<compile_context>
chip_gen: v7x
topology: tpu7x:2x2x1
jax: 0.10.0
libtpu: 0.0.40
codegen_flags: <defaults>
</compile_context>

<pallas_src>
import functools
import numpy as np

import jax
import jax.numpy as jnp
from jax import lax
from jax.experimental import pallas as pl
from jax.experimental.pallas import tpu as pltpu

HID = 32       # hidden channels of the surrogate UNet
TEMB = 32      # sinusoidal time-embedding width
T_STEPS = 8    # diffusion timesteps (small demo schedule)
CH = 4         # voxel channels (1 density + 3 features)

N_GROUPS = 3   # conv2 tap groups (27 = 3 * 9)
TPG = 9        # taps per group -> stacked contraction depth K2 = TPG * HID = 288
K2 = TPG * HID

_OFFSETS = [(oh, ow, od) for oh in (-1, 0, 1) for ow in (-1, 0, 1) for od in (-1, 0, 1)]


# ----------------------------------------------------------------------------
# Fused Pallas kernel: the FULL reverse-diffusion loop for one sample.
# Layout is channel-major (C, M), M = H*W*D lanes (M % 128 == 0).
# ----------------------------------------------------------------------------
def _fused_sampling_kernel(coefs_ref, x_ref, noise_ref, masks_ref, b1e_ref,
                           w1_ref, w2_ref, b2_ref, w3_ref, b3_ref,
                           o_ref, xs_ref, stack_ref, *, H, W, D, T):
    M = H * W * D
    WD = W * D

    # persistent f32 diffusion state for this sample (lives in VMEM across all T steps)
    xs_ref[...] = x_ref[0]

    def tap_slab(act, k):
        """act: (cin, M) f32 -> rolled + zero-padding-masked neighbour slab (f32)."""
        oh, ow, od = _OFFSETS[k]
        off = oh * WD + ow * D + od
        if off == 0:
            return act
        rolled = jnp.roll(act, -off, axis=1)      # static lane rotation
        return rolled * masks_ref[k]              # (1, M) f32 boundary mask

    def step(t, carry):
        x = xs_ref[...]                           # (CH, M) f32

        # ---- conv1 3x3x3 (CH -> HID) + (bias + time-embedding) + SiLU ----------
        # CH = 4 input channels: per-tap K=4 dots (4-row bf16 slabs cannot be
        # stored 16-sublane-aligned in the tap-stack); conv1 is ~1/8 of conv2.
        h1 = None
        for k in range(27):
            slab = tap_slab(x, k).astype(jnp.bfloat16)
            part = jnp.dot(w1_ref[k], slab, preferred_element_type=jnp.float32)
            h1 = part if h1 is None else h1 + part
        h1 = h1 + b1e_ref[t]
        h1 = h1 * jax.nn.sigmoid(h1)

        # ---- conv2 3x3x3 (HID -> HID): 3 stacked-K (=288) bf16 MXU matmuls + SiLU
        h2 = None
        for g in range(N_GROUPS):
            for j in range(TPG):
                k = g * TPG + j
                stack_ref[pl.ds(j * HID, HID), :] = tap_slab(h1, k).astype(jnp.bfloat16)
            part = jnp.dot(w2_ref[g], stack_ref[...], preferred_element_type=jnp.float32)
            h2 = part if h2 is None else h2 + part
        h2 = h2 + b2_ref[...]
        h2 = h2 * jax.nn.sigmoid(h2)

        # ---- conv3 1x1x1 (HID -> CH): predicted noise eps ------------------------
        eps = jnp.dot(w3_ref[...], h2.astype(jnp.bfloat16),
                      preferred_element_type=jnp.float32) + b3_ref[...]

        # ---- fused clipped DDPM posterior update ---------------------------------
        c_recip = coefs_ref[t, 0]
        c_recipm1 = coefs_ref[t, 1]
        post_c1 = coefs_ref[t, 2]
        post_c2 = coefs_ref[t, 3]
        sigma = coefs_ref[t, 4]
        x0 = jnp.clip(c_recip * x - c_recipm1 * eps, -1.0, 1.0)
        xs_ref[...] = post_c1 * x0 + post_c2 * x + sigma * noise_ref[t, 0]
        return carry

    lax.fori_loop(0, T, step, 0)
    o_ref[0] = xs_ref[...]


def fused_ddpm_sampler(x, coefs, noise, masks, b1e, w1t, w2s, b2c, w3t, b3c, *, H, W, D):
    """x: (N, CH, M) f32  ->  x_0 samples (N, CH, M) f32 (whole T-step loop fused)."""
    N, C, M = x.shape
    T = coefs.shape[0]
    kernel = functools.partial(_fused_sampling_kernel, H=H, W=W, D=D, T=T)
    return pl.pallas_call(
        kernel,
        out_shape=jax.ShapeDtypeStruct((N, C, M), jnp.float32),
        grid=(N,),
        in_specs=[
            pl.BlockSpec(memory_space=pltpu.MemorySpace.SMEM),            # coefs (T, 5)
            pl.BlockSpec((1, C, M), lambda n: (n, 0, 0)),                 # x_T per sample
            pl.BlockSpec((T, 1, C, M), lambda n: (0, n, 0, 0)),           # posterior noise
            pl.BlockSpec((27, 1, M), lambda n: (0, 0, 0)),                # boundary masks
            pl.BlockSpec((T, HID, 1), lambda n: (0, 0, 0)),               # time-emb bias
            pl.BlockSpec((27, HID, C), lambda n: (0, 0, 0)),              # conv1 weights (bf16)
            pl.BlockSpec((N_GROUPS, HID, K2), lambda n: (0, 0, 0)),       # conv2 stacked (bf16)
            pl.BlockSpec((HID, 1), lambda n: (0, 0)),                     # conv2 bias
            pl.BlockSpec((C, HID), lambda n: (0, 0)),                     # conv3 weights (bf16)
            pl.BlockSpec((C, 1), lambda n: (0, 0)),                       # conv3 bias
        ],
        out_specs=pl.BlockSpec((1, C, M), lambda n: (n, 0, 0)),
        scratch_shapes=[
            pltpu.VMEM((C, M), jnp.float32),       # persistent diffusion state
            pltpu.VMEM((K2, M), jnp.bfloat16),     # conv2 tap-stack (K = 288 rows)
        ],
        input_output_aliases={1: 0},               # update the state buffer in place
        compiler_params=pltpu.CompilerParams(
            dimension_semantics=("parallel",),     # shard samples across TensorCores
            vmem_limit_bytes=48 * 1024 * 1024),
    )(coefs, x, noise, masks, b1e, w1t, w2s, b2c, w3t, b3c)


# ----------------------------------------------------------------------------
# Host-side helpers
# ----------------------------------------------------------------------------
def _boundary_masks(H, W, D):
    """Zero-padding validity masks for the 27 conv taps, (27, 1, M) f32."""
    M = H * W * D
    r = np.arange(M)
    hh, ww, dd = r // (W * D), (r // D) % W, r % D
    masks = np.zeros((27, 1, M), np.float32)
    for k, (oh, ow, od) in enumerate(_OFFSETS):
        valid = ((hh + oh >= 0) & (hh + oh < H) & (ww + ow >= 0) & (ww + ow < W) &
                 (dd + od >= 0) & (dd + od < D))
        masks[k, 0] = valid.astype(np.float32)
    return jnp.asarray(masks)


def _stack_conv2_weights(w2t):
    """(27, HID, HID) per-tap bf16 -> (N_GROUPS, HID, TPG*HID) stacked-K operands."""
    w = w2t.reshape(N_GROUPS, TPG, HID, HID)
    w = jnp.transpose(w, (0, 2, 1, 3))
    return w.reshape(N_GROUPS, HID, K2)


def _sinusoidal_embedding(t_vec, dim):
    half = dim // 2
    freqs = jnp.exp(-np.log(10000.0) * jnp.arange(half, dtype=jnp.float32) / half)
    args = t_vec[:, None].astype(jnp.float32) * freqs[None, :]
    return jnp.concatenate([jnp.cos(args), jnp.sin(args)], axis=-1)


def init_params(key):
    ks = jax.random.split(key, 6)
    s = 0.05
    return {
        # conv weights stored per-tap, transposed (tap, Cout, Cin), bf16 MXU operands
        "w1t": (s * jax.random.normal(ks[0], (27, HID, CH), jnp.float32)).astype(jnp.bfloat16),
        "b1": jnp.zeros((HID,), jnp.float32),
        "w2t": (s * jax.random.normal(ks[1], (27, HID, HID), jnp.float32)).astype(jnp.bfloat16),
        "b2c": jnp.zeros((HID, 1), jnp.float32),
        "w3t": (s * jax.random.normal(ks[2], (CH, HID), jnp.float32)).astype(jnp.bfloat16),
        "b3c": jnp.zeros((CH, 1), jnp.float32),
        # tiny time-embedding MLP (f32, evaluated once per schedule in plain JAX)
        "t_w1": s * jax.random.normal(ks[3], (TEMB, HID), jnp.float32),
        "t_b1": jnp.zeros((HID,), jnp.float32),
        "t_w2": s * jax.random.normal(ks[4], (HID, HID), jnp.float32),
        "t_b2": jnp.zeros((HID,), jnp.float32),
    }


def time_embeddings(params, t_values):
    """(T,) timesteps -> per-step effective conv1 bias (T, HID, 1) (no per-sample copy)."""
    temb = _sinusoidal_embedding(t_values, TEMB)
    temb = jax.nn.silu(temb @ params["t_w1"] + params["t_b1"])
    temb = temb @ params["t_w2"] + params["t_b2"]               # (T, HID)
    b1e = params["b1"][None, :] + temb                          # (T, HID)
    return b1e[..., None].astype(jnp.float32)                   # (T, HID, 1)


def _prepare_sampling(params, shape, num_samples, key, T):
    """Diffusion schedule coefficients, time-emb biases, x_T and per-step noise."""
    H, W, D = shape
    M = H * W * D

    betas = np.linspace(1e-4, 2e-2, T, dtype=np.float64)
    alphas = 1.0 - betas
    abar = np.cumprod(alphas)
    abar_prev = np.append(1.0, abar[:-1])
    post_var = betas * (1.0 - abar_prev) / (1.0 - abar)
    post_c1 = betas * np.sqrt(abar_prev) / (1.0 - abar)
    post_c2 = (1.0 - abar_prev) * np.sqrt(alphas) / (1.0 - abar)

    ts = np.arange(T - 1, -1, -1)                    # sampling order t = T-1 ... 0
    coefs = np.zeros((T, 5), np.float32)
    coefs[:, 0] = np.sqrt(1.0 / abar[ts])
    coefs[:, 1] = np.sqrt(1.0 / abar[ts] - 1.0)
    coefs[:, 2] = post_c1[ts]
    coefs[:, 3] = post_c2[ts]
    coefs[:, 4] = np.where(ts > 0, np.sqrt(post_var[ts]), 0.0)
    coefs = jnp.asarray(coefs)

    b1e = time_embeddings(params, jnp.asarray(ts, jnp.float32))   # (T, HID, 1)

    k0, kn = jax.random.split(key)
    x = jax.random.normal(k0, (num_samples, CH, M), jnp.float32)
    # Posterior noise for every step, drawn once with jax.random (the in-kernel TPU
    # PRNG has no interpret/CPU lowering).  The last step (t = 0) has sigma = 0.
    noise = jax.random.normal(kn, (T, num_samples, CH, M), jnp.float32)
    return x, coefs, noise, b1e


# ----------------------------------------------------------------------------
# Gaussian diffusion p_sample_loop (linear betas, clip_denoised=True)
# ----------------------------------------------------------------------------
def p_sample_loop(params, shape, num_samples, key, T=T_STEPS):
    H, W, D = shape
    M = H * W * D
    assert M % 128 == 0, "H*W*D must be a multiple of 128 for the lane-dense layout"
    # TODO(synk): volumes too large to keep one sample + tap-stack scratch resident in
    #             VMEM (esp. v7x, 64 MiB) need an extra spatial lane-block grid axis
    #             with halo handling in the fused kernel.

    x, coefs, noise, b1e = _prepare_sampling(params, shape, num_samples, key, T)
    masks = _boundary_masks(H, W, D)
    w2s = _stack_conv2_weights(params["w2t"])
    out = fused_ddpm_sampler(x, coefs, noise, masks, b1e,
                             params["w1t"], w2s, params["b2c"],
                             params["w3t"], params["b3c"], H=H, W=W, D=D)
    # (N, CH, M) is already channel-major -> just unflatten, no transpose needed
    return out.reshape(num_samples, CH, H, W, D)


# ----------------------------------------------------------------------------
# Pure-JAX f32 reference of the full fused sampling loop (same schedule / noise)
# ----------------------------------------------------------------------------
def p_sample_loop_ref(params, x, coefs, noise, b1e, shape):
    H, W, D = shape
    masks = _boundary_masks(H, W, D)                 # (27, 1, M)
    w1 = params["w1t"].astype(jnp.float32)
    w2 = params["w2t"].astype(jnp.float32)
    w3 = params["w3t"].astype(jnp.float32)

    def conv(act, wt):                               # act: (N, cin, M), wt: (27, cout, cin)
        out = 0.0
        for k, (oh, ow, od) in enumerate(_OFFSETS):
            off = oh * W * D + ow * D + od
            sh = jnp.roll(act, -off, axis=2) * masks[k][None]
            out = out + jnp.einsum('oc,ncm->nom', wt[k], sh)
        return out

    T = coefs.shape[0]
    for i in range(T):
        h1 = conv(x, w1) + b1e[i][None]
        h1 = h1 * jax.nn.sigmoid(h1)
        h2 = conv(h1, w2) + params["b2c"][None]
        h2 = h2 * jax.nn.sigmoid(h2)
        eps = jnp.einsum('oc,ncm->nom', w3, h2) + params["b3c"][None]
        x0 = jnp.clip(coefs[i, 0] * x - coefs[i, 1] * eps, -1.0, 1.0)
        x = coefs[i, 2] * x0 + coefs[i, 3] * x + coefs[i, 4] * noise[i]
    return x


# ----------------------------------------------------------------------------
# Model wrapper mirroring Thre3inFusionModel.forward
# ----------------------------------------------------------------------------
class Thre3inFusionModelPallas:
    def __init__(self, params, num_timesteps=T_STEPS):
        self.params = params
        self.num_timesteps = num_timesteps
        self.density_scale_range = (1.0, 1.0)
        self.features_scale_range = (1.0, 1.0)
        self._sample = jax.jit(p_sample_loop, static_argnums=(1, 2, 4))

    def sample(self, shape, num_samples=1, key=None):
        if key is None:
            key = jax.random.PRNGKey(0)
        return self._sample(self.params, tuple(shape), num_samples, key,
                            self.num_timesteps)

    def forward(self, shape, num_samples=1, key=None):
        return self.sample(shape, num_samples, key=key)


if __name__ == "__main__":
    params = init_params(jax.random.PRNGKey(0))

    grid_shape = (8, 8, 8)     # small voxel grid; 4 channels = 1 density + 3 features
    num_samples = 2            # keeps the "parallel" sample axis >= 2 (v7x dual-TC)
    key = jax.random.PRNGKey(0)

    # --- full reverse-diffusion sampling (the module's forward), one fused kernel ---
    model = Thre3inFusionModelPallas(params)
    out = model.forward(grid_shape, num_samples=num_samples, key=key)
    out = jax.block_until_ready(out)

    assert out.shape == (num_samples, CH) + grid_shape, out.shape
    assert out.dtype == jnp.float32
    assert bool(jnp.all(jnp.isfinite(out)))

    # --- numerical self-check vs a pure-JAX f32 reference using identical inputs ---
    x0, coefs, noise, b1e = _prepare_sampling(params, grid_shape, num_samples, key,
                                              T_STEPS)
    want = p_sample_loop_ref(params, x0, coefs, noise, b1e, grid_shape)
    err = float(jnp.max(jnp.abs(out.reshape(num_samples, CH, -1) - want)))
    assert err < 5e-2, f"fused sampler mismatch vs reference: max abs err {err}"

    print("KERNEL_OK")
</pallas_src>

<mosaic_0001>
module attributes {stable_mosaic.version = 11 : i64} {
  func.func @_fused_sampling_kernel(%arg0: i32, %arg1: memref<8x5xf32, #tpu.memory_space<smem>>, %arg2: memref<1x4x512xf32, #tpu.memory_space<vmem>>, %arg3: memref<8x1x4x512xf32, #tpu.memory_space<vmem>>, %arg4: memref<27x1x512xf32, #tpu.memory_space<vmem>>, %arg5: memref<8x32x1xf32, #tpu.memory_space<vmem>>, %arg6: memref<27x32x4xbf16, #tpu.memory_space<vmem>>, %arg7: memref<3x32x288xbf16, #tpu.memory_space<vmem>>, %arg8: memref<32x1xf32, #tpu.memory_space<vmem>>, %arg9: memref<4x32xbf16, #tpu.memory_space<vmem>>, %arg10: memref<4x1xf32, #tpu.memory_space<vmem>>, %arg11: memref<1x4x512xf32, #tpu.memory_space<vmem>>, %arg12: memref<4x512xf32, #tpu.memory_space<vmem>>, %arg13: memref<288x512xbf16, #tpu.memory_space<vmem>>) attributes {dimension_semantics = [#tpu.dimension_semantics<parallel>], iteration_bounds = array<i64: 2>, scalar_prefetch = 0 : i64, scratch_operands = 2 : i64, tpu.core_type = #tpu.core_type<tc>, window_params = [{transform_indices = @transform_0, window_bounds = array<i64: 8, 5>}, {transform_indices = @transform_1, window_bounds = array<i64: 1, 4, 512>}, {transform_indices = @transform_2, window_bounds = array<i64: 8, 1, 4, 512>}, {pipeline_mode = #tpu.pipeline_mode<synchronous>, transform_indices = @transform_3, window_bounds = array<i64: 27, 1, 512>}, {pipeline_mode = #tpu.pipeline_mode<synchronous>, transform_indices = @transform_4, window_bounds = array<i64: 8, 32, 1>}, {pipeline_mode = #tpu.pipeline_mode<synchronous>, transform_indices = @transform_5, window_bounds = array<i64: 27, 32, 4>}, {pipeline_mode = #tpu.pipeline_mode<synchronous>, transform_indices = @transform_6, window_bounds = array<i64: 3, 32, 288>}, {pipeline_mode = #tpu.pipeline_mode<synchronous>, transform_indices = @transform_7, window_bounds = array<i64: 32, 1>}, {pipeline_mode = #tpu.pipeline_mode<synchronous>, transform_indices = @transform_8, window_bounds = array<i64: 4, 32>}, {pipeline_mode = #tpu.pipeline_mode<synchronous>, transform_indices = @transform_9, window_bounds = array<i64: 4, 1>}, {transform_indices = @transform_10, window_bounds = array<i64: 1, 4, 512>}]} {
    %c0 = arith.constant 0 : index
    %c0_0 = arith.constant 0 : index
    %c0_1 = arith.constant 0 : index
    %0 = vector.load %arg2[%c0, %c0_0, %c0_1] : memref<1x4x512xf32, #tpu.memory_space<vmem>>, vector<1x4x512xf32>
    %1 = vector.shape_cast %0 : vector<1x4x512xf32> to vector<4x512xf32>
    %c0_2 = arith.constant 0 : index
    %c0_3 = arith.constant 0 : index
    %2 = vector.load %arg12[%c0_2, %c0_3] : memref<4x512xf32, #tpu.memory_space<vmem>>, vector<4x512xf32>
    tpu.vector_store %arg12[%c0_2, %c0_3], %1 {strides = array<i32>} : memref<4x512xf32, #tpu.memory_space<vmem>>, vector<4x512xf32>,
    %c0_i32 = arith.constant 0 : i32
    %c8_i32 = arith.constant 8 : i32
    %3 = arith.addi %c0_i32, %c8_i32 : i32
    %c1_i32 = arith.constant 1 : i32
    scf.for %arg14 = %c0_i32 to %3 step %c1_i32  : i32 {
      %c0_10 = arith.constant 0 : index
      %c0_11 = arith.constant 0 : index
      %8 = vector.load %arg12[%c0_10, %c0_11] : memref<4x512xf32, #tpu.memory_space<vmem>>, vector<4x512xf32>
      %9 = vector.extract_strided_slice %8 {offsets = [0, 439], sizes = [4, 73], strides = [1, 1]} : vector<4x512xf32> to vector<4x73xf32>
      %10 = vector.extract_strided_slice %8 {offsets = [0, 0], sizes = [4, 439], strides = [1, 1]} : vector<4x512xf32> to vector<4x439xf32>
      %11 = tpu.concatenate %9, %10 in 1 : vector<4x73xf32>, vector<4x439xf32> -> vector<4x512xf32>
      %c0_12 = arith.constant 0 : index
      %c0_13 = arith.constant 0 : index
      %c0_14 = arith.constant 0 : index
      %12 = vector.load %arg4[%c0_12, %c0_13, %c0_14] : memref<27x1x512xf32, #tpu.memory_space<vmem>>, vector<1x1x512xf32>
      %13 = vector.shape_cast %12 : vector<1x1x512xf32> to vector<1x512xf32>
      %14 = vector.broadcast %13 : vector<1x512xf32> to vector<4x512xf32>
      %15 = arith.mulf %11, %14 : vector<4x512xf32>
      %16 = arith.truncf %15 : vector<4x512xf32> to vector<4x512xbf16>
      %c0_15 = arith.constant 0 : index
      %c0_16 = arith.constant 0 : index
      %c0_17 = arith.constant 0 : index
      %17 = vector.load %arg6[%c0_15, %c0_16, %c0_17] : memref<27x32x4xbf16, #tpu.memory_space<vmem>>, vector<1x32x4xbf16>
      %18 = vector.shape_cast %17 : vector<1x32x4xbf16> to vector<32x4xbf16>
      %cst = arith.constant dense<0.000000e+00> : vector<32x512xf32>
      %19 = tpu.matmul %18, %16, %cst {dimension_numbers = #tpu.dot_dimension_numbers<[1], [0], [0], [1], [0, 0, 1, 1], [], []>} : vector<32x4xbf16>, vector<4x512xbf16>, vector<32x512xf32> -> vector<32x512xf32>
      %20 = vector.extract_strided_slice %8 {offsets = [0, 440], sizes = [4, 72], strides = [1, 1]} : vector<4x512xf32> to vector<4x72xf32>
      %21 = vector.extract_strided_slice %8 {offsets = [0, 0], sizes = [4, 440], strides = [1, 1]} : vector<4x512xf32> to vector<4x440xf32>
      %22 = tpu.concatenate %20, %21 in 1 : vector<4x72xf32>, vector<4x440xf32> -> vector<4x512xf32>
      %c1 = arith.constant 1 : index
      %c0_18 = arith.constant 0 : index
      %c0_19 = arith.constant 0 : index
      %23 = vector.load %arg4[%c1, %c0_18, %c0_19] : memref<27x1x512xf32, #tpu.memory_space<vmem>>, vector<1x1x512xf32>
      %24 = vector.shape_cast %23 : vector<1x1x512xf32> to vector<1x512xf32>
      %25 = vector.broadcast %24 : vector<1x512xf32> to vector<4x512xf32>
      %26 = arith.mulf %22, %25 : vector<4x512xf32>
      %27 = arith.truncf %26 : vector<4x512xf32> to vector<4x512xbf16>
      %c1_20 = arith.constant 1 : index
      %c0_21 = arith.constant 0 : index
      %c0_22 = arith.constant 0 : index
      %28 = vector.load %arg6[%c1_20, %c0_21, %c0_22] : memref<27x32x4xbf16, #tpu.memory_space<vmem>>, vector<1x32x4xbf16>
      %29 = vector.shape_cast %28 : vector<1x32x4xbf16> to vector<32x4xbf16>
      %cst_23 = arith.constant dense<0.000000e+00> : vector<32x512xf32>
      %30 = tpu.matmul %29, %27, %cst_23 {dimension_numbers = #tpu.dot_dimension_numbers<[1], [0], [0], [1], [0, 0, 1, 1], [], []>} : vector<32x4xbf16>, vector<4x512xbf16>, vector<32x512xf32> -> vector<32x512xf32>
      %31 = arith.addf %19, %30 : vector<32x512xf32>
      %32 = vector.extract_strided_slice %8 {offsets = [0, 441], sizes = [4, 71], strides = [1, 1]} : vector<4x512xf32> to vector<4x71xf32>
      %33 = vector.extract_strided_slice %8 {offsets = [0, 0], sizes = [4, 441], strides = [1, 1]} : vector<4x512xf32> to vector<4x441xf32>
      %34 = tpu.concatenate %32, %33 in 1 : vector<4x71xf32>, vector<4x441xf32> -> vector<4x512xf32>
      %c2 = arith.constant 2 : index
      %c0_24 = arith.constant 0 : index
      %c0_25 = arith.constant 0 : index
      %35 = vector.load %arg4[%c2, %c0_24, %c0_25] : memref<27x1x512xf32, #tpu.memory_space<vmem>>, vector<1x1x512xf32>
      %36 = vector.shape_cast %35 : vector<1x1x512xf32> to vector<1x512xf32>
      %37 = vector.broadcast %36 : vector<1x512xf32> to vector<4x512xf32>
      %38 = arith.mulf %34, %37 : vector<4x512xf32>
      %39 = arith.truncf %38 : vector<4x512xf32> to vector<4x512xbf16>
      %c2_26 = arith.constant 2 : index
      %c0_27 = arith.constant 0 : index
      %c0_28 = arith.constant 0 : index
      %40 = vector.load %arg6[%c2_26, %c0_27, %c0_28] : memref<27x32x4xbf16, #tpu.memory_space<vmem>>, vector<1x32x4xbf16>
      %41 = vector.shape_cast %40 : vector<1x32x4xbf16> to vector<32x4xbf16>
      %cst_29 = arith.constant dense<0.000000e+00> : vector<32x512xf32>
      %42 = tpu.matmul %41, %39, %cst_29 {dimension_numbers = #tpu.dot_dimension_numbers<[1], [0], [0], [1], [0, 0, 1, 1], [], []>} : vector<32x4xbf16>, vector<4x512xbf16>, vector<32x512xf32> -> vector<32x512xf32>
      %43 = arith.addf %31, %42 : vector<32x512xf32>
      %44 = vector.extract_strided_slice %8 {offsets = [0, 447], sizes = [4, 65], strides = [1, 1]} : vector<4x512xf32> to vector<4x65xf32>
      %45 = vector.extract_strided_slice %8 {offsets = [0, 0], sizes = [4, 447], strides = [1, 1]} : vector<4x512xf32> to vector<4x447xf32>
      %46 = tpu.concatenate %44, %45 in 1 : vector<4x65xf32>, vector<4x447xf32> -> vector<4x512xf32>
      %c3 = arith.constant 3 : index
      %c0_30 = arith.constant 0 : index
      %c0_31 = arith.constant 0 : index
      %47 = vector.load %arg4[%c3, %c0_30, %c0_31] : memref<27x1x512xf32, #tpu.memory_space<vmem>>, vector<1x1x512xf32>
      %48 = vector.shape_cast %47 : vector<1x1x512xf32> to vector<1x512xf32>
      %49 = vector.broadcast %48 : vector<1x512xf32> to vector<4x512xf32>
      %50 = arith.mulf %46, %49 : vector<4x512xf32>
      %51 = arith.truncf %50 : vector<4x512xf32> to vector<4x512xbf16>
      %c3_32 = arith.constant 3 : index
      %c0_33 = arith.constant 0 : index
      %c0_34 = arith.constant 0 : index
      %52 = vector.load %arg6[%c3_32, %c0_33, %c0_34] : memref<27x32x4xbf16, #tpu.memory_space<vmem>>, vector<1x32x4xbf16>
      %53 = vector.shape_cast %52 : vector<1x32x4xbf16> to vector<32x4xbf16>
      %cst_35 = arith.constant dense<0.000000e+00> : vector<32x512xf32>
      %54 = tpu.matmul %53, %51, %cst_35 {dimension_numbers = #tpu.dot_dimension_numbers<[1], [0], [0], [1], [0, 0, 1, 1], [], []>} : vector<32x4xbf16>, vector<4x512xbf16>, vector<32x512xf32> -> vector<32x512xf32>
      %55 = arith.addf %43, %54 : vector<32x512xf32>
      %56 = vector.extract_strided_slice %8 {offsets = [0, 448], sizes = [4, 64], strides = [1, 1]} : vector<4x512xf32> to vector<4x64xf32>
      %57 = vector.extract_strided_slice %8 {offsets = [0, 0], sizes = [4, 448], strides = [1, 1]} : vector<4x512xf32> to vector<4x448xf32>
      %58 = tpu.concatenate %56, %57 in 1 : vector<4x64xf32>, vector<4x448xf32> -> vector<4x512xf32>
      %c4 = arith.constant 4 : index
      %c0_36 = arith.constant 0 : index
      %c0_37 = arith.constant 0 : index
      %59 = vector.load %arg4[%c4, %c0_36, %c0_37] : memref<27x1x512xf32, #tpu.memory_space<vmem>>, vector<1x1x512xf32>
      %60 = vector.shape_cast %59 : vector<1x1x512xf32> to vector<1x512xf32>
      %61 = vector.broadcast %60 : vector<1x512xf32> to vector<4x512xf32>
      %62 = arith.mulf %58, %61 : vector<4x512xf32>
      %63 = arith.truncf %62 : vector<4x512xf32> to vector<4x512xbf16>
      %c4_38 = arith.constant 4 : index
      %c0_39 = arith.constant 0 : index
      %c0_40 = arith.constant 0 : index
      %64 = vector.load %arg6[%c4_38, %c0_39, %c0_40] : memref<27x32x4xbf16, #tpu.memory_space<vmem>>, vector<1x32x4xbf16>
      %65 = vector.shape_cast %64 : vector<1x32x4xbf16> to vector<32x4xbf16>
      %cst_41 = arith.constant dense<0.000000e+00> : vector<32x512xf32>
      %66 = tpu.matmul %65, %63, %cst_41 {dimension_numbers = #tpu.dot_dimension_numbers<[1], [0], [0], [1], [0, 0, 1, 1], [], []>} : vector<32x4xbf16>, vector<4x512xbf16>, vector<32x512xf32> -> vector<32x512xf32>
      %67 = arith.addf %55, %66 : vector<32x512xf32>
      %68 = vector.extract_strided_slice %8 {offsets = [0, 449], sizes = [4, 63], strides = [1, 1]} : vector<4x512xf32> to vector<4x63xf32>
      %69 = vector.extract_strided_slice %8 {offsets = [0, 0], sizes = [4, 449], strides = [1, 1]} : vector<4x512xf32> to vector<4x449xf32>
      %70 = tpu.concatenate %68, %69 in 1 : vector<4x63xf32>, vector<4x449xf32> -> vector<4x512xf32>
      %c5 = arith.constant 5 : index
      %c0_42 = arith.constant 0 : index
      %c0_43 = arith.constant 0 : index
      %71 = vector.load %arg4[%c5, %c0_42, %c0_43] : memref<27x1x512xf32, #tpu.memory_space<vmem>>, vector<1x1x512xf32>
      %72 = vector.shape_cast %71 : vector<1x1x512xf32> to vector<1x512xf32>
      %73 = vector.broadcast %72 : vector<1x512xf32> to vector<4x512xf32>
      %74 = arith.mulf %70, %73 : vector<4x512xf32>
      %75 = arith.truncf %74 : vector<4x512xf32> to vector<4x512xbf16>
      %c5_44 = arith.constant 5 : index
      %c0_45 = arith.constant 0 : index
      %c0_46 = arith.constant 0 : index
      %76 = vector.load %arg6[%c5_44, %c0_45, %c0_46] : memref<27x32x4xbf16, #tpu.memory_space<vmem>>, vector<1x32x4xbf16>
      %77 = vector.shape_cast %76 : vector<1x32x4xbf16> to vector<32x4xbf16>
      %cst_47 = arith.constant dense<0.000000e+00> : vector<32x512xf32>
      %78 = tpu.matmul %77, %75, %cst_47 {dimension_numbers = #tpu.dot_dimension_numbers<[1], [0], [0], [1], [0, 0, 1, 1], [], []>} : vector<32x4xbf16>, vector<4x512xbf16>, vector<32x512xf32> -> vector<32x512xf32>
      %79 = arith.addf %67, %78 : vector<32x512xf32>
      %80 = vector.extract_strided_slice %8 {offsets = [0, 455], sizes = [4, 57], strides = [1, 1]} : vector<4x512xf32> to vector<4x57xf32>
      %81 = vector.extract_strided_slice %8 {offsets = [0, 0], sizes = [4, 455], strides = [1, 1]} : vector<4x512xf32> to vector<4x455xf32>
      %82 = tpu.concatenate %80, %81 in 1 : vector<4x57xf32>, vector<4x455xf32> -> vector<4x512xf32>
      %c6 = arith.constant 6 : index
      %c0_48 = arith.constant 0 : index
      %c0_49 = arith.constant 0 : index
      %83 = vector.load %arg4[%c6, %c0_48, %c0_49] : memref<27x1x512xf32, #tpu.memory_space<vmem>>, vector<1x1x512xf32>
      %84 = vector.shape_cast %83 : vector<1x1x512xf32> to vector<1x512xf32>
      %85 = vector.broadcast %84 : vector<1x512xf32> to vector<4x512xf32>
      %86 = arith.mulf %82, %85 : vector<4x512xf32>
      %87 = arith.truncf %86 : vector<4x512xf32> to vector<4x512xbf16>
      %c6_50 = arith.constant 6 : index
      %c0_51 = arith.constant 0 : index
      %c0_52 = arith.constant 0 : index
      %88 = vector.load %arg6[%c6_50, %c0_51, %c0_52] : memref<27x32x4xbf16, #tpu.memory_space<vmem>>, vector<1x32x4xbf16>
      %89 = vector.shape_cast %88 : vector<1x32x4xbf16> to vector<32x4xbf16>
      %cst_53 = arith.constant dense<0.000000e+00> : vector<32x512xf32>
      %90 = tpu.matmul %89, %87, %cst_53 {dimension_numbers = #tpu.dot_dimension_numbers<[1], [0], [0], [1], [0, 0, 1, 1], [], []>} : vector<32x4xbf16>, vector<4x512xbf16>, vector<32x512xf32> -> vector<32x512xf32>
      %91 = arith.addf %79, %90 : vector<32x512xf32>
      %92 = vector.extract_strided_slice %8 {offsets = [0, 456], sizes = [4, 56], strides = [1, 1]} : vector<4x512xf32> to vector<4x56xf32>
      %93 = vector.extract_strided_slice %8 {offsets = [0, 0], sizes = [4, 456], strides = [1, 1]} : vector<4x512xf32> to vector<4x456xf32>
      %94 = tpu.concatenate %92, %93 in 1 : vector<4x56xf32>, vector<4x456xf32> -> vector<4x512xf32>
      %c7 = arith.constant 7 : index
      %c0_54 = arith.constant 0 : index
      %c0_55 = arith.constant 0 : index
      %95 = vector.load %arg4[%c7, %c0_54, %c0_55] : memref<27x1x512xf32, #tpu.memory_space<vmem>>, vector<1x1x512xf32>
      %96 = vector.shape_cast %95 : vector<1x1x512xf32> to vector<1x512xf32>
      %97 = vector.broadcast %96 : vector<1x512xf32> to vector<4x512xf32>
      %98 = arith.mulf %94, %97 : vector<4x512xf32>
      %99 = arith.truncf %98 : vector<4x512xf32> to vector<4x512xbf16>
      %c7_56 = arith.constant 7 : index
      %c0_57 = arith.constant 0 : index
      %c0_58 = arith.constant 0 : index
      %100 = vector.load %arg6[%c7_56, %c0_57, %c0_58] : memref<27x32x4xbf16, #tpu.memory_space<vmem>>, vector<1x32x4xbf16>
      %101 = vector.shape_cast %100 : vector<1x32x4xbf16> to vector<32x4xbf16>
      %cst_59 = arith.constant dense<0.000000e+00> : vector<32x512xf32>
      %102 = tpu.matmul %101, %99, %cst_59 {dimension_numbers = #tpu.dot_dimension_numbers<[1], [0], [0], [1], [0, 0, 1, 1], [], []>} : vector<32x4xbf16>, vector<4x512xbf16>, vector<32x512xf32> -> vector<32x512xf32>
      %103 = arith.addf %91, %102 : vector<32x512xf32>
      %104 = vector.extract_strided_slice %8 {offsets = [0, 457], sizes = [4, 55], strides = [1, 1]} : vector<4x512xf32> to vector<4x55xf32>
      %105 = vector.extract_strided_slice %8 {offsets = [0, 0], sizes = [4, 457], strides = [1, 1]} : vector<4x512xf32> to vector<4x457xf32>
      %106 = tpu.concatenate %104, %105 in 1 : vector<4x55xf32>, vector<4x457xf32> -> vector<4x512xf32>
      %c8 = arith.constant 8 : index
      %c0_60 = arith.constant 0 : index
      %c0_61 = arith.constant 0 : index
      %107 = vector.load %arg4[%c8, %c0_60, %c0_61] : memref<27x1x512xf32, #tpu.memory_space<vmem>>, vector<1x1x512xf32>
      %108 = vector.shape_cast %107 : vector<1x1x512xf32> to vector<1x512xf32>
      %109 = vector.broadcast %108 : vector<1x512xf32> to vector<4x512xf32>
      %110 = arith.mulf %106, %109 : vector<4x512xf32>
      %111 = arith.truncf %110 : vector<4x512xf32> to vector<4x512xbf16>
      %c8_62 = arith.constant 8 : index
      %c0_63 = arith.constant 0 : index
      %c0_64 = arith.constant 0 : index
      %112 = vector.load %arg6[%c8_62, %c0_63, %c0_64] : memref<27x32x4xbf16, #tpu.memory_space<vmem>>, vector<1x32x4xbf16>
      %113 = vector.shape_cast %112 : vector<1x32x4xbf16> to vector<32x4xbf16>
      %cst_65 = arith.constant dense<0.000000e+00> : vector<32x512xf32>
      %114 = tpu.matmul %113, %111, %cst_65 {dimension_numbers = #tpu.dot_dimension_numbers<[1], [0], [0], [1], [0, 0, 1, 1], [], []>} : vector<32x4xbf16>, vector<4x512xbf16>, vector<32x512xf32> -> vector<32x512xf32>
      %115 = arith.addf %103, %114 : vector<32x512xf32>
      %116 = vector.extract_strided_slice %8 {offsets = [0, 503], sizes = [4, 9], strides = [1, 1]} : vector<4x512xf32> to vector<4x9xf32>
      %117 = vector.extract_strided_slice %8 {offsets = [0, 0], sizes = [4, 503], strides = [1, 1]} : vector<4x512xf32> to vector<4x503xf32>
      %118 = tpu.concatenate %116, %117 in 1 : vector<4x9xf32>, vector<4x503xf32> -> vector<4x512xf32>
      %c9 = arith.constant 9 : index
      %c0_66 = arith.constant 0 : index
      %c0_67 = arith.constant 0 : index
      %119 = vector.load %arg4[%c9, %c0_66, %c0_67] : memref<27x1x512xf32, #tpu.memory_space<vmem>>, vector<1x1x512xf32>
      %120 = vector.shape_cast %119 : vector<1x1x512xf32> to vector<1x512xf32>
      %121 = vector.broadcast %120 : vector<1x512xf32> to vector<4x512xf32>
      %122 = arith.mulf %118, %121 : vector<4x512xf32>
      %123 = arith.truncf %122 : vector<4x512xf32> to vector<4x512xbf16>
      %c9_68 = arith.constant 9 : index
      %c0_69 = arith.constant 0 : index
      %c0_70 = arith.constant 0 : index
      %124 = vector.load %arg6[%c9_68, %c0_69, %c0_70] : memref<27x32x4xbf16, #tpu.memory_space<vmem>>, vector<1x32x4xbf16>
      %125 = vector.shape_cast %124 : vector<1x32x4xbf16> to vector<32x4xbf16>
      %cst_71 = arith.constant dense<0.000000e+00> : vector<32x512xf32>
      %126 = tpu.matmul %125, %123, %cst_71 {dimension_numbers = #tpu.dot_dimension_numbers<[1], [0], [0], [1], [0, 0, 1, 1], [], []>} : vector<32x4xbf16>, vector<4x512xbf16>, vector<32x512xf32> -> vector<32x512xf32>
      %127 = arith.addf %115, %126 : vector<32x512xf32>
      %128 = vector.extract_strided_slice %8 {offsets = [0, 504], sizes = [4, 8], strides = [1, 1]} : vector<4x512xf32> to vector<4x8xf32>
      %129 = vector.extract_strided_slice %8 {offsets = [0, 0], sizes = [4, 504], strides = [1, 1]} : vector<4x512xf32> to vector<4x504xf32>
      %130 = tpu.concatenate %128, %129 in 1 : vector<4x8xf32>, vector<4x504xf32> -> vector<4x512xf32>
      %c10 = arith.constant 10 : index
      %c0_72 = arith.constant 0 : index
      %c0_73 = arith.constant 0 : index
      %131 = vector.load %arg4[%c10, %c0_72, %c0_73] : memref<27x1x512xf32, #tpu.memory_space<vmem>>, vector<1x1x512xf32>
      %132 = vector.shape_cast %131 : vector<1x1x512xf32> to vector<1x512xf32>
      %133 = vector.broadcast %132 : vector<1x512xf32> to vector<4x512xf32>
      %134 = arith.mulf %130, %133 : vector<4x512xf32>
      %135 = arith.truncf %134 : vector<4x512xf32> to vector<4x512xbf16>
      %c10_74 = arith.constant 10 : index
      %c0_75 = arith.constant 0 : index
      %c0_76 = arith.constant 0 : index
      %136 = vector.load %arg6[%c10_74, %c0_75, %c0_76] : memref<27x32x4xbf16, #tpu.memory_space<vmem>>, vector<1x32x4xbf16>
      %137 = vector.shape_cast %136 : vector<1x32x4xbf16> to vector<32x4xbf16>
      %cst_77 = arith.constant dense<0.000000e+00> : vector<32x512xf32>
      %138 = tpu.matmul %137, %135, %cst_77 {dimension_numbers = #tpu.dot_dimension_numbers<[1], [0], [0], [1], [0, 0, 1, 1], [], []>} : vector<32x4xbf16>, vector<4x512xbf16>, vector<32x512xf32> -> vector<32x512xf32>
      %139 = arith.addf %127, %138 : vector<32x512xf32>
      %140 = vector.extract_strided_slice %8 {offsets = [0, 505], sizes = [4, 7], strides = [1, 1]} : vector<4x512xf32> to vector<4x7xf32>
      %141 = vector.extract_strided_slice %8 {offsets = [0, 0], sizes = [4, 505], strides = [1, 1]} : vector<4x512xf32> to vector<4x505xf32>
      %142 = tpu.concatenate %140, %141 in 1 : vector<4x7xf32>, vector<4x505xf32> -> vector<4x512xf32>
      %c11 = arith.constant 11 : index
      %c0_78 = arith.constant 0 : index
      %c0_79 = arith.constant 0 : index
      %143 = vector.load %arg4[%c11, %c0_78, %c0_79] : memref<27x1x512xf32, #tpu.memory_space<vmem>>, vector<1x1x512xf32>
      %144 = vector.shape_cast %143 : vector<1x1x512xf32> to vector<1x512xf32>
      %145 = vector.broadcast %144 : vector<1x512xf32> to vector<4x512xf32>
      %146 = arith.mulf %142, %145 : vector<4x512xf32>
      %147 = arith.truncf %146 : vector<4x512xf32> to vector<4x512xbf16>
      %c11_80 = arith.constant 11 : index
      %c0_81 = arith.constant 0 : index
      %c0_82 = arith.constant 0 : index
      %148 = vector.load %arg6[%c11_80, %c0_81, %c0_82] : memref<27x32x4xbf16, #tpu.memory_space<vmem>>, vector<1x32x4xbf16>
      %149 = vector.shape_cast %148 : vector<1x32x4xbf16> to vector<32x4xbf16>
      %cst_83 = arith.constant dense<0.000000e+00> : vector<32x512xf32>
      %150 = tpu.matmul %149, %147, %cst_83 {dimension_numbers = #tpu.dot_dimension_numbers<[1], [0], [0], [1], [0, 0, 1, 1], [], []>} : vector<32x4xbf16>, vector<4x512xbf16>, vector<32x512xf32> -> vector<32x512xf32>
      %151 = arith.addf %139, %150 : vector<32x512xf32>
      %152 = vector.extract_strided_slice %8 {offsets = [0, 511], sizes = [4, 1], strides = [1, 1]} : vector<4x512xf32> to vector<4x1xf32>
      %153 = vector.extract_strided_slice %8 {offsets = [0, 0], sizes = [4, 511], strides = [1, 1]} : vector<4x512xf32> to vector<4x511xf32>
      %154 = tpu.concatenate %152, %153 in 1 : vector<4x1xf32>, vector<4x511xf32> -> vector<4x512xf32>
      %c12 = arith.constant 12 : index
      %c0_84 = arith.constant 0 : index
      %c0_85 = arith.constant 0 : index
      %155 = vector.load %arg4[%c12, %c0_84, %c0_85] : memref<27x1x512xf32, #tpu.memory_space<vmem>>, vector<1x1x512xf32>
      %156 = vector.shape_cast %155 : vector<1x1x512xf32> to vector<1x512xf32>
      %157 = vector.broadcast %156 : vector<1x512xf32> to vector<4x512xf32>
      %158 = arith.mulf %154, %157 : vector<4x512xf32>
      %159 = arith.truncf %158 : vector<4x512xf32> to vector<4x512xbf16>
      %c12_86 = arith.constant 12 : index
      %c0_87 = arith.constant 0 : index
      %c0_88 = arith.constant 0 : index
      %160 = vector.load %arg6[%c12_86, %c0_87, %c0_88] : memref<27x32x4xbf16, #tpu.memory_space<vmem>>, vector<1x32x4xbf16>
      %161 = vector.shape_cast %160 : vector<1x32x4xbf16> to vector<32x4xbf16>
      %cst_89 = arith.constant dense<0.000000e+00> : vector<32x512xf32>
      %162 = tpu.matmul %161, %159, %cst_89 {dimension_numbers = #tpu.dot_dimension_numbers<[1], [0], [0], [1], [0, 0, 1, 1], [], []>} : vector<32x4xbf16>, vector<4x512xbf16>, vector<32x512xf32> -> vector<32x512xf32>
      %163 = arith.addf %151, %162 : vector<32x512xf32>
      %164 = arith.truncf %8 : vector<4x512xf32> to vector<4x512xbf16>
      %c13 = arith.constant 13 : index
      %c0_90 = arith.constant 0 : index
      %c0_91 = arith.constant 0 : index
      %165 = vector.load %arg6[%c13, %c0_90, %c0_91] : memref<27x32x4xbf16, #tpu.memory_space<vmem>>, vector<1x32x4xbf16>
      %166 = vector.shape_cast %165 : vector<1x32x4xbf16> to vector<32x4xbf16>
      %cst_92 = arith.constant dense<0.000000e+00> : vector<32x512xf32>
      %167 = tpu.matmul %166, %164, %cst_92 {dimension_numbers = #tpu.dot_dimension_numbers<[1], [0], [0], [1], [0, 0, 1, 1], [], []>} : vector<32x4xbf16>, vector<4x512xbf16>, vector<32x512xf32> -> vector<32x512xf32>
      %168 = arith.addf %163, %167 : vector<32x512xf32>
      %169 = vector.extract_strided_slice %8 {offsets = [0, 1], sizes = [4, 511], strides = [1, 1]} : vector<4x512xf32> to vector<4x511xf32>
      %170 = vector.extract_strided_slice %8 {offsets = [0, 0], sizes = [4, 1], strides = [1, 1]} : vector<4x512xf32> to vector<4x1xf32>
      %171 = tpu.concatenate %169, %170 in 1 : vector<4x511xf32>, vector<4x1xf32> -> vector<4x512xf32>
      %c14 = arith.constant 14 : index
      %c0_93 = arith.constant 0 : index
      %c0_94 = arith.constant 0 : index
      %172 = vector.load %arg4[%c14, %c0_93, %c0_94] : memref<27x1x512xf32, #tpu.memory_space<vmem>>, vector<1x1x512xf32>
      %173 = vector.shape_cast %172 : vector<1x1x512xf32> to vector<1x512xf32>
      %174 = vector.broadcast %173 : vector<1x512xf32> to vector<4x512xf32>
      %175 = arith.mulf %171, %174 : vector<4x512xf32>
      %176 = arith.truncf %175 : vector<4x512xf32> to vector<4x512xbf16>
      %c14_95 = arith.constant 14 : index
      %c0_96 = arith.constant 0 : index
      %c0_97 = arith.constant 0 : index
      %177 = vector.load %arg6[%c14_95, %c0_96, %c0_97] : memref<27x32x4xbf16, #tpu.memory_space<vmem>>, vector<1x32x4xbf16>
      %178 = vector.shape_cast %177 : vector<1x32x4xbf16> to vector<32x4xbf16>
      %cst_98 = arith.constant dense<0.000000e+00> : vector<32x512xf32>
      %179 = tpu.matmul %178, %176, %cst_98 {dimension_numbers = #tpu.dot_dimension_numbers<[1], [0], [0], [1], [0, 0, 1, 1], [], []>} : vector<32x4xbf16>, vector<4x512xbf16>, vector<32x512xf32> -> vector<32x512xf32>
      %180 = arith.addf %168, %179 : vector<32x512xf32>
      %181 = vector.extract_strided_slice %8 {offsets = [0, 7], sizes = [4, 505], strides = [1, 1]} : vector<4x512xf32> to vector<4x505xf32>
      %182 = vector.extract_strided_slice %8 {offsets = [0, 0], sizes = [4, 7], strides = [1, 1]} : vector<4x512xf32> to vector<4x7xf32>
      %183 = tpu.concatenate %181, %182 in 1 : vector<4x505xf32>, vector<4x7xf32> -> vector<4x512xf32>
      %c15 = arith.constant 15 : index
      %c0_99 = arith.constant 0 : index
      %c0_100 = arith.constant 0 : index
      %184 = vector.load %arg4[%c15, %c0_99, %c0_100] : memref<27x1x512xf32, #tpu.memory_space<vmem>>, vector<1x1x512xf32>
      %185 = vector.shape_cast %184 : vector<1x1x512xf32> to vector<1x512xf32>
      %186 = vector.broadcast %185 : vector<1x512xf32> to vector<4x512xf32>
      %187 = arith.mulf %183, %186 : vector<4x512xf32>
      %188 = arith.truncf %187 : vector<4x512xf32> to vector<4x512xbf16>
      %c15_101 = arith.constant 15 : index
      %c0_102 = arith.constant 0 : index
      %c0_103 = arith.constant 0 : index
      %189 = vector.load %arg6[%c15_101, %c0_102, %c0_103] : memref<27x32x4xbf16, #tpu.memory_space<vmem>>, vector<1x32x4xbf16>
      %190 = vector.shape_cast %189 : vector<1x32x4xbf16> to vector<32x4xbf16>
      %cst_104 = arith.constant dense<0.000000e+00> : vector<32x512xf32>
      %191 = tpu.matmul %190, %188, %cst_104 {dimension_numbers = #tpu.dot_dimension_numbers<[1], [0], [0], [1], [0, 0, 1, 1], [], []>} : vector<32x4xbf16>, vector<4x512xbf16>, vector<32x512xf32> -> vector<32x512xf32>
      %192 = arith.addf %180, %191 : vector<32x512xf32>
      %193 = vector.extract_strided_slice %8 {offsets = [0, 8], sizes = [4, 504], strides = [1, 1]} : vector<4x512xf32> to vector<4x504xf32>
      %194 = vector.extract_strided_slice %8 {offsets = [0, 0], sizes = [4, 8], strides = [1, 1]} : vector<4x512xf32> to vector<4x8xf32>
      %195 = tpu.concatenate %193, %194 in 1 : vector<4x504xf32>, vector<4x8xf32> -> vector<4x512xf32>
      %c16 = arith.constant 16 : index
      %c0_105 = arith.constant 0 : index
      %c0_106 = arith.constant 0 : index
      %196 = vector.load %arg4[%c16, %c0_105, %c0_106] : memref<27x1x512xf32, #tpu.memory_space<vmem>>, vector<1x1x512xf32>
      %197 = vector.shape_cast %196 : vector<1x1x512xf32> to vector<1x512xf32>
      %198 = vector.broadcast %197 : vector<1x512xf32> to vector<4x512xf32>
      %199 = arith.mulf %195, %198 : vector<4x512xf32>
      %200 = arith.truncf %199 : vector<4x512xf32> to vector<4x512xbf16>
      %c16_107 = arith.constant 16 : index
      %c0_108 = arith.constant 0 : index
      %c0_109 = arith.constant 0 : index
      %201 = vector.load %arg6[%c16_107, %c0_108, %c0_109] : memref<27x32x4xbf16, #tpu.memory_space<vmem>>, vector<1x32x4xbf16>
      %202 = vector.shape_cast %201 : vector<1x32x4xbf16> to vector<32x4xbf16>
      %cst_110 = arith.constant dense<0.000000e+00> : vector<32x512xf32>
      %203 = tpu.matmul %202, %200, %cst_110 {dimension_numbers = #tpu.dot_dimension_numbers<[1], [0], [0], [1], [0, 0, 1, 1], [], []>} : vector<32x4xbf16>, vector<4x512xbf16>, vector<32x512xf32> -> vector<32x512xf32>
      %204 = arith.addf %192, %203 : vector<32x512xf32>
      %205 = vector.extract_strided_slice %8 {offsets = [0, 9], sizes = [4, 503], strides = [1, 1]} : vector<4x512xf32> to vector<4x503xf32>
      %206 = vector.extract_strided_slice %8 {offsets = [0, 0], sizes = [4, 9], strides = [1, 1]} : vector<4x512xf32> to vector<4x9xf32>
      %207 = tpu.concatenate %205, %206 in 1 : vector<4x503xf32>, vector<4x9xf32> -> vector<4x512xf32>
      %c17 = arith.constant 17 : index
      %c0_111 = arith.constant 0 : index
      %c0_112 = arith.constant 0 : index
      %208 = vector.load %arg4[%c17, %c0_111, %c0_112] : memref<27x1x512xf32, #tpu.memory_space<vmem>>, vector<1x1x512xf32>
      %209 = vector.shape_cast %208 : vector<1x1x512xf32> to vector<1x512xf32>
      %210 = vector.broadcast %209 : vector<1x512xf32> to vector<4x512xf32>
      %211 = arith.mulf %207, %210 : vector<4x512xf32>
      %212 = arith.truncf %211 : vector<4x512xf32> to vector<4x512xbf16>
      %c17_113 = arith.constant 17 : index
      %c0_114 = arith.constant 0 : index
      %c0_115 = arith.constant 0 : index
      %213 = vector.load %arg6[%c17_113, %c0_114, %c0_115] : memref<27x32x4xbf16, #tpu.memory_space<vmem>>, vector<1x32x4xbf16>
      %214 = vector.shape_cast %213 : vector<1x32x4xbf16> to vector<32x4xbf16>
      %cst_116 = arith.constant dense<0.000000e+00> : vector<32x512xf32>
      %215 = tpu.matmul %214, %212, %cst_116 {dimension_numbers = #tpu.dot_dimension_numbers<[1], [0], [0], [1], [0, 0, 1, 1], [], []>} : vector<32x4xbf16>, vector<4x512xbf16>, vector<32x512xf32> -> vector<32x512xf32>
      %216 = arith.addf %204, %215 : vector<32x512xf32>
      %217 = vector.extract_strided_slice %8 {offsets = [0, 55], sizes = [4, 457], strides = [1, 1]} : vector<4x512xf32> to vector<4x457xf32>
      %218 = vector.extract_strided_slice %8 {offsets = [0, 0], sizes = [4, 55], strides = [1, 1]} : vector<4x512xf32> to vector<4x55xf32>
      %219 = tpu.concatenate %217, %218 in 1 : vector<4x457xf32>, vector<4x55xf32> -> vector<4x512xf32>
      %c18 = arith.constant 18 : index
      %c0_117 = arith.constant 0 : index
      %c0_118 = arith.constant 0 : index
      %220 = vector.load %arg4[%c18, %c0_117, %c0_118] : memref<27x1x512xf32, #tpu.memory_space<vmem>>, vector<1x1x512xf32>
      %221 = vector.shape_cast %220 : vector<1x1x512xf32> to vector<1x512xf32>
      %222 = vector.broadcast %221 : vector<1x512xf32> to vector<4x512xf32>
      %223 = arith.mulf %219, %222 : vector<4x512xf32>
      %224 = arith.truncf %223 : vector<4x512xf32> to vector<4x512xbf16>
      %c18_119 = arith.constant 18 : index
      %c0_120 = arith.constant 0 : index
      %c0_121 = arith.constant 0 : index
      %225 = vector.load %arg6[%c18_119, %c0_120, %c0_121] : memref<27x32x4xbf16, #tpu.memory_space<vmem>>, vector<1x32x4xbf16>
      %226 = vector.shape_cast %225 : vector<1x32x4xbf16> to vector<32x4xbf16>
      %cst_122 = arith.constant dense<0.000000e+00> : vector<32x512xf32>
      %227 = tpu.matmul %226, %224, %cst_122 {dimension_numbers = #tpu.dot_dimension_numbers<[1], [0], [0], [1], [0, 0, 1, 1], [], []>} : vector<32x4xbf16>, vector<4x512xbf16>, vector<32x512xf32> -> vector<32x512xf32>
      %228 = arith.addf %216, %227 : vector<32x512xf32>
      %229 = vector.extract_strided_slice %8 {offsets = [0, 56], sizes = [4, 456], strides = [1, 1]} : vector<4x512xf32> to vector<4x456xf32>
      %230 = vector.extract_strided_slice %8 {offsets = [0, 0], sizes = [4, 56], strides = [1, 1]} : vector<4x512xf32> to vector<4x56xf32>
      %231 = tpu.concatenate %229, %230 in 1 : vector<4x456xf32>, vector<4x56xf32> -> vector<4x512xf32>
      %c19 = arith.constant 19 : index
      %c0_123 = arith.constant 0 : index
      %c0_124 = arith.constant 0 : index
      %232 = vector.load %arg4[%c19, %c0_123, %c0_124] : memref<27x1x512xf32, #tpu.memory_space<vmem>>, vector<1x1x512xf32>
      %233 = vector.shape_cast %232 : vector<1x1x512xf32> to vector<1x512xf32>
      %234 = vector.broadcast %233 : vector<1x512xf32> to vector<4x512xf32>
      %235 = arith.mulf %231, %234 : vector<4x512xf32>
      %236 = arith.truncf %235 : vector<4x512xf32> to vector<4x512xbf16>
      %c19_125 = arith.constant 19 : index
      %c0_126 = arith.constant 0 : index
      %c0_127 = arith.constant 0 : index
      %237 = vector.load %arg6[%c19_125, %c0_126, %c0_127] : memref<27x32x4xbf16, #tpu.memory_space<vmem>>, vector<1x32x4xbf16>
      %238 = vector.shape_cast %237 : vector<1x32x4xbf16> to vector<32x4xbf16>
      %cst_128 = arith.constant dense<0.000000e+00> : vector<32x512xf32>
      %239 = tpu.matmul %238, %236, %cst_128 {dimension_numbers = #tpu.dot_dimension_numbers<[1], [0], [0], [1], [0, 0, 1, 1], [], []>} : vector<32x4xbf16>, vector<4x512xbf16>, vector<32x512xf32> -> vector<32x512xf32>
      %240 = arith.addf %228, %239 : vector<32x512xf32>
      %241 = vector.extract_strided_slice %8 {offsets = [0, 57], sizes = [4, 455], strides = [1, 1]} : vector<4x512xf32> to vector<4x455xf32>
      %242 = vector.extract_strided_slice %8 {offsets = [0, 0], sizes = [4, 57], strides = [1, 1]} : vector<4x512xf32> to vector<4x57xf32>
      %243 = tpu.concatenate %241, %242 in 1 : vector<4x455xf32>, vector<4x57xf32> -> vector<4x512xf32>
      %c20 = arith.constant 20 : index
      %c0_129 = arith.constant 0 : index
      %c0_130 = arith.constant 0 : index
      %244 = vector.load %arg4[%c20, %c0_129, %c0_130] : memref<27x1x512xf32, #tpu.memory_space<vmem>>, vector<1x1x512xf32>
      %245 = vector.shape_cast %244 : vector<1x1x512xf32> to vector<1x512xf32>
      %246 = vector.broadcast %245 : vector<1x512xf32> to vector<4x512xf32>
      %247 = arith.mulf %243, %246 : vector<4x512xf32>
      %248 = arith.truncf %247 : vector<4x512xf32> to vector<4x512xbf16>
      %c20_131 = arith.constant 20 : index
      %c0_132 = arith.constant 0 : index
      %c0_133 = arith.constant 0 : index
      %249 = vector.load %arg6[%c20_131, %c0_132, %c0_133] : memref<27x32x4xbf16, #tpu.memory_space<vmem>>, vector<1x32x4xbf16>
      %250 = vector.shape_cast %249 : vector<1x32x4xbf16> to vector<32x4xbf16>
      %cst_134 = arith.constant dense<0.000000e+00> : vector<32x512xf32>
      %251 = tpu.matmul %250, %248, %cst_134 {dimension_numbers = #tpu.dot_dimension_numbers<[1], [0], [0], [1], [0, 0, 1, 1], [], []>} : vector<32x4xbf16>, vector<4x512xbf16>, vector<32x512xf32> -> vector<32x512xf32>
      %252 = arith.addf %240, %251 : vector<32x512xf32>
      %253 = vector.extract_strided_slice %8 {offsets = [0, 63], sizes = [4, 449], strides = [1, 1]} : vector<4x512xf32> to vector<4x449xf32>
      %254 = vector.extract_strided_slice %8 {offsets = [0, 0], sizes = [4, 63], strides = [1, 1]} : vector<4x512xf32> to vector<4x63xf32>
      %255 = tpu.concatenate %253, %254 in 1 : vector<4x449xf32>, vector<4x63xf32> -> vector<4x512xf32>
      %c21 = arith.constant 21 : index
      %c0_135 = arith.constant 0 : index
      %c0_136 = arith.constant 0 : index
      %256 = vector.load %arg4[%c21, %c0_135, %c0_136] : memref<27x1x512xf32, #tpu.memory_space<vmem>>, vector<1x1x512xf32>
      %257 = vector.shape_cast %256 : vector<1x1x512xf32> to vector<1x512xf32>
      %258 = vector.broadcast %257 : vector<1x512xf32> to vector<4x512xf32>
      %259 = arith.mulf %255, %258 : vector<4x512xf32>
      %260 = arith.truncf %259 : vector<4x512xf32> to vector<4x512xbf16>
      %c21_137 = arith.constant 21 : index
      %c0_138 = arith.constant 0 : index
      %c0_139 = arith.constant 0 : index
      %261 = vector.load %arg6[%c21_137, %c0_138, %c0_139] : memref<27x32x4xbf16, #tpu.memory_space<vmem>>, vector<1x32x4xbf16>
      %262 = vector.shape_cast %261 : vector<1x32x4xbf16> to vector<32x4xbf16>
      %cst_140 = arith.constant dense<0.000000e+00> : vector<32x512xf32>
      %263 = tpu.matmul %262, %260, %cst_140 {dimension_numbers = #tpu.dot_dimension_numbers<[1], [0], [0], [1], [0, 0, 1, 1], [], []>} : vector<32x4xbf16>, vector<4x512xbf16>, vector<32x512xf32> -> vector<32x512xf32>
      %264 = arith.addf %252, %263 : vector<32x512xf32>
      %265 = vector.extract_strided_slice %8 {offsets = [0, 64], sizes = [4, 448], strides = [1, 1]} : vector<4x512xf32> to vector<4x448xf32>
      %266 = vector.extract_strided_slice %8 {offsets = [0, 0], sizes = [4, 64], strides = [1, 1]} : vector<4x512xf32> to vector<4x64xf32>
      %267 = tpu.concatenate %265, %266 in 1 : vector<4x448xf32>, vector<4x64xf32> -> vector<4x512xf32>
      %c22 = arith.constant 22 : index
      %c0_141 = arith.constant 0 : index
      %c0_142 = arith.constant 0 : index
      %268 = vector.load %arg4[%c22, %c0_141, %c0_142] : memref<27x1x512xf32, #tpu.memory_space<vmem>>, vector<1x1x512xf32>
      %269 = vector.shape_cast %268 : vector<1x1x512xf32> to vector<1x512xf32>
      %270 = vector.broadcast %269 : vector<1x512xf32> to vector<4x512xf32>
      %271 = arith.mulf %267, %270 : vector<4x512xf32>
      %272 = arith.truncf %271 : vector<4x512xf32> to vector<4x512xbf16>
      %c22_143 = arith.constant 22 : index
      %c0_144 = arith.constant 0 : index
      %c0_145 = arith.constant 0 : index
      %273 = vector.load %arg6[%c22_143, %c0_144, %c0_145] : memref<27x32x4xbf16, #tpu.memory_space<vmem>>, vector<1x32x4xbf16>
      %274 = vector.shape_cast %273 : vector<1x32x4xbf16> to vector<32x4xbf16>
      %cst_146 = arith.constant dense<0.000000e+00> : vector<32x512xf32>
      %275 = tpu.matmul %274, %272, %cst_146 {dimension_numbers = #tpu.dot_dimension_numbers<[1], [0], [0], [1], [0, 0, 1, 1], [], []>} : vector<32x4xbf16>, vector<4x512xbf16>, vector<32x512xf32> -> vector<32x512xf32>
      %276 = arith.addf %264, %275 : vector<32x512xf32>
      %277 = vector.extract_strided_slice %8 {offsets = [0, 65], sizes = [4, 447], strides = [1, 1]} : vector<4x512xf32> to vector<4x447xf32>
      %278 = vector.extract_strided_slice %8 {offsets = [0, 0], sizes = [4, 65], strides = [1, 1]} : vector<4x512xf32> to vector<4x65xf32>
      %279 = tpu.concatenate %277, %278 in 1 : vector<4x447xf32>, vector<4x65xf32> -> vector<4x512xf32>
      %c23 = arith.constant 23 : index
      %c0_147 = arith.constant 0 : index
      %c0_148 = arith.constant 0 : index
      %280 = vector.load %arg4[%c23, %c0_147, %c0_148] : memref<27x1x512xf32, #tpu.memory_space<vmem>>, vector<1x1x512xf32>
      %281 = vector.shape_cast %280 : vector<1x1x512xf32> to vector<1x512xf32>
      %282 = vector.broadcast %281 : vector<1x512xf32> to vector<4x512xf32>
      %283 = arith.mulf %279, %282 : vector<4x512xf32>
      %284 = arith.truncf %283 : vector<4x512xf32> to vector<4x512xbf16>
      %c23_149 = arith.constant 23 : index
      %c0_150 = arith.constant 0 : index
      %c0_151 = arith.constant 0 : index
      %285 = vector.load %arg6[%c23_149, %c0_150, %c0_151] : memref<27x32x4xbf16, #tpu.memory_space<vmem>>, vector<1x32x4xbf16>
      %286 = vector.shape_cast %285 : vector<1x32x4xbf16> to vector<32x4xbf16>
      %cst_152 = arith.constant dense<0.000000e+00> : vector<32x512xf32>
      %287 = tpu.matmul %286, %284, %cst_152 {dimension_numbers = #tpu.dot_dimension_numbers<[1], [0], [0], [1], [0, 0, 1, 1], [], []>} : vector<32x4xbf16>, vector<4x512xbf16>, vector<32x512xf32> -> vector<32x512xf32>
      %288 = arith.addf %276, %287 : vector<32x512xf32>
      %289 = vector.extract_strided_slice %8 {offsets = [0, 71], sizes = [4, 441], strides = [1, 1]} : vector<4x512xf32> to vector<4x441xf32>
      %290 = vector.extract_strided_slice %8 {offsets = [0, 0], sizes = [4, 71], strides = [1, 1]} : vector<4x512xf32> to vector<4x71xf32>
      %291 = tpu.concatenate %289, %290 in 1 : vector<4x441xf32>, vector<4x71xf32> -> vector<4x512xf32>
      %c24 = arith.constant 24 : index
      %c0_153 = arith.constant 0 : index
      %c0_154 = arith.constant 0 : index
      %292 = vector.load %arg4[%c24, %c0_153, %c0_154] : memref<27x1x512xf32, #tpu.memory_space<vmem>>, vector<1x1x512xf32>
      %293 = vector.shape_cast %292 : vector<1x1x512xf32> to vector<1x512xf32>
      %294 = vector.broadcast %293 : vector<1x512xf32> to vector<4x512xf32>
      %295 = arith.mulf %291, %294 : vector<4x512xf32>
      %296 = arith.truncf %295 : vector<4x512xf32> to vector<4x512xbf16>
      %c24_155 = arith.constant 24 : index
      %c0_156 = arith.constant 0 : index
      %c0_157 = arith.constant 0 : index
      %297 = vector.load %arg6[%c24_155, %c0_156, %c0_157] : memref<27x32x4xbf16, #tpu.memory_space<vmem>>, vector<1x32x4xbf16>
      %298 = vector.shape_cast %297 : vector<1x32x4xbf16> to vector<32x4xbf16>
      %cst_158 = arith.constant dense<0.000000e+00> : vector<32x512xf32>
      %299 = tpu.matmul %298, %296, %cst_158 {dimension_numbers = #tpu.dot_dimension_numbers<[1], [0], [0], [1], [0, 0, 1, 1], [], []>} : vector<32x4xbf16>, vector<4x512xbf16>, vector<32x512xf32> -> vector<32x512xf32>
      %300 = arith.addf %288, %299 : vector<32x512xf32>
      %301 = vector.extract_strided_slice %8 {offsets = [0, 72], sizes = [4, 440], strides = [1, 1]} : vector<4x512xf32> to vector<4x440xf32>
      %302 = vector.extract_strided_slice %8 {offsets = [0, 0], sizes = [4, 72], strides = [1, 1]} : vector<4x512xf32> to vector<4x72xf32>
      %303 = tpu.concatenate %301, %302 in 1 : vector<4x440xf32>, vector<4x72xf32> -> vector<4x512xf32>
      %c25 = arith.constant 25 : index
      %c0_159 = arith.constant 0 : index
      %c0_160 = arith.constant 0 : index
      %304 = vector.load %arg4[%c25, %c0_159, %c0_160] : memref<27x1x512xf32, #tpu.memory_space<vmem>>, vector<1x1x512xf32>
      %305 = vector.shape_cast %304 : vector<1x1x512xf32> to vector<1x512xf32>
      %306 = vector.broadcast %305 : vector<1x512xf32> to vector<4x512xf32>
      %307 = arith.mulf %303, %306 : vector<4x512xf32>
      %308 = arith.truncf %307 : vector<4x512xf32> to vector<4x512xbf16>
      %c25_161 = arith.constant 25 : index
      %c0_162 = arith.constant 0 : index
      %c0_163 = arith.constant 0 : index
      %309 = vector.load %arg6[%c25_161, %c0_162, %c0_163] : memref<27x32x4xbf16, #tpu.memory_space<vmem>>, vector<1x32x4xbf16>
      %310 = vector.shape_cast %309 : vector<1x32x4xbf16> to vector<32x4xbf16>
      %cst_164 = arith.constant dense<0.000000e+00> : vector<32x512xf32>
      %311 = tpu.matmul %310, %308, %cst_164 {dimension_numbers = #tpu.dot_dimension_numbers<[1], [0], [0], [1], [0, 0, 1, 1], [], []>} : vector<32x4xbf16>, vector<4x512xbf16>, vector<32x512xf32> -> vector<32x512xf32>
      %312 = arith.addf %300, %311 : vector<32x512xf32>
      %313 = vector.extract_strided_slice %8 {offsets = [0, 73], sizes = [4, 439], strides = [1, 1]} : vector<4x512xf32> to vector<4x439xf32>
      %314 = vector.extract_strided_slice %8 {offsets = [0, 0], sizes = [4, 73], strides = [1, 1]} : vector<4x512xf32> to vector<4x73xf32>
      %315 = tpu.concatenate %313, %314 in 1 : vector<4x439xf32>, vector<4x73xf32> -> vector<4x512xf32>
      %c26 = arith.constant 26 : index
      %c0_165 = arith.constant 0 : index
      %c0_166 = arith.constant 0 : index
      %316 = vector.load %arg4[%c26, %c0_165, %c0_166] : memref<27x1x512xf32, #tpu.memory_space<vmem>>, vector<1x1x512xf32>
      %317 = vector.shape_cast %316 : vector<1x1x512xf32> to vector<1x512xf32>
      %318 = vector.broadcast %317 : vector<1x512xf32> to vector<4x512xf32>
      %319 = arith.mulf %315, %318 : vector<4x512xf32>
      %320 = arith.truncf %319 : vector<4x512xf32> to vector<4x512xbf16>
      %c26_167 = arith.constant 26 : index
      %c0_168 = arith.constant 0 : index
      %c0_169 = arith.constant 0 : index
      %321 = vector.load %arg6[%c26_167, %c0_168, %c0_169] : memref<27x32x4xbf16, #tpu.memory_space<vmem>>, vector<1x32x4xbf16>
      %322 = vector.shape_cast %321 : vector<1x32x4xbf16> to vector<32x4xbf16>
      %cst_170 = arith.constant dense<0.000000e+00> : vector<32x512xf32>
      %323 = tpu.matmul %322, %320, %cst_170 {dimension_numbers = #tpu.dot_dimension_numbers<[1], [0], [0], [1], [0, 0, 1, 1], [], []>} : vector<32x4xbf16>, vector<4x512xbf16>, vector<32x512xf32> -> vector<32x512xf32>
      %324 = arith.addf %312, %323 : vector<32x512xf32>
      %325 = arith.index_cast %arg14 : i32 to index
      %c0_171 = arith.constant 0 : index
      %c0_172 = arith.constant 0 : index
      %326 = vector.load %arg5[%325, %c0_171, %c0_172] : memref<8x32x1xf32, #tpu.memory_space<vmem>>, vector<1x32x1xf32>
      %327 = vector.shape_cast %326 : vector<1x32x1xf32> to vector<32x1xf32>
      %328 = vector.broadcast %327 : vector<32x1xf32> to vector<32x512xf32>
      %329 = arith.addf %324, %328 : vector<32x512xf32>
      %330 = arith.negf %329 : vector<32x512xf32>
      %331 = math.exp %330 : vector<32x512xf32>
      %cst_173 = arith.constant 1.000000e+00 : f32
      %332 = vector.broadcast %cst_173 : f32 to vector<32x512xf32>
      %333 = arith.addf %332, %331 : vector<32x512xf32>
      %334 = arith.divf %332, %333 : vector<32x512xf32>
      %335 = arith.mulf %329, %334 : vector<32x512xf32>
      %336 = vector.extract_strided_slice %335 {offsets = [0, 439], sizes = [32, 73], strides = [1, 1]} : vector<32x512xf32> to vector<32x73xf32>
      %337 = vector.extract_strided_slice %335 {offsets = [0, 0], sizes = [32, 439], strides = [1, 1]} : vector<32x512xf32> to vector<32x439xf32>
      %338 = tpu.concatenate %336, %337 in 1 : vector<32x73xf32>, vector<32x439xf32> -> vector<32x512xf32>
      %c0_174 = arith.constant 0 : index
      %c0_175 = arith.constant 0 : index
      %c0_176 = arith.constant 0 : index
      %339 = vector.load %arg4[%c0_174, %c0_175, %c0_176] : memref<27x1x512xf32, #tpu.memory_space<vmem>>, vector<1x1x512xf32>
      %340 = vector.shape_cast %339 : vector<1x1x512xf32> to vector<1x512xf32>
      %341 = vector.broadcast %340 : vector<1x512xf32> to vector<32x512xf32>
      %342 = arith.mulf %338, %341 : vector<32x512xf32>
      %343 = arith.truncf %342 : vector<32x512xf32> to vector<32x512xbf16>
      %c0_177 = arith.constant 0 : index
      %c0_178 = arith.constant 0 : index
      %344 = vector.load %arg13[%c0_177, %c0_178] : memref<288x512xbf16, #tpu.memory_space<vmem>>, vector<32x512xbf16>
      tpu.vector_store %arg13[%c0_177, %c0_178], %343 {strides = array<i32>} : memref<288x512xbf16, #tpu.memory_space<vmem>>, vector<32x512xbf16>,
      %345 = vector.extract_strided_slice %335 {offsets = [0, 440], sizes = [32, 72], strides = [1, 1]} : vector<32x512xf32> to vector<32x72xf32>
      %346 = vector.extract_strided_slice %335 {offsets = [0, 0], sizes = [32, 440], strides = [1, 1]} : vector<32x512xf32> to vector<32x440xf32>
      %347 = tpu.concatenate %345, %346 in 1 : vector<32x72xf32>, vector<32x440xf32> -> vector<32x512xf32>
      %c1_179 = arith.constant 1 : index
      %c0_180 = arith.constant 0 : index
      %c0_181 = arith.constant 0 : index
      %348 = vector.load %arg4[%c1_179, %c0_180, %c0_181] : memref<27x1x512xf32, #tpu.memory_space<vmem>>, vector<1x1x512xf32>
      %349 = vector.shape_cast %348 : vector<1x1x512xf32> to vector<1x512xf32>
      %350 = vector.broadcast %349 : vector<1x512xf32> to vector<32x512xf32>
      %351 = arith.mulf %347, %350 : vector<32x512xf32>
      %352 = arith.truncf %351 : vector<32x512xf32> to vector<32x512xbf16>
      %c32 = arith.constant 32 : index
      %c0_182 = arith.constant 0 : index
      %353 = vector.load %arg13[%c32, %c0_182] : memref<288x512xbf16, #tpu.memory_space<vmem>>, vector<32x512xbf16>
      tpu.vector_store %arg13[%c32, %c0_182], %352 {strides = array<i32>} : memref<288x512xbf16, #tpu.memory_space<vmem>>, vector<32x512xbf16>,
      %354 = vector.extract_strided_slice %335 {offsets = [0, 441], sizes = [32, 71], strides = [1, 1]} : vector<32x512xf32> to vector<32x71xf32>
      %355 = vector.extract_strided_slice %335 {offsets = [0, 0], sizes = [32, 441], strides = [1, 1]} : vector<32x512xf32> to vector<32x441xf32>
      %356 = tpu.concatenate %354, %355 in 1 : vector<32x71xf32>, vector<32x441xf32> -> vector<32x512xf32>
      %c2_183 = arith.constant 2 : index
      %c0_184 = arith.constant 0 : index
      %c0_185 = arith.constant 0 : index
      %357 = vector.load %arg4[%c2_183, %c0_184, %c0_185] : memref<27x1x512xf32, #tpu.memory_space<vmem>>, vector<1x1x512xf32>
      %358 = vector.shape_cast %357 : vector<1x1x512xf32> to vector<1x512xf32>
      %359 = vector.broadcast %358 : vector<1x512xf32> to vector<32x512xf32>
      %360 = arith.mulf %356, %359 : vector<32x512xf32>
      %361 = arith.truncf %360 : vector<32x512xf32> to vector<32x512xbf16>
      %c64 = arith.constant 64 : index
      %c0_186 = arith.constant 0 : index
      %362 = vector.load %arg13[%c64, %c0_186] : memref<288x512xbf16, #tpu.memory_space<vmem>>, vector<32x512xbf16>
      tpu.vector_store %arg13[%c64, %c0_186], %361 {strides = array<i32>} : memref<288x512xbf16, #tpu.memory_space<vmem>>, vector<32x512xbf16>,
      %363 = vector.extract_strided_slice %335 {offsets = [0, 447], sizes = [32, 65], strides = [1, 1]} : vector<32x512xf32> to vector<32x65xf32>
      %364 = vector.extract_strided_slice %335 {offsets = [0, 0], sizes = [32, 447], strides = [1, 1]} : vector<32x512xf32> to vector<32x447xf32>
      %365 = tpu.concatenate %363, %364 in 1 : vector<32x65xf32>, vector<32x447xf32> -> vector<32x512xf32>
      %c3_187 = arith.constant 3 : index
      %c0_188 = arith.constant 0 : index
      %c0_189 = arith.constant 0 : index
      %366 = vector.load %arg4[%c3_187, %c0_188, %c0_189] : memref<27x1x512xf32, #tpu.memory_space<vmem>>, vector<1x1x512xf32>
      %367 = vector.shape_cast %366 : vector<1x1x512xf32> to vector<1x512xf32>
      %368 = vector.broadcast %367 : vector<1x512xf32> to vector<32x512xf32>
      %369 = arith.mulf %365, %368 : vector<32x512xf32>
      %370 = arith.truncf %369 : vector<32x512xf32> to vector<32x512xbf16>
      %c96 = arith.constant 96 : index
      %c0_190 = arith.constant 0 : index
      %371 = vector.load %arg13[%c96, %c0_190] : memref<288x512xbf16, #tpu.memory_space<vmem>>, vector<32x512xbf16>
      tpu.vector_store %arg13[%c96, %c0_190], %370 {strides = array<i32>} : memref<288x512xbf16, #tpu.memory_space<vmem>>, vector<32x512xbf16>,
      %372 = vector.extract_strided_slice %335 {offsets = [0, 448], sizes = [32, 64], strides = [1, 1]} : vector<32x512xf32> to vector<32x64xf32>
      %373 = vector.extract_strided_slice %335 {offsets = [0, 0], sizes = [32, 448], strides = [1, 1]} : vector<32x512xf32> to vector<32x448xf32>
      %374 = tpu.concatenate %372, %373 in 1 : vector<32x64xf32>, vector<32x448xf32> -> vector<32x512xf32>
      %c4_191 = arith.constant 4 : index
      %c0_192 = arith.constant 0 : index
      %c0_193 = arith.constant 0 : index
      %375 = vector.load %arg4[%c4_191, %c0_192, %c0_193] : memref<27x1x512xf32, #tpu.memory_space<vmem>>, vector<1x1x512xf32>
      %376 = vector.shape_cast %375 : vector<1x1x512xf32> to vector<1x512xf32>
      %377 = vector.broadcast %376 : vector<1x512xf32> to vector<32x512xf32>
      %378 = arith.mulf %374, %377 : vector<32x512xf32>
      %379 = arith.truncf %378 : vector<32x512xf32> to vector<32x512xbf16>
      %c128 = arith.constant 128 : index
      %c0_194 = arith.constant 0 : index
      %380 = vector.load %arg13[%c128, %c0_194] : memref<288x512xbf16, #tpu.memory_space<vmem>>, vector<32x512xbf16>
      tpu.vector_store %arg13[%c128, %c0_194], %379 {strides = array<i32>} : memref<288x512xbf16, #tpu.memory_space<vmem>>, vector<32x512xbf16>,
      %381 = vector.extract_strided_slice %335 {offsets = [0, 449], sizes = [32, 63], strides = [1, 1]} : vector<32x512xf32> to vector<32x63xf32>
      %382 = vector.extract_strided_slice %335 {offsets = [0, 0], sizes = [32, 449], strides = [1, 1]} : vector<32x512xf32> to vector<32x449xf32>
      %383 = tpu.concatenate %381, %382 in 1 : vector<32x63xf32>, vector<32x449xf32> -> vector<32x512xf32>
      %c5_195 = arith.constant 5 : index
      %c0_196 = arith.constant 0 : index
      %c0_197 = arith.constant 0 : index
      %384 = vector.load %arg4[%c5_195, %c0_196, %c0_197] : memref<27x1x512xf32, #tpu.memory_space<vmem>>, vector<1x1x512xf32>
      %385 = vector.shape_cast %384 : vector<1x1x512xf32> to vector<1x512xf32>
      %386 = vector.broadcast %385 : vector<1x512xf32> to vector<32x512xf32>
      %387 = arith.mulf %383, %386 : vector<32x512xf32>
      %388 = arith.truncf %387 : vector<32x512xf32> to vector<32x512xbf16>
      %c160 = arith.constant 160 : index
      %c0_198 = arith.constant 0 : index
      %389 = vector.load %arg13[%c160, %c0_198] : memref<288x512xbf16, #tpu.memory_space<vmem>>, vector<32x512xbf16>
      tpu.vector_store %arg13[%c160, %c0_198], %388 {strides = array<i32>} : memref<288x512xbf16, #tpu.memory_space<vmem>>, vector<32x512xbf16>,
      %390 = vector.extract_strided_slice %335 {offsets = [0, 455], sizes = [32, 57], strides = [1, 1]} : vector<32x512xf32> to vector<32x57xf32>
      %391 = vector.extract_strided_slice %335 {offsets = [0, 0], sizes = [32, 455], strides = [1, 1]} : vector<32x512xf32> to vector<32x455xf32>
      %392 = tpu.concatenate %390, %391 in 1 : vector<32x57xf32>, vector<32x455xf32> -> vector<32x512xf32>
      %c6_199 = arith.constant 6 : index
      %c0_200 = arith.constant 0 : index
      %c0_201 = arith.constant 0 : index
      %393 = vector.load %arg4[%c6_199, %c0_200, %c0_201] : memref<27x1x512xf32, #tpu.memory_space<vmem>>, vector<1x1x512xf32>
      %394 = vector.shape_cast %393 : vector<1x1x512xf32> to vector<1x512xf32>
      %395 = vector.broadcast %394 : vector<1x512xf32> to vector<32x512xf32>
      %396 = arith.mulf %392, %395 : vector<32x512xf32>
      %397 = arith.truncf %396 : vector<32x512xf32> to vector<32x512xbf16>
      %c192 = arith.constant 192 : index
      %c0_202 = arith.constant 0 : index
      %398 = vector.load %arg13[%c192, %c0_202] : memref<288x512xbf16, #tpu.memory_space<vmem>>, vector<32x512xbf16>
      tpu.vector_store %arg13[%c192, %c0_202], %397 {strides = array<i32>} : memref<288x512xbf16, #tpu.memory_space<vmem>>, vector<32x512xbf16>,
      %399 = vector.extract_strided_slice %335 {offsets = [0, 456], sizes = [32, 56], strides = [1, 1]} : vector<32x512xf32> to vector<32x56xf32>
      %400 = vector.extract_strided_slice %335 {offsets = [0, 0], sizes = [32, 456], strides = [1, 1]} : vector<32x512xf32> to vector<32x456xf32>
      %401 = tpu.concatenate %399, %400 in 1 : vector<32x56xf32>, vector<32x456xf32> -> vector<32x512xf32>
      %c7_203 = arith.constant 7 : index
      %c0_204 = arith.constant 0 : index
      %c0_205 = arith.constant 0 : index
      %402 = vector.load %arg4[%c7_203, %c0_204, %c0_205] : memref<27x1x512xf32, #tpu.memory_space<vmem>>, vector<1x1x512xf32>
      %403 = vector.shape_cast %402 : vector<1x1x512xf32> to vector<1x512xf32>
      %404 = vector.broadcast %403 : vector<1x512xf32> to vector<32x512xf32>
      %405 = arith.mulf %401, %404 : vector<32x512xf32>
      %406 = arith.truncf %405 : vector<32x512xf32> to vector<32x512xbf16>
      %c224 = arith.constant 224 : index
      %c0_206 = arith.constant 0 : index
      %407 = vector.load %arg13[%c224, %c0_206] : memref<288x512xbf16, #tpu.memory_space<vmem>>, vector<32x512xbf16>
      tpu.vector_store %arg13[%c224, %c0_206], %406 {strides = array<i32>} : memref<288x512xbf16, #tpu.memory_space<vmem>>, vector<32x512xbf16>,
      %408 = vector.extract_strided_slice %335 {offsets = [0, 457], sizes = [32, 55], strides = [1, 1]} : vector<32x512xf32> to vector<32x55xf32>
      %409 = vector.extract_strided_slice %335 {offsets = [0, 0], sizes = [32, 457], strides = [1, 1]} : vector<32x512xf32> to vector<32x457xf32>
      %410 = tpu.concatenate %408, %409 in 1 : vector<32x55xf32>, vector<32x457xf32> -> vector<32x512xf32>
      %c8_207 = arith.constant 8 : index
      %c0_208 = arith.constant 0 : index
      %c0_209 = arith.constant 0 : index
      %411 = vector.load %arg4[%c8_207, %c0_208, %c0_209] : memref<27x1x512xf32, #tpu.memory_space<vmem>>, vector<1x1x512xf32>
      %412 = vector.shape_cast %411 : vector<1x1x512xf32> to vector<1x512xf32>
      %413 = vector.broadcast %412 : vector<1x512xf32> to vector<32x512xf32>
      %414 = arith.mulf %410, %413 : vector<32x512xf32>
      %415 = arith.truncf %414 : vector<32x512xf32> to vector<32x512xbf16>
      %c256 = arith.constant 256 : index
      %c0_210 = arith.constant 0 : index
      %416 = vector.load %arg13[%c256, %c0_210] : memref<288x512xbf16, #tpu.memory_space<vmem>>, vector<32x512xbf16>
      tpu.vector_store %arg13[%c256, %c0_210], %415 {strides = array<i32>} : memref<288x512xbf16, #tpu.memory_space<vmem>>, vector<32x512xbf16>,
      %c0_211 = arith.constant 0 : index
      %c0_212 = arith.constant 0 : index
      %c0_213 = arith.constant 0 : index
      %417 = vector.load %arg7[%c0_211, %c0_212, %c0_213] : memref<3x32x288xbf16, #tpu.memory_space<vmem>>, vector<1x32x288xbf16>
      %418 = vector.shape_cast %417 : vector<1x32x288xbf16> to vector<32x288xbf16>
      %c0_214 = arith.constant 0 : index
      %c0_215 = arith.constant 0 : index
      %419 = vector.load %arg13[%c0_214, %c0_215] : memref<288x512xbf16, #tpu.memory_space<vmem>>, vector<288x512xbf16>
      %cst_216 = arith.constant dense<0.000000e+00> : vector<32x512xf32>
      %420 = tpu.matmul %418, %419, %cst_216 {dimension_numbers = #tpu.dot_dimension_numbers<[1], [0], [0], [1], [0, 0, 1, 1], [], []>} : vector<32x288xbf16>, vector<288x512xbf16>, vector<32x512xf32> -> vector<32x512xf32>
      %421 = vector.extract_strided_slice %335 {offsets = [0, 503], sizes = [32, 9], strides = [1, 1]} : vector<32x512xf32> to vector<32x9xf32>
      %422 = vector.extract_strided_slice %335 {offsets = [0, 0], sizes = [32, 503], strides = [1, 1]} : vector<32x512xf32> to vector<32x503xf32>
      %423 = tpu.concatenate %421, %422 in 1 : vector<32x9xf32>, vector<32x503xf32> -> vector<32x512xf32>
      %c9_217 = arith.constant 9 : index
      %c0_218 = arith.constant 0 : index
      %c0_219 = arith.constant 0 : index
      %424 = vector.load %arg4[%c9_217, %c0_218, %c0_219] : memref<27x1x512xf32, #tpu.memory_space<vmem>>, vector<1x1x512xf32>
      %425 = vector.shape_cast %424 : vector<1x1x512xf32> to vector<1x512xf32>
      %426 = vector.broadcast %425 : vector<1x512xf32> to vector<32x512xf32>
      %427 = arith.mulf %423, %426 : vector<32x512xf32>
      %428 = arith.truncf %427 : vector<32x512xf32> to vector<32x512xbf16>
      %c0_220 = arith.constant 0 : index
      %c0_221 = arith.constant 0 : index
      %429 = vector.load %arg13[%c0_220, %c0_221] : memref<288x512xbf16, #tpu.memory_space<vmem>>, vector<32x512xbf16>
      tpu.vector_store %arg13[%c0_220, %c0_221], %428 {strides = array<i32>} : memref<288x512xbf16, #tpu.memory_space<vmem>>, vector<32x512xbf16>,
      %430 = vector.extract_strided_slice %335 {offsets = [0, 504], sizes = [32, 8], strides = [1, 1]} : vector<32x512xf32> to vector<32x8xf32>
      %431 = vector.extract_strided_slice %335 {offsets = [0, 0], sizes = [32, 504], strides = [1, 1]} : vector<32x512xf32> to vector<32x504xf32>
      %432 = tpu.concatenate %430, %431 in 1 : vector<32x8xf32>, vector<32x504xf32> -> vector<32x512xf32>
      %c10_222 = arith.constant 10 : index
      %c0_223 = arith.constant 0 : index
      %c0_224 = arith.constant 0 : index
      %433 = vector.load %arg4[%c10_222, %c0_223, %c0_224] : memref<27x1x512xf32, #tpu.memory_space<vmem>>, vector<1x1x512xf32>
      %434 = vector.shape_cast %433 : vector<1x1x512xf32> to vector<1x512xf32>
      %435 = vector.broadcast %434 : vector<1x512xf32> to vector<32x512xf32>
      %436 = arith.mulf %432, %435 : vector<32x512xf32>
      %437 = arith.truncf %436 : vector<32x512xf32> to vector<32x512xbf16>
      %c32_225 = arith.constant 32 : index
      %c0_226 = arith.constant 0 : index
      %438 = vector.load %arg13[%c32_225, %c0_226] : memref<288x512xbf16, #tpu.memory_space<vmem>>, vector<32x512xbf16>
      tpu.vector_store %arg13[%c32_225, %c0_226], %437 {strides = array<i32>} : memref<288x512xbf16, #tpu.memory_space<vmem>>, vector<32x512xbf16>,
      %439 = vector.extract_strided_slice %335 {offsets = [0, 505], sizes = [32, 7], strides = [1, 1]} : vector<32x512xf32> to vector<32x7xf32>
      %440 = vector.extract_strided_slice %335 {offsets = [0, 0], sizes = [32, 505], strides = [1, 1]} : vector<32x512xf32> to vector<32x505xf32>
      %441 = tpu.concatenate %439, %440 in 1 : vector<32x7xf32>, vector<32x505xf32> -> vector<32x512xf32>
      %c11_227 = arith.constant 11 : index
      %c0_228 = arith.constant 0 : index
      %c0_229 = arith.constant 0 : index
      %442 = vector.load %arg4[%c11_227, %c0_228, %c0_229] : memref<27x1x512xf32, #tpu.memory_space<vmem>>, vector<1x1x512xf32>
      %443 = vector.shape_cast %442 : vector<1x1x512xf32> to vector<1x512xf32>
      %444 = vector.broadcast %443 : vector<1x512xf32> to vector<32x512xf32>
      %445 = arith.mulf %441, %444 : vector<32x512xf32>
      %446 = arith.truncf %445 : vector<32x512xf32> to vector<32x512xbf16>
      %c64_230 = arith.constant 64 : index
      %c0_231 = arith.constant 0 : index
      %447 = vector.load %arg13[%c64_230, %c0_231] : memref<288x512xbf16, #tpu.memory_space<vmem>>, vector<32x512xbf16>
      tpu.vector_store %arg13[%c64_230, %c0_231], %446 {strides = array<i32>} : memref<288x512xbf16, #tpu.memory_space<vmem>>, vector<32x512xbf16>,
      %448 = vector.extract_strided_slice %335 {offsets = [0, 511], sizes = [32, 1], strides = [1, 1]} : vector<32x512xf32> to vector<32x1xf32>
      %449 = vector.extract_strided_slice %335 {offsets = [0, 0], sizes = [32, 511], strides = [1, 1]} : vector<32x512xf32> to vector<32x511xf32>
      %450 = tpu.concatenate %448, %449 in 1 : vector<32x1xf32>, vector<32x511xf32> -> vector<32x512xf32>
      %c12_232 = arith.constant 12 : index
      %c0_233 = arith.constant 0 : index
      %c0_234 = arith.constant 0 : index
      %451 = vector.load %arg4[%c12_232, %c0_233, %c0_234] : memref<27x1x512xf32, #tpu.memory_space<vmem>>, vector<1x1x512xf32>
      %452 = vector.shape_cast %451 : vector<1x1x512xf32> to vector<1x512xf32>
      %453 = vector.broadcast %452 : vector<1x512xf32> to vector<32x512xf32>
      %454 = arith.mulf %450, %453 : vector<32x512xf32>
      %455 = arith.truncf %454 : vector<32x512xf32> to vector<32x512xbf16>
      %c96_235 = arith.constant 96 : index
      %c0_236 = arith.constant 0 : index
      %456 = vector.load %arg13[%c96_235, %c0_236] : memref<288x512xbf16, #tpu.memory_space<vmem>>, vector<32x512xbf16>
      tpu.vector_store %arg13[%c96_235, %c0_236], %455 {strides = array<i32>} : memref<288x512xbf16, #tpu.memory_space<vmem>>, vector<32x512xbf16>,
      %457 = arith.truncf %335 : vector<32x512xf32> to vector<32x512xbf16>
      %c128_237 = arith.constant 128 : index
      %c0_238 = arith.constant 0 : index
      %458 = vector.load %arg13[%c128_237, %c0_238] : memref<288x512xbf16, #tpu.memory_space<vmem>>, vector<32x512xbf16>
      tpu.vector_store %arg13[%c128_237, %c0_238], %457 {strides = array<i32>} : memref<288x512xbf16, #tpu.memory_space<vmem>>, vector<32x512xbf16>,
      %459 = vector.extract_strided_slice %335 {offsets = [0, 1], sizes = [32, 511], strides = [1, 1]} : vector<32x512xf32> to vector<32x511xf32>
      %460 = vector.extract_strided_slice %335 {offsets = [0, 0], sizes = [32, 1], strides = [1, 1]} : vector<32x512xf32> to vector<32x1xf32>
      %461 = tpu.concatenate %459, %460 in 1 : vector<32x511xf32>, vector<32x1xf32> -> vector<32x512xf32>
      %c14_239 = arith.constant 14 : index
      %c0_240 = arith.constant 0 : index
      %c0_241 = arith.constant 0 : index
      %462 = vector.load %arg4[%c14_239, %c0_240, %c0_241] : memref<27x1x512xf32, #tpu.memory_space<vmem>>, vector<1x1x512xf32>
      %463 = vector.shape_cast %462 : vector<1x1x512xf32> to vector<1x512xf32>
      %464 = vector.broadcast %463 : vector<1x512xf32> to vector<32x512xf32>
      %465 = arith.mulf %461, %464 : vector<32x512xf32>
      %466 = arith.truncf %465 : vector<32x512xf32> to vector<32x512xbf16>
      %c160_242 = arith.constant 160 : index
      %c0_243 = arith.constant 0 : index
      %467 = vector.load %arg13[%c160_242, %c0_243] : memref<288x512xbf16, #tpu.memory_space<vmem>>, vector<32x512xbf16>
      tpu.vector_store %arg13[%c160_242, %c0_243], %466 {strides = array<i32>} : memref<288x512xbf16, #tpu.memory_space<vmem>>, vector<32x512xbf16>,
      %468 = vector.extract_strided_slice %335 {offsets = [0, 7], sizes = [32, 505], strides = [1, 1]} : vector<32x512xf32> to vector<32x505xf32>
      %469 = vector.extract_strided_slice %335 {offsets = [0, 0], sizes = [32, 7], strides = [1, 1]} : vector<32x512xf32> to vector<32x7xf32>
      %470 = tpu.concatenate %468, %469 in 1 : vector<32x505xf32>, vector<32x7xf32> -> vector<32x512xf32>
      %c15_244 = arith.constant 15 : index
      %c0_245 = arith.constant 0 : index
      %c0_246 = arith.constant 0 : index
      %471 = vector.load %arg4[%c15_244, %c0_245, %c0_246] : memref<27x1x512xf32, #tpu.memory_space<vmem>>, vector<1x1x512xf32>
      %472 = vector.shape_cast %471 : vector<1x1x512xf32> to vector<1x512xf32>
      %473 = vector.broadcast %472 : vector<1x512xf32> to vector<32x512xf32>
      %474 = arith.mulf %470, %473 : vector<32x512xf32>
      %475 = arith.truncf %474 : vector<32x512xf32> to vector<32x512xbf16>
      %c192_247 = arith.constant 192 : index
      %c0_248 = arith.constant 0 : index
      %476 = vector.load %arg13[%c192_247, %c0_248] : memref<288x512xbf16, #tpu.memory_space<vmem>>, vector<32x512xbf16>
      tpu.vector_store %arg13[%c192_247, %c0_248], %475 {strides = array<i32>} : memref<288x512xbf16, #tpu.memory_space<vmem>>, vector<32x512xbf16>,
      %477 = vector.extract_strided_slice %335 {offsets = [0, 8], sizes = [32, 504], strides = [1, 1]} : vector<32x512xf32> to vector<32x504xf32>
      %478 = vector.extract_strided_slice %335 {offsets = [0, 0], sizes = [32, 8], strides = [1, 1]} : vector<32x512xf32> to vector<32x8xf32>
      %479 = tpu.concatenate %477, %478 in 1 : vector<32x504xf32>, vector<32x8xf32> -> vector<32x512xf32>
      %c16_249 = arith.constant 16 : index
      %c0_250 = arith.constant 0 : index
      %c0_251 = arith.constant 0 : index
      %480 = vector.load %arg4[%c16_249, %c0_250, %c0_251] : memref<27x1x512xf32, #tpu.memory_space<vmem>>, vector<1x1x512xf32>
      %481 = vector.shape_cast %480 : vector<1x1x512xf32> to vector<1x512xf32>
      %482 = vector.broadcast %481 : vector<1x512xf32> to vector<32x512xf32>
      %483 = arith.mulf %479, %482 : vector<32x512xf32>
      %484 = arith.truncf %483 : vector<32x512xf32> to vector<32x512xbf16>
      %c224_252 = arith.constant 224 : index
      %c0_253 = arith.constant 0 : index
      %485 = vector.load %arg13[%c224_252, %c0_253] : memref<288x512xbf16, #tpu.memory_space<vmem>>, vector<32x512xbf16>
      tpu.vector_store %arg13[%c224_252, %c0_253], %484 {strides = array<i32>} : memref<288x512xbf16, #tpu.memory_space<vmem>>, vector<32x512xbf16>,
      %486 = vector.extract_strided_slice %335 {offsets = [0, 9], sizes = [32, 503], strides = [1, 1]} : vector<32x512xf32> to vector<32x503xf32>
      %487 = vector.extract_strided_slice %335 {offsets = [0, 0], sizes = [32, 9], strides = [1, 1]} : vector<32x512xf32> to vector<32x9xf32>
      %488 = tpu.concatenate %486, %487 in 1 : vector<32x503xf32>, vector<32x9xf32> -> vector<32x512xf32>
      %c17_254 = arith.constant 17 : index
      %c0_255 = arith.constant 0 : index
      %c0_256 = arith.constant 0 : index
      %489 = vector.load %arg4[%c17_254, %c0_255, %c0_256] : memref<27x1x512xf32, #tpu.memory_space<vmem>>, vector<1x1x512xf32>
      %490 = vector.shape_cast %489 : vector<1x1x512xf32> to vector<1x512xf32>
      %491 = vector.broadcast %490 : vector<1x512xf32> to vector<32x512xf32>
      %492 = arith.mulf %488, %491 : vector<32x512xf32>
      %493 = arith.truncf %492 : vector<32x512xf32> to vector<32x512xbf16>
      %c256_257 = arith.constant 256 : index
      %c0_258 = arith.constant 0 : index
      %494 = vector.load %arg13[%c256_257, %c0_258] : memref<288x512xbf16, #tpu.memory_space<vmem>>, vector<32x512xbf16>
      tpu.vector_store %arg13[%c256_257, %c0_258], %493 {strides = array<i32>} : memref<288x512xbf16, #tpu.memory_space<vmem>>, vector<32x512xbf16>,
      %c1_259 = arith.constant 1 : index
      %c0_260 = arith.constant 0 : index
      %c0_261 = arith.constant 0 : index
      %495 = vector.load %arg7[%c1_259, %c0_260, %c0_261] : memref<3x32x288xbf16, #tpu.memory_space<vmem>>, vector<1x32x288xbf16>
      %496 = vector.shape_cast %495 : vector<1x32x288xbf16> to vector<32x288xbf16>
      %c0_262 = arith.constant 0 : index
      %c0_263 = arith.constant 0 : index
      %497 = vector.load %arg13[%c0_262, %c0_263] : memref<288x512xbf16, #tpu.memory_space<vmem>>, vector<288x512xbf16>
      %cst_264 = arith.constant dense<0.000000e+00> : vector<32x512xf32>
      %498 = tpu.matmul %496, %497, %cst_264 {dimension_numbers = #tpu.dot_dimension_numbers<[1], [0], [0], [1], [0, 0, 1, 1], [], []>} : vector<32x288xbf16>, vector<288x512xbf16>, vector<32x512xf32> -> vector<32x512xf32>
      %499 = arith.addf %420, %498 : vector<32x512xf32>
      %500 = vector.extract_strided_slice %335 {offsets = [0, 55], sizes = [32, 457], strides = [1, 1]} : vector<32x512xf32> to vector<32x457xf32>
      %501 = vector.extract_strided_slice %335 {offsets = [0, 0], sizes = [32, 55], strides = [1, 1]} : vector<32x512xf32> to vector<32x55xf32>
      %502 = tpu.concatenate %500, %501 in 1 : vector<32x457xf32>, vector<32x55xf32> -> vector<32x512xf32>
      %c18_265 = arith.constant 18 : index
      %c0_266 = arith.constant 0 : index
      %c0_267 = arith.constant 0 : index
      %503 = vector.load %arg4[%c18_265, %c0_266, %c0_267] : memref<27x1x512xf32, #tpu.memory_space<vmem>>, vector<1x1x512xf32>
      %504 = vector.shape_cast %503 : vector<1x1x512xf32> to vector<1x512xf32>
      %505 = vector.broadcast %504 : vector<1x512xf32> to vector<32x512xf32>
      %506 = arith.mulf %502, %505 : vector<32x512xf32>
      %507 = arith.truncf %506 : vector<32x512xf32> to vector<32x512xbf16>
      %c0_268 = arith.constant 0 : index
      %c0_269 = arith.constant 0 : index
      %508 = vector.load %arg13[%c0_268, %c0_269] : memref<288x512xbf16, #tpu.memory_space<vmem>>, vector<32x512xbf16>
      tpu.vector_store %arg13[%c0_268, %c0_269], %507 {strides = array<i32>} : memref<288x512xbf16, #tpu.memory_space<vmem>>, vector<32x512xbf16>,
      %509 = vector.extract_strided_slice %335 {offsets = [0, 56], sizes = [32, 456], strides = [1, 1]} : vector<32x512xf32> to vector<32x456xf32>
      %510 = vector.extract_strided_slice %335 {offsets = [0, 0], sizes = [32, 56], strides = [1, 1]} : vector<32x512xf32> to vector<32x56xf32>
      %511 = tpu.concatenate %509, %510 in 1 : vector<32x456xf32>, vector<32x56xf32> -> vector<32x512xf32>
      %c19_270 = arith.constant 19 : index
      %c0_271 = arith.constant 0 : index
      %c0_272 = arith.constant 0 : index
      %512 = vector.load %arg4[%c19_270, %c0_271, %c0_272] : memref<27x1x512xf32, #tpu.memory_space<vmem>>, vector<1x1x512xf32>
      %513 = vector.shape_cast %512 : vector<1x1x512xf32> to vector<1x512xf32>
      %514 = vector.broadcast %513 : vector<1x512xf32> to vector<32x512xf32>
      %515 = arith.mulf %511, %514 : vector<32x512xf32>
      %516 = arith.truncf %515 : vector<32x512xf32> to vector<32x512xbf16>
      %c32_273 = arith.constant 32 : index
      %c0_274 = arith.constant 0 : index
      %517 = vector.load %arg13[%c32_273, %c0_274] : memref<288x512xbf16, #tpu.memory_space<vmem>>, vector<32x512xbf16>
      tpu.vector_store %arg13[%c32_273, %c0_274], %516 {strides = array<i32>} : memref<288x512xbf16, #tpu.memory_space<vmem>>, vector<32x512xbf16>,
      %518 = vector.extract_strided_slice %335 {offsets = [0, 57], sizes = [32, 455], strides = [1, 1]} : vector<32x512xf32> to vector<32x455xf32>
      %519 = vector.extract_strided_slice %335 {offsets = [0, 0], sizes = [32, 57], strides = [1, 1]} : vector<32x512xf32> to vector<32x57xf32>
      %520 = tpu.concatenate %518, %519 in 1 : vector<32x455xf32>, vector<32x57xf32> -> vector<32x512xf32>
      %c20_275 = arith.constant 20 : index
      %c0_276 = arith.constant 0 : index
      %c0_277 = arith.constant 0 : index
      %521 = vector.load %arg4[%c20_275, %c0_276, %c0_277] : memref<27x1x512xf32, #tpu.memory_space<vmem>>, vector<1x1x512xf32>
      %522 = vector.shape_cast %521 : vector<1x1x512xf32> to vector<1x512xf32>
      %523 = vector.broadcast %522 : vector<1x512xf32> to vector<32x512xf32>
      %524 = arith.mulf %520, %523 : vector<32x512xf32>
      %525 = arith.truncf %524 : vector<32x512xf32> to vector<32x512xbf16>
      %c64_278 = arith.constant 64 : index
      %c0_279 = arith.constant 0 : index
      %526 = vector.load %arg13[%c64_278, %c0_279] : memref<288x512xbf16, #tpu.memory_space<vmem>>, vector<32x512xbf16>
      tpu.vector_store %arg13[%c64_278, %c0_279], %525 {strides = array<i32>} : memref<288x512xbf16, #tpu.memory_space<vmem>>, vector<32x512xbf16>,
      %527 = vector.extract_strided_slice %335 {offsets = [0, 63], sizes = [32, 449], strides = [1, 1]} : vector<32x512xf32> to vector<32x449xf32>
      %528 = vector.extract_strided_slice %335 {offsets = [0, 0], sizes = [32, 63], strides = [1, 1]} : vector<32x512xf32> to vector<32x63xf32>
      %529 = tpu.concatenate %527, %528 in 1 : vector<32x449xf32>, vector<32x63xf32> -> vector<32x512xf32>
      %c21_280 = arith.constant 21 : index
      %c0_281 = arith.constant 0 : index
      %c0_282 = arith.constant 0 : index
      %530 = vector.load %arg4[%c21_280, %c0_281, %c0_282] : memref<27x1x512xf32, #tpu.memory_space<vmem>>, vector<1x1x512xf32>
      %531 = vector.shape_cast %530 : vector<1x1x512xf32> to vector<1x512xf32>
      %532 = vector.broadcast %531 : vector<1x512xf32> to vector<32x512xf32>
      %533 = arith.mulf %529, %532 : vector<32x512xf32>
      %534 = arith.truncf %533 : vector<32x512xf32> to vector<32x512xbf16>
      %c96_283 = arith.constant 96 : index
      %c0_284 = arith.constant 0 : index
      %535 = vector.load %arg13[%c96_283, %c0_284] : memref<288x512xbf16, #tpu.memory_space<vmem>>, vector<32x512xbf16>
      tpu.vector_store %arg13[%c96_283, %c0_284], %534 {strides = array<i32>} : memref<288x512xbf16, #tpu.memory_space<vmem>>, vector<32x512xbf16>,
      %536 = vector.extract_strided_slice %335 {offsets = [0, 64], sizes = [32, 448], strides = [1, 1]} : vector<32x512xf32> to vector<32x448xf32>
      %537 = vector.extract_strided_slice %335 {offsets = [0, 0], sizes = [32, 64], strides = [1, 1]} : vector<32x512xf32> to vector<32x64xf32>
      %538 = tpu.concatenate %536, %537 in 1 : vector<32x448xf32>, vector<32x64xf32> -> vector<32x512xf32>
      %c22_285 = arith.constant 22 : index
      %c0_286 = arith.constant 0 : index
      %c0_287 = arith.constant 0 : index
      %539 = vector.load %arg4[%c22_285, %c0_286, %c0_287] : memref<27x1x512xf32, #tpu.memory_space<vmem>>, vector<1x1x512xf32>
      %540 = vector.shape_cast %539 : vector<1x1x512xf32> to vector<1x512xf32>
      %541 = vector.broadcast %540 : vector<1x512xf32> to vector<32x512xf32>
      %542 = arith.mulf %538, %541 : vector<32x512xf32>
      %543 = arith.truncf %542 : vector<32x512xf32> to vector<32x512xbf16>
      %c128_288 = arith.constant 128 : index
      %c0_289 = arith.constant 0 : index
      %544 = vector.load %arg13[%c128_288, %c0_289] : memref<288x512xbf16, #tpu.memory_space<vmem>>, vector<32x512xbf16>
      tpu.vector_store %arg13[%c128_288, %c0_289], %543 {strides = array<i32>} : memref<288x512xbf16, #tpu.memory_space<vmem>>, vector<32x512xbf16>,
      %545 = vector.extract_strided_slice %335 {offsets = [0, 65], sizes = [32, 447], strides = [1, 1]} : vector<32x512xf32> to vector<32x447xf32>
      %546 = vector.extract_strided_slice %335 {offsets = [0, 0], sizes = [32, 65], strides = [1, 1]} : vector<32x512xf32> to vector<32x65xf32>
      %547 = tpu.concatenate %545, %546 in 1 : vector<32x447xf32>, vector<32x65xf32> -> vector<32x512xf32>
      %c23_290 = arith.constant 23 : index
      %c0_291 = arith.constant 0 : index
      %c0_292 = arith.constant 0 : index
      %548 = vector.load %arg4[%c23_290, %c0_291, %c0_292] : memref<27x1x512xf32, #tpu.memory_space<vmem>>, vector<1x1x512xf32>
      %549 = vector.shape_cast %548 : vector<1x1x512xf32> to vector<1x512xf32>
      %550 = vector.broadcast %549 : vector<1x512xf32> to vector<32x512xf32>
      %551 = arith.mulf %547, %550 : vector<32x512xf32>
      %552 = arith.truncf %551 : vector<32x512xf32> to vector<32x512xbf16>
      %c160_293 = arith.constant 160 : index
      %c0_294 = arith.constant 0 : index
      %553 = vector.load %arg13[%c160_293, %c0_294] : memref<288x512xbf16, #tpu.memory_space<vmem>>, vector<32x512xbf16>
      tpu.vector_store %arg13[%c160_293, %c0_294], %552 {strides = array<i32>} : memref<288x512xbf16, #tpu.memory_space<vmem>>, vector<32x512xbf16>,
      %554 = vector.extract_strided_slice %335 {offsets = [0, 71], sizes = [32, 441], strides = [1, 1]} : vector<32x512xf32> to vector<32x441xf32>
      %555 = vector.extract_strided_slice %335 {offsets = [0, 0], sizes = [32, 71], strides = [1, 1]} : vector<32x512xf32> to vector<32x71xf32>
      %556 = tpu.concatenate %554, %555 in 1 : vector<32x441xf32>, vector<32x71xf32> -> vector<32x512xf32>
      %c24_295 = arith.constant 24 : index
      %c0_296 = arith.constant 0 : index
      %c0_297 = arith.constant 0 : index
      %557 = vector.load %arg4[%c24_295, %c0_296, %c0_297] : memref<27x1x512xf32, #tpu.memory_space<vmem>>, vector<1x1x512xf32>
      %558 = vector.shape_cast %557 : vector<1x1x512xf32> to vector<1x512xf32>
      %559 = vector.broadcast %558 : vector<1x512xf32> to vector<32x512xf32>
      %560 = arith.mulf %556, %559 : vector<32x512xf32>
      %561 = arith.truncf %560 : vector<32x512xf32> to vector<32x512xbf16>
      %c192_298 = arith.constant 192 : index
      %c0_299 = arith.constant 0 : index
      %562 = vector.load %arg13[%c192_298, %c0_299] : memref<288x512xbf16, #tpu.memory_space<vmem>>, vector<32x512xbf16>
      tpu.vector_store %arg13[%c192_298, %c0_299], %561 {strides = array<i32>} : memref<288x512xbf16, #tpu.memory_space<vmem>>, vector<32x512xbf16>,
      %563 = vector.extract_strided_slice %335 {offsets = [0, 72], sizes = [32, 440], strides = [1, 1]} : vector<32x512xf32> to vector<32x440xf32>
      %564 = vector.extract_strided_slice %335 {offsets = [0, 0], sizes = [32, 72], strides = [1, 1]} : vector<32x512xf32> to vector<32x72xf32>
      %565 = tpu.concatenate %563, %564 in 1 : vector<32x440xf32>, vector<32x72xf32> -> vector<32x512xf32>
      %c25_300 = arith.constant 25 : index
      %c0_301 = arith.constant 0 : index
      %c0_302 = arith.constant 0 : index
      %566 = vector.load %arg4[%c25_300, %c0_301, %c0_302] : memref<27x1x512xf32, #tpu.memory_space<vmem>>, vector<1x1x512xf32>
      %567 = vector.shape_cast %566 : vector<1x1x512xf32> to vector<1x512xf32>
      %568 = vector.broadcast %567 : vector<1x512xf32> to vector<32x512xf32>
      %569 = arith.mulf %565, %568 : vector<32x512xf32>
      %570 = arith.truncf %569 : vector<32x512xf32> to vector<32x512xbf16>
      %c224_303 = arith.constant 224 : index
      %c0_304 = arith.constant 0 : index
      %571 = vector.load %arg13[%c224_303, %c0_304] : memref<288x512xbf16, #tpu.memory_space<vmem>>, vector<32x512xbf16>
      tpu.vector_store %arg13[%c224_303, %c0_304], %570 {strides = array<i32>} : memref<288x512xbf16, #tpu.memory_space<vmem>>, vector<32x512xbf16>,
      %572 = vector.extract_strided_slice %335 {offsets = [0, 73], sizes = [32, 439], strides = [1, 1]} : vector<32x512xf32> to vector<32x439xf32>
      %573 = vector.extract_strided_slice %335 {offsets = [0, 0], sizes = [32, 73], strides = [1, 1]} : vector<32x512xf32> to vector<32x73xf32>
      %574 = tpu.concatenate %572, %573 in 1 : vector<32x439xf32>, vector<32x73xf32> -> vector<32x512xf32>
      %c26_305 = arith.constant 26 : index
      %c0_306 = arith.constant 0 : index
      %c0_307 = arith.constant 0 : index
      %575 = vector.load %arg4[%c26_305, %c0_306, %c0_307] : memref<27x1x512xf32, #tpu.memory_space<vmem>>, vector<1x1x512xf32>
      %576 = vector.shape_cast %575 : vector<1x1x512xf32> to vector<1x512xf32>
      %577 = vector.broadcast %576 : vector<1x512xf32> to vector<32x512xf32>
      %578 = arith.mulf %574, %577 : vector<32x512xf32>
      %579 = arith.truncf %578 : vector<32x512xf32> to vector<32x512xbf16>
      %c256_308 = arith.constant 256 : index
      %c0_309 = arith.constant 0 : index
      %580 = vector.load %arg13[%c256_308, %c0_309] : memref<288x512xbf16, #tpu.memory_space<vmem>>, vector<32x512xbf16>
      tpu.vector_store %arg13[%c256_308, %c0_309], %579 {strides = array<i32>} : memref<288x512xbf16, #tpu.memory_space<vmem>>, vector<32x512xbf16>,
      %c2_310 = arith.constant 2 : index
      %c0_311 = arith.constant 0 : index
      %c0_312 = arith.constant 0 : index
      %581 = vector.load %arg7[%c2_310, %c0_311, %c0_312] : memref<3x32x288xbf16, #tpu.memory_space<vmem>>, vector<1x32x288xbf16>
      %582 = vector.shape_cast %581 : vector<1x32x288xbf16> to vector<32x288xbf16>
      %c0_313 = arith.constant 0 : index
      %c0_314 = arith.constant 0 : index
      %583 = vector.load %arg13[%c0_313, %c0_314] : memref<288x512xbf16, #tpu.memory_space<vmem>>, vector<288x512xbf16>
      %cst_315 = arith.constant dense<0.000000e+00> : vector<32x512xf32>
      %584 = tpu.matmul %582, %583, %cst_315 {dimension_numbers = #tpu.dot_dimension_numbers<[1], [0], [0], [1], [0, 0, 1, 1], [], []>} : vector<32x288xbf16>, vector<288x512xbf16>, vector<32x512xf32> -> vector<32x512xf32>
      %585 = arith.addf %499, %584 : vector<32x512xf32>
      %c0_316 = arith.constant 0 : index
      %c0_317 = arith.constant 0 : index
      %586 = vector.load %arg8[%c0_316, %c0_317] : memref<32x1xf32, #tpu.memory_space<vmem>>, vector<32x1xf32>
      %587 = vector.broadcast %586 : vector<32x1xf32> to vector<32x512xf32>
      %588 = arith.addf %585, %587 : vector<32x512xf32>
      %589 = arith.negf %588 : vector<32x512xf32>
      %590 = math.exp %589 : vector<32x512xf32>
      %cst_318 = arith.constant 1.000000e+00 : f32
      %591 = vector.broadcast %cst_318 : f32 to vector<32x512xf32>
      %592 = arith.addf %591, %590 : vector<32x512xf32>
      %593 = arith.divf %591, %592 : vector<32x512xf32>
      %594 = arith.mulf %588, %593 : vector<32x512xf32>
      %c0_319 = arith.constant 0 : index
      %c0_320 = arith.constant 0 : index
      %595 = vector.load %arg9[%c0_319, %c0_320] : memref<4x32xbf16, #tpu.memory_space<vmem>>, vector<4x32xbf16>
      %596 = arith.truncf %594 : vector<32x512xf32> to vector<32x512xbf16>
      %cst_321 = arith.constant dense<0.000000e+00> : vector<4x512xf32>
      %597 = tpu.matmul %595, %596, %cst_321 {dimension_numbers = #tpu.dot_dimension_numbers<[1], [0], [0], [1], [0, 0, 1, 1], [], []>} : vector<4x32xbf16>, vector<32x512xbf16>, vector<4x512xf32> -> vector<4x512xf32>
      %c0_322 = arith.constant 0 : index
      %c0_323 = arith.constant 0 : index
      %598 = vector.load %arg10[%c0_322, %c0_323] : memref<4x1xf32, #tpu.memory_space<vmem>>, vector<4x1xf32>
      %599 = vector.broadcast %598 : vector<4x1xf32> to vector<4x512xf32>
      %600 = arith.addf %597, %599 : vector<4x512xf32>
      %601 = arith.index_cast %arg14 : i32 to index
      %c0_324 = arith.constant 0 : index
      %602 = memref.load %arg1[%601, %c0_324] : memref<8x5xf32, #tpu.memory_space<smem>>
      %603 = arith.index_cast %arg14 : i32 to index
      %c1_325 = arith.constant 1 : index
      %604 = memref.load %arg1[%603, %c1_325] : memref<8x5xf32, #tpu.memory_space<smem>>
      %605 = arith.index_cast %arg14 : i32 to index
      %c2_326 = arith.constant 2 : index
      %606 = memref.load %arg1[%605, %c2_326] : memref<8x5xf32, #tpu.memory_space<smem>>
      %607 = arith.index_cast %arg14 : i32 to index
      %c3_327 = arith.constant 3 : index
      %608 = memref.load %arg1[%607, %c3_327] : memref<8x5xf32, #tpu.memory_space<smem>>
      %609 = arith.index_cast %arg14 : i32 to index
      %c4_328 = arith.constant 4 : index
      %610 = memref.load %arg1[%609, %c4_328] : memref<8x5xf32, #tpu.memory_space<smem>>
      %611 = vector.broadcast %602 : f32 to vector<4x512xf32>
      %612 = arith.mulf %611, %8 : vector<4x512xf32>
      %613 = vector.broadcast %604 : f32 to vector<4x512xf32>
      %614 = arith.mulf %613, %600 : vector<4x512xf32>
      %615 = arith.subf %612, %614 : vector<4x512xf32>
      %cst_329 = arith.constant -1.000000e+00 : f32
      %cst_330 = arith.constant 1.000000e+00 : f32
      %616 = vector.broadcast %cst_329 : f32 to vector<4x512xf32>
      %617 = arith.maximumf %616, %615 : vector<4x512xf32>
      %618 = vector.broadcast %cst_330 : f32 to vector<4x512xf32>
      %619 = arith.minimumf %618, %617 : vector<4x512xf32>
      %620 = vector.broadcast %606 : f32 to vector<4x512xf32>
      %621 = arith.mulf %620, %619 : vector<4x512xf32>
      %622 = vector.broadcast %608 : f32 to vector<4x512xf32>
      %623 = arith.mulf %622, %8 : vector<4x512xf32>
      %624 = arith.addf %621, %623 : vector<4x512xf32>
      %625 = arith.index_cast %arg14 : i32 to index
      %c0_331 = arith.constant 0 : index
      %c0_332 = arith.constant 0 : index
      %c0_333 = arith.constant 0 : index
      %626 = vector.load %arg3[%625, %c0_331, %c0_332, %c0_333] : memref<8x1x4x512xf32, #tpu.memory_space<vmem>>, vector<1x1x4x512xf32>
      %627 = vector.shape_cast %626 : vector<1x1x4x512xf32> to vector<4x512xf32>
      %628 = vector.broadcast %610 : f32 to vector<4x512xf32>
      %629 = arith.mulf %628, %627 : vector<4x512xf32>
      %630 = arith.addf %624, %629 : vector<4x512xf32>
      %c0_334 = arith.constant 0 : index
      %c0_335 = arith.constant 0 : index
      %631 = vector.load %arg12[%c0_334, %c0_335] : memref<4x512xf32, #tpu.memory_space<vmem>>, vector<4x512xf32>
      tpu.vector_store %arg12[%c0_334, %c0_335], %630 {strides = array<i32>} : memref<4x512xf32, #tpu.memory_space<vmem>>, vector<4x512xf32>,
    }
    %c8_i32_4 = arith.constant 8 : i32
    %c0_5 = arith.constant 0 : index
    %c0_6 = arith.constant 0 : index
    %4 = vector.load %arg12[%c0_5, %c0_6] : memref<4x512xf32, #tpu.memory_space<vmem>>, vector<4x512xf32>
    %c0_7 = arith.constant 0 : index
    %c0_8 = arith.constant 0 : index
    %c0_9 = arith.constant 0 : index
    %5 = vector.load %arg11[%c0_7, %c0_8, %c0_9] : memref<1x4x512xf32, #tpu.memory_space<vmem>>, vector<1x4x512xf32>
    %6 = vector.shape_cast %5 : vector<1x4x512xf32> to vector<4x512xf32>
    %7 = vector.shape_cast %4 : vector<4x512xf32> to vector<1x4x512xf32>
    tpu.vector_store %arg11[%c0_7, %c0_8, %c0_9], %7 {strides = array<i32>} : memref<1x4x512xf32, #tpu.memory_space<vmem>>, vector<1x4x512xf32>,
    return
  }
  func.func @transform_0(%arg0: i32) -> (i32, i32) {
    %c0_i32 = arith.constant 0 : i32
    %c0_i32_0 = arith.constant 0 : i32
    %c0_i32_1 = arith.constant 0 : i32
    return %c0_i32, %c0_i32_0 : i32, i32
  }
  func.func @transform_1(%arg0: i32) -> (i32, i32, i32) {
    %c0_i32 = arith.constant 0 : i32
    %c0_i32_0 = arith.constant 0 : i32
    %c0_i32_1 = arith.constant 0 : i32
    return %arg0, %c0_i32, %c0_i32_0 : i32, i32, i32
  }
  func.func @transform_2(%arg0: i32) -> (i32, i32, i32, i32) {
    %c0_i32 = arith.constant 0 : i32
    %c0_i32_0 = arith.constant 0 : i32
    %c0_i32_1 = arith.constant 0 : i32
    %c0_i32_2 = arith.constant 0 : i32
    return %c0_i32, %arg0, %c0_i32_0, %c0_i32_1 : i32, i32, i32, i32
  }
  func.func @transform_3(%arg0: i32) -> (i32, i32, i32) {
    %c0_i32 = arith.constant 0 : i32
    %c0_i32_0 = arith.constant 0 : i32
    %c0_i32_1 = arith.constant 0 : i32
    %c0_i32_2 = arith.constant 0 : i32
    return %c0_i32, %c0_i32_0, %c0_i32_1 : i32, i32, i32
  }
  func.func @transform_4(%arg0: i32) -> (i32, i32, i32) {
    %c0_i32 = arith.constant 0 : i32
    %c0_i32_0 = arith.constant 0 : i32
    %c0_i32_1 = arith.constant 0 : i32
    %c0_i32_2 = arith.constant 0 : i32
    return %c0_i32, %c0_i32_0, %c0_i32_1 : i32, i32, i32
  }
  func.func @transform_5(%arg0: i32) -> (i32, i32, i32) {
    %c0_i32 = arith.constant 0 : i32
    %c0_i32_0 = arith.constant 0 : i32
    %c0_i32_1 = arith.constant 0 : i32
    %c0_i32_2 = arith.constant 0 : i32
    return %c0_i32, %c0_i32_0, %c0_i32_1 : i32, i32, i32
  }
  func.func @transform_6(%arg0: i32) -> (i32, i32, i32) {
    %c0_i32 = arith.constant 0 : i32
    %c0_i32_0 = arith.constant 0 : i32
    %c0_i32_1 = arith.constant 0 : i32
    %c0_i32_2 = arith.constant 0 : i32
    return %c0_i32, %c0_i32_0, %c0_i32_1 : i32, i32, i32
  }
  func.func @transform_7(%arg0: i32) -> (i32, i32) {
    %c0_i32 = arith.constant 0 : i32
    %c0_i32_0 = arith.constant 0 : i32
    %c0_i32_1 = arith.constant 0 : i32
    return %c0_i32, %c0_i32_0 : i32, i32
  }
  func.func @transform_8(%arg0: i32) -> (i32, i32) {
    %c0_i32 = arith.constant 0 : i32
    %c0_i32_0 = arith.constant 0 : i32
    %c0_i32_1 = arith.constant 0 : i32
    return %c0_i32, %c0_i32_0 : i32, i32
  }
  func.func @transform_9(%arg0: i32) -> (i32, i32) {
    %c0_i32 = arith.constant 0 : i32
    %c0_i32_0 = arith.constant 0 : i32
    %c0_i32_1 = arith.constant 0 : i32
    return %c0_i32, %c0_i32_0 : i32, i32
  }
  func.func @transform_10(%arg0: i32) -> (i32, i32, i32) {
    %c0_i32 = arith.constant 0 : i32
    %c0_i32_0 = arith.constant 0 : i32
    %c0_i32_1 = arith.constant 0 : i32
    return %arg0, %c0_i32, %c0_i32_0 : i32, i32, i32
  }
}

</mosaic_0001>

<bundles_post_ra>
// kernel: p_sample_loop.1
= control target key start
LH: loop header
LB: loop body
LE: loop exit
PB: predicated region body
PF: predicated region fallthrough
CT: control target
= control target key end

     0   :  { %s16783_s0 = inlined_call_operand.vmem [shape: f32[8,5], index: 0, kind: input, shape index: {}]   ;;  %s16784_s1 = inlined_call_operand.vmem [shape: f32[2,4,512], index: 1, kind: input, shape index: {}, may-alias: {1,10}]   ;;  %s16785_s2 = inlined_call_operand.vmem [shape: f32[8,2,4,512], index: 2, kind: input, shape index: {}]   ;;  %s16786_s3 = inlined_call_operand.vmem [shape: f32[27,1,512], index: 3, kind: input, shape index: {}]   ;;  %s16787_s4 = inlined_call_operand.vmem [shape: f32[8,32,1], index: 4, kind: input, shape index: {}]   ;;  %s16788_s5 = inlined_call_operand.vmem [shape: bf16[27,32,4], index: 5, kind: input, shape index: {}]   ;;  %s16789_s6 = inlined_call_operand.vmem [shape: bf16[3,32,288], index: 6, kind: input, shape index: {}]   ;;  %s16790_s7 = inlined_call_operand.vmem [shape: f32[32,1], index: 7, kind: input, shape index: {}]   ;;  %s16791_s8 = inlined_call_operand.vmem [shape: bf16[4,32], index: 8, kind: input, shape index: {}]   ;;  %s16792_s9 = inlined_call_operand.vmem [shape: f32[4,1], index: 9, kind: input, shape index: {}]   ;;  %s16793_s10 = inlined_call_operand.vmem [shape: f32[2,4,512], index: 10, kind: output, shape index: {}, may-alias: {1,10}]  }
   0x1   :  { %17486 = sst [smem:[#allocation306_spill]] %s16783_s0 }
   0x2   :  { %17487 = sst [smem:[#allocation307_spill]] %s16784_s1 }
   0x3   :  { %17488 = sst [smem:[#allocation308_spill]] %s16785_s2 }
   0x4   :  { %17489 = sst [smem:[#allocation309_spill]] %s16787_s4 }
   0x5   :  { %17490 = sst [smem:[#allocation310_spill]] %s16788_s5 }
   0x6   :  { %17491 = sst [smem:[#allocation311_spill]] %s16793_s10 }
   0x7   :  { %15 = vsyncpa [#allocation5], 0  ;;  %s11234_s13 = smov 0   ;;  %s11236_s14 = smov 0  }
   0x8   :  { %s11238_s15 = smov 0  }
   0x9 LB: > { %s11250_s16 = sadd.s32 4294967295, %s11154_s15   ;;  %s11253_s17 = sadd.s32 1, %s11154_s15   ;;  %s11154_s15 = sphi %s11238_s15, %s18959_s15   ;;  %s11150_s14 = sphi %s11236_s14, %s18958_s14   ;;  %s11146_s13 = sphi %s11234_s13, %s18957_s13  }
   0xa   : > { %s72_s18 = ssub.s32 %s11154_s15, %s11253_s17  ;;  %s75_s19 = sadd.s32 1, %s11150_s14 }
   0xb   : > { %p73_p0 = scmp.eq.s32.totalorder %s72_s18, 0  ;;  %p82_p1 = scmp.ne.s32.totalorder %s11150_s14, %s11146_s13 }
   0xc   : > { %p83_p2 = scmp.eq.s32.totalorder %s11154_s15, 0  ;;  %p9863_p3 = scmp.ge.s32.totalorder %s11154_s15, 1 }
   0xd   : > { %s11263_s20 = scalar_select %p73_p0, %s11150_s14, %s75_s19  }
   0xe   : > { %p11265_p4 = por %p83_p2, %p82_p1  ;;  %p272_p5 = scmp.lt.s32.totalorder %s11154_s15, 3 }
   0xf   : > { %p10842_p6 = scmp.eq.s32.totalorder %s11250_s16, 0  ;;  %s17494_s0 = sld [smem:[#allocation306_spill]] }
  0x10   : > { %p11271_p7 = pnand %p9863_p3, %p272_p5 }
  0x12   : > { %p10838_p8 = pneg %p11271_p7 }
  0x14   : > { %p10839_p9 = pnand %p10842_p6, %p10838_p8 }
  0x15   : > { %s285_s25 = sshll.u32 %s17494_s0, 4  ;;  %s286_s25 = int_to_ptr.vmem [resolvable:$true] %s285_s25 }
  0x16   : > { %s11109_s26 = scalar_lea.vmem %s286_s25, 128  ;;  %p11111_p11 = pneg %p10839_p9 }
  0x17   : > { %p11110_p10 = scmp.ne.s32.totalorder %s286_s25, %s11109_s26  ;;  %p11117_p0 = scmp.lt.s32.totalorder %s286_s25, %s286_s25 }
  0x18   : > { %p11118_p1 = scmp.lt.s32.totalorder %s11109_s26, %s11109_s26 }
  0x19   : > { %p11112_p12 = pnand %p11111_p11, %p11110_p10 }
  0x1a   : > { %p11119_p2 = por %p11118_p1, %p11117_p0 }
  0x1b   : > { %p11113_p13 = pneg %p11112_p12 }
  0x1d   : > { %p11120_p3 = pnand %p11119_p2, %p11113_p13 }
  0x1f   : > { %11123 = shalt.err (!%p11120_p3)
}
  0x20   : > { %s11160_s27 = smov [#allocation4]   ;;  %p9865_p5 = scmp.ge.s32.totalorder %s11154_s15, 2 }
  0x21   : > { %10841 = dma.vmem_to_smem (!%p10839_p9), %s286_s25, 128, %s11160_s27, [#allocation5]  }
  0x22   : > { %313 = sbr.rel (%p9865_p5) target bundleno = 59 (0x3b), region = 48 }
  0x29   : > { %324 = sbr.rel (!%p11265_p4) target bundleno = 59 (0x3b), region = 56  ;;  %s326_s28 = sand.u32 (%p11265_p4), 1, %s11150_s14  }
  0x2a   : > { %s10334_s29 = sshll.u32 (%p11265_p4), %s11154_s15, 4  ;;  %s9866_s30 = sshll.u32 (%p11265_p4), %s326_s28, 7 }
  0x2b   : > { %s17495_s2 = sld [smem:[#allocation308_spill]] (%p11265_p4)  ;;  %s328_s19 = scalar_lea.vmem (%p11265_p4), [#allocation6], %s9866_s30 }
  0x31   : > { %s11290_s18 = scalar_lea.vmem %s17495_s2, %s10334_s29 }
  0x32   : > { %v344_v0 = vld [vmem:[%s11290_s18] sm:$0xff]  ;;  %v346_v1 = vld [vmem:[%s11290_s18 + $0x8] sm:$0xff] }
  0x33   : > { %v348_v2 = vld [vmem:[%s11290_s18 + $0x20] sm:$0xff]  ;;  %345 = vst [vmem:[%s328_s19] sm:$0xff] %v344_v0  ;;  %347 = vst [vmem:[%s328_s19 + $0x8] sm:$0xff] %v346_v1  ;;  %v350_v3 = vld [vmem:[%s11290_s18 + $0x28] sm:$0xff] }
  0x34   : > { %349 = vst [vmem:[%s328_s19 + $0x10] sm:$0xff] %v348_v2  ;;  %v352_v4 = vld [vmem:[%s11290_s18 + $0x40] sm:$0xff]  ;;  %v354_v5 = vld [vmem:[%s11290_s18 + $0x48] sm:$0xff]  ;;  %351 = vst [vmem:[%s328_s19 + $0x18] sm:$0xff] %v350_v3 }
  0x35   : > { %353 = vst [vmem:[%s328_s19 + $0x20] sm:$0xff] %v352_v4  ;;  %355 = vst [vmem:[%s328_s19 + $0x28] sm:$0xff] %v354_v5  ;;  %v356_v6 = vld [vmem:[%s11290_s18 + $0x60] sm:$0xff]  ;;  %v358_v7 = vld [vmem:[%s11290_s18 + $0x68] sm:$0xff] }
  0x36   : > { %v360_v8 = vld [vmem:[%s11290_s18 + $0x80] sm:$0xff]  ;;  %357 = vst [vmem:[%s328_s19 + $0x30] sm:$0xff] %v356_v6  ;;  %359 = vst [vmem:[%s328_s19 + $0x38] sm:$0xff] %v358_v7  ;;  %v362_v9 = vld [vmem:[%s11290_s18 + $0x88] sm:$0xff] }
  0x37   : > { %361 = vst [vmem:[%s328_s19 + $0x40] sm:$0xff] %v360_v8  ;;  %v364_v10 = vld [vmem:[%s11290_s18 + $0xa0] sm:$0xff]  ;;  %v366_v11 = vld [vmem:[%s11290_s18 + $0xa8] sm:$0xff]  ;;  %363 = vst [vmem:[%s328_s19 + $0x48] sm:$0xff] %v362_v9 }
  0x38   : > { %365 = vst [vmem:[%s328_s19 + $0x50] sm:$0xff] %v364_v10  ;;  %367 = vst [vmem:[%s328_s19 + $0x58] sm:$0xff] %v366_v11  ;;  %v368_v12 = vld [vmem:[%s11290_s18 + $0xc0] sm:$0xff]  ;;  %v370_v13 = vld [vmem:[%s11290_s18 + $0xc8] sm:$0xff] }
  0x39   : > { %v372_v14 = vld [vmem:[%s11290_s18 + $0xe0] sm:$0xff]  ;;  %369 = vst [vmem:[%s328_s19 + $0x60] sm:$0xff] %v368_v12  ;;  %371 = vst [vmem:[%s328_s19 + $0x68] sm:$0xff] %v370_v13  ;;  %v374_v15 = vld [vmem:[%s11290_s18 + $0xe8] sm:$0xff] }
  0x3a   : > { %373 = vst [vmem:[%s328_s19 + $0x70] sm:$0xff] %v372_v14  ;;  %375 = vst [vmem:[%s328_s19 + $0x78] sm:$0xff] %v374_v15 }
  0x3b PF: > { %384 = sbr.rel (%p11271_p7) target bundleno = 2194 (0x892), region = 79 }
  0x42   : > { %11141 = dma.done.wait (%p10842_p6), [#allocation5], 128  }
  0x43   : > { %11143 = vsyncadd (%p10842_p6), [#allocation5], 4294967168  ;;  %s391_s15 = sand.u32 1, %s11146_s13  }
  0x44   : > { %s11315_s21 = sshll.u32 %s391_s15, 7 }
  0x45   : > { %397 = sfence }
  0x46   : > { %p434_p4 = scmp.lt.s32.totalorder %s11250_s16, 1  ;;  %s17496_s1 = sld [smem:[#allocation307_spill]] }
  0x47   : > { %s17497_s10 = sld [smem:[#allocation311_spill]]  ;;  %s11328_s13 = smov 0  }
  0x48   : > { %s18961_s16 = smov (!%p434_p4, %s11250_s16), 1 }
  0x49   : > { %s10335_s24 = sshll.u32 %s18961_s16, 4 }
  0x4c   : > { %s438_s26 = scalar_lea.vmem %s17496_s1, %s10335_s24 }
  0x4d   : > { %s11326_s29 = scalar_lea.vmem %s17497_s10, %s10335_s24  ;;  %v445_v16 = vld [vmem:[%s438_s26] sm:$0xff]  ;;  %v446_v17 = vld [vmem:[%s438_s26 + $0x8] sm:$0xff] }
  0x4e   : > { %447 = vst [vmem:[#allocation2] sm:$0xff] %v445_v16  ;;  %448 = vst [vmem:[#allocation2 + $0x8] sm:$0xff] %v446_v17 }
  0x4f LB: >> { %s16820_s16 = smov 72   ;;  %v16824_v22 = vmov 0   ;;  %s16822_s30 = smov 73   ;;  %v481_v23 = vlaneseq  ;;  %v9876_v28 = vld [vmem:[%s16786_s3 + $0x4] sm:$0xf]  ;;  %vm522_vm0 = vcmask 588800   ;;  %s11158_s13 = sphi %s11328_s13, %s454_s13  }
  0x50   : >> { %629 = vmatprep.mubr.bf16.mxu0 %v16824_v22  ;;  %682 = vmatprep.mubr.bf16.mxu1 %v16824_v22  ;;  %s16806_s11 = smov 71   ;;  %s16804_s12 = smov 65   ;;  %v479_v33 = vld [vmem:[%s16786_s3] sm:$0xf]  ;;  %vm470_vm1 = vcmask 596992   ;;  %vm584_vm2 = vcmask 1041408  }
  0x51   : >> { %10895 = vset.pattern.permute.xlu0 %v16824_v22  ;;  %10896 = vset.pattern.permute.xlu1 %v16824_v22  ;;  %s16802_s18 = smov 64   ;;  %s16800_s19 = smov 63   ;;  %v482_v24 = vshrl.u32 %v481_v23, 7  ;;  %vm577_vm3 = vcmask 31744   ;;  %v9897_v7 = vld [vmem:[%s16786_s3 + $0x8] sm:$0xf] }
  0x52   : >> { %s16798_s15 = smov 57   ;;  %s16796_s24 = smov 56   ;;  %vm846_vm4 = vcmask 580608   ;;  %vm1050_vm5 = vcmask 531456   ;;  %vm1254_vm6 = vcmask 523264   ;;  %vm1458_vm7 = vcmask 515072  }
  0x53   : >> { %s16794_s22 = smov 55   ;;  %s16905_s25 = smov 9   ;;  %v11461_v25 = vsub.s32 1, %v482_v24  ;;  %v11467_v26 = vsub.s32 3, %v482_v24  ;;  %v11469_v27 = vsub.s32 0, %v482_v24  ;;  %v11474_v29 = vsub.s32 2, %v482_v24 }
  0x54   : >> { %s16903_s26 = smov 8   ;;  %s16860_s27 = smov 7   ;;  %vm16819_vm8 = vcmask 465920   ;;  %vm16818_vm9 = vcmask 457728   ;;  %vm16817_vm10 = vcmask 449536   ;;  %vm2274_vm11 = vcmask 72704  }
  0x55   : >> { %v11333_v18 = vld [vmem:[#allocation2 + $0x8] sm:$0xff]  ;;  %v11335_v19 = vld [vmem:[#allocation2] sm:$0xff]  ;;  %s16858_s28 = smov 1   ;;  %s16901_s23 = smov 127   ;;  %17498 = vst [vmem:[#allocation8_spill] sm:$0xff] %v11461_v25  ;;  %17499 = vst [vmem:[#allocation9_spill] sm:$0xff] %v11467_v26  ;;  %v541_v32 = vrot.slane %v9876_v28, %v11461_v25  ;;  %v549_v34 = vrot.slane %v9876_v28, %v11467_v26  ;;  %v537_v35 = vrot.slane %v9876_v28, %v11469_v27 }
  0x56   : >> { %v11339_v20 = vcombine.high %v11333_v18, %v11333_v18  ;;  %v11343_v21 = vcombine.high %v11335_v19, %v11335_v19  ;;  %17500 = vst [vmem:[#allocation10_spill] sm:$0xff] %v11469_v27  ;;  %17501 = vst [vmem:[#allocation11_spill] sm:$0xff] %v11474_v29  ;;  %v545_v36 = vrot.slane %v9876_v28, %v11474_v29  ;;  %s17506_s5 = sld [smem:[#allocation310_spill]]  ;;  %vm2478_vm12 = vcmask 64512   ;;  %s17508_s4 = sld [smem:[#allocation309_spill]] }
  0x57   : >> { %v11500_v43 = vrot.slane %v479_v33, %v11469_v27  ;;  %v11511_v51 = vrot.slane %v479_v33, %v11461_v25  ;;  %v11517_v55 = vrot.slane %v479_v33, %v11474_v29  ;;  %v11523_v58 = vrot.slane %v479_v33, %v11467_v26  ;;  %s17621_s0 = smov 1   ;;  %s17655_s1 = smov 9  }
  0x58   : >> { %513 = vrot.lane.b32.xlu0 %v11339_v20, %s16820_s16  ;;  %518 = vrot.lane.b32.xlu1 %v11343_v21, %s16820_s16  ;;  %v861_v14 = vrot.slane %v9897_v7, %v11469_v27  ;;  %v865_v15 = vrot.slane %v9897_v7, %v11461_v25  ;;  %v869_v23 = vrot.slane %v9897_v7, %v11474_v29  ;;  %vm2682_vm13 = vcmask 56320   ;;  %s10327_s2 = sshll.u32 %s11158_s13, 7 }
  0x59   : >> { %17502 = vst [vmem:[#allocation12_spill] sm:$0xff] %v11500_v43  ;;  %17503 = vst [vmem:[#allocation13_spill] sm:$0xff] %v11511_v51  ;;  %v873_v24 = vrot.slane %v9897_v7, %v11467_v26  ;;  %vm2886_vm14 = vcmask 7168   ;;  %vm3250_vm15 = vcmask 1039360  }
  0x5a   : >> { %17504 = vst [vmem:[#allocation14_spill] sm:$0xff] %v11517_v55  ;;  %17505 = vst [vmem:[#allocation15_spill] sm:$0xff] %v11523_v58 }
  0x5c   : >> { %516 = vrot.lane.b32.xlu0 %v11335_v19, %s16820_s16  ;;  %520 = vrot.lane.b32.xlu1 %v11333_v18, %s16820_s16  ;;  %v10899_v60 = vld [vmem:[%s17506_s5 + $0x10] sm:$0xff]   ;;  %v10900_v28 = vld [vmem:[%s17506_s5 + $0x18] sm:$0xff]   ;;  %s17517_s16 = smov 71  }
  0x60   : >> { %459 = vrot.lane.b32.xlu0 %v11339_v20, %s16822_s30  ;;  %464 = vrot.lane.b32.xlu1 %v11335_v19, %s16822_s30 }
  0x64   : >> { %466 = vrot.lane.b32.xlu0 %v11343_v21, %s16822_s30  ;;  %468 = vrot.lane.b32.xlu1 %v11333_v18, %s16822_s30 }
  0x68   : >> { %837 = vrot.lane.b32.xlu0 %v11339_v20, %s16806_s11  ;;  %840 = vrot.lane.b32.xlu1 %v11335_v19, %s16806_s11 }
  0x6c   : >> { %842 = vrot.lane.b32.xlu0 %v11343_v21, %s16806_s11  ;;  %844 = vrot.lane.b32.xlu1 %v11333_v18, %s16806_s11  ;;  %s10221_s11 = sshll.u32 %s11158_s13, 5 }
  0x6d   : >> { %s5733_s30 = scalar_lea.vmem %s17508_s4, %s10221_s11  ;;  %s17518_s11 = smov 65  }
  0x6e   : >> { %s18956_s4 = scalar_lea.vmem [#allocation6], %s11315_s21 }
  0x70   : >> { %1041 = vrot.lane.b32.xlu0 %v11339_v20, %s16804_s12  ;;  %1044 = vrot.lane.b32.xlu1 %v11335_v19, %s16804_s12 }
  0x74   : >> { %1046 = vrot.lane.b32.xlu0 %v11343_v21, %s16804_s12  ;;  %1048 = vrot.lane.b32.xlu1 %v11333_v18, %s16804_s12  ;;  %s17519_s12 = smov 64  }
  0x78   : >> { %1245 = vrot.lane.b32.xlu0 %v11339_v20, %s16802_s18  ;;  %1248 = vrot.lane.b32.xlu1 %v11335_v19, %s16802_s18 }
  0x7c   : >> { %1250 = vrot.lane.b32.xlu0 %v11343_v21, %s16802_s18  ;;  %1252 = vrot.lane.b32.xlu1 %v11333_v18, %s16802_s18  ;;  %s16897_s18 = smov 120  }
  0x80   : >> { %1449 = vrot.lane.b32.xlu0 %v11339_v20, %s16800_s19  ;;  %1452 = vrot.lane.b32.xlu1 %v11335_v19, %s16800_s19 }
  0x84   : >> { %1454 = vrot.lane.b32.xlu0 %v11343_v21, %s16800_s19  ;;  %1456 = vrot.lane.b32.xlu1 %v11333_v18, %s16800_s19  ;;  %s16895_s19 = smov 119  }
  0x88   : >> { %1653 = vrot.lane.b32.xlu0 %v11339_v20, %s16798_s15  ;;  %1656 = vrot.lane.b32.xlu1 %v11335_v19, %s16798_s15 }
  0x8c   : >> { %1658 = vrot.lane.b32.xlu0 %v11343_v21, %s16798_s15  ;;  %1660 = vrot.lane.b32.xlu1 %v11333_v18, %s16798_s15  ;;  %s17520_s15 = smov 63  }
  0x90   : >> { %1857 = vrot.lane.b32.xlu0 %v11339_v20, %s16796_s24  ;;  %1860 = vrot.lane.b32.xlu1 %v11335_v19, %s16796_s24 }
  0x94   : >> { %1862 = vrot.lane.b32.xlu0 %v11343_v21, %s16796_s24  ;;  %1864 = vrot.lane.b32.xlu1 %v11333_v18, %s16796_s24  ;;  %s17516_s24 = smov 72  }
  0x98   : >> { %2061 = vrot.lane.b32.xlu0 %v11339_v20, %s16794_s22  ;;  %2064 = vrot.lane.b32.xlu1 %v11335_v19, %s16794_s22 }
  0x9c   : >> { %2066 = vrot.lane.b32.xlu0 %v11343_v21, %s16794_s22  ;;  %2068 = vrot.lane.b32.xlu1 %v11333_v18, %s16794_s22  ;;  %s16899_s22 = smov 121  }
  0xa0   : >> { %2265 = vrot.lane.b32.xlu0 %v11339_v20, %s16905_s25  ;;  %2268 = vrot.lane.b32.xlu1 %v11335_v19, %s16905_s25 }
  0xa4   : >> { %2270 = vrot.lane.b32.xlu0 %v11343_v21, %s16905_s25  ;;  %2272 = vrot.lane.b32.xlu1 %v11333_v18, %s16905_s25 }
  0xa8   : >> { %2469 = vrot.lane.b32.xlu0 %v11339_v20, %s16903_s26  ;;  %2472 = vrot.lane.b32.xlu1 %v11335_v19, %s16903_s26 }
  0xac   : >> { %2474 = vrot.lane.b32.xlu0 %v11343_v21, %s16903_s26  ;;  %2476 = vrot.lane.b32.xlu1 %v11333_v18, %s16903_s26 }
  0xb0   : >> { %2673 = vrot.lane.b32.xlu0 %v11339_v20, %s16860_s27  ;;  %2676 = vrot.lane.b32.xlu1 %v11335_v19, %s16860_s27 }
  0xb4   : >> { %2678 = vrot.lane.b32.xlu0 %v11343_v21, %s16860_s27  ;;  %2680 = vrot.lane.b32.xlu1 %v11333_v18, %s16860_s27 }
  0xb8   : >> { %2877 = vrot.lane.b32.xlu0 %v11339_v20, %s16858_s28  ;;  %2880 = vrot.lane.b32.xlu1 %v11335_v19, %s16858_s28 }
  0xbc   : >> { %2882 = vrot.lane.b32.xlu0 %v11343_v21, %s16858_s28  ;;  %2884 = vrot.lane.b32.xlu1 %v11333_v18, %s16858_s28 }
  0xc0   : >> { %3242 = vrot.lane.b32.xlu0 %v11335_v19, %s16901_s23  ;;  %3244 = vrot.lane.b32.xlu1 %v11343_v21, %s16901_s23 }
  0xc4   : >> { %3246 = vrot.lane.b32.xlu0 %v11333_v18, %s16901_s23  ;;  %3248 = vrot.lane.b32.xlu1 %v11339_v20, %s16901_s23 }
  0xc8   : >> { %3446 = vrot.lane.b32.xlu0 %v11335_v19, %s16899_s22  ;;  %3448 = vrot.lane.b32.xlu1 %v11343_v21, %s16899_s22 }
  0xca   : >> { %v514_v30 = vpop.permute.xlu0 %513  ;;  %v519_v31 = vpop.permute.xlu1 %518 }
  0xcc   : >> { %3450 = vrot.lane.b32.xlu0 %v11333_v18, %s16899_s22  ;;  %3452 = vrot.lane.b32.xlu1 %v11339_v20, %s16899_s22 }
  0xce   : >> { %v517_v37 = vpop.permute.xlu0 %516  ;;  %v521_v38 = vpop.permute.xlu1 %520 }
  0xcf   : >> { %v11488_v39 = vsel %vm522_vm0, %v514_v30, %v517_v37  ;;  %v11491_v40 = vsel %vm522_vm0, %v519_v31, %v521_v38  ;;  %v11494_v41 = vsel %vm522_vm0, %v517_v37, %v519_v31  ;;  %v11497_v42 = vsel %vm522_vm0, %v521_v38, %v514_v30  ;;  %v9910_v38 = vld [vmem:[%s16786_s3 + $0xc] sm:$0xf] }
  0xd0   : >> { %v555_v44 = vmul.f32 %v541_v32, %v11494_v41  ;;  %3650 = vrot.lane.b32.xlu0 %v11335_v19, %s16897_s18  ;;  %v557_v45 = vmul.f32 %v549_v34, %v11497_v42  ;;  %v554_v46 = vmul.f32 %v537_v35, %v11488_v39  ;;  %v556_v47 = vmul.f32 %v545_v36, %v11491_v40 }
  0xd1   : >> { %3652 = vrot.lane.b32.xlu1 %v11343_v21, %s16897_s18 }
  0xd2   : >> { %v460_v48 = vpop.permute.xlu0 %459  ;;  %v465_v49 = vpop.permute.xlu1 %464  ;;  %v559_v50 = vpack.c.bf16 %v555_v44, %v555_v44  ;;  %v561_v53 = vpack.c.bf16 %v557_v45, %v557_v45  ;;  %v558_v54 = vpack.c.bf16 %v554_v46, %v554_v46  ;;  %v560_v57 = vpack.c.bf16 %v556_v47, %v556_v47 }
  0xd3   : >> { %v11514_v52 = vsel %vm470_vm1, %v460_v48, %v465_v49 }
  0xd4   : >> { %v501_v56 = vmul.f32 %v11500_v43, %v11514_v52  ;;  %9883 = vmatprep.subr.msk.bf16.mxu0 %vm584_vm2, %v559_v50  ;;  %3654 = vrot.lane.b32.xlu0 %v11333_v18, %s16897_s18  ;;  %v586_v59 = vsel %vm584_vm2, %v558_v54, 0  ;;  %v592_v62 = vsel %vm584_vm2, %v560_v57, 0  ;;  %v1069_v50 = vrot.slane %v9910_v38, %v11461_v25  ;;  %v10901_v54 = vld [vmem:[%s17506_s5] sm:$0xff]  }
  0xd5   : >> { %9886 = vmatprep.subr.msk.bf16.mxu1 %vm584_vm2, %v561_v53  ;;  %3656 = vrot.lane.b32.xlu1 %v11339_v20, %s16897_s18  ;;  %v1077_v53 = vrot.slane %v9910_v38, %v11467_v26 }
  0xd6   : >> { %v505_v61 = vpack.c.bf16 %v501_v56, %v501_v56  ;;  %598 = vmatpush1.bf16.msra.mxu0 %v586_v59  ;;  %v467_v63 = vpop.permute.xlu0 %466  ;;  %v469_v0 = vpop.permute.xlu1 %468  ;;  %651 = vmatpush1.bf16.msra.mxu1 %v592_v62 }
  0xd7   : >> { %v11536_v1 = vsel %vm470_vm1, %v465_v49, %v467_v63  ;;  %v11539_v2 = vsel %vm470_vm1, %v467_v63, %v469_v0  ;;  %v11542_v3 = vsel %vm470_vm1, %v469_v0, %v460_v48 }
  0xd8   : >> { %v502_v4 = vmul.f32 %v11511_v51, %v11536_v1  ;;  %v503_v5 = vmul.f32 %v11517_v55, %v11539_v2  ;;  %v504_v6 = vmul.f32 %v11523_v58, %v11542_v3  ;;  %v720_v11 = vsel %vm584_vm2, %v505_v61, 0  ;;  %3854 = vrot.lane.b32.xlu0 %v11335_v19, %s16895_s19 }
  0xd9   : >> { %9884 = vmatmul.mubr.msk.bf16.vlgmr.msra.gmra.mrb[0].mxu0 %vm577_vm3, %v10899_v60  ;;  %9887 = vmatmul.mubr.msk.bf16.vlgmr.msra.gmra.mrb[0].mxu1 %vm577_vm3, %v10899_v60 }
  0xda   : >> { %v506_v8 = vpack.c.bf16 %v502_v4, %v502_v4  ;;  %v507_v9 = vpack.c.bf16 %v503_v5, %v503_v5  ;;  %v508_v10 = vpack.c.bf16 %v504_v6, %v504_v6  ;;  %v838_v12 = vpop.permute.xlu0 %837  ;;  %v841_v13 = vpop.permute.xlu1 %840  ;;  %639 = vmatprep.mubr.bf16.mxu0 %v16824_v22  ;;  %692 = vmatprep.mubr.bf16.mxu1 %v16824_v22 }
  0xdb   : >> { %v11564_v17 = vsel %vm846_vm4, %v838_v12, %v841_v13  ;;  %3856 = vrot.lane.b32.xlu1 %v11343_v21, %s16895_s19  ;;  %v1065_v6 = vrot.slane %v9910_v38, %v11469_v27 }
  0xdc   : >> { %9891 = vmatprep.subr.msk.bf16.mxu0 %vm584_vm2, %v506_v8  ;;  %9894 = vmatprep.subr.msk.bf16.mxu1 %vm584_vm2, %v508_v10  ;;  %v726_v16 = vsel %vm584_vm2, %v507_v9, 0  ;;  %v878_v32 = vmul.f32 %v861_v14, %v11564_v17  ;;  %v1073_v9 = vrot.slane %v9910_v38, %v11474_v29  ;;  %v10902_v10 = vld [vmem:[%s17506_s5 + $0x8] sm:$0xff]  }
  0xdd   : >> { %732 = vmatpush1.bf16.msra.mxu0 %v720_v11  ;;  %785 = vmatpush1.bf16.msra.mxu1 %v726_v16 }
  0xde   : >> { %v843_v30 = vpop.permute.xlu0 %842  ;;  %v845_v31 = vpop.permute.xlu1 %844  ;;  %v882_v48 = vpack.c.bf16 %v878_v32, %v878_v32  ;;  %3858 = vrot.lane.b32.xlu0 %v11333_v18, %s16895_s19 }
  0xdf   : >> { %v11577_v33 = vsel %vm846_vm4, %v841_v13, %v843_v30  ;;  %v11580_v34 = vsel %vm846_vm4, %v843_v30, %v845_v31  ;;  %v11583_v35 = vsel %vm846_vm4, %v845_v31, %v838_v12  ;;  %3860 = vrot.lane.b32.xlu1 %v11339_v20, %s16895_s19  ;;  %v9923_v12 = vld [vmem:[%s16786_s3 + $0x10] sm:$0xf] }
  0xe0   : >> { %v879_v36 = vmul.f32 %v865_v15, %v11577_v33  ;;  %v880_v37 = vmul.f32 %v869_v23, %v11580_v34  ;;  %v881_v19 = vmul.f32 %v873_v24, %v11583_v35  ;;  %v908_v59 = vsel %vm584_vm2, %v882_v48, 0 }
  0xe1   : >> { %9885 = vmatmul.mubr.msk.bf16.gmra.mrb[4].mxu0 %vm577_vm3, %v10900_v28  ;;  %9888 = vmatmul.mubr.msk.bf16.gmra.mrb[4].mxu1 %vm577_vm3, %v10900_v28  ;;  %v1273_v23 = vrot.slane %v9923_v12, %v11461_v25  ;;  %v1281_v28 = vrot.slane %v9923_v12, %v11467_v26 }
  0xe2   : >> { %v883_v44 = vpack.c.bf16 %v879_v36, %v879_v36  ;;  %v885_v45 = vpack.c.bf16 %v881_v19, %v881_v19  ;;  %v1042_v46 = vpop.permute.xlu0 %1041  ;;  %v1045_v47 = vpop.permute.xlu1 %1044  ;;  %763 = vmatprep.mubr.bf16.mxu0 %v16824_v22  ;;  %816 = vmatprep.mubr.bf16.mxu1 %v16824_v22  ;;  %v884_v49 = vpack.c.bf16 %v880_v37, %v880_v37  ;;  %v10903_v37 = vld [vmem:[%s17506_s5 + $0x20] sm:$0xff]  }
  0xe3   : >> { %v11621_v8 = vsel %vm1050_vm5, %v1042_v46, %v1045_v47 }
  0xe4   : >> { %9904 = vmatprep.subr.msk.bf16.mxu0 %vm584_vm2, %v883_v44  ;;  %9907 = vmatprep.subr.msk.bf16.mxu1 %vm584_vm2, %v885_v45  ;;  %v914_v62 = vsel %vm584_vm2, %v884_v49, 0  ;;  %v1082_v14 = vmul.f32 %v1065_v6, %v11621_v8  ;;  %v1269_v49 = vrot.slane %v9923_v12, %v11469_v27 }
  0xe6   : >> { %v1047_v56 = vpop.permute.xlu0 %1046  ;;  %v1049_v57 = vpop.permute.xlu1 %1048  ;;  %v1086_v31 = vpack.c.bf16 %v1082_v14, %v1082_v14 }
  0xe7   : >> { %v11608_v60 = vsel %vm1050_vm5, %v1045_v47, %v1047_v56  ;;  %v11611_v61 = vsel %vm1050_vm5, %v1049_v57, %v1042_v46  ;;  %v11630_v11 = vsel %vm1050_vm5, %v1047_v56, %v1049_v57  ;;  %v9936_v57 = vld [vmem:[%s16786_s3 + $0x14] sm:$0xf] }
  0xe8   : >> { %v1083_v63 = vmul.f32 %v1069_v50, %v11608_v60  ;;  %v1085_v0 = vmul.f32 %v1077_v53, %v11611_v61  ;;  %v1084_v16 = vmul.f32 %v1073_v9, %v11630_v11  ;;  %v1112_v38 = vsel %vm584_vm2, %v1086_v31, 0 }
  0xe9   : >> { %9892 = vmatmul.mubr.msk.bf16.vlgmr.msra.gmra.mrb[0].mxu0 %vm577_vm3, %v10901_v54  ;;  %9895 = vmatmul.mubr.msk.bf16.vlgmr.msra.gmra.mrb[0].mxu1 %vm577_vm3, %v10901_v54  ;;  %v1277_v53 = vrot.slane %v9923_v12, %v11474_v29  ;;  %v10904_v54 = vld [vmem:[%s17506_s5 + $0x28] sm:$0xff]   ;;  %v10905_v12 = vld [vmem:[%s17506_s5 + $0x30] sm:$0xff]  }
  0xea   : >> { %920 = vmatpush1.bf16.msra.mxu0 %v908_v59  ;;  %v1087_v18 = vpack.c.bf16 %v1083_v63, %v1083_v63  ;;  %v1246_v4 = vpop.permute.xlu0 %1245  ;;  %v1249_v5 = vpop.permute.xlu1 %1248  ;;  %973 = vmatpush1.bf16.msra.mxu1 %v914_v62  ;;  %v1089_v7 = vpack.c.bf16 %v1085_v0, %v1085_v0  ;;  %v1088_v32 = vpack.c.bf16 %v1084_v16, %v1084_v16 }
  0xeb   : >> { %773 = vmatprep.mubr.bf16.mxu0 %v16824_v22  ;;  %826 = vmatprep.mubr.bf16.mxu1 %v16824_v22  ;;  %v11662_v50 = vsel %vm1254_vm6, %v1246_v4, %v1249_v5 }
  0xec   : >> { %9917 = vmatprep.subr.msk.bf16.mxu0 %vm584_vm2, %v1087_v18  ;;  %9920 = vmatprep.subr.msk.bf16.mxu1 %vm584_vm2, %v1089_v7  ;;  %v1118_v44 = vsel %vm584_vm2, %v1088_v32, 0  ;;  %v1286_v62 = vmul.f32 %v1269_v49, %v11662_v50  ;;  %v1477_v18 = vrot.slane %v9936_v57, %v11461_v25  ;;  %v1473_v32 = vrot.slane %v9936_v57, %v11469_v27 }
  0xee   : >> { %v1251_v13 = vpop.permute.xlu0 %1250  ;;  %v1253_v15 = vpop.permute.xlu1 %1252  ;;  %v1290_v7 = vpack.c.bf16 %v1286_v62, %v1286_v62 }
  0xef   : >> { %v11641_v24 = vsel %vm1254_vm6, %v1249_v5, %v1251_v13  ;;  %v11647_v30 = vsel %vm1254_vm6, %v1253_v15, %v1246_v4  ;;  %v11671_v56 = vsel %vm1254_vm6, %v1251_v13, %v1253_v15  ;;  %v1485_v5 = vrot.slane %v9936_v57, %v11467_v26 }
  0xf0   : >> { %v1287_v36 = vmul.f32 %v1273_v23, %v11641_v24  ;;  %v1289_v19 = vmul.f32 %v1281_v28, %v11647_v30  ;;  %v1288_v0 = vmul.f32 %v1277_v53, %v11671_v56  ;;  %v1316_v14 = vsel %vm584_vm2, %v1290_v7, 0 }
  0xf1   : >> { %9893 = vmatmul.mubr.msk.bf16.gmra.mrb[4].mxu0 %vm577_vm3, %v10902_v10  ;;  %9896 = vmatmul.mubr.msk.bf16.gmra.mrb[4].mxu1 %vm577_vm3, %v10902_v10 }
  0xf2   : >> { %951 = vmatprep.mubr.bf16.mxu0 %v16824_v22  ;;  %1004 = vmatprep.mubr.bf16.mxu1 %v16824_v22  ;;  %v1291_v45 = vpack.c.bf16 %v1287_v36, %v1287_v36  ;;  %v1450_v46 = vpop.permute.xlu0 %1449  ;;  %v1293_v47 = vpack.c.bf16 %v1289_v19, %v1289_v19  ;;  %v1453_v48 = vpop.permute.xlu1 %1452  ;;  %v1292_v9 = vpack.c.bf16 %v1288_v0, %v1288_v0  ;;  %v10906_v19 = vld [vmem:[%s17506_s5 + $0x38] sm:$0xff]   ;;  %v10907_v0 = vld [vmem:[%s17506_s5 + $0x40] sm:$0xff]  }
  0xf3   : >> { %v11703_v36 = vsel %vm1458_vm7, %v1450_v46, %v1453_v48 }
  0xf4   : >> { %v1322_v15 = vsel %vm584_vm2, %v1292_v9, 0 }
  0xf6   : >> { %v1455_v59 = vpop.permute.xlu0 %1454  ;;  %v1457_v63 = vpop.permute.xlu1 %1456 }
  0xf7   : >> { %v11682_v4 = vsel %vm1458_vm7, %v1453_v48, %v1455_v59  ;;  %v11688_v6 = vsel %vm1458_vm7, %v1457_v63, %v1450_v46  ;;  %v1490_v46 = vmul.f32 %v1473_v32, %v11703_v36 }
  0xf8   : >> { %v1491_v10 = vmul.f32 %v1477_v18, %v11682_v4  ;;  %v1493_v13 = vmul.f32 %v1485_v5, %v11688_v6 }
  0xf9   : >> { %9905 = vmatmul.mubr.msk.bf16.vlgmr.msra.gmra.mrb[0].mxu0 %vm577_vm3, %v10903_v37  ;;  %9908 = vmatmul.mubr.msk.bf16.vlgmr.msra.gmra.mrb[0].mxu1 %vm577_vm3, %v10903_v37  ;;  %v1481_v37 = vrot.slane %v9936_v57, %v11474_v29 }
  0xfa   : >> { %1124 = vmatpush1.bf16.msra.mxu0 %v1112_v38  ;;  %1177 = vmatpush1.bf16.msra.mxu1 %v1118_v44  ;;  %v1495_v16 = vpack.c.bf16 %v1491_v10, %v1491_v10  ;;  %v1654_v23 = vpop.permute.xlu0 %1653  ;;  %v1497_v28 = vpack.c.bf16 %v1493_v13, %v1493_v13  ;;  %v1657_v31 = vpop.permute.xlu1 %1656  ;;  %v11712_v38 = vsel %vm1458_vm7, %v1455_v59, %v1457_v63  ;;  %v9949_v44 = vld [vmem:[%s16786_s3 + $0x18] sm:$0xf] }
  0xfb   : >> { %961 = vmatprep.mubr.bf16.mxu0 %v16824_v22  ;;  %1014 = vmatprep.mubr.bf16.mxu1 %v16824_v22  ;;  %v1492_v48 = vmul.f32 %v1481_v37, %v11712_v38  ;;  %v1681_v49 = vrot.slane %v9949_v44, %v11461_v25  ;;  %v1494_v59 = vpack.c.bf16 %v1490_v46, %v1490_v46 }
  0xfc   : >> { %9930 = vmatprep.subr.msk.bf16.mxu0 %vm584_vm2, %v1291_v45  ;;  %9933 = vmatprep.subr.msk.bf16.mxu1 %vm584_vm2, %v1293_v47 }
  0xfd   : >> { %v1496_v62 = vpack.c.bf16 %v1492_v48, %v1492_v48  ;;  %v1520_v5 = vsel %vm584_vm2, %v1494_v59, 0 }
  0xfe   : >> { %v1659_v45 = vpop.permute.xlu0 %1658  ;;  %v1661_v47 = vpop.permute.xlu1 %1660 }
  0xff   : >> { %v11723_v53 = vsel %vm16819_vm8, %v1657_v31, %v1659_v45  ;;  %v11729_v57 = vsel %vm16819_vm8, %v1661_v47, %v1654_v23  ;;  %v1526_v7 = vsel %vm584_vm2, %v1496_v62, 0  ;;  %v11753_v32 = vsel %vm16819_vm8, %v1659_v45, %v1661_v47  ;;  %v10909_v62 = vld [vmem:[%s17506_s5 + $0x50] sm:$0xff]  }
 0x100   : >> { %v1695_v63 = vmul.f32 %v1681_v49, %v11723_v53 }
 0x101   : >> { %9906 = vmatmul.mubr.msk.bf16.gmra.mrb[4].mxu0 %vm577_vm3, %v10904_v54  ;;  %9909 = vmatmul.mubr.msk.bf16.gmra.mrb[4].mxu1 %vm577_vm3, %v10904_v54  ;;  %v1689_v54 = vrot.slane %v9949_v44, %v11467_v26 }
 0x102   : >> { %1155 = vmatprep.mubr.bf16.mxu0 %v16824_v22  ;;  %1208 = vmatprep.mubr.bf16.mxu1 %v16824_v22  ;;  %v1699_v9 = vpack.c.bf16 %v1695_v63, %v1695_v63  ;;  %v1858_v10 = vpop.permute.xlu0 %1857  ;;  %v1861_v13 = vpop.permute.xlu1 %1860 }
 0x103   : >> { %v1697_v18 = vmul.f32 %v1689_v54, %v11729_v57 }
 0x109   : >> { %9918 = vmatmul.mubr.msk.bf16.vlgmr.msra.gmra.mrb[0].mxu0 %vm577_vm3, %v10905_v12  ;;  %9921 = vmatmul.mubr.msk.bf16.vlgmr.msra.gmra.mrb[0].mxu1 %vm577_vm3, %v10905_v12  ;;  %v1701_v12 = vpack.c.bf16 %v1697_v18, %v1697_v18 }
 0x10a   : >> { %1328 = vmatpush1.bf16.msra.mxu0 %v1316_v14  ;;  %1381 = vmatpush1.bf16.msra.mxu1 %v1322_v15  ;;  %v1677_v14 = vrot.slane %v9949_v44, %v11469_v27  ;;  %v11744_v15 = vsel %vm16819_vm8, %v1654_v23, %v1657_v31  ;;  %v9962_v23 = vld [vmem:[%s16786_s3 + $0x1c] sm:$0xf]  ;;  %v1863_v31 = vpop.permute.xlu0 %1862  ;;  %vm3862_vm8 = vcmask 973824  }
 0x10b   : >> { %1165 = vmatprep.mubr.bf16.mxu0 %v16824_v22  ;;  %1218 = vmatprep.mubr.bf16.mxu1 %v16824_v22  ;;  %v1885_v46 = vrot.slane %v9962_v23, %v11461_v25  ;;  %v11764_v45 = vsel %vm16818_vm9, %v1861_v13, %v1863_v31  ;;  %v1893_v47 = vrot.slane %v9962_v23, %v11467_v26 }
 0x10c   : >> { %9943 = vmatprep.subr.msk.bf16.mxu0 %vm584_vm2, %v1495_v16  ;;  %9946 = vmatprep.subr.msk.bf16.mxu1 %vm584_vm2, %v1497_v28  ;;  %v1685_v16 = vrot.slane %v9949_v44, %v11474_v29  ;;  %v10908_v28 = vld [vmem:[%s17506_s5 + $0x48] sm:$0xff]   ;;  %v1694_v37 = vmul.f32 %v1677_v14, %v11744_v15  ;;  %v1881_v14 = vrot.slane %v9962_v23, %v11469_v27 }
 0x10d   : >> { %v1899_v59 = vmul.f32 %v1885_v46, %v11764_v45 }
 0x10e   : >> { %v1696_v44 = vmul.f32 %v1685_v16, %v11753_v32  ;;  %v1698_v49 = vpack.c.bf16 %v1694_v37, %v1694_v37  ;;  %v11785_v16 = vsel %vm16818_vm9, %v1858_v10, %v1861_v13  ;;  %v10910_v37 = vld [vmem:[%s17506_s5 + $0x58] sm:$0xff]  }
 0x10f   : >> { %v1898_v46 = vmul.f32 %v1881_v14, %v11785_v16 }
 0x110   : >> { %v1700_v54 = vpack.c.bf16 %v1696_v44, %v1696_v44 }
 0x111   : >> { %9919 = vmatmul.mubr.msk.bf16.gmra.mrb[4].mxu0 %vm577_vm3, %v10906_v19  ;;  %9922 = vmatmul.mubr.msk.bf16.gmra.mrb[4].mxu1 %vm577_vm3, %v10906_v19  ;;  %v1865_v19 = vpop.permute.xlu1 %1864 }
 0x112   : >> { %1359 = vmatprep.mubr.bf16.mxu0 %v16824_v22  ;;  %1412 = vmatprep.mubr.bf16.mxu1 %v16824_v22  ;;  %v11770_v48 = vsel %vm16818_vm9, %v1865_v19, %v1858_v10  ;;  %v1730_v18 = vsel %vm584_vm2, %v1700_v54, 0  ;;  %v11794_v44 = vsel %vm16818_vm9, %v1863_v31, %v1865_v19  ;;  %v9975_v10 = vld [vmem:[%s16786_s3 + $0x20] sm:$0xf]  ;;  %vm3658_vm9 = vcmask 982016  }
 0x113   : >> { %v1901_v63 = vmul.f32 %v1893_v47, %v11770_v48  ;;  %v2097_v19 = vrot.slane %v9975_v10, %v11467_v26 }
 0x119   : >> { %9931 = vmatmul.mubr.msk.bf16.vlgmr.msra.gmra.mrb[0].mxu0 %vm577_vm3, %v10907_v0  ;;  %9934 = vmatmul.mubr.msk.bf16.vlgmr.msra.gmra.mrb[0].mxu1 %vm577_vm3, %v10907_v0  ;;  %v1724_v0 = vsel %vm584_vm2, %v1698_v49, 0  ;;  %v2089_v49 = vrot.slane %v9975_v10, %v11461_v25 }
 0x11a   : >> { %1532 = vmatpush1.bf16.msra.mxu0 %v1520_v5  ;;  %1585 = vmatpush1.bf16.msra.mxu1 %v1526_v7  ;;  %v1903_v5 = vpack.c.bf16 %v1899_v59, %v1899_v59  ;;  %v2062_v7 = vpop.permute.xlu0 %2061  ;;  %v1902_v59 = vpack.c.bf16 %v1898_v46, %v1898_v46 }
 0x11b   : >> { %1369 = vmatprep.mubr.bf16.mxu0 %v16824_v22  ;;  %1422 = vmatprep.mubr.bf16.mxu1 %v16824_v22 }
 0x11c   : >> { %9956 = vmatprep.subr.msk.bf16.mxu0 %vm584_vm2, %v1699_v9  ;;  %9959 = vmatprep.subr.msk.bf16.mxu1 %vm584_vm2, %v1701_v12  ;;  %v1905_v9 = vpack.c.bf16 %v1901_v63, %v1901_v63  ;;  %v2065_v12 = vpop.permute.xlu1 %2064 }
 0x11e   : >> { %v2067_v13 = vpop.permute.xlu0 %2066 }
 0x11f   : >> { %v11805_v31 = vsel %vm16817_vm10, %v2065_v12, %v2067_v13 }
 0x120   : >> { %v2103_v63 = vmul.f32 %v2089_v49, %v11805_v31  ;;  %v11826_v49 = vsel %vm16817_vm10, %v2062_v7, %v2065_v12 }
 0x121   : >> { %9932 = vmatmul.mubr.msk.bf16.gmra.mrb[4].mxu0 %vm577_vm3, %v10908_v28  ;;  %9935 = vmatmul.mubr.msk.bf16.gmra.mrb[4].mxu1 %vm577_vm3, %v10908_v28  ;;  %v1889_v28 = vrot.slane %v9962_v23, %v11474_v29  ;;  %v2069_v23 = vpop.permute.xlu1 %2068 }
 0x122   : >> { %1563 = vmatprep.mubr.bf16.mxu0 %v16824_v22  ;;  %1616 = vmatprep.mubr.bf16.mxu1 %v16824_v22  ;;  %v11811_v54 = vsel %vm16817_vm10, %v2069_v23, %v2062_v7  ;;  %v2107_v14 = vpack.c.bf16 %v2103_v63, %v2103_v63  ;;  %v9988_v7 = vld [vmem:[%s16786_s3 + $0x24] sm:$0xf] }
 0x123   : >> { %v1900_v47 = vmul.f32 %v1889_v28, %v11794_v44  ;;  %17507 = vst [vmem:[#allocation16_spill] sm:$0xff] %v11811_v54  ;;  %v2266_v28 = vpop.permute.xlu0 %2265 }
 0x125   : >> { %v2269_v46 = vpop.permute.xlu1 %2268 }
 0x127   : >> { %v2271_v12 = vpop.permute.xlu0 %2270 }
 0x129   : >> { %9944 = vmatmul.mubr.msk.bf16.vlgmr.msra.gmra.mrb[0].mxu0 %vm577_vm3, %v10909_v62  ;;  %9947 = vmatmul.mubr.msk.bf16.vlgmr.msra.gmra.mrb[0].mxu1 %vm577_vm3, %v10909_v62  ;;  %v1904_v62 = vpack.c.bf16 %v1900_v47, %v1900_v47  ;;  %v2085_v47 = vrot.slane %v9975_v10, %v11469_v27 }
 0x12a   : >> { %1736 = vmatpush1.bf16.msra.mxu0 %v1724_v0  ;;  %1789 = vmatpush1.bf16.msra.mxu1 %v1730_v18  ;;  %v10911_v0 = vld [vmem:[%s17506_s5 + $0x60] sm:$0xff]   ;;  %v2105_v18 = vmul.f32 %v2097_v19, %v11811_v54  ;;  %v2093_v19 = vrot.slane %v9975_v10, %v11474_v29  ;;  %v2273_v10 = vpop.permute.xlu1 %2272 }
 0x12b   : >> { %1573 = vmatprep.mubr.bf16.mxu0 %v16824_v22  ;;  %1626 = vmatprep.mubr.bf16.mxu1 %v16824_v22  ;;  %v2102_v63 = vmul.f32 %v2085_v47, %v11826_v49  ;;  %v10913_v47 = vld [vmem:[%s17506_s5 + $0x70] sm:$0xff]  }
 0x12c   : >> { %9969 = vmatprep.subr.msk.bf16.mxu0 %vm584_vm2, %v1903_v5  ;;  %9972 = vmatprep.subr.msk.bf16.mxu1 %vm584_vm2, %v1905_v9  ;;  %v1928_v5 = vsel %vm584_vm2, %v1902_v59, 0  ;;  %v1934_v9 = vsel %vm584_vm2, %v1904_v62, 0  ;;  %v10912_v59 = vld [vmem:[%s17506_s5 + $0x68] sm:$0xff]   ;;  %v11835_v62 = vsel %vm16817_vm10, %v2067_v13, %v2069_v23  ;;  %v2275_v13 = vsel %vm2274_vm11, %v2269_v46, %v2271_v12 }
 0x12d   : >> { %v2301_v23 = vrot.slane %v9988_v7, %v11467_v26  ;;  %vm3454_vm10 = vcmask 990208  }
 0x12e   : >> { %v2473_v54 = vpop.permute.xlu1 %2472 }
 0x131   : >> { %9945 = vmatmul.mubr.msk.bf16.gmra.mrb[4].mxu0 %vm577_vm3, %v10910_v37  ;;  %9948 = vmatmul.mubr.msk.bf16.gmra.mrb[4].mxu1 %vm577_vm3, %v10910_v37  ;;  %v2109_v37 = vpack.c.bf16 %v2105_v18, %v2105_v18  ;;  %v2293_v18 = vrot.slane %v9988_v7, %v11461_v25 }
 0x132   : >> { %1767 = vmatprep.mubr.bf16.mxu0 %v16824_v22  ;;  %1820 = vmatprep.mubr.bf16.mxu1 %v16824_v22 }
 0x139   : >> { %9957 = vmatmul.mubr.msk.bf16.vlgmr.msra.gmra.mrb[0].mxu0 %vm577_vm3, %v10911_v0  ;;  %9960 = vmatmul.mubr.msk.bf16.vlgmr.msra.gmra.mrb[0].mxu1 %vm577_vm3, %v10911_v0  ;;  %v2104_v0 = vmul.f32 %v2093_v19, %v11835_v62 }
 0x13a   : >> { %1940 = vmatpush1.bf16.msra.mxu0 %v1928_v5  ;;  %1993 = vmatpush1.bf16.msra.mxu1 %v1934_v9  ;;  %v2277_v5 = vsel %vm2274_vm11, %v2273_v10, %v2266_v28  ;;  %v2106_v9 = vpack.c.bf16 %v2102_v63, %v2102_v63  ;;  %v2289_v63 = vrot.slane %v9988_v7, %v11469_v27 }
 0x13b   : >> { %1777 = vmatprep.mubr.bf16.mxu0 %v16824_v22  ;;  %1830 = vmatprep.mubr.bf16.mxu1 %v16824_v22  ;;  %v2309_v19 = vmul.f32 %v2301_v23, %v2277_v5  ;;  %v2276_v23 = vsel %vm2274_vm11, %v2271_v12, %v2273_v10 }
 0x13c   : >> { %9982 = vmatprep.subr.msk.bf16.mxu0 %vm584_vm2, %v2107_v14  ;;  %9985 = vmatprep.subr.msk.bf16.mxu1 %vm584_vm2, %v2109_v37  ;;  %v2108_v14 = vpack.c.bf16 %v2104_v0, %v2104_v0  ;;  %v2307_v37 = vmul.f32 %v2293_v18, %v2275_v13  ;;  %v2132_v58 = vsel %vm584_vm2, %v2106_v9, 0  ;;  %v2282_v0 = vsel %vm2274_vm11, %v2266_v28, %v2269_v46  ;;  %v10914_v13 = vld [vmem:[%s17506_s5 + $0x78] sm:$0xff]   ;;  %v2477_v46 = vpop.permute.xlu1 %2476 }
 0x13d   : >> { %v2313_v51 = vpack.c.bf16 %v2309_v19, %v2309_v19  ;;  %v2297_v18 = vrot.slane %v9988_v7, %v11474_v29  ;;  %v2306_v28 = vmul.f32 %v2289_v63, %v2282_v0 }
 0x13e   : >> { %v2138_v43 = vsel %vm584_vm2, %v2108_v14, 0  ;;  %v2311_v55 = vpack.c.bf16 %v2307_v37, %v2307_v37  ;;  %v10915_v37 = vld [vmem:[%s17506_s5 + $0x80] sm:$0xff]  }
 0x13f   : >> { %v2308_v5 = vmul.f32 %v2297_v18, %v2276_v23  ;;  %v2310_v12 = vpack.c.bf16 %v2306_v28, %v2306_v28 }
 0x140   : >> { %v2677_v23 = vpop.permute.xlu1 %2676 }
 0x141   : >> { %9958 = vmatmul.mubr.msk.bf16.gmra.mrb[4].mxu0 %vm577_vm3, %v10912_v59  ;;  %9961 = vmatmul.mubr.msk.bf16.gmra.mrb[4].mxu1 %vm577_vm3, %v10912_v59  ;;  %v2470_v59 = vpop.permute.xlu0 %2469  ;;  %v2312_v10 = vpack.c.bf16 %v2308_v5, %v2308_v5  ;;  %v2336_v19 = vsel %vm584_vm2, %v2310_v12, 0 }
 0x142   : >> { %1971 = vmatprep.mubr.bf16.mxu0 %v16824_v22  ;;  %2024 = vmatprep.mubr.bf16.mxu1 %v16824_v22  ;;  %v2486_v5 = vsel %vm2478_vm12, %v2470_v59, %v2473_v54 }
 0x143   : >> { %v2342_v63 = vsel %vm584_vm2, %v2312_v10, 0 }
 0x144   : >> { %v2681_v12 = vpop.permute.xlu1 %2680 }
 0x149   : >> { %9970 = vmatmul.mubr.msk.bf16.vlgmr.msra.gmra.mrb[0].mxu0 %vm577_vm3, %v10913_v47  ;;  %9973 = vmatmul.mubr.msk.bf16.vlgmr.msra.gmra.mrb[0].mxu1 %vm577_vm3, %v10913_v47 }
 0x14a   : >> { %2144 = vmatpush1.bf16.msra.mxu0 %v2132_v58  ;;  %2197 = vmatpush1.bf16.msra.mxu1 %v2138_v43  ;;  %v10001_v43 = vld [vmem:[%s16786_s3 + $0x28] sm:$0xf]  ;;  %v2475_v58 = vpop.permute.xlu0 %2474 }
 0x14b   : >> { %1981 = vmatprep.mubr.bf16.mxu0 %v16824_v22  ;;  %2034 = vmatprep.mubr.bf16.mxu1 %v16824_v22  ;;  %v2497_v7 = vrot.slane %v10001_v43, %v11461_v25  ;;  %v2505_v9 = vrot.slane %v10001_v43, %v11467_v26  ;;  %v2493_v28 = vrot.slane %v10001_v43, %v11469_v27 }
 0x14c   : >> { %9995 = vmatprep.subr.msk.bf16.mxu0 %vm584_vm2, %v2311_v55  ;;  %9998 = vmatprep.subr.msk.bf16.mxu1 %vm584_vm2, %v2313_v51  ;;  %v2479_v55 = vsel %vm2478_vm12, %v2473_v54, %v2475_v58  ;;  %v2481_v51 = vsel %vm2478_vm12, %v2477_v46, %v2470_v59 }
 0x14d   : >> { %v2511_v14 = vmul.f32 %v2497_v7, %v2479_v55  ;;  %v2513_v47 = vmul.f32 %v2505_v9, %v2481_v51  ;;  %v2501_v7 = vrot.slane %v10001_v43, %v11474_v29  ;;  %v10916_v55 = vld [vmem:[%s17506_s5 + $0x88] sm:$0xff]   ;;  %v2480_v9 = vsel %vm2478_vm12, %v2475_v58, %v2477_v46 }
 0x14e   : >> { %v2674_v18 = vpop.permute.xlu0 %2673  ;;  %v10014_v51 = vld [vmem:[%s16786_s3 + $0x2c] sm:$0xf]  ;;  %v2510_v59 = vmul.f32 %v2493_v28, %v2486_v5 }
 0x14f   : >> { %v2515_v0 = vpack.c.bf16 %v2511_v14, %v2511_v14  ;;  %v2512_v10 = vmul.f32 %v2501_v7, %v2480_v9  ;;  %v2701_v43 = vrot.slane %v10014_v51, %v11461_v25  ;;  %v2685_v58 = vsel %vm2682_vm13, %v2681_v12, %v2674_v18  ;;  %v2881_v9 = vpop.permute.xlu1 %2880 }
 0x150   : >> { %v2514_v46 = vpack.c.bf16 %v2510_v59, %v2510_v59  ;;  %v2697_v59 = vrot.slane %v10014_v51, %v11469_v27 }
 0x151   : >> { %9971 = vmatmul.mubr.msk.bf16.gmra.mrb[4].mxu0 %vm577_vm3, %v10914_v13  ;;  %9974 = vmatmul.mubr.msk.bf16.gmra.mrb[4].mxu1 %vm577_vm3, %v10914_v13  ;;  %v2517_v13 = vpack.c.bf16 %v2513_v47, %v2513_v47  ;;  %v2516_v47 = vpack.c.bf16 %v2512_v10, %v2512_v10  ;;  %v2690_v10 = vsel %vm2682_vm13, %v2674_v18, %v2677_v23 }
 0x152   : >> { %2175 = vmatprep.mubr.bf16.mxu0 %v16824_v22  ;;  %2228 = vmatprep.mubr.bf16.mxu1 %v16824_v22  ;;  %v2679_v54 = vpop.permute.xlu0 %2678 }
 0x153   : >> { %v2683_v14 = vsel %vm2682_vm13, %v2677_v23, %v2679_v54  ;;  %v2546_v28 = vsel %vm584_vm2, %v2516_v47, 0  ;;  %v2714_v23 = vmul.f32 %v2697_v59, %v2690_v10 }
 0x156   : >> { %v2878_v7 = vpop.permute.xlu0 %2877 }
 0x159   : >> { %9983 = vmatmul.mubr.msk.bf16.vlgmr.msra.gmra.mrb[0].mxu0 %vm577_vm3, %v10915_v37  ;;  %9986 = vmatmul.mubr.msk.bf16.vlgmr.msra.gmra.mrb[0].mxu1 %vm577_vm3, %v10915_v37  ;;  %v2709_v37 = vrot.slane %v10014_v51, %v11467_v26 }
 0x15a   : >> { %2348 = vmatpush1.bf16.msra.mxu0 %v2336_v19  ;;  %2401 = vmatpush1.bf16.msra.mxu1 %v2342_v63  ;;  %v2715_v19 = vmul.f32 %v2701_v43, %v2683_v14  ;;  %v10917_v63 = vld [vmem:[%s17506_s5 + $0x90] sm:$0xff]   ;;  %v2705_v43 = vrot.slane %v10014_v51, %v11474_v29  ;;  %v10918_v14 = vld [vmem:[%s17506_s5 + $0x98] sm:$0xff]   ;;  %v2883_v18 = vpop.permute.xlu0 %2882 }
 0x15b   : >> { %2185 = vmatprep.mubr.bf16.mxu0 %v16824_v22  ;;  %2238 = vmatprep.mubr.bf16.mxu1 %v16824_v22 }
 0x15c   : >> { %10008 = vmatprep.subr.msk.bf16.mxu0 %vm584_vm2, %v2515_v0  ;;  %10011 = vmatprep.subr.msk.bf16.mxu1 %vm584_vm2, %v2517_v13  ;;  %v2717_v0 = vmul.f32 %v2709_v37, %v2685_v58  ;;  %v2540_v13 = vsel %vm584_vm2, %v2514_v46, 0  ;;  %v2719_v5 = vpack.c.bf16 %v2715_v19, %v2715_v19  ;;  %v2684_v37 = vsel %vm2682_vm13, %v2679_v54, %v2681_v12  ;;  %v10027_v58 = vld [vmem:[%s16786_s3 + $0x30] sm:$0xf]  ;;  %v2885_v46 = vpop.permute.xlu1 %2884 }
 0x15d   : >> { %v2716_v47 = vmul.f32 %v2705_v43, %v2684_v37  ;;  %v2905_v51 = vrot.slane %v10027_v58, %v11461_v25  ;;  %v2887_v19 = vsel %vm2886_vm14, %v2881_v9, %v2883_v18  ;;  %v2889_v54 = vsel %vm2886_vm14, %v2885_v46, %v2878_v7 }
 0x15e   : >> { %v2718_v12 = vpack.c.bf16 %v2714_v23, %v2714_v23  ;;  %v2894_v37 = vsel %vm2886_vm14, %v2878_v7, %v2881_v9  ;;  %v2909_v23 = vrot.slane %v10027_v58, %v11474_v29 }
 0x161   : >> { %9984 = vmatmul.mubr.msk.bf16.gmra.mrb[4].mxu0 %vm577_vm3, %v10916_v55  ;;  %9987 = vmatmul.mubr.msk.bf16.gmra.mrb[4].mxu1 %vm577_vm3, %v10916_v55  ;;  %v2721_v55 = vpack.c.bf16 %v2717_v0, %v2717_v0  ;;  %v2720_v0 = vpack.c.bf16 %v2716_v47, %v2716_v47  ;;  %v10920_v47 = vld [vmem:[%s17506_s5 + $0xa8] sm:$0xff]  }
 0x162   : >> { %2379 = vmatprep.mubr.bf16.mxu0 %v16824_v22  ;;  %2432 = vmatprep.mubr.bf16.mxu1 %v16824_v22 }
 0x163   : >> { %v2750_v59 = vsel %vm584_vm2, %v2720_v0, 0  ;;  %v3245_v0 = vpop.permute.xlu1 %3244 }
 0x169   : >> { %9996 = vmatmul.mubr.msk.bf16.vlgmr.msra.gmra.mrb[0].mxu0 %vm577_vm3, %v10917_v63  ;;  %9999 = vmatmul.mubr.msk.bf16.vlgmr.msra.gmra.mrb[0].mxu1 %vm577_vm3, %v10917_v63  ;;  %v2913_v63 = vrot.slane %v10027_v58, %v11467_v26 }
 0x16a   : >> { %2552 = vmatpush1.bf16.msra.mxu0 %v2540_v13  ;;  %2605 = vmatpush1.bf16.msra.mxu1 %v2546_v28  ;;  %v2919_v13 = vmul.f32 %v2905_v51, %v2887_v19  ;;  %v10919_v28 = vld [vmem:[%s17506_s5 + $0xa0] sm:$0xff]   ;;  %v2888_v51 = vsel %vm2886_vm14, %v2883_v18, %v2885_v46 }
 0x16b   : >> { %2389 = vmatprep.mubr.bf16.mxu0 %v16824_v22  ;;  %2442 = vmatprep.mubr.bf16.mxu1 %v16824_v22 }
 0x16c   : >> { %10021 = vmatprep.subr.msk.bf16.mxu0 %vm584_vm2, %v2719_v5  ;;  %10024 = vmatprep.subr.msk.bf16.mxu1 %vm584_vm2, %v2721_v55  ;;  %v2921_v5 = vmul.f32 %v2913_v63, %v2889_v54  ;;  %v2744_v55 = vsel %vm584_vm2, %v2718_v12, 0  ;;  %v2923_v10 = vpack.c.bf16 %v2919_v13, %v2919_v13  ;;  %v2920_v63 = vmul.f32 %v2909_v23, %v2888_v51  ;;  %v3243_v12 = vpop.permute.xlu0 %3242  ;;  %v11106_v51 = vld [vmem:[#allocation2 + $0x8] sm:$0xff] }
 0x16d   : >> { %v3084_v54 = vpack.c.bf16 %v11343_v21, %v11343_v21  ;;  %v3086_v13 = vpack.c.bf16 %v11339_v20, %v11339_v20  ;;  %v10922_v21 = vld [vmem:[%s17506_s5 + $0xb8] sm:$0xff]  }
 0x16e   : >> { %v2925_v43 = vpack.c.bf16 %v2921_v5, %v2921_v5  ;;  %v2924_v9 = vpack.c.bf16 %v2920_v63, %v2920_v63  ;;  %v3249_v5 = vpop.permute.xlu1 %3248 }
 0x170   : >> { %v2954_v46 = vsel %vm584_vm2, %v2924_v9, 0  ;;  %v3247_v20 = vpop.permute.xlu0 %3246 }
 0x171   : >> { %9997 = vmatmul.mubr.msk.bf16.gmra.mrb[4].mxu0 %vm577_vm3, %v10918_v14  ;;  %10000 = vmatmul.mubr.msk.bf16.gmra.mrb[4].mxu1 %vm577_vm3, %v10918_v14  ;;  %v2901_v14 = vrot.slane %v10027_v58, %v11469_v27  ;;  %v10921_v58 = vld [vmem:[%s17506_s5 + $0xb0] sm:$0xff]  }
 0x172   : >> { %2583 = vmatprep.mubr.bf16.mxu0 %v16824_v22  ;;  %2636 = vmatprep.mubr.bf16.mxu1 %v16824_v22 }
 0x173   : >> { %v2918_v19 = vmul.f32 %v2901_v14, %v2894_v37  ;;  %v11105_v14 = vld [vmem:[#allocation2] sm:$0xff] }
 0x174   : >> { %v3083_v37 = vpack.c.bf16 %v11105_v14, %v11105_v14 }
 0x175   : >> { %v2922_v7 = vpack.c.bf16 %v2918_v19, %v2918_v19  ;;  %v3085_v19 = vpack.c.bf16 %v11106_v51, %v11106_v51 }
 0x177   : >> { %v2948_v18 = vsel %vm584_vm2, %v2922_v7, 0  ;;  %v3109_v7 = vsel %vm584_vm2, %v3083_v37, 0 }
 0x179   : >> { %10009 = vmatmul.mubr.msk.bf16.vlgmr.msra.gmra.mrb[0].mxu0 %vm577_vm3, %v10919_v28  ;;  %10012 = vmatmul.mubr.msk.bf16.vlgmr.msra.gmra.mrb[0].mxu1 %vm577_vm3, %v10919_v28  ;;  %v10052_v28 = vld [vmem:[%s16786_s3 + $0x38] sm:$0xf] }
 0x17a   : >> { %2756 = vmatpush1.bf16.msra.mxu0 %v2744_v55  ;;  %2809 = vmatpush1.bf16.msra.mxu1 %v2750_v59  ;;  %v3270_v55 = vrot.slane %v10052_v28, %v11461_v25  ;;  %v3252_v59 = vsel %vm3250_vm15, %v3245_v0, %v3247_v20 }
 0x17b   : >> { %2593 = vmatprep.mubr.bf16.mxu0 %v16824_v22  ;;  %2646 = vmatprep.mubr.bf16.mxu1 %v16824_v22 }
 0x17c   : >> { %10034 = vmatprep.subr.msk.bf16.mxu0 %vm584_vm2, %v2923_v10  ;;  %10037 = vmatprep.subr.msk.bf16.mxu1 %vm584_vm2, %v2925_v43  ;;  %v3278_v10 = vrot.slane %v10052_v28, %v11467_v26  ;;  %v3259_v43 = vsel %vm3250_vm15, %v3249_v5, %v3243_v12  ;;  %v3284_v23 = vmul.f32 %v3270_v55, %v3252_v59  ;;  %v10924_v59 = vld [vmem:[%s17506_s5 + $0xc8] sm:$0xff]  }
 0x17d   : >> { %v3274_v55 = vrot.slane %v10052_v28, %v11474_v29 }
 0x17e   : >> { %v3286_v63 = vmul.f32 %v3278_v10, %v3259_v43  ;;  %v3288_v9 = vpack.c.bf16 %v3284_v23, %v3284_v23  ;;  %v3253_v10 = vsel %vm3250_vm15, %v3247_v20, %v3249_v5  ;;  %v10065_v43 = vld [vmem:[%s16786_s3 + $0x3c] sm:$0xf] }
 0x17f   : >> { %v3285_v37 = vmul.f32 %v3274_v55, %v3253_v10 }
 0x181   : >> { %10010 = vmatmul.mubr.msk.bf16.gmra.mrb[4].mxu0 %vm577_vm3, %v10920_v47  ;;  %10013 = vmatmul.mubr.msk.bf16.gmra.mrb[4].mxu1 %vm577_vm3, %v10920_v47  ;;  %v10923_v47 = vld [vmem:[%s17506_s5 + $0xc0] sm:$0xff]   ;;  %v3289_v51 = vpack.c.bf16 %v3285_v37, %v3285_v37  ;;  %v10926_v37 = vld [vmem:[%s17506_s5 + $0xd8] sm:$0xff]  }
 0x182   : >> { %2787 = vmatprep.mubr.bf16.mxu0 %v16824_v22  ;;  %2840 = vmatprep.mubr.bf16.mxu1 %v16824_v22 }
 0x189   : >> { %10022 = vmatmul.mubr.msk.bf16.vlgmr.msra.gmra.mrb[0].mxu0 %vm577_vm3, %v10921_v58  ;;  %10025 = vmatmul.mubr.msk.bf16.vlgmr.msra.gmra.mrb[0].mxu1 %vm577_vm3, %v10921_v58  ;;  %v3447_v58 = vpop.permute.xlu0 %3446 }
 0x18a   : >> { %2960 = vmatpush1.bf16.msra.mxu0 %v2948_v18  ;;  %3013 = vmatpush1.bf16.msra.mxu1 %v2954_v46  ;;  %v3115_v18 = vsel %vm584_vm2, %v3085_v19, 0  ;;  %v3290_v46 = vpack.c.bf16 %v3286_v63, %v3286_v63  ;;  %v10925_v63 = vld [vmem:[%s17506_s5 + $0xd0] sm:$0xff]  }
 0x18b   : >> { %2797 = vmatprep.mubr.bf16.mxu0 %v16824_v22  ;;  %2850 = vmatprep.mubr.bf16.mxu1 %v16824_v22 }
 0x18c   : >> { %10046 = vmatprep.subr.msk.bf16.mxu0 %vm584_vm2, %v3084_v54  ;;  %10049 = vmatprep.subr.msk.bf16.mxu1 %vm584_vm2, %v3086_v13  ;;  %v3449_v54 = vpop.permute.xlu1 %3448  ;;  %v3266_v13 = vrot.slane %v10052_v28, %v11469_v27  ;;  %v3474_v28 = vrot.slane %v10065_v43, %v11461_v25 }
 0x18d   : >> { %v3451_v14 = vpop.permute.xlu0 %3450  ;;  %v3455_v10 = vsel %vm3454_vm10, %v3447_v58, %v3449_v54 }
 0x18e   : >> { %v3456_v23 = vsel %vm3454_vm10, %v3449_v54, %v3451_v14 }
 0x18f   : >> { %v3488_v19 = vmul.f32 %v3474_v28, %v3456_v23  ;;  %v10078_v23 = vld [vmem:[%s16786_s3 + $0x40] sm:$0xf] }
 0x191   : >> { %10023 = vmatmul.mubr.msk.bf16.gmra.mrb[4].mxu0 %vm577_vm3, %v10922_v21  ;;  %10026 = vmatmul.mubr.msk.bf16.gmra.mrb[4].mxu1 %vm577_vm3, %v10922_v21  ;;  %v3251_v21 = vsel %vm3250_vm15, %v3243_v12, %v3245_v0  ;;  %v3453_v0 = vpop.permute.xlu1 %3452 }
 0x192   : >> { %2991 = vmatprep.mubr.bf16.mxu0 %v16824_v22  ;;  %3044 = vmatprep.mubr.bf16.mxu1 %v16824_v22  ;;  %v3283_v12 = vmul.f32 %v3266_v13, %v3251_v21  ;;  %v3463_v20 = vsel %vm3454_vm10, %v3453_v0, %v3447_v58  ;;  %v3651_v13 = vpop.permute.xlu0 %3650  ;;  %v3457_v28 = vsel %vm3454_vm10, %v3451_v14, %v3453_v0 }
 0x194   : >> { %v3287_v5 = vpack.c.bf16 %v3283_v12, %v3283_v12  ;;  %v3478_v12 = vrot.slane %v10065_v43, %v11474_v29 }
 0x195   : >> { %v3653_v55 = vpop.permute.xlu1 %3652 }
 0x196   : >> { %v3655_v58 = vpop.permute.xlu0 %3654 }
 0x199   : >> { %10035 = vmatmul.mubr.msk.bf16.vlgmr.msra.gmra.mrb[0].mxu0 %vm577_vm3, %v10923_v47  ;;  %10038 = vmatmul.mubr.msk.bf16.vlgmr.msra.gmra.mrb[0].mxu1 %vm577_vm3, %v10923_v47  ;;  %v3482_v47 = vrot.slane %v10065_v43, %v11467_v26 }
 0x19a   : >> { %3121 = vmatpush1.bf16.msra.mxu0 %v3109_v7  ;;  %3001 = vmatprep.mubr.bf16.mxu0 %v16824_v22 }
 0x19b   : >> { %3054 = vmatprep.mubr.bf16.mxu1 %v16824_v22  ;;  %3174 = vmatpush1.bf16.msra.mxu1 %v3115_v18  ;;  %v3490_v7 = vmul.f32 %v3482_v47, %v3463_v20  ;;  %v3319_v18 = vsel %vm584_vm2, %v3289_v51, 0  ;;  %v3657_v47 = vpop.permute.xlu1 %3656  ;;  %v3489_v20 = vmul.f32 %v3478_v12, %v3457_v28  ;;  %v3686_v51 = vrot.slane %v10078_v23, %v11467_v26 }
 0x19c   : >> { %10059 = vmatprep.subr.msk.bf16.mxu0 %vm584_vm2, %v3288_v9  ;;  %10062 = vmatprep.subr.msk.bf16.mxu1 %vm584_vm2, %v3290_v46  ;;  %v3313_v9 = vsel %vm584_vm2, %v3287_v5, 0  ;;  %v3492_v46 = vpack.c.bf16 %v3488_v19, %v3488_v19  ;;  %v3660_v5 = vsel %vm3658_vm9, %v3653_v55, %v3655_v58  ;;  %v3667_v14 = vsel %vm3658_vm9, %v3657_v47, %v3651_v13 }
 0x19d   : >> { %v3494_v21 = vpack.c.bf16 %v3490_v7, %v3490_v7  ;;  %v3493_v19 = vpack.c.bf16 %v3489_v20, %v3489_v20  ;;  %v10927_v7 = vld [vmem:[%s17506_s5 + $0xe0] sm:$0xff]   ;;  %v3659_v28 = vsel %vm3658_vm9, %v3651_v13, %v3653_v55  ;;  %v10928_v20 = vld [vmem:[%s17506_s5 + $0xe8] sm:$0xff]  }
 0x19f   : >> { %v3857_v12 = vpop.permute.xlu1 %3856 }
 0x1a1   : >> { %10036 = vmatmul.mubr.msk.bf16.gmra.mrb[4].mxu0 %vm577_vm3, %v10924_v59  ;;  %10039 = vmatmul.mubr.msk.bf16.gmra.mrb[4].mxu1 %vm577_vm3, %v10924_v59  ;;  %v3470_v59 = vrot.slane %v10065_v43, %v11469_v27  ;;  %v3678_v43 = vrot.slane %v10078_v23, %v11461_v25 }
 0x1a2   : >> { %3152 = vmatprep.mubr.bf16.mxu0 %v16824_v22  ;;  %3205 = vmatprep.mubr.bf16.mxu1 %v16824_v22 }
 0x1a3   : >> { %v3487_v54 = vmul.f32 %v3470_v59, %v3455_v10  ;;  %v3855_v59 = vpop.permute.xlu0 %3854 }
 0x1a5   : >> { %v3491_v0 = vpack.c.bf16 %v3487_v54, %v3487_v54  ;;  %v3682_v54 = vrot.slane %v10078_v23, %v11474_v29 }
 0x1a7   : >> { %v3859_v13 = vpop.permute.xlu0 %3858 }
 0x1a9   : >> { %10047 = vmatmul.mubr.msk.bf16.vlgmr.msra.gmra.mrb[0].mxu0 %vm577_vm3, %v10925_v63  ;;  %10050 = vmatmul.mubr.msk.bf16.vlgmr.msra.gmra.mrb[0].mxu1 %vm577_vm3, %v10925_v63  ;;  %v3692_v63 = vmul.f32 %v3678_v43, %v3660_v5  ;;  %v3661_v43 = vsel %vm3658_vm9, %v3655_v58, %v3657_v47  ;;  %v10091_v5 = vld [vmem:[%s16786_s3 + $0x44] sm:$0xf] }
 0x1aa   : >> { %3325 = vmatpush1.bf16.msra.mxu0 %v3313_v9  ;;  %3378 = vmatpush1.bf16.msra.mxu1 %v3319_v18  ;;  %v3694_v9 = vmul.f32 %v3686_v51, %v3667_v14  ;;  %v3517_v18 = vsel %vm584_vm2, %v3491_v0, 0  ;;  %v3861_v51 = vpop.permute.xlu1 %3860  ;;  %v3693_v14 = vmul.f32 %v3682_v54, %v3661_v43  ;;  %v3864_v0 = vsel %vm3862_vm8, %v3857_v12, %v3859_v13  ;;  %v10930_v43 = vld [vmem:[%s17506_s5 + $0xf8] sm:$0xff]  }
 0x1ab   : >> { %3162 = vmatprep.mubr.bf16.mxu0 %v16824_v22  ;;  %3215 = vmatprep.mubr.bf16.mxu1 %v16824_v22  ;;  %v3871_v58 = vsel %vm3862_vm8, %v3861_v51, %v3855_v59  ;;  %v3863_v54 = vsel %vm3862_vm8, %v3855_v59, %v3857_v12 }
 0x1ac   : >> { %10072 = vmatprep.subr.msk.bf16.mxu0 %vm584_vm2, %v3492_v46  ;;  %10075 = vmatprep.subr.msk.bf16.mxu1 %vm584_vm2, %v3494_v21  ;;  %v3523_v46 = vsel %vm584_vm2, %v3493_v19, 0  ;;  %v3696_v21 = vpack.c.bf16 %v3692_v63, %v3692_v63  ;;  %v3698_v10 = vpack.c.bf16 %v3694_v9, %v3694_v9  ;;  %v3890_v19 = vrot.slane %v10091_v5, %v11467_v26  ;;  %v10929_v9 = vld [vmem:[%s17506_s5 + $0xf0] sm:$0xff]  }
 0x1ad   : >> { %v3697_v63 = vpack.c.bf16 %v3693_v14, %v3693_v14  ;;  %v10104_v14 = vld [vmem:[%s16786_s3 + $0x48] sm:$0xf] }
 0x1ae   : >> { %v4068_v12 = vrot.slane %v10104_v14, %v11461_v25 }
 0x1b1   : >> { %10048 = vmatmul.mubr.msk.bf16.gmra.mrb[4].mxu0 %vm577_vm3, %v10926_v37  ;;  %10051 = vmatmul.mubr.msk.bf16.gmra.mrb[4].mxu1 %vm577_vm3, %v10926_v37  ;;  %v3674_v37 = vrot.slane %v10078_v23, %v11469_v27  ;;  %v3882_v23 = vrot.slane %v10091_v5, %v11461_v25 }
 0x1b2   : >> { %3356 = vmatprep.mubr.bf16.mxu0 %v16824_v22  ;;  %3409 = vmatprep.mubr.bf16.mxu1 %v16824_v22 }
 0x1b3   : >> { %v3691_v55 = vmul.f32 %v3674_v37, %v3659_v28  ;;  %v3878_v28 = vrot.slane %v10091_v5, %v11469_v27 }
 0x1b5   : >> { %v3695_v47 = vpack.c.bf16 %v3691_v55, %v3691_v55  ;;  %v3865_v55 = vsel %vm3862_vm8, %v3859_v13, %v3861_v51  ;;  %v4082_v51 = vmul.f32 %v4068_v12, %v11539_v2  ;;  %v10932_v2 = vld [vmem:[%s17506_s5 + $0x108] sm:$0xff]  }
 0x1b9   : >> { %10060 = vmatmul.mubr.msk.bf16.vlgmr.msra.gmra.mrb[0].mxu0 %vm577_vm3, %v10927_v7  ;;  %10063 = vmatmul.mubr.msk.bf16.vlgmr.msra.gmra.mrb[0].mxu1 %vm577_vm3, %v10927_v7  ;;  %v3896_v7 = vmul.f32 %v3882_v23, %v3864_v0  ;;  %v3895_v23 = vmul.f32 %v3878_v28, %v3863_v54 }
 0x1ba   : >> { %3529 = vmatpush1.bf16.msra.mxu0 %v3517_v18  ;;  %3582 = vmatpush1.bf16.msra.mxu1 %v3523_v46  ;;  %v3898_v18 = vmul.f32 %v3890_v19, %v3871_v58  ;;  %v3721_v46 = vsel %vm584_vm2, %v3695_v47, 0  ;;  %v10931_v19 = vld [vmem:[%s17506_s5 + $0x100] sm:$0xff]  }
 0x1bb   : >> { %3366 = vmatprep.mubr.bf16.mxu0 %v16824_v22  ;;  %3419 = vmatprep.mubr.bf16.mxu1 %v16824_v22  ;;  %v3899_v0 = vpack.c.bf16 %v3895_v23, %v3895_v23 }
 0x1bc   : >> { %10085 = vmatprep.subr.msk.bf16.mxu0 %vm584_vm2, %v3696_v21  ;;  %10088 = vmatprep.subr.msk.bf16.mxu1 %vm584_vm2, %v3698_v10  ;;  %v3727_v21 = vsel %vm584_vm2, %v3697_v63, 0  ;;  %v3900_v10 = vpack.c.bf16 %v3896_v7, %v3896_v7  ;;  %v3902_v37 = vpack.c.bf16 %v3898_v18, %v3898_v18  ;;  %v4086_v7 = vpack.c.bf16 %v4082_v51, %v4082_v51  ;;  %v10117_v18 = vld [vmem:[%s16786_s3 + $0x4c] sm:$0xf] }
 0x1bd   : >> { %v3925_v47 = vsel %vm584_vm2, %v3899_v0, 0  ;;  %v4258_v12 = vrot.slane %v10117_v18, %v11474_v29 }
 0x1bf   : >> { %v4269_v51 = vmul.f32 %v4258_v12, %v11497_v42 }
 0x1c1   : >> { %10061 = vmatmul.mubr.msk.bf16.gmra.mrb[4].mxu0 %vm577_vm3, %v10928_v20  ;;  %10064 = vmatmul.mubr.msk.bf16.gmra.mrb[4].mxu1 %vm577_vm3, %v10928_v20  ;;  %v3886_v20 = vrot.slane %v10091_v5, %v11474_v29  ;;  %v4076_v5 = vrot.slane %v10104_v14, %v11467_v26 }
 0x1c2   : >> { %3560 = vmatprep.mubr.bf16.mxu0 %v16824_v22  ;;  %3613 = vmatprep.mubr.bf16.mxu1 %v16824_v22 }
 0x1c3   : >> { %v3897_v59 = vmul.f32 %v3886_v20, %v3865_v55  ;;  %v4084_v58 = vmul.f32 %v4076_v5, %v11514_v52  ;;  %v4064_v52 = vrot.slane %v10104_v14, %v11469_v27  ;;  %v10130_v5 = vld [vmem:[%s16786_s3 + $0x50] sm:$0xf] }
 0x1c5   : >> { %v3901_v13 = vpack.c.bf16 %v3897_v59, %v3897_v59 }
 0x1c7   : >> { %v3931_v63 = vsel %vm584_vm2, %v3901_v13, 0  ;;  %v4440_v13 = vrot.slane %v10130_v5, %v11461_v25 }
 0x1c9   : >> { %10073 = vmatmul.mubr.msk.bf16.vlgmr.msra.gmra.mrb[0].mxu0 %vm577_vm3, %v10929_v9  ;;  %10076 = vmatmul.mubr.msk.bf16.vlgmr.msra.gmra.mrb[0].mxu1 %vm577_vm3, %v10929_v9  ;;  %v4088_v9 = vpack.c.bf16 %v4084_v58, %v4084_v58 }
 0x1ca   : >> { %3733 = vmatpush1.bf16.msra.mxu0 %v3721_v46  ;;  %3786 = vmatpush1.bf16.msra.mxu1 %v3727_v21  ;;  %v4072_v46 = vrot.slane %v10104_v14, %v11474_v29  ;;  %v4254_v21 = vrot.slane %v10117_v18, %v11461_v25 }
 0x1cb   : >> { %3570 = vmatprep.mubr.bf16.mxu0 %v16824_v22  ;;  %3623 = vmatprep.mubr.bf16.mxu1 %v16824_v22 }
 0x1cc   : >> { %10098 = vmatprep.subr.msk.bf16.mxu0 %vm584_vm2, %v3900_v10  ;;  %10101 = vmatprep.subr.msk.bf16.mxu1 %vm584_vm2, %v3902_v37  ;;  %v4081_v10 = vmul.f32 %v4064_v52, %v11536_v1  ;;  %v4262_v37 = vrot.slane %v10117_v18, %v11467_v26  ;;  %v4083_v28 = vmul.f32 %v4072_v46, %v11542_v3  ;;  %v10143_v46 = vld [vmem:[%s16786_s3 + $0x54] sm:$0xf] }
 0x1cd   : >> { %v4268_v54 = vmul.f32 %v4254_v21, %v11491_v40  ;;  %v10934_v40 = vld [vmem:[%s17506_s5 + $0x118] sm:$0xff]   ;;  %v4630_v12 = vrot.slane %v10143_v46, %v11474_v29 }
 0x1ce   : >> { %v4085_v20 = vpack.c.bf16 %v4081_v10, %v4081_v10  ;;  %v4270_v1 = vmul.f32 %v4262_v37, %v11488_v39  ;;  %v4087_v55 = vpack.c.bf16 %v4083_v28, %v4083_v28  ;;  %v4250_v39 = vrot.slane %v10117_v18, %v11469_v27 }
 0x1cf   : >> { %v4272_v14 = vpack.c.bf16 %v4268_v54, %v4268_v54  ;;  %v4444_v18 = vrot.slane %v10130_v5, %v11474_v29  ;;  %v4626_v10 = vrot.slane %v10143_v46, %v11461_v25  ;;  %v4634_v28 = vrot.slane %v10143_v46, %v11467_v26 }
 0x1d0   : >> { %v4111_v3 = vsel %vm584_vm2, %v4085_v20, 0  ;;  %v4274_v23 = vpack.c.bf16 %v4270_v1, %v4270_v1  ;;  %v4117_v59 = vsel %vm584_vm2, %v4087_v55, 0  ;;  %v4267_v0 = vmul.f32 %v4250_v39, %v11494_v41  ;;  %v10935_v41 = vld [vmem:[%s17506_s5 + $0x120] sm:$0xff]   ;;  %v5735_v55 = vld [vmem:[%s5733_s30 + $0x8] sm:$0xff] }
 0x1d1   : >> { %10074 = vmatmul.mubr.msk.bf16.gmra.mrb[4].mxu0 %vm577_vm3, %v10930_v43  ;;  %10077 = vmatmul.mubr.msk.bf16.gmra.mrb[4].mxu1 %vm577_vm3, %v10930_v43  ;;  %v10933_v43 = vld [vmem:[%s17506_s5 + $0x110] sm:$0xff]   ;;  %v4455_v37 = vmul.f32 %v4444_v18, %v11583_v35  ;;  %v4640_v20 = vmul.f32 %v4626_v10, %v11630_v11  ;;  %v5734_v1 = vld [vmem:[%s5733_s30] sm:$0xff]  ;;  %v4622_v39 = vrot.slane %v10143_v46, %v11469_v27 }
 0x1d2   : >> { %3764 = vmatprep.mubr.bf16.mxu0 %v16824_v22  ;;  %3817 = vmatprep.mubr.bf16.mxu1 %v16824_v22  ;;  %v4271_v58 = vpack.c.bf16 %v4267_v0, %v4267_v0 }
 0x1d3   : >> { %v4459_v35 = vpack.c.bf16 %v4455_v37, %v4455_v37  ;;  %5740 = vperm.xlu0 %10895, %v5734_v1   ;;  %5745 = vperm.xlu1 %10896, %v5735_v55   ;;  %v4639_v0 = vmul.f32 %v4622_v39, %v11608_v60  ;;  %v10939_v60 = vld [vmem:[%s17506_s5 + $0x140] sm:$0xff]  }
 0x1d4   : >> { %v4297_v42 = vsel %vm584_vm2, %v4271_v58, 0 }
 0x1d5   : >> { %v4643_v58 = vpack.c.bf16 %v4639_v0, %v4639_v0  ;;  %v10195_v0 = vld [vmem:[%s16786_s3 + $0x64] sm:$0xf] }
 0x1d9   : >> { %10086 = vmatmul.mubr.msk.bf16.vlgmr.msra.gmra.mrb[0].mxu0 %vm577_vm3, %v10931_v19  ;;  %10089 = vmatmul.mubr.msk.bf16.vlgmr.msra.gmra.mrb[0].mxu1 %vm577_vm3, %v10931_v19  ;;  %v4448_v19 = vrot.slane %v10130_v5, %v11467_v26 }
 0x1da   : >> { %3937 = vmatpush1.bf16.msra.mxu0 %v3925_v47  ;;  %3990 = vmatpush1.bf16.msra.mxu1 %v3931_v63  ;;  %v4454_v47 = vmul.f32 %v4440_v13, %v11580_v34  ;;  %v4273_v63 = vpack.c.bf16 %v4269_v51, %v4269_v51  ;;  %v10936_v34 = vld [vmem:[%s17506_s5 + $0x128] sm:$0xff]   ;;  %v4641_v51 = vmul.f32 %v4630_v12, %v11611_v61  ;;  %v4669_v61 = vsel %vm584_vm2, %v4643_v58, 0 }
 0x1db   : >> { %10111 = vmatprep.subr.msk.bf16.mxu0 %vm584_vm2, %v4086_v7  ;;  %10114 = vmatprep.subr.msk.bf16.mxu1 %vm584_vm2, %v4088_v9  ;;  %v4456_v7 = vmul.f32 %v4448_v19, %v11564_v17  ;;  %v4436_v17 = vrot.slane %v10130_v5, %v11469_v27  ;;  %v10156_v5 = vld [vmem:[%s16786_s3 + $0x58] sm:$0xf]  ;;  %v5378_v58 = vrot.slane %v10195_v0, %v11467_v26 }
 0x1dc   : >> { %3774 = vmatprep.mubr.bf16.mxu0 %v16824_v22  ;;  %3827 = vmatprep.mubr.bf16.mxu1 %v16824_v22  ;;  %v4458_v9 = vpack.c.bf16 %v4454_v47, %v4454_v47  ;;  %v4812_v13 = vrot.slane %v10156_v5, %v11461_v25  ;;  %v4820_v19 = vrot.slane %v10156_v5, %v11467_v26 }
 0x1dd   : >> { %v4460_v52 = vpack.c.bf16 %v4456_v7, %v4456_v7  ;;  %v4453_v21 = vmul.f32 %v4436_v17, %v11577_v33  ;;  %v10937_v33 = vld [vmem:[%s17506_s5 + $0x130] sm:$0xff]  }
 0x1de   : >> { %v4826_v47 = vmul.f32 %v4812_v13, %v11671_v56  ;;  %v10940_v56 = vld [vmem:[%s17506_s5 + $0x148] sm:$0xff]  }
 0x1df   : >> { %v4457_v54 = vpack.c.bf16 %v4453_v21, %v4453_v21 }
 0x1e0   : >> { %v4830_v7 = vpack.c.bf16 %v4826_v47, %v4826_v47 }
 0x1e1   : >> { %10087 = vmatmul.mubr.msk.bf16.gmra.mrb[4].mxu0 %vm577_vm3, %v10932_v2  ;;  %10090 = vmatmul.mubr.msk.bf16.gmra.mrb[4].mxu1 %vm577_vm3, %v10932_v2  ;;  %v4303_v2 = vsel %vm584_vm2, %v4273_v63, 0  ;;  %v4483_v11 = vsel %vm584_vm2, %v4457_v54, 0  ;;  %v4828_v63 = vmul.f32 %v4820_v19, %v11662_v50  ;;  %v4808_v50 = vrot.slane %v10156_v5, %v11469_v27 }
 0x1e2   : >> { %3968 = vmatprep.mubr.bf16.mxu0 %v16824_v22  ;;  %4021 = vmatprep.mubr.bf16.mxu1 %v16824_v22 }
 0x1e3   : >> { %v4825_v17 = vmul.f32 %v4808_v50, %v11641_v24  ;;  %v10941_v24 = vld [vmem:[%s17506_s5 + $0x150] sm:$0xff]   ;;  %v10208_v50 = vld [vmem:[%s16786_s3 + $0x68] sm:$0xf] }
 0x1e5   : >> { %v4829_v21 = vpack.c.bf16 %v4825_v17, %v4825_v17  ;;  %v5564_v17 = vrot.slane %v10208_v50, %v11467_v26 }
 0x1e9   : >> { %10099 = vmatmul.mubr.msk.bf16.vlgmr.msra.gmra.mrb[0].mxu0 %vm577_vm3, %v10933_v43  ;;  %10102 = vmatmul.mubr.msk.bf16.vlgmr.msra.gmra.mrb[0].mxu1 %vm577_vm3, %v10933_v43  ;;  %v4642_v43 = vmul.f32 %v4634_v28, %v11621_v8  ;;  %v5736_v8 = vld [vmem:[%s5733_s30 + $0x10] sm:$0xff] }
 0x1ea   : >> { %4123 = vmatpush1.bf16.msra.mxu0 %v4111_v3  ;;  %4176 = vmatpush1.bf16.msra.mxu1 %v4117_v59  ;;  %v5737_v59 = vld [vmem:[%s5733_s30 + $0x18] sm:$0xff]  ;;  %s17515_s30 = smov 73  }
 0x1eb   : >> { %10124 = vmatprep.subr.msk.bf16.mxu0 %vm584_vm2, %v4272_v14  ;;  %10127 = vmatprep.subr.msk.bf16.mxu1 %vm584_vm2, %v4274_v23  ;;  %v4644_v14 = vpack.c.bf16 %v4640_v20, %v4640_v20  ;;  %v4646_v3 = vpack.c.bf16 %v4642_v43, %v4642_v43  ;;  %v4489_v23 = vsel %vm584_vm2, %v4459_v35, 0  ;;  %v10182_v43 = vld [vmem:[%s16786_s3 + $0x60] sm:$0xf] }
 0x1ec   : >> { %3978 = vmatprep.mubr.bf16.mxu0 %v16824_v22  ;;  %4031 = vmatprep.mubr.bf16.mxu1 %v16824_v22  ;;  %v5184_v55 = vrot.slane %v10182_v43, %v11461_v25 }
 0x1ed   : >> { %5755 = vperm.xlu0 %10895, %v5737_v59   ;;  %5750 = vperm.xlu1 %10896, %v5736_v8  }
 0x1f1   : >> { %10100 = vmatmul.mubr.msk.bf16.gmra.mrb[4].mxu0 %vm577_vm3, %v10934_v40  ;;  %10103 = vmatmul.mubr.msk.bf16.gmra.mrb[4].mxu1 %vm577_vm3, %v10934_v40  ;;  %v10938_v40 = vld [vmem:[%s17506_s5 + $0x138] sm:$0xff]  }
 0x1f2   : >> { %4154 = vmatprep.mubr.bf16.mxu0 %v16824_v22  ;;  %4207 = vmatprep.mubr.bf16.mxu1 %v16824_v22 }
 0x1f9   : >> { %10112 = vmatmul.mubr.msk.bf16.vlgmr.msra.gmra.mrb[0].mxu0 %vm577_vm3, %v10935_v41  ;;  %10115 = vmatmul.mubr.msk.bf16.vlgmr.msra.gmra.mrb[0].mxu1 %vm577_vm3, %v10935_v41  ;;  %v4645_v41 = vpack.c.bf16 %v4641_v51, %v4641_v51  ;;  %v5370_v51 = vrot.slane %v10195_v0, %v11461_v25 }
 0x1fa   : >> { %4309 = vmatpush1.bf16.msra.mxu0 %v4297_v42  ;;  %4362 = vmatpush1.bf16.msra.mxu1 %v4303_v2  ;;  %v10169_v2 = vld [vmem:[%s16786_s3 + $0x5c] sm:$0xf] }
 0x1fb   : >> { %10137 = vmatprep.subr.msk.bf16.mxu0 %vm584_vm2, %v4458_v9  ;;  %10140 = vmatprep.subr.msk.bf16.mxu1 %vm584_vm2, %v4460_v52  ;;  %v4832_v9 = vpack.c.bf16 %v4828_v63, %v4828_v63  ;;  %v4675_v42 = vsel %vm584_vm2, %v4645_v41, 0  ;;  %v4816_v52 = vrot.slane %v10156_v5, %v11474_v29  ;;  %v5006_v46 = vrot.slane %v10169_v2, %v11467_v26 }
 0x1fc   : >> { %4164 = vmatprep.mubr.bf16.mxu0 %v16824_v22  ;;  %4217 = vmatprep.mubr.bf16.mxu1 %v16824_v22  ;;  %v5002_v35 = vrot.slane %v10169_v2, %v11474_v29  ;;  %v5188_v5 = vrot.slane %v10182_v43, %v11474_v29  ;;  %v5386_v63 = vmul.f32 %v5378_v58, %v11785_v16 }
 0x1fd   : >> { %v4827_v18 = vmul.f32 %v4816_v52, %v11647_v30  ;;  %v5014_v28 = vmul.f32 %v5006_v46, %v11703_v36  ;;  %v4855_v30 = vsel %vm584_vm2, %v4829_v21, 0  ;;  %v4994_v36 = vrot.slane %v10169_v2, %v11469_v27 }
 0x1fe   : >> { %v5199_v19 = vmul.f32 %v5188_v5, %v11729_v57  ;;  %v5366_v16 = vrot.slane %v10195_v0, %v11469_v27  ;;  %v5556_v52 = vrot.slane %v10208_v50, %v11461_v25  ;;  %v5572_v21 = vmul.f32 %v5564_v17, %v11826_v49 }
 0x1ff   : >> { %v4831_v37 = vpack.c.bf16 %v4827_v18, %v4827_v18  ;;  %v5018_v20 = vpack.c.bf16 %v5014_v28, %v5014_v28  ;;  %v5011_v1 = vmul.f32 %v4994_v36, %v11682_v4  ;;  %v10943_v4 = vld [vmem:[%s17506_s5 + $0x160] sm:$0xff]   ;;  %v5552_v49 = vrot.slane %v10208_v50, %v11469_v27  ;;  %v10949_v36 = vld [vmem:[%s17506_s5 + $0x190] sm:$0xff]  }
 0x200   : >> { %v5203_v41 = vpack.c.bf16 %v5199_v19, %v5199_v19  ;;  %v5570_v18 = vmul.f32 %v5556_v52, %v11835_v62  ;;  %v10948_v62 = vld [vmem:[%s17506_s5 + $0x188] sm:$0xff]   ;;  %v5560_v28 = vrot.slane %v10208_v50, %v11474_v29 }
 0x201   : >> { %10113 = vmatmul.mubr.msk.bf16.gmra.mrb[4].mxu0 %vm577_vm3, %v10936_v34  ;;  %10116 = vmatmul.mubr.msk.bf16.gmra.mrb[4].mxu1 %vm577_vm3, %v10936_v34  ;;  %v4998_v34 = vrot.slane %v10169_v2, %v11461_v25 }
 0x202   : >> { %4340 = vmatprep.mubr.bf16.mxu0 %v16824_v22  ;;  %4393 = vmatprep.mubr.bf16.mxu1 %v16824_v22 }
 0x203   : >> { %v5012_v10 = vmul.f32 %v4998_v34, %v11712_v38  ;;  %v10942_v38 = vld [vmem:[%s17506_s5 + $0x158] sm:$0xff]  }
 0x205   : >> { %v5016_v54 = vpack.c.bf16 %v5012_v10, %v5012_v10  ;;  %v5574_v10 = vpack.c.bf16 %v5570_v18, %v5570_v18 }
 0x209   : >> { %10125 = vmatmul.mubr.msk.bf16.vlgmr.msra.gmra.mrb[0].mxu0 %vm577_vm3, %v10937_v33  ;;  %10128 = vmatmul.mubr.msk.bf16.vlgmr.msra.gmra.mrb[0].mxu1 %vm577_vm3, %v10937_v33  ;;  %v4861_v33 = vsel %vm584_vm2, %v4831_v37, 0 }
 0x20a   : >> { %4495 = vmatpush1.bf16.msra.mxu0 %v4483_v11  ;;  %4548 = vmatpush1.bf16.msra.mxu1 %v4489_v23  ;;  %v5192_v11 = vrot.slane %v10182_v43, %v11467_v26  ;;  %v5198_v23 = vmul.f32 %v5184_v55, %v11753_v32  ;;  %v10944_v32 = vld [vmem:[%s17506_s5 + $0x168] sm:$0xff]  }
 0x20b   : >> { %10150 = vmatprep.subr.msk.bf16.mxu0 %vm584_vm2, %v4644_v14  ;;  %10153 = vmatprep.subr.msk.bf16.mxu1 %vm584_vm2, %v4646_v3  ;;  %v5013_v14 = vmul.f32 %v5002_v35, %v11688_v6  ;;  %v5015_v3 = vpack.c.bf16 %v5011_v1, %v5011_v1  ;;  %v10951_v1 = vld [vmem:[%s17506_s5 + $0x1a0] sm:$0xff]   ;;  %v10952_v55 = vld [vmem:[%s17506_s5 + $0x1a8] sm:$0xff]  }
 0x20c   : >> { %4350 = vmatprep.mubr.bf16.mxu0 %v16824_v22  ;;  %4403 = vmatprep.mubr.bf16.mxu1 %v16824_v22  ;;  %v5200_v8 = vmul.f32 %v5192_v11, %v11744_v15  ;;  %v5202_v39 = vpack.c.bf16 %v5198_v23, %v5198_v23  ;;  %v5180_v15 = vrot.slane %v10182_v43, %v11469_v27  ;;  %v10950_v43 = vld [vmem:[%s17506_s5 + $0x198] sm:$0xff]  }
 0x20d   : >> { %v5017_v59 = vpack.c.bf16 %v5013_v14, %v5013_v14  ;;  %v5041_v6 = vsel %vm584_vm2, %v5015_v3, 0 }
 0x20e   : >> { %v5197_v13 = vmul.f32 %v5180_v15, %v11723_v53  ;;  %v10945_v53 = vld [vmem:[%s17506_s5 + $0x170] sm:$0xff]  }
 0x20f   : >> { %v5047_v12 = vsel %vm584_vm2, %v5017_v59, 0 }
 0x210   : >> { %v5201_v47 = vpack.c.bf16 %v5197_v13, %v5197_v13 }
 0x211   : >> { %10126 = vmatmul.mubr.msk.bf16.gmra.mrb[4].mxu0 %vm577_vm3, %v10938_v40  ;;  %10129 = vmatmul.mubr.msk.bf16.gmra.mrb[4].mxu1 %vm577_vm3, %v10938_v40  ;;  %v5204_v40 = vpack.c.bf16 %v5200_v8, %v5200_v8 }
 0x212   : >> { %4526 = vmatprep.mubr.bf16.mxu0 %v16824_v22  ;;  %4579 = vmatprep.mubr.bf16.mxu1 %v16824_v22  ;;  %v5227_v57 = vsel %vm584_vm2, %v5201_v47, 0 }
 0x219   : >> { %10138 = vmatmul.mubr.msk.bf16.vlgmr.msra.gmra.mrb[0].mxu0 %vm577_vm3, %v10939_v60  ;;  %10141 = vmatmul.mubr.msk.bf16.vlgmr.msra.gmra.mrb[0].mxu1 %vm577_vm3, %v10939_v60  ;;  %v5384_v60 = vmul.f32 %v5370_v51, %v11794_v44  ;;  %v10946_v44 = vld [vmem:[%s17506_s5 + $0x178] sm:$0xff]  }
 0x21a   : >> { %4681 = vmatpush1.bf16.msra.mxu0 %v4669_v61  ;;  %4734 = vmatpush1.bf16.msra.mxu1 %v4675_v42  ;;  %v5390_v61 = vpack.c.bf16 %v5386_v63, %v5386_v63  ;;  %v5374_v42 = vrot.slane %v10195_v0, %v11474_v29 }
 0x21b   : >> { %10163 = vmatprep.subr.msk.bf16.mxu0 %vm584_vm2, %v4830_v7  ;;  %10166 = vmatprep.subr.msk.bf16.mxu1 %vm584_vm2, %v4832_v9  ;;  %v5388_v7 = vpack.c.bf16 %v5384_v60, %v5384_v60  ;;  %v5233_v9 = vsel %vm584_vm2, %v5203_v41, 0 }
 0x21c   : >> { %4536 = vmatprep.mubr.bf16.mxu0 %v16824_v22  ;;  %4589 = vmatprep.mubr.bf16.mxu1 %v16824_v22  ;;  %v5385_v2 = vmul.f32 %v5374_v42, %v11770_v48 }
 0x21e   : >> { %v5389_v46 = vpack.c.bf16 %v5385_v2, %v5385_v2 }
 0x220   : >> { %v5419_v37 = vsel %vm584_vm2, %v5389_v46, 0 }
 0x221   : >> { %10139 = vmatmul.mubr.msk.bf16.gmra.mrb[4].mxu0 %vm577_vm3, %v10940_v56  ;;  %10142 = vmatmul.mubr.msk.bf16.gmra.mrb[4].mxu1 %vm577_vm3, %v10940_v56  ;;  %v5383_v56 = vmul.f32 %v5366_v16, %v11764_v45  ;;  %v10947_v45 = vld [vmem:[%s17506_s5 + $0x180] sm:$0xff]  }
 0x222   : >> { %4712 = vmatprep.mubr.bf16.mxu0 %v16824_v22  ;;  %4765 = vmatprep.mubr.bf16.mxu1 %v16824_v22 }
 0x223   : >> { %v5387_v34 = vpack.c.bf16 %v5383_v56, %v5383_v56 }
 0x225   : >> { %v5413_v48 = vsel %vm584_vm2, %v5387_v34, 0 }
 0x229   : >> { %10151 = vmatmul.mubr.msk.bf16.vlgmr.msra.gmra.mrb[0].mxu0 %vm577_vm3, %v10941_v24  ;;  %10154 = vmatmul.mubr.msk.bf16.vlgmr.msra.gmra.mrb[0].mxu1 %vm577_vm3, %v10941_v24  ;;  %v5576_v24 = vpack.c.bf16 %v5572_v21, %v5572_v21 }
 0x22a   : >> { %4867 = vmatpush1.bf16.msra.mxu0 %v4855_v30  ;;  %4920 = vmatpush1.bf16.msra.mxu1 %v4861_v33  ;;  %v17509_v30 = vld [vmem:[#allocation16_spill] sm:$0xff] }
 0x22b   : >> { %10176 = vmatprep.subr.msk.bf16.mxu0 %vm584_vm2, %v5016_v54  ;;  %10179 = vmatprep.subr.msk.bf16.mxu1 %vm584_vm2, %v5018_v20  ;;  %v5569_v54 = vmul.f32 %v5552_v49, %v11805_v31  ;;  %v5571_v20 = vmul.f32 %v5560_v28, %v17509_v30 }
 0x22c   : >> { %4722 = vmatprep.mubr.bf16.mxu0 %v16824_v22  ;;  %4775 = vmatprep.mubr.bf16.mxu1 %v16824_v22 }
 0x22d   : >> { %v5573_v33 = vpack.c.bf16 %v5569_v54, %v5569_v54 }
 0x22f   : >> { %v5599_v31 = vsel %vm584_vm2, %v5573_v33, 0 }
 0x231   : >> { %10152 = vmatmul.mubr.msk.bf16.gmra.mrb[4].mxu0 %vm577_vm3, %v10942_v38  ;;  %10155 = vmatmul.mubr.msk.bf16.gmra.mrb[4].mxu1 %vm577_vm3, %v10942_v38  ;;  %v5575_v38 = vpack.c.bf16 %v5571_v20, %v5571_v20 }
 0x232   : >> { %4898 = vmatprep.mubr.bf16.mxu0 %v16824_v22  ;;  %4951 = vmatprep.mubr.bf16.mxu1 %v16824_v22 }
 0x233   : >> { %v5605_v35 = vsel %vm584_vm2, %v5575_v38, 0 }
 0x239   : >> { %10164 = vmatmul.mubr.msk.bf16.vlgmr.msra.gmra.mrb[0].mxu0 %vm577_vm3, %v10943_v4  ;;  %10167 = vmatmul.mubr.msk.bf16.vlgmr.msra.gmra.mrb[0].mxu1 %vm577_vm3, %v10943_v4 }
 0x23a   : >> { %5053 = vmatpush1.bf16.msra.mxu0 %v5041_v6  ;;  %5106 = vmatpush1.bf16.msra.mxu1 %v5047_v12 }
 0x23b   : >> { %10189 = vmatprep.subr.msk.bf16.mxu0 %vm584_vm2, %v5202_v39  ;;  %10192 = vmatprep.subr.msk.bf16.mxu1 %vm584_vm2, %v5204_v40 }
 0x23c   : >> { %4908 = vmatprep.mubr.bf16.mxu0 %v16824_v22  ;;  %4961 = vmatprep.mubr.bf16.mxu1 %v16824_v22 }
 0x241   : >> { %10165 = vmatmul.mubr.msk.bf16.gmra.mrb[4].mxu0 %vm577_vm3, %v10944_v32  ;;  %10168 = vmatmul.mubr.msk.bf16.gmra.mrb[4].mxu1 %vm577_vm3, %v10944_v32 }
 0x242   : >> { %5084 = vmatprep.mubr.bf16.mxu0 %v16824_v22  ;;  %5137 = vmatprep.mubr.bf16.mxu1 %v16824_v22 }
 0x249   : >> { %10177 = vmatmul.mubr.msk.bf16.vlgmr.msra.gmra.mrb[0].mxu0 %vm577_vm3, %v10945_v53  ;;  %10180 = vmatmul.mubr.msk.bf16.vlgmr.msra.gmra.mrb[0].mxu1 %vm577_vm3, %v10945_v53 }
 0x24a   : >> { %5239 = vmatpush1.bf16.msra.mxu0 %v5227_v57  ;;  %5292 = vmatpush1.bf16.msra.mxu1 %v5233_v9 }
 0x24b   : >> { %10202 = vmatprep.subr.msk.bf16.mxu0 %vm584_vm2, %v5388_v7  ;;  %10205 = vmatprep.subr.msk.bf16.mxu1 %vm584_vm2, %v5390_v61 }
 0x24c   : >> { %5094 = vmatprep.mubr.bf16.mxu0 %v16824_v22  ;;  %5147 = vmatprep.mubr.bf16.mxu1 %v16824_v22 }
 0x251   : >> { %10178 = vmatmul.mubr.msk.bf16.gmra.mrb[4].mxu0 %vm577_vm3, %v10946_v44  ;;  %10181 = vmatmul.mubr.msk.bf16.gmra.mrb[4].mxu1 %vm577_vm3, %v10946_v44 }
 0x252   : >> { %5270 = vmatprep.mubr.bf16.mxu0 %v16824_v22  ;;  %5323 = vmatprep.mubr.bf16.mxu1 %v16824_v22  ;;  %v5741_v14 = vpop.permute.xlu0 %5740 }
 0x259   : >> { %10190 = vmatmul.mubr.msk.bf16.vlgmr.msra.gmra.mrb[0].mxu0 %vm577_vm3, %v10947_v45  ;;  %10193 = vmatmul.mubr.msk.bf16.vlgmr.msra.gmra.mrb[0].mxu1 %vm577_vm3, %v10947_v45 }
 0x25a   : >> { %5425 = vmatpush1.bf16.msra.mxu0 %v5413_v48  ;;  %5478 = vmatpush1.bf16.msra.mxu1 %v5419_v37 }
 0x25b   : >> { %10215 = vmatprep.subr.msk.bf16.mxu0 %vm584_vm2, %v5574_v10  ;;  %10218 = vmatprep.subr.msk.bf16.mxu1 %vm584_vm2, %v5576_v24  ;;  %v12451_v10 = vpop.permute.xlu1 %5745  ;;  %vm18196_vm2 = vcmask 465920  }
 0x25c   : >> { %5280 = vmatprep.mubr.bf16.mxu0 %v16824_v22  ;;  %5333 = vmatprep.mubr.bf16.mxu1 %v16824_v22 }
 0x261   : >> { %10191 = vmatmul.mubr.msk.bf16.gmra.mrb[4].mxu0 %vm577_vm3, %v10948_v62  ;;  %10194 = vmatmul.mubr.msk.bf16.gmra.mrb[4].mxu1 %vm577_vm3, %v10948_v62 }
 0x262   : >> { %5456 = vmatprep.mubr.bf16.mxu0 %v16824_v22  ;;  %5509 = vmatprep.mubr.bf16.mxu1 %v16824_v22 }
 0x269   : >> { %10203 = vmatmul.mubr.msk.bf16.vlgmr.msra.gmra.mrb[0].mxu0 %vm577_vm3, %v10949_v36  ;;  %10206 = vmatmul.mubr.msk.bf16.vlgmr.msra.gmra.mrb[0].mxu1 %vm577_vm3, %v10949_v36 }
 0x26a   : >> { %5611 = vmatpush1.bf16.msra.mxu0 %v5599_v31  ;;  %5664 = vmatpush1.bf16.msra.mxu1 %v5605_v35 }
 0x26b   : >> { %5466 = vmatprep.mubr.bf16.mxu0 %v16824_v22  ;;  %5519 = vmatprep.mubr.bf16.mxu1 %v16824_v22 }
 0x271   : >> { %10204 = vmatmul.mubr.msk.bf16.gmra.mrb[4].mxu0 %vm577_vm3, %v10950_v43  ;;  %10207 = vmatmul.mubr.msk.bf16.gmra.mrb[4].mxu1 %vm577_vm3, %v10950_v43  ;;  %v12539_v43 = vpop.permute.xlu1 %5750 }
 0x272   : >> { %5642 = vmatprep.mubr.bf16.mxu0 %v16824_v22  ;;  %5695 = vmatprep.mubr.bf16.mxu1 %v16824_v22 }
 0x279   : >> { %10216 = vmatmul.mubr.msk.bf16.vlgmr.msra.gmra.mrb[0].mxu0 %vm577_vm3, %v10951_v1  ;;  %10219 = vmatmul.mubr.msk.bf16.vlgmr.msra.gmra.mrb[0].mxu1 %vm577_vm3, %v10951_v1  ;;  %v12543_v1 = vpop.permute.xlu0 %5755 }
 0x27a   : >> { %5652 = vmatprep.mubr.bf16.mxu0 %v16824_v22  ;;  %5705 = vmatprep.mubr.bf16.mxu1 %v16824_v22  ;;  %17523 = vst [vmem:[#allocation23_spill] sm:$0xff] %v12543_v1 }
 0x281   : >> { %10217 = vmatmul.mubr.msk.bf16.gmra.mrb[4].mxu0 %vm577_vm3, %v10952_v55  ;;  %10220 = vmatmul.mubr.msk.bf16.gmra.mrb[4].mxu1 %vm577_vm3, %v10952_v55  ;;  %vm18205_vm3 = vmmov %vm18196_vm2 }
 0x34c   : >> { %v5644_v11 = vpop.f32.mrb[0].mxu0  ;;  %v5697_v23 = vpop.f32.mrb[0].mxu1 }
 0x34d   : >> { %v5758_v3 = vadd.f32 %v5741_v14, %v5644_v11  ;;  %v5646_v4 = vpop.f32.mrb[1].mxu0  ;;  %v5760_v59 = vadd.f32 %v5741_v14, %v5697_v23  ;;  %v5699_v39 = vpop.f32.mrb[1].mxu1 }
 0x34e   : >> { %v5759_v8 = vadd.f32 %v5741_v14, %v5646_v4  ;;  %v5648_v6 = vpop.f32.mrb[2].mxu0  ;;  %v5701_v12 = vpop.f32.mrb[2].mxu1  ;;  %v5761_v63 = vadd.f32 %v5741_v14, %v5699_v39 }
 0x34f   : >> { %v10222_v40 = vmul.f32 -1.442695, %v5758_v3  ;;  %v12391_v15 = vpop.f32.mrb[3].mxu0  ;;  %v10224_v32 = vmul.f32 -1.442695, %v5760_v59  ;;  %v12393_v0 = vpop.f32.mrb[3].mxu1  ;;  %v5762_v48 = vadd.f32 %v12451_v10, %v5648_v6  ;;  %v5764_v24 = vadd.f32 %v12451_v10, %v5701_v12 }
 0x350   : >> { %v10223_v5 = vmul.f32 -1.442695, %v5759_v8  ;;  %v10225_v44 = vmul.f32 -1.442695, %v5761_v63  ;;  %v5765_v31 = vadd.f32 %v12451_v10, %v12393_v0  ;;  %v5763_v23 = vadd.f32 %v12451_v10, %v12391_v15 }
 0x351   : >> { %10977 = vpow2.f32 %v10222_v40  ;;  %v10226_v37 = vmul.f32 -1.442695, %v5762_v48  ;;  %v10228_v49 = vmul.f32 -1.442695, %v5764_v24 }
 0x352   : >> { %10979 = vpow2.f32 %v10224_v32  ;;  %v10229_v35 = vmul.f32 -1.442695, %v5765_v31  ;;  %v10227_v39 = vmul.f32 -1.442695, %v5763_v23 }
 0x353   : >> { %10981 = vpow2.f32 %v10223_v5 }
 0x354   : >> { %v12395_v13 = vpop.f32.mrb[4].mxu0  ;;  %v12397_v51 = vpop.f32.mrb[4].mxu1 }
 0x355   : >> { %v12399_v19 = vpop.f32.mrb[5].mxu0  ;;  %v12401_v58 = vpop.f32.mrb[5].mxu1 }
 0x356   : >> { %v12403_v47 = vpop.f32.mrb[6].mxu0  ;;  %v12405_v60 = vpop.f32.mrb[6].mxu1 }
 0x357   : >> { %v12407_v53 = vpop.f32.mrb[7].mxu0  ;;  %v12409_v41 = vpop.f32.mrb[7].mxu1 }
 0x358   : >> { %17510 = vst [vmem:[#allocation16_spill] sm:$0xff] %v12407_v53 }
 0x35b   : >> { %v10978_v7 = vpop.eup %10977 }
 0x35c   : >> { %v10980_v57 = vpop.eup %10979  ;;  %v5822_v61 = vadd.f32 1.0, %v10978_v7 }
 0x35d   : >> { %v10982_v9 = vpop.eup %10981  ;;  %v5824_v16 = vadd.f32 1.0, %v10980_v57 }
 0x35e   : >> { %10983 = vrcp.f32 %v5822_v61  ;;  %v5823_v42 = vadd.f32 1.0, %v10982_v9 }
 0x35f   : >> { %10985 = vrcp.f32 %v5824_v16 }
 0x360   : >> { %10987 = vrcp.f32 %v5823_v42 }
 0x361   : >> { %10989 = vpow2.f32 %v10225_v44 }
 0x368   : >> { %v10984_v50 = vpop.eup %10983 }
 0x369   : >> { %v10986_v56 = vpop.eup %10985  ;;  %v12411_v52 = vmul.f32 %v10984_v50, %v5758_v3 }
 0x36a   : >> { %v10988_v2 = vpop.eup %10987  ;;  %v12417_v18 = vmul.f32 %v10986_v56, %v5760_v59 }
 0x36b   : >> { %17511 = vst [vmem:[#allocation17_spill] sm:$0xff] %v12411_v52  ;;  %v10990_v17 = vpop.eup %10989  ;;  %v12413_v34 = vmul.f32 %v10988_v2, %v5759_v8  ;;  %7070 = vrot.lane.b32.xlu1 %v12411_v52, %s16905_s25 }
 0x36c   : >> { %17513 = vst [vmem:[#allocation19_spill] sm:$0xff] %v12417_v18  ;;  %v5825_v45 = vadd.f32 1.0, %v10990_v17 }
 0x36d   : >> { %17512 = vst [vmem:[#allocation18_spill] sm:$0xff] %v12413_v34  ;;  %7072 = vrot.lane.b32.xlu0 %v12413_v34, %s16905_s25 }
 0x36e   : >> { %10991 = vrcp.f32 %v5825_v45 }
 0x36f   : >> { %7074 = vrot.lane.b32.xlu1 %v12417_v18, %s16905_s25  ;;  %10993 = vpow2.f32 %v10226_v37 }
 0x370   : >> { %10995 = vpow2.f32 %v10228_v49 }
 0x371   : >> { %7194 = vrot.lane.b32.xlu0 %v12413_v34, %s16903_s26 }
 0x373   : >> { %7192 = vrot.lane.b32.xlu1 %v12411_v52, %s16903_s26 }
 0x375   : >> { %7316 = vrot.lane.b32.xlu0 %v12413_v34, %s16860_s27 }
 0x377   : >> { %7196 = vrot.lane.b32.xlu1 %v12417_v18, %s16903_s26 }
 0x378   : >> { %v10992_v46 = vpop.eup %10991 }
 0x379   : >> { %7438 = vrot.lane.b32.xlu0 %v12413_v34, %s16858_s28  ;;  %v12437_v21 = vmul.f32 %v10992_v46, %v5761_v63  ;;  %v10994_v62 = vpop.eup %10993 }
 0x37a   : >> { %v5826_v28 = vadd.f32 1.0, %v10994_v62  ;;  %v10996_v54 = vpop.eup %10995 }
 0x37b   : >> { %7314 = vrot.lane.b32.xlu1 %v12411_v52, %s16860_s27  ;;  %17514 = vst [vmem:[#allocation20_spill] sm:$0xff] %v12437_v21  ;;  %v5828_v30 = vadd.f32 1.0, %v10996_v54 }
 0x37c   : >> { %10997 = vrcp.f32 %v5826_v28 }
 0x37d   : >> { %7564 = vrot.lane.b32.xlu0 %v12413_v34, %s16901_s23  ;;  %10999 = vrcp.f32 %v5828_v30 }
 0x37e   : >> { %11001 = vpow2.f32 %v10229_v35 }
 0x37f   : >> { %7318 = vrot.lane.b32.xlu1 %v12417_v18, %s16860_s27  ;;  %11003 = vpow2.f32 %v10227_v39  ;;  %v12693_v39 = vadd.f32 %v12539_v43, %v12397_v51 }
 0x381   : >> { %7568 = vrot.lane.b32.xlu0 %v12437_v21, %s16901_s23 }
 0x383   : >> { %7436 = vrot.lane.b32.xlu1 %v12411_v52, %s16858_s28 }
 0x385   : >> { %7686 = vrot.lane.b32.xlu0 %v12413_v34, %s16899_s22 }
 0x386   : >> { %v10998_v20 = vpop.eup %10997 }
 0x387   : >> { %7440 = vrot.lane.b32.xlu1 %v12417_v18, %s16858_s28  ;;  %v12495_v33 = vmul.f32 %v10998_v20, %v5762_v48  ;;  %v11000_v36 = vpop.eup %10999 }
 0x388   : >> { %v12501_v38 = vmul.f32 %v11000_v36, %v5764_v24  ;;  %v11002_v59 = vpop.eup %11001 }
 0x389   : >> { %7690 = vrot.lane.b32.xlu0 %v12437_v21, %s16899_s22  ;;  %17521 = vst [vmem:[#allocation21_spill] sm:$0xff] %v12495_v33  ;;  %v5829_v40 = vadd.f32 1.0, %v11002_v59  ;;  %v11004_v7 = vpop.eup %11003 }
 0x38a   : >> { %17522 = vst [vmem:[#allocation22_spill] sm:$0xff] %v12501_v38  ;;  %v5827_v16 = vadd.f32 1.0, %v11004_v7 }
 0x38b   : >> { %7562 = vrot.lane.b32.xlu1 %v12411_v52, %s16901_s23  ;;  %11005 = vrcp.f32 %v5829_v40 }
 0x38c   : >> { %11007 = vrcp.f32 %v5827_v16 }
 0x38d   : >> { %7808 = vrot.lane.b32.xlu0 %v12413_v34, %s16897_s18 }
 0x38f   : >> { %7566 = vrot.lane.b32.xlu1 %v12417_v18, %s16901_s23 }
 0x391   : >> { %7812 = vrot.lane.b32.xlu0 %v12437_v21, %s16897_s18 }
 0x393   : >> { %7684 = vrot.lane.b32.xlu1 %v12411_v52, %s16899_s22 }
 0x395   : >> { %7930 = vrot.lane.b32.xlu0 %v12413_v34, %s16895_s19  ;;  %v11006_v61 = vpop.eup %11005 }
 0x396   : >> { %v12609_v44 = vmul.f32 %v11006_v61, %v5765_v31  ;;  %v11008_v10 = vpop.eup %11007  ;;  %v5766_v31 = vadd.f32 %v12539_v43, %v12395_v13  ;;  %v10232_v61 = vmul.f32 -1.442695, %v12693_v39 }
 0x397   : >> { %7688 = vrot.lane.b32.xlu1 %v12417_v18, %s16899_s22  ;;  %v12643_v24 = vmul.f32 %v11008_v10, %v5763_v23  ;;  %v12685_v23 = vadd.f32 %v12539_v43, %v12399_v19 }
 0x398   : >> { %17536 = vst [vmem:[#allocation36_spill] sm:$0xff] %v12609_v44  ;;  %v10230_v40 = vmul.f32 -1.442695, %v5766_v31 }
 0x399   : >> { %7934 = vrot.lane.b32.xlu0 %v12437_v21, %s16895_s19  ;;  %17545 = vst [vmem:[#allocation45_spill] sm:$0xff] %v12643_v24  ;;  %v10231_v7 = vmul.f32 -1.442695, %v12685_v23 }
 0x39a   : >> { %11009 = vpow2.f32 %v10230_v40 }
 0x39b   : >> { %7806 = vrot.lane.b32.xlu1 %v12411_v52, %s16897_s18  ;;  %11011 = vpow2.f32 %v10231_v7 }
 0x39c   : >> { %11013 = vpow2.f32 %v10232_v61 }
 0x39d   : >> { %5916 = vrot.lane.b32.xlu0 %v12413_v34, %s17515_s30 }
 0x39f   : >> { %7810 = vrot.lane.b32.xlu1 %v12417_v18, %s16897_s18 }
 0x3a1   : >> { %6016 = vrot.lane.b32.xlu0 %v12413_v34, %s17516_s24 }
 0x3a3   : >> { %7928 = vrot.lane.b32.xlu1 %v12411_v52, %s16895_s19 }
 0x3a4   : >> { %v11010_v7 = vpop.eup %11009 }
 0x3a5   : >> { %6138 = vrot.lane.b32.xlu0 %v12413_v34, %s17517_s16 }
 0x3a7   : >> { %7932 = vrot.lane.b32.xlu1 %v12417_v18, %s16895_s19 }
 0x3a9   : >> { %6260 = vrot.lane.b32.xlu0 %v12413_v34, %s17518_s11 }
 0x3ab   : >> { %5914 = vrot.lane.b32.xlu1 %v12411_v52, %s17515_s30 }
 0x3ad   : >> { %6382 = vrot.lane.b32.xlu0 %v12413_v34, %s17519_s12 }
 0x3af   : >> { %5918 = vrot.lane.b32.xlu1 %v12417_v18, %s17515_s30 }
 0x3b1   : >> { %6504 = vrot.lane.b32.xlu0 %v12413_v34, %s17520_s15 }
 0x3b3   : >> { %6014 = vrot.lane.b32.xlu1 %v12411_v52, %s17516_s24 }
 0x3b5   : >> { %7076 = vrot.lane.b32.xlu0 %v12495_v33, %s16905_s25 }
 0x3b7   : >> { %6018 = vrot.lane.b32.xlu1 %v12417_v18, %s17516_s24 }
 0x3b9   : >> { %7080 = vrot.lane.b32.xlu0 %v12501_v38, %s16905_s25 }
 0x3bb   : >> { %6136 = vrot.lane.b32.xlu1 %v12411_v52, %s17517_s16 }
 0x3bd   : >> { %7198 = vrot.lane.b32.xlu0 %v12495_v33, %s16903_s26 }
 0x3bf   : >> { %6140 = vrot.lane.b32.xlu1 %v12417_v18, %s17517_s16 }
 0x3c1   : >> { %7202 = vrot.lane.b32.xlu0 %v12501_v38, %s16903_s26 }
 0x3c3   : >> { %6258 = vrot.lane.b32.xlu1 %v12411_v52, %s17518_s11 }
 0x3c5   : >> { %7320 = vrot.lane.b32.xlu0 %v12495_v33, %s16860_s27 }
 0x3c7   : >> { %6262 = vrot.lane.b32.xlu1 %v12417_v18, %s17518_s11 }
 0x3c9   : >> { %7324 = vrot.lane.b32.xlu0 %v12501_v38, %s16860_s27 }
 0x3cb   : >> { %6380 = vrot.lane.b32.xlu1 %v12411_v52, %s17519_s12 }
 0x3cd   : >> { %7442 = vrot.lane.b32.xlu0 %v12495_v33, %s16858_s28 }
 0x3cf   : >> { %6384 = vrot.lane.b32.xlu1 %v12417_v18, %s17519_s12 }
 0x3d1   : >> { %7446 = vrot.lane.b32.xlu0 %v12501_v38, %s16858_s28 }
 0x3d3   : >> { %6502 = vrot.lane.b32.xlu1 %v12411_v52, %s17520_s15 }
 0x3d5   : >> { %5920 = vrot.lane.b32.xlu0 %v12495_v33, %s17515_s30 }
 0x3d7   : >> { %7058 = vrot.lane.b32.xlu1 %v12437_v21, %s16905_s25 }
 0x3d9   : >> { %5924 = vrot.lane.b32.xlu0 %v12501_v38, %s17515_s30 }
 0x3db   : >> { %7180 = vrot.lane.b32.xlu1 %v12437_v21, %s16903_s26 }
 0x3dd   : >> { %6020 = vrot.lane.b32.xlu0 %v12495_v33, %s17516_s24  ;;  %v12549_v55 = vpop.permute.xlu1 %7070 }
 0x3df   : >> { %v12551_v14 = vpop.permute.xlu0 %7072  ;;  %7302 = vrot.lane.b32.xlu1 %v12437_v21, %s16860_s27 }
 0x3e1   : >> { %6024 = vrot.lane.b32.xlu0 %v12501_v38, %s17516_s24  ;;  %v12557_v11 = vpop.permute.xlu1 %7074 }
 0x3e3   : >> { %v12559_v3 = vpop.permute.xlu0 %7194  ;;  %7424 = vrot.lane.b32.xlu1 %v12437_v21, %s16858_s28 }
 0x3e4   : >> { %17524 = vst [vmem:[#allocation24_spill] sm:$0xff] %v12559_v3 }
 0x3e5   : >> { %6142 = vrot.lane.b32.xlu0 %v12495_v33, %s17517_s16  ;;  %v12567_v4 = vpop.permute.xlu1 %7192 }
 0x3e6   : >> { %17525 = vst [vmem:[#allocation25_spill] sm:$0xff] %v12567_v4 }
 0x3e7   : >> { %v12569_v8 = vpop.permute.xlu0 %7316  ;;  %5890 = vrot.lane.b32.xlu1 %v12437_v21, %s17515_s30 }
 0x3e8   : >> { %17526 = vst [vmem:[#allocation26_spill] sm:$0xff] %v12569_v8 }
 0x3e9   : >> { %6146 = vrot.lane.b32.xlu0 %v12501_v38, %s17517_s16  ;;  %v12575_v6 = vpop.permute.xlu1 %7196 }
 0x3ea   : >> { %17527 = vst [vmem:[#allocation27_spill] sm:$0xff] %v12575_v6 }
 0x3eb   : >> { %v12577_v12 = vpop.permute.xlu0 %7438  ;;  %6002 = vrot.lane.b32.xlu1 %v12437_v21, %s17516_s24 }
 0x3ec   : >> { %17528 = vst [vmem:[#allocation28_spill] sm:$0xff] %v12577_v12 }
 0x3ed   : >> { %6264 = vrot.lane.b32.xlu0 %v12495_v33, %s17518_s11  ;;  %v12583_v15 = vpop.permute.xlu1 %7314 }
 0x3ee   : >> { %17529 = vst [vmem:[#allocation29_spill] sm:$0xff] %v12583_v15 }
 0x3ef   : >> { %v12585_v32 = vpop.permute.xlu0 %7564  ;;  %6124 = vrot.lane.b32.xlu1 %v12437_v21, %s17517_s16 }
 0x3f0   : >> { %17530 = vst [vmem:[#allocation30_spill] sm:$0xff] %v12585_v32 }
 0x3f1   : >> { %6268 = vrot.lane.b32.xlu0 %v12501_v38, %s17518_s11  ;;  %v12591_v5 = vpop.permute.xlu1 %7318 }
 0x3f2   : >> { %17531 = vst [vmem:[#allocation31_spill] sm:$0xff] %v12591_v5 }
 0x3f3   : >> { %v12593_v0 = vpop.permute.xlu0 %7568  ;;  %6246 = vrot.lane.b32.xlu1 %v12437_v21, %s17518_s11 }
 0x3f4   : >> { %17532 = vst [vmem:[#allocation32_spill] sm:$0xff] %v12593_v0 }
 0x3f5   : >> { %6386 = vrot.lane.b32.xlu0 %v12495_v33, %s17519_s12  ;;  %v12599_v63 = vpop.permute.xlu1 %7436 }
 0x3f6   : >> { %17533 = vst [vmem:[#allocation33_spill] sm:$0xff] %v12599_v63 }
 0x3f7   : >> { %v12601_v57 = vpop.permute.xlu0 %7686  ;;  %6368 = vrot.lane.b32.xlu1 %v12437_v21, %s17519_s12 }
 0x3f8   : >> { %17534 = vst [vmem:[#allocation34_spill] sm:$0xff] %v12601_v57 }
 0x3f9   : >> { %6390 = vrot.lane.b32.xlu0 %v12501_v38, %s17519_s12  ;;  %v12607_v9 = vpop.permute.xlu1 %7440 }
 0x3fa   : >> { %17535 = vst [vmem:[#allocation35_spill] sm:$0xff] %v12607_v9  ;;  %v5772_v9 = vadd.f32 %v12543_v1, %v12405_v60  ;;  %v10246_v60 = vld [vmem:[%s16786_s3 + $0x24] sm:$0xf] }
 0x3fb   : >> { %v12611_v42 = vpop.permute.xlu0 %7690  ;;  %6490 = vrot.lane.b32.xlu1 %v12437_v21, %s17520_s15  ;;  %v12873_v8 = vrot.slane %v10246_v60, %v11467_v26 }
 0x3fc   : >> { %17537 = vst [vmem:[#allocation37_spill] sm:$0xff] %v12611_v42  ;;  %v10236_v12 = vmul.f32 -1.442695, %v5772_v9 }
 0x3fd   : >> { %7060 = vrot.lane.b32.xlu0 %v12609_v44, %s16905_s25  ;;  %v12617_v50 = vpop.permute.xlu1 %7562  ;;  %17567 = vst [vmem:[#allocation67_spill] sm:$0xff] %v12873_v8 }
 0x3fe   : >> { %17538 = vst [vmem:[#allocation38_spill] sm:$0xff] %v12617_v50 }
 0x3ff   : >> { %v12619_v56 = vpop.permute.xlu0 %7808  ;;  %7570 = vrot.lane.b32.xlu1 %v12495_v33, %s16901_s23 }
 0x400   : >> { %17539 = vst [vmem:[#allocation39_spill] sm:$0xff] %v12619_v56 }
 0x401   : >> { %7182 = vrot.lane.b32.xlu0 %v12609_v44, %s16903_s26  ;;  %v12625_v2 = vpop.permute.xlu1 %7566 }
 0x402   : >> { %17540 = vst [vmem:[#allocation40_spill] sm:$0xff] %v12625_v2 }
 0x403   : >> { %v12627_v17 = vpop.permute.xlu0 %7812  ;;  %7574 = vrot.lane.b32.xlu1 %v12501_v38, %s16901_s23 }
 0x404   : >> { %17541 = vst [vmem:[#allocation41_spill] sm:$0xff] %v12627_v17 }
 0x405   : >> { %7304 = vrot.lane.b32.xlu0 %v12609_v44, %s16860_s27  ;;  %v12633_v45 = vpop.permute.xlu1 %7684 }
 0x406   : >> { %17542 = vst [vmem:[#allocation42_spill] sm:$0xff] %v12633_v45 }
 0x407   : >> { %v12635_v46 = vpop.permute.xlu0 %7930  ;;  %7692 = vrot.lane.b32.xlu1 %v12495_v33, %s16899_s22 }
 0x408   : >> { %17543 = vst [vmem:[#allocation43_spill] sm:$0xff] %v12635_v46  ;;  %v5769_v46 = vadd.f32 %v12539_v43, %v12401_v58 }
 0x409   : >> { %7426 = vrot.lane.b32.xlu0 %v12609_v44, %s16858_s28  ;;  %v12641_v48 = vpop.permute.xlu1 %7688 }
 0x40a   : >> { %17544 = vst [vmem:[#allocation44_spill] sm:$0xff] %v12641_v48  ;;  %v10233_v56 = vmul.f32 -1.442695, %v5769_v46 }
 0x40b   : >> { %v12645_v37 = vpop.permute.xlu0 %7934  ;;  %7696 = vrot.lane.b32.xlu1 %v12501_v38, %s16899_s22 }
 0x40c   : >> { %17546 = vst [vmem:[#allocation46_spill] sm:$0xff] %v12645_v37  ;;  %v5830_v37 = vadd.f32 1.0, %v11010_v7 }
 0x40d   : >> { %7572 = vrot.lane.b32.xlu0 %v12643_v24, %s16901_s23  ;;  %v12651_v49 = vpop.permute.xlu1 %7806 }
 0x40e   : >> { %17547 = vst [vmem:[#allocation47_spill] sm:$0xff] %v12651_v49  ;;  %11015 = vrcp.f32 %v5830_v37 }
 0x40f   : >> { %v12653_v62 = vpop.permute.xlu0 %5916  ;;  %7814 = vrot.lane.b32.xlu1 %v12495_v33, %s16897_s18 }
 0x411   : >> { %7576 = vrot.lane.b32.xlu0 %v12609_v44, %s16901_s23  ;;  %v12659_v28 = vpop.permute.xlu1 %7810 }
 0x412   : >> { %17548 = vst [vmem:[#allocation48_spill] sm:$0xff] %v12659_v28 }
 0x413   : >> { %v12661_v54 = vpop.permute.xlu0 %6016  ;;  %7818 = vrot.lane.b32.xlu1 %v12501_v38, %s16897_s18 }
 0x415   : >> { %7694 = vrot.lane.b32.xlu0 %v12643_v24, %s16899_s22  ;;  %v12667_v30 = vpop.permute.xlu1 %7928 }
 0x416   : >> { %17549 = vst [vmem:[#allocation49_spill] sm:$0xff] %v12667_v30 }
 0x417   : >> { %v12669_v20 = vpop.permute.xlu0 %6138  ;;  %7936 = vrot.lane.b32.xlu1 %v12495_v33, %s16895_s19 }
 0x419   : >> { %7698 = vrot.lane.b32.xlu0 %v12609_v44, %s16899_s22  ;;  %v12675_v36 = vpop.permute.xlu1 %7932 }
 0x41a   : >> { %17550 = vst [vmem:[#allocation50_spill] sm:$0xff] %v12675_v36 }
 0x41b   : >> { %v12679_v35 = vpop.permute.xlu0 %6260  ;;  %7940 = vrot.lane.b32.xlu1 %v12501_v38, %s16895_s19 }
 0x41d   : >> { %7816 = vrot.lane.b32.xlu0 %v12643_v24, %s16897_s18  ;;  %v12689_v59 = vpop.permute.xlu1 %5914 }
 0x41f   : >> { %v12695_v13 = vpop.permute.xlu0 %6382  ;;  %7078 = vrot.lane.b32.xlu1 %v12643_v24, %s16905_s25 }
 0x421   : >> { %7820 = vrot.lane.b32.xlu0 %v12609_v44, %s16897_s18  ;;  %v12702_v19 = vpop.permute.xlu1 %5918 }
 0x423   : >> { %v12705_v16 = vpop.permute.xlu0 %6504  ;;  %7200 = vrot.lane.b32.xlu1 %v12643_v24, %s16903_s26 }
 0x424   : >> { %17551 = vst [vmem:[#allocation51_spill] sm:$0xff] %v12705_v16  ;;  %v11012_v16 = vpop.eup %11011 }
 0x425   : >> { %7938 = vrot.lane.b32.xlu0 %v12643_v24, %s16895_s19  ;;  %v12711_v51 = vpop.permute.xlu1 %6014  ;;  %v11014_v30 = vpop.eup %11013  ;;  %v5831_v17 = vadd.f32 1.0, %v11012_v16 }
 0x427   : >> { %v12713_v10 = vpop.permute.xlu0 %7076  ;;  %7322 = vrot.lane.b32.xlu1 %v12643_v24, %s16860_s27  ;;  %11017 = vrcp.f32 %v5831_v17 }
 0x429   : >> { %7942 = vrot.lane.b32.xlu0 %v12609_v44, %s16895_s19  ;;  %v12719_v40 = vpop.permute.xlu1 %6018 }
 0x42b   : >> { %v12721_v22 = vpop.permute.xlu0 %7080  ;;  %7444 = vrot.lane.b32.xlu1 %v12643_v24, %s16858_s28 }
 0x42d   : >> { %5892 = vrot.lane.b32.xlu0 %v12609_v44, %s17515_s30  ;;  %v12727_v61 = vpop.permute.xlu1 %6136 }
 0x42f   : >> { %v12729_v36 = vpop.permute.xlu0 %7198  ;;  %5922 = vrot.lane.b32.xlu1 %v12643_v24, %s17515_s30 }
 0x430   : >> { %17552 = vst [vmem:[#allocation52_spill] sm:$0xff] %v12729_v36  ;;  %v5832_v36 = vadd.f32 1.0, %v11014_v30  ;;  %v11016_v30 = vpop.eup %11015 }
 0x431   : >> { %6004 = vrot.lane.b32.xlu0 %v12609_v44, %s17516_s24  ;;  %v12737_v28 = vpop.permute.xlu1 %6140 }
 0x432   : >> { %11019 = vrcp.f32 %v5832_v36  ;;  %v12767_v36 = vmul.f32 %v11016_v30, %v5766_v31 }
 0x433   : >> { %v12739_v49 = vpop.permute.xlu0 %7202  ;;  %6022 = vrot.lane.b32.xlu1 %v12643_v24, %s17516_s24  ;;  %11021 = vpow2.f32 %v10233_v56  ;;  %v11018_v56 = vpop.eup %11017 }
 0x434   : >> { %17553 = vst [vmem:[#allocation53_spill] sm:$0xff] %v12739_v49  ;;  %17557 = vst [vmem:[#allocation57_spill] sm:$0xff] %v12767_v36  ;;  %v12774_v48 = vmul.f32 %v11018_v56, %v12685_v23 }
 0x435   : >> { %6126 = vrot.lane.b32.xlu0 %v12609_v44, %s17517_s16  ;;  %v12745_v7 = vpop.permute.xlu1 %6258 }
 0x436   : >> { %17558 = vst [vmem:[#allocation58_spill] sm:$0xff] %v12774_v48 }
 0x437   : >> { %v12747_v58 = vpop.permute.xlu0 %7320  ;;  %6144 = vrot.lane.b32.xlu1 %v12643_v24, %s17517_s16 }
 0x438   : >> { %17554 = vst [vmem:[#allocation54_spill] sm:$0xff] %v12747_v58 }
 0x439   : >> { %6248 = vrot.lane.b32.xlu0 %v12609_v44, %s17518_s11  ;;  %v12753_v43 = vpop.permute.xlu1 %6262 }
 0x43b   : >> { %v12755_v37 = vpop.permute.xlu0 %7324  ;;  %6266 = vrot.lane.b32.xlu1 %v12643_v24, %s17518_s11 }
 0x43c   : >> { %17555 = vst [vmem:[#allocation55_spill] sm:$0xff] %v12755_v37  ;;  %v11020_v58 = vpop.eup %11019 }
 0x43d   : >> { %6370 = vrot.lane.b32.xlu0 %v12609_v44, %s17519_s12  ;;  %v12761_v17 = vpop.permute.xlu1 %6380  ;;  %v11022_v49 = vpop.eup %11021 }
 0x43e   : >> { %v5833_v30 = vadd.f32 1.0, %v11022_v49 }
 0x43f   : >> { %v12763_v16 = vpop.permute.xlu0 %7442  ;;  %6388 = vrot.lane.b32.xlu1 %v12643_v24, %s17519_s12 }
 0x440   : >> { %17556 = vst [vmem:[#allocation56_spill] sm:$0xff] %v12763_v16  ;;  %v12781_v16 = vmul.f32 %v11020_v58, %v12693_v39  ;;  %11023 = vrcp.f32 %v5833_v30 }
 0x441   : >> { %6492 = vrot.lane.b32.xlu0 %v12609_v44, %s17520_s15  ;;  %v12771_v37 = vpop.permute.xlu1 %6384 }
 0x442   : >> { %17560 = vst [vmem:[#allocation60_spill] sm:$0xff] %v12781_v16 }
 0x443   : >> { %v12776_v42 = vpop.permute.xlu0 %7446  ;;  %7082 = vrot.lane.b32.xlu1 %v12767_v36, %s16905_s25 }
 0x444   : >> { %17559 = vst [vmem:[#allocation59_spill] sm:$0xff] %v12776_v42 }
 0x445   : >> { %7084 = vrot.lane.b32.xlu0 %v12774_v48, %s16905_s25  ;;  %v12785_v31 = vpop.permute.xlu1 %6502 }
 0x446   : >> { %17561 = vst [vmem:[#allocation61_spill] sm:$0xff] %v12785_v31 }
 0x447   : >> { %v12787_v45 = vpop.permute.xlu0 %5920  ;;  %7086 = vrot.lane.b32.xlu1 %v12781_v16, %s16905_s25 }
 0x449   : >> { %7206 = vrot.lane.b32.xlu0 %v12774_v48, %s16903_s26  ;;  %v12793_v23 = vpop.permute.xlu1 %7058 }
 0x44a   : >> { %v11024_v42 = vpop.eup %11023  ;;  %v7096_v6 = vsel %vm2274_vm11, %v12557_v11, %v12793_v23 }
 0x44b   : >> { %v12795_v56 = vpop.permute.xlu0 %5924  ;;  %7204 = vrot.lane.b32.xlu1 %v12767_v36, %s16903_s26  ;;  %v12819_v31 = vmul.f32 %v11024_v42, %v5769_v46 }
 0x44d   : >> { %7328 = vrot.lane.b32.xlu0 %v12774_v48, %s16860_s27  ;;  %v12801_v49 = vpop.permute.xlu1 %7180  ;;  %17565 = vst [vmem:[#allocation65_spill] sm:$0xff] %v12819_v31 }
 0x44e   : >> { %17562 = vst [vmem:[#allocation62_spill] sm:$0xff] %v12801_v49 }
 0x44f   : >> { %v12803_v39 = vpop.permute.xlu0 %6020  ;;  %7208 = vrot.lane.b32.xlu1 %v12781_v16, %s16903_s26 }
 0x451   : >> { %7450 = vrot.lane.b32.xlu0 %v12774_v48, %s16858_s28  ;;  %v12809_v58 = vpop.permute.xlu1 %7302 }
 0x452   : >> { %17563 = vst [vmem:[#allocation63_spill] sm:$0xff] %v12809_v58 }
 0x453   : >> { %v12811_v30 = vpop.permute.xlu0 %6024  ;;  %7326 = vrot.lane.b32.xlu1 %v12767_v36, %s16860_s27 }
 0x455   : >> { %7580 = vrot.lane.b32.xlu0 %v12774_v48, %s16901_s23  ;;  %v12817_v49 = vpop.permute.xlu1 %7424 }
 0x456   : >> { %17564 = vst [vmem:[#allocation64_spill] sm:$0xff] %v12817_v49  ;;  %v5770_v49 = vadd.f32 %v12543_v1, %v12403_v47 }
 0x457   : >> { %v12821_v57 = vpop.permute.xlu0 %6142  ;;  %7330 = vrot.lane.b32.xlu1 %v12781_v16, %s16860_s27 }
 0x458   : >> { %v10234_v32 = vmul.f32 -1.442695, %v5770_v49 }
 0x459   : >> { %7584 = vrot.lane.b32.xlu0 %v12819_v31, %s16901_s23  ;;  %v12827_v58 = vpop.permute.xlu1 %5890 }
 0x45a   : >> { %11025 = vpow2.f32 %v10234_v32 }
 0x45b   : >> { %v12829_v2 = vpop.permute.xlu0 %6146  ;;  %7448 = vrot.lane.b32.xlu1 %v12767_v36, %s16858_s28  ;;  %11027 = vpow2.f32 %v10236_v12  ;;  %v7151_v12 = vmul.f32 %v12873_v8, %v7096_v6 }
 0x45d   : >> { %7702 = vrot.lane.b32.xlu0 %v12774_v48, %s16899_s22  ;;  %v12835_v42 = vpop.permute.xlu1 %6002 }
 0x45f   : >> { %v12837_v46 = vpop.permute.xlu0 %6264  ;;  %7452 = vrot.lane.b32.xlu1 %v12781_v16, %s16858_s28  ;;  %s17748_s28 = smov 57  }
 0x461   : >> { %7706 = vrot.lane.b32.xlu0 %v12819_v31, %s16899_s22  ;;  %v12845_v0 = vpop.permute.xlu1 %6124 }
 0x463   : >> { %v12847_v50 = vpop.permute.xlu0 %6268  ;;  %7578 = vrot.lane.b32.xlu1 %v12767_v36, %s16901_s23 }
 0x465   : >> { %7824 = vrot.lane.b32.xlu0 %v12774_v48, %s16897_s18  ;;  %v12855_v63 = vpop.permute.xlu1 %6246 }
 0x467   : >> { %v12857_v47 = vpop.permute.xlu0 %6386  ;;  %7582 = vrot.lane.b32.xlu1 %v12781_v16, %s16901_s23  ;;  %s17670_s23 = smov 8  }
 0x468   : >> { %17566 = vst [vmem:[#allocation66_spill] sm:$0xff] %v12857_v47  ;;  %v13156_v47 = vsel %vm522_vm0, %v12661_v54, %v12719_v40 }
 0x469   : >> { %7828 = vrot.lane.b32.xlu0 %v12819_v31, %s16897_s18  ;;  %v12863_v5 = vpop.permute.xlu1 %6368  ;;  %17629 = vst [vmem:[#allocation127_spill] sm:$0xff] %v13156_v47 }
 0x46b   : >> { %v12865_v15 = vpop.permute.xlu0 %6390  ;;  %7700 = vrot.lane.b32.xlu1 %v12767_v36, %s16899_s22 }
 0x46d   : >> { %7946 = vrot.lane.b32.xlu0 %v12774_v48, %s16895_s19  ;;  %v12877_v32 = vpop.permute.xlu1 %6490 }
 0x46e   : >> { %17568 = vst [vmem:[#allocation68_spill] sm:$0xff] %v12877_v32  ;;  %v11026_v32 = vpop.eup %11025 }
 0x46f   : >> { %v7061_v4 = vpop.permute.xlu0 %7060  ;;  %7704 = vrot.lane.b32.xlu1 %v12781_v16, %s16899_s22  ;;  %v5834_v6 = vadd.f32 1.0, %v11026_v32  ;;  %s17594_s22 = smov 7  }
 0x470   : >> { %v7099_v3 = vsel %vm2274_vm11, %v12721_v22, %v7061_v4 }
 0x471   : >> { %v7155_v52 = vmul.f32 %v12873_v8, %v7099_v3  ;;  %7950 = vrot.lane.b32.xlu0 %v12819_v31, %s16895_s19  ;;  %v12890_v21 = vpop.permute.xlu1 %7570  ;;  %v11028_v3 = vpop.eup %11027  ;;  %11029 = vrcp.f32 %v5834_v6 }
 0x472   : >> { %17569 = vst [vmem:[#allocation69_spill] sm:$0xff] %v12890_v21 }
 0x473   : >> { %v12892_v24 = vpop.permute.xlu0 %7182  ;;  %7822 = vrot.lane.b32.xlu1 %v12767_v36, %s16897_s18  ;;  %v7167_v34 = vpack.c.bf16 %v7155_v52, %v7151_v12  ;;  %v5836_v52 = vadd.f32 1.0, %v11028_v3 }
 0x474   : >> { %17570 = vst [vmem:[#allocation70_spill] sm:$0xff] %v12892_v24 }
 0x475   : >> { %5928 = vrot.lane.b32.xlu0 %v12774_v48, %s17515_s30  ;;  %8274 = vmatprep.subr.bf16.mxu1 %v7167_v34  ;;  %v12898_v44 = vpop.permute.xlu1 %7574  ;;  %11031 = vrcp.f32 %v5836_v52 }
 0x476   : >> { %17571 = vst [vmem:[#allocation71_spill] sm:$0xff] %v12898_v44 }
 0x477   : >> { %v12900_v8 = vpop.permute.xlu0 %7304  ;;  %7826 = vrot.lane.b32.xlu1 %v12781_v16, %s16897_s18  ;;  %s17734_s18 = smov 120  }
 0x478   : >> { %17572 = vst [vmem:[#allocation72_spill] sm:$0xff] %v12900_v8 }
 0x479   : >> { %6028 = vrot.lane.b32.xlu0 %v12774_v48, %s17516_s24  ;;  %v12906_v21 = vpop.permute.xlu1 %7692 }
 0x47a   : >> { %17573 = vst [vmem:[#allocation73_spill] sm:$0xff] %v12906_v21 }
 0x47b   : >> { %v12908_v12 = vpop.permute.xlu0 %7426  ;;  %7944 = vrot.lane.b32.xlu1 %v12767_v36, %s16895_s19  ;;  %v11030_v21 = vpop.eup %11029 }
 0x47c   : >> { %17574 = vst [vmem:[#allocation74_spill] sm:$0xff] %v12908_v12 }
 0x47d   : >> { %6150 = vrot.lane.b32.xlu0 %v12774_v48, %s17517_s16  ;;  %v12914_v34 = vpop.permute.xlu1 %7696 }
 0x47e   : >> { %17575 = vst [vmem:[#allocation75_spill] sm:$0xff] %v12914_v34  ;;  %v12932_v34 = vmul.f32 %v11030_v21, %v5770_v49  ;;  %v12953_v49 = vrot.slane %v10246_v60, %v11461_v25 }
 0x47f   : >> { %v12916_v32 = vpop.permute.xlu0 %7572  ;;  %7948 = vrot.lane.b32.xlu1 %v12781_v16, %s16895_s19  ;;  %s17739_s19 = smov 119  }
 0x480   : >> { %17576 = vst [vmem:[#allocation76_spill] sm:$0xff] %v12916_v32  ;;  %17580 = vst [vmem:[#allocation80_spill] sm:$0xff] %v12932_v34  ;;  %v11032_v32 = vpop.eup %11031 }
 0x481   : >> { %6272 = vrot.lane.b32.xlu0 %v12774_v48, %s17518_s11  ;;  %v12922_v6 = vpop.permute.xlu1 %7814  ;;  %17586 = vst [vmem:[#allocation86_spill] sm:$0xff] %v12953_v49 }
 0x482   : >> { %17577 = vst [vmem:[#allocation77_spill] sm:$0xff] %v12922_v6 }
 0x483   : >> { %v12924_v3 = vpop.permute.xlu0 %7576  ;;  %5926 = vrot.lane.b32.xlu1 %v12767_v36, %s17515_s30 }
 0x484   : >> { %17578 = vst [vmem:[#allocation78_spill] sm:$0xff] %v12924_v3  ;;  %v12942_v3 = vmul.f32 %v11032_v32, %v5772_v9  ;;  %v7123_v9 = vsel %vm2274_vm11, %v7061_v4, %v12713_v10  ;;  %v7122_v4 = vsel %vm2274_vm11, %v12793_v23, %v12549_v55 }
 0x485   : >> { %6394 = vrot.lane.b32.xlu0 %v12774_v48, %s17519_s12  ;;  %v12930_v52 = vpop.permute.xlu1 %7818 }
 0x486   : >> { %17579 = vst [vmem:[#allocation79_spill] sm:$0xff] %v12930_v52  ;;  %17583 = vst [vmem:[#allocation83_spill] sm:$0xff] %v12942_v3  ;;  %v12956_v52 = vrot.slane %v10246_v60, %v11474_v29 }
 0x487   : >> { %v12934_v44 = vpop.permute.xlu0 %7694  ;;  %5930 = vrot.lane.b32.xlu1 %v12781_v16, %s17515_s30 }
 0x488   : >> { %17581 = vst [vmem:[#allocation81_spill] sm:$0xff] %v12934_v44  ;;  %17587 = vst [vmem:[#allocation87_spill] sm:$0xff] %v12956_v52 }
 0x489   : >> { %7088 = vrot.lane.b32.xlu0 %v12932_v34, %s16905_s25  ;;  %v12940_v6 = vpop.permute.xlu1 %7936 }
 0x48a   : >> { %17582 = vst [vmem:[#allocation82_spill] sm:$0xff] %v12940_v6  ;;  %v7094_v6 = vsel %vm2274_vm11, %v12549_v55, %v12551_v14 }
 0x48b   : >> { %v12944_v12 = vpop.permute.xlu0 %7698  ;;  %6026 = vrot.lane.b32.xlu1 %v12767_v36, %s17516_s24 }
 0x48c   : >> { %17584 = vst [vmem:[#allocation84_spill] sm:$0xff] %v12944_v12  ;;  %v12971_v12 = vrot.slane %v10246_v60, %v11469_v27 }
 0x48d   : >> { %7092 = vrot.lane.b32.xlu0 %v12942_v3, %s16905_s25  ;;  %v12950_v21 = vpop.permute.xlu1 %7940  ;;  %s17722_s25 = smov 127  }
 0x48e   : >> { %17585 = vst [vmem:[#allocation85_spill] sm:$0xff] %v12950_v21  ;;  %v7095_v21 = vsel %vm2274_vm11, %v12551_v14, %v12557_v11  ;;  %17589 = vst [vmem:[#allocation89_spill] sm:$0xff] %v12971_v12  ;;  %v7152_v44 = vmul.f32 %v12971_v12, %v7123_v9  ;;  %v7149_v14 = vmul.f32 %v12953_v49, %v7094_v6 }
 0x48f   : >> { %v12960_v32 = vpop.permute.xlu0 %7816  ;;  %6030 = vrot.lane.b32.xlu1 %v12781_v16, %s17516_s24  ;;  %v7150_v11 = vmul.f32 %v12956_v52, %v7095_v21  ;;  %v12993_v9 = vadd.f32 %v12543_v1, %v12409_v41  ;;  %v10282_v41 = vld [vmem:[%s16786_s3 + $0x48] sm:$0xf] }
 0x490   : >> { %17588 = vst [vmem:[#allocation88_spill] sm:$0xff] %v12960_v32  ;;  %v13071_v18 = vrot.slane %v10282_v41, %v11467_v26 }
 0x491   : >> { %7210 = vrot.lane.b32.xlu0 %v12932_v34, %s16903_s26  ;;  %v7079_v32 = vpop.permute.xlu1 %7078  ;;  %17591 = vst [vmem:[#allocation91_spill] sm:$0xff] %v12993_v9 }
 0x492   : >> { %v7097_v8 = vsel %vm2274_vm11, %v12713_v10, %v7079_v32  ;;  %v7098_v24 = vsel %vm2274_vm11, %v7079_v32, %v12721_v22  ;;  %v7148_v10 = vmul.f32 %v12971_v12, %v7122_v4  ;;  %v10237_v32 = vmul.f32 -1.442695, %v12993_v9  ;;  %v10283_v4 = vld [vmem:[%s16786_s3 + $0x4c] sm:$0xf]  ;;  %17610 = vst [vmem:[#allocation109_spill] sm:$0xff] %v13071_v18 }
 0x493   : >> { %v7153_v60 = vmul.f32 %v12953_v49, %v7097_v8  ;;  %v7154_v55 = vmul.f32 %v12956_v52, %v7098_v24  ;;  %v12987_v23 = vpop.permute.xlu0 %7820  ;;  %6148 = vrot.lane.b32.xlu1 %v12767_v36, %s17517_s16  ;;  %v13077_v48 = vrot.slane %v10283_v4, %v11467_v26 }
 0x494   : >> { %17590 = vst [vmem:[#allocation90_spill] sm:$0xff] %v12987_v23  ;;  %v7164_v21 = vpack.c.bf16 %v7152_v44, %v7148_v10  ;;  %11033 = vpow2.f32 %v10237_v32  ;;  %v13029_v10 = vrot.slane %v10282_v41, %v11469_v27  ;;  %v13047_v32 = vrot.slane %v10282_v41, %v11474_v29 }
 0x495   : >> { %v7166_v22 = vpack.c.bf16 %v7154_v55, %v7150_v11  ;;  %7214 = vrot.lane.b32.xlu0 %v12942_v3, %s16903_s26  ;;  %v12998_v6 = vpop.permute.xlu1 %7200  ;;  %v7165_v8 = vpack.c.bf16 %v7153_v60, %v7149_v14  ;;  %v10284_v14 = vld [vmem:[%s16786_s3 + $0x50] sm:$0xf]  ;;  %v10285_v11 = vld [vmem:[%s16786_s3 + $0x54] sm:$0xf]  ;;  %v10286_v60 = vld [vmem:[%s16786_s3 + $0x58] sm:$0xf] }
 0x496   : >> { %17592 = vst [vmem:[#allocation92_spill] sm:$0xff] %v12998_v6  ;;  %17597 = vst [vmem:[#allocation96_spill] sm:$0xff] %v13029_v10  ;;  %v13041_v12 = vrot.slane %v10284_v14, %v11469_v27  ;;  %v13044_v52 = vrot.slane %v10284_v14, %v11461_v25  ;;  %v13065_v6 = vsel %vm470_vm1, %v12702_v19, %v12827_v58  ;;  %s17728_s26 = smov 121  }
 0x497   : >> { %v13000_v24 = vpop.permute.xlu0 %7938  ;;  %6152 = vrot.lane.b32.xlu1 %v12781_v16, %s17517_s16  ;;  %8168 = vmatprep.subr.bf16.mxu0 %v7165_v8  ;;  %v13035_v8 = vrot.slane %v10283_v4, %v11469_v27  ;;  %17603 = vst [vmem:[#allocation102_spill] sm:$0xff] %v13047_v32  ;;  %17608 = vst [vmem:[#allocation107_spill] sm:$0xff] %v13065_v6  ;;  %v13068_v23 = vrot.slane %v10286_v60, %v11461_v25 }
 0x498   : >> { %17593 = vst [vmem:[#allocation93_spill] sm:$0xff] %v13000_v24  ;;  %8275 = vmatpush1.bf16.msra.mxu1 %v7166_v22  ;;  %8169 = vmatpush1.bf16.msra.mxu0 %v7164_v21  ;;  %v13032_v22 = vrot.slane %v10282_v41, %v11461_v25  ;;  %v13038_v21 = vrot.slane %v10283_v4, %v11461_v25  ;;  %17601 = vst [vmem:[#allocation100_spill] sm:$0xff] %v13041_v12 }
 0x499   : >> { %7332 = vrot.lane.b32.xlu0 %v12932_v34, %s17594_s22  ;;  %v13013_v44 = vpop.permute.xlu1 %7322  ;;  %17599 = vst [vmem:[#allocation98_spill] sm:$0xff] %v13035_v8  ;;  %17602 = vst [vmem:[#allocation101_spill] sm:$0xff] %v13044_v52  ;;  %v13060_v24 = vrot.slane %v10286_v60, %v11469_v27  ;;  %v13092_v41 = vrot.slane %v10284_v14, %v11467_v26  ;;  %v13101_v33 = vmul.f32 %v13047_v32, %v13065_v6 }
 0x49a   : >> { %17595 = vst [vmem:[#allocation94_spill] sm:$0xff] %v13013_v44  ;;  %17598 = vst [vmem:[#allocation97_spill] sm:$0xff] %v13032_v22  ;;  %v13057_v44 = vrot.slane %v10285_v11, %v11461_v25  ;;  %v13089_v25 = vrot.slane %v10284_v14, %v11474_v29  ;;  %v13104_v9 = vrot.slane %v10285_v11, %v11474_v29 }
 0x49b   : >> { %v13024_v55 = vpop.permute.xlu0 %7942  ;;  %6270 = vrot.lane.b32.xlu1 %v12767_v36, %s17518_s11  ;;  %17600 = vst [vmem:[#allocation99_spill] sm:$0xff] %v13038_v21  ;;  %17607 = vst [vmem:[#allocation106_spill] sm:$0xff] %v13060_v24  ;;  %v13107_v1 = vrot.slane %v10285_v11, %v11467_v26  ;;  %v13120_v6 = vsel %vm470_vm1, %v12653_v62, %v12702_v19  ;;  %v13145_v19 = vrot.slane %v10286_v60, %v11467_v26 }
 0x49c   : >> { %17596 = vst [vmem:[#allocation95_spill] sm:$0xff] %v13024_v55  ;;  %v13054_v55 = vrot.slane %v10285_v11, %v11469_v27  ;;  %17606 = vst [vmem:[#allocation105_spill] sm:$0xff] %v13057_v44  ;;  %v13086_v27 = vsel %vm470_vm1, %v12689_v59, %v12653_v62  ;;  %v13130_v11 = vsel %vm522_vm0, %v12719_v40, %v12835_v42 }
 0x49d   : >> { %7336 = vrot.lane.b32.xlu0 %v12942_v3, %s17594_s22  ;;  %v13051_v49 = vpop.permute.xlu1 %7444  ;;  %17609 = vst [vmem:[#allocation108_spill] sm:$0xff] %v13068_v23  ;;  %17612 = vst [vmem:[#allocation111_spill] sm:$0xff] %v13077_v48  ;;  %v13142_v62 = vrot.slane %v10286_v60, %v11474_v29 }
 0x49e   : >> { %17604 = vst [vmem:[#allocation103_spill] sm:$0xff] %v13051_v49  ;;  %17605 = vst [vmem:[#allocation104_spill] sm:$0xff] %v13054_v55  ;;  %v13074_v49 = vrot.slane %v10283_v4, %v11474_v29 }
 0x49f   : >> { %v13079_v38 = vpop.permute.xlu0 %5892  ;;  %6274 = vrot.lane.b32.xlu1 %v12781_v16, %s17518_s11  ;;  %17613 = vst [vmem:[#allocation112_spill] sm:$0xff] %v13086_v27  ;;  %17614 = vst [vmem:[#allocation113_spill] sm:$0xff] %v13089_v25 }
 0x4a0   : >> { %17611 = vst [vmem:[#allocation110_spill] sm:$0xff] %v13074_v49  ;;  %17615 = vst [vmem:[#allocation114_spill] sm:$0xff] %v13092_v41  ;;  %v13097_v4 = vsel %vm470_vm1, %v12795_v56, %v13079_v38  ;;  %v13125_v41 = vsel %vm522_vm0, %v12711_v51, %v12661_v54  ;;  %v13182_v40 = vmul.f32 %v13074_v49, %v13130_v11 }
 0x4a1   : >> { %17616 = vst [vmem:[#allocation115_spill] sm:$0xff] %v13097_v4  ;;  %17617 = vst [vmem:[#allocation116_spill] sm:$0xff] %v13101_v33  ;;  %v13111_v53 = vmul.f32 %v13047_v32, %v13097_v4  ;;  %7454 = vrot.lane.b32.xlu0 %v12932_v34, %s17621_s0  ;;  %v13115_v14 = vpop.permute.xlu1 %5922  ;;  %v13139_v4 = vmul.f32 %v13029_v10, %v13086_v27  ;;  %v13161_v27 = vsel %vm846_vm4, %v12727_v61, %v12669_v20 }
 0x4a2   : >> { %17618 = vst [vmem:[#allocation117_spill] sm:$0xff] %v13104_v9  ;;  %17619 = vst [vmem:[#allocation118_spill] sm:$0xff] %v13107_v1  ;;  %v13135_v32 = vsel %vm470_vm1, %v12787_v45, %v13115_v14  ;;  %v13174_v33 = vmul.f32 %v13032_v22, %v13120_v6  ;;  %v13178_v54 = vmul.f32 %v13035_v8, %v13125_v41 }
 0x4a3   : >> { %17620 = vst [vmem:[#allocation119_spill] sm:$0xff] %v13111_v53  ;;  %17622 = vst [vmem:[#allocation120_spill] sm:$0xff] %v13120_v6  ;;  %v13149_v48 = vpop.permute.xlu0 %6004  ;;  %6392 = vrot.lane.b32.xlu1 %v12767_v36, %s17519_s12  ;;  %v13165_v60 = vmul.f32 %v13029_v10, %v13135_v32  ;;  %v13195_v6 = vsel %vm846_vm4, %v12669_v20, %v12737_v28  ;;  %v13214_v20 = vmul.f32 %v13041_v12, %v13161_v27 }
 0x4a4   : >> { %17623 = vst [vmem:[#allocation121_spill] sm:$0xff] %v13125_v41  ;;  %17624 = vst [vmem:[#allocation122_spill] sm:$0xff] %v13130_v11  ;;  %v13170_v1 = vsel %vm522_vm0, %v12811_v30, %v13149_v48  ;;  %v13200_v11 = vsel %vm846_vm4, %v12737_v28, %v12845_v0  ;;  %v13210_v41 = vmul.f32 %v13038_v21, %v13156_v47 }
 0x4a5   : >> { %17625 = vst [vmem:[#allocation123_spill] sm:$0xff] %v13135_v32  ;;  %17626 = vst [vmem:[#allocation124_spill] sm:$0xff] %v13139_v4  ;;  %v13186_v53 = vmul.f32 %v13074_v49, %v13170_v1  ;;  %7458 = vrot.lane.b32.xlu0 %v12942_v3, %s17621_s0  ;;  %v6023_v10 = vpop.permute.xlu1 %6022  ;;  %v13190_v32 = vpop.eup %11033  ;;  %v13219_v28 = vsel %vm1050_vm5, %v12745_v7, %v12679_v35 }
 0x4a6   : >> { %17627 = vst [vmem:[#allocation125_spill] sm:$0xff] %v13142_v62  ;;  %17628 = vst [vmem:[#allocation126_spill] sm:$0xff] %v13145_v19 }
 0x4a7   : >> { %17630 = vst [vmem:[#allocation128_spill] sm:$0xff] %v13161_v27  ;;  %17631 = vst [vmem:[#allocation129_spill] sm:$0xff] %v13165_v60  ;;  %v6127_v4 = vpop.permute.xlu0 %6126  ;;  %6396 = vrot.lane.b32.xlu1 %v12781_v16, %s17519_s12  ;;  %v13228_v60 = vsel %vm1050_vm5, %v12679_v35, %v12753_v43  ;;  %v13233_v27 = vsel %vm1254_vm6, %v12761_v17, %v12695_v13  ;;  %v13250_v35 = vsel %vm1254_vm6, %v12695_v13, %v12771_v37 }
 0x4a8   : >> { %17632 = vst [vmem:[#allocation130_spill] sm:$0xff] %v13170_v1  ;;  %17633 = vst [vmem:[#allocation131_spill] sm:$0xff] %v13174_v33  ;;  %v13206_v1 = vsel %vm522_vm0, %v12803_v39, %v6023_v10  ;;  %v13241_v49 = vsel %vm846_vm4, %v12829_v2, %v6127_v4  ;;  %v13270_v13 = vsel %vm1050_vm5, %v12753_v43, %v12855_v63 }
 0x4a9   : >> { %17634 = vst [vmem:[#allocation132_spill] sm:$0xff] %v13178_v54  ;;  %17635 = vst [vmem:[#allocation133_spill] sm:$0xff] %v13182_v40  ;;  %v13237_v47 = vmul.f32 %v13035_v8, %v13206_v1  ;;  %v13245_v40 = vmul.f32 %v13044_v52, %v13195_v6  ;;  %v13258_v8 = vmul.f32 %v13089_v25, %v13241_v49  ;;  %5932 = vrot.lane.b32.xlu0 %v12932_v34, %s17515_s30 }
 0x4aa   : >> { %17636 = vst [vmem:[#allocation134_spill] sm:$0xff] %v13186_v53  ;;  %17637 = vst [vmem:[#allocation135_spill] sm:$0xff] %v13195_v6  ;;  %v13254_v53 = vmul.f32 %v13089_v25, %v13200_v11  ;;  %v13265_v6 = vsel %vm470_vm1, %v12827_v58, %v12689_v59  ;;  %v13284_v59 = vmul.f32 %v13057_v44, %v13228_v60 }
 0x4ab   : >> { %17638 = vst [vmem:[#allocation136_spill] sm:$0xff] %v13200_v11  ;;  %17639 = vst [vmem:[#allocation137_spill] sm:$0xff] %v13206_v1  ;;  %v6145_v1 = vpop.permute.xlu1 %6144  ;;  %v13288_v58 = vmul.f32 %v13060_v24, %v13233_v27  ;;  %v6249_v11 = vpop.permute.xlu0 %6248  ;;  %7062 = vrot.lane.b32.xlu1 %v12819_v31, %s17655_s1  ;;  %v13297_v54 = vsel %vm1254_vm6, %v12771_v37, %v12863_v5  ;;  %v13318_v37 = vmul.f32 %v13071_v18, %v13265_v6 }
 0x4ac   : >> { %17640 = vst [vmem:[#allocation138_spill] sm:$0xff] %v13210_v41  ;;  %17641 = vst [vmem:[#allocation139_spill] sm:$0xff] %v13214_v20  ;;  %v13276_v25 = vsel %vm846_vm4, %v12821_v57, %v6145_v1  ;;  %v13310_v43 = vsel %vm1050_vm5, %v12847_v50, %v6249_v11 }
 0x4ad   : >> { %17642 = vst [vmem:[#allocation140_spill] sm:$0xff] %v13233_v27  ;;  %17643 = vst [vmem:[#allocation141_spill] sm:$0xff] %v13237_v47  ;;  %v13302_v47 = vsel %vm470_vm1, %v13079_v38, %v12787_v45  ;;  %v13306_v27 = vmul.f32 %v13041_v12, %v13276_v25  ;;  %v13322_v38 = vmul.f32 %v13104_v9, %v13270_v13  ;;  %5936 = vrot.lane.b32.xlu0 %v12942_v3, %s17515_s30 }
 0x4ae   : >> { %17644 = vst [vmem:[#allocation142_spill] sm:$0xff] %v13241_v49  ;;  %17645 = vst [vmem:[#allocation143_spill] sm:$0xff] %v13245_v40  ;;  %v13280_v49 = vmul.f32 %v13054_v55, %v13219_v28  ;;  %v13326_v45 = vmul.f32 %v13104_v9, %v13310_v43  ;;  %v13333_v12 = vsel %vm522_vm0, %v12835_v42, %v12711_v51 }
 0x4af   : >> { %17646 = vst [vmem:[#allocation144_spill] sm:$0xff] %v13250_v35  ;;  %17647 = vst [vmem:[#allocation145_spill] sm:$0xff] %v13254_v53  ;;  %v13314_v53 = vmul.f32 %v13068_v23, %v13250_v35  ;;  %v13353_v51 = vmul.f32 %v13142_v62, %v13297_v54  ;;  %v6371_v42 = vpop.permute.xlu0 %6370  ;;  %7184 = vrot.lane.b32.xlu1 %v12819_v31, %s17670_s23 }
 0x4b0   : >> { %17648 = vst [vmem:[#allocation146_spill] sm:$0xff] %v13258_v8  ;;  %17649 = vst [vmem:[#allocation147_spill] sm:$0xff] %v13265_v6  ;;  %v6267_v8 = vpop.permute.xlu1 %6266 }
 0x4b1   : >> { %17650 = vst [vmem:[#allocation148_spill] sm:$0xff] %v13270_v13  ;;  %17651 = vst [vmem:[#allocation149_spill] sm:$0xff] %v13276_v25  ;;  %v13338_v25 = vsel %vm846_vm4, %v12845_v0, %v12727_v61  ;;  %v13344_v9 = vsel %vm1050_vm5, %v12837_v46, %v6267_v8  ;;  %v13357_v0 = vmul.f32 %v13071_v18, %v13302_v47  ;;  %6032 = vrot.lane.b32.xlu0 %v12932_v34, %s17516_s24 }
 0x4b2   : >> { %17652 = vst [vmem:[#allocation150_spill] sm:$0xff] %v13280_v49  ;;  %17653 = vst [vmem:[#allocation151_spill] sm:$0xff] %v13284_v59  ;;  %v13375_v13 = vmul.f32 %v13054_v55, %v13344_v9  ;;  %v13379_v61 = vsel %vm1254_vm6, %v12865_v15, %v6371_v42 }
 0x4b3   : >> { %17654 = vst [vmem:[#allocation152_spill] sm:$0xff] %v13288_v58  ;;  %17656 = vst [vmem:[#allocation153_spill] sm:$0xff] %v13297_v54  ;;  %7306 = vrot.lane.b32.xlu1 %v12819_v31, %s17594_s22  ;;  %v17713_v58 = vld [vmem:[#allocation16_spill] sm:$0xff] }
 0x4b4   : >> { %17657 = vst [vmem:[#allocation154_spill] sm:$0xff] %v13302_v47  ;;  %17658 = vst [vmem:[#allocation155_spill] sm:$0xff] %v13306_v27 }
 0x4b5   : >> { %17659 = vst [vmem:[#allocation156_spill] sm:$0xff] %v13310_v43  ;;  %17660 = vst [vmem:[#allocation157_spill] sm:$0xff] %v13314_v53  ;;  %v13349_v43 = vsel %vm1050_vm5, %v12855_v63, %v12745_v7  ;;  %v13366_v63 = vsel %vm470_vm1, %v13115_v14, %v12795_v56  ;;  %v13371_v7 = vsel %vm522_vm0, %v13149_v48, %v12803_v39  ;;  %v6389_v14 = vpop.permute.xlu1 %6388  ;;  %6036 = vrot.lane.b32.xlu0 %v12942_v3, %s17516_s24 }
 0x4b6   : >> { %17661 = vst [vmem:[#allocation158_spill] sm:$0xff] %v13318_v37  ;;  %17662 = vst [vmem:[#allocation159_spill] sm:$0xff] %v13322_v38  ;;  %v13383_v38 = vsel %vm522_vm0, %v6023_v10, %v12811_v30  ;;  %v13387_v56 = vsel %vm846_vm4, %v6127_v4, %v12821_v57  ;;  %v13391_v48 = vsel %vm846_vm4, %v6145_v1, %v12829_v2  ;;  %v17681_v2 = vld [vmem:[#allocation66_spill] sm:$0xff]  ;;  %v5837_v37 = vadd.f32 1.0, %v13190_v32 }
 0x4b7   : >> { %17663 = vst [vmem:[#allocation160_spill] sm:$0xff] %v13326_v45  ;;  %17664 = vst [vmem:[#allocation161_spill] sm:$0xff] %v13333_v12  ;;  %v13395_v39 = vmul.f32 %v13142_v62, %v13379_v61  ;;  %v13401_v30 = vsel %vm1050_vm5, %v6249_v11, %v12837_v46  ;;  %v13405_v57 = vsel %vm1050_vm5, %v6267_v8, %v12847_v50  ;;  %v13427_v8 = vpop.permute.xlu0 %6492  ;;  %v17687_v11 = vld [vmem:[#allocation111_spill] sm:$0xff]  ;;  %v17693_v46 = vld [vmem:[#allocation114_spill] sm:$0xff]  ;;  %7428 = vrot.lane.b32.xlu1 %v12819_v31, %s17621_s0 }
 0x4b8   : >> { %17665 = vst [vmem:[#allocation162_spill] sm:$0xff] %v13338_v25  ;;  %17666 = vst [vmem:[#allocation163_spill] sm:$0xff] %v13344_v9  ;;  %v13411_v10 = vsel %vm1254_vm6, %v17681_v2, %v6389_v14  ;;  %v13415_v4 = vmul.f32 %v13032_v22, %v13366_v63  ;;  %v13419_v45 = vsel %vm1254_vm6, %v6371_v42, %v17681_v2  ;;  %11035 = vrcp.f32 %v5837_v37  ;;  %v10240_v9 = vld [vmem:[%s16786_s3 + $0xc] sm:$0xf] }
 0x4b9   : >> { %17667 = vst [vmem:[#allocation164_spill] sm:$0xff] %v13349_v43  ;;  %17668 = vst [vmem:[#allocation165_spill] sm:$0xff] %v13353_v51  ;;  %v13425_v50 = vsel %vm1254_vm6, %v6389_v14, %v12865_v15  ;;  %v13433_v1 = vmul.f32 %v17687_v11, %v13371_v7  ;;  %v13437_v42 = vmul.f32 %v13038_v21, %v13383_v38  ;;  %v13466_v20 = vpop.permute.xlu1 %7082  ;;  %6154 = vrot.lane.b32.xlu0 %v12932_v34, %s17517_s16 }
 0x4ba   : >> { %17669 = vst [vmem:[#allocation166_spill] sm:$0xff] %v13357_v0  ;;  %17671 = vst [vmem:[#allocation167_spill] sm:$0xff] %v13366_v63  ;;  %v13441_v2 = vmul.f32 %v13044_v52, %v13391_v48  ;;  %v13445_v15 = vmul.f32 %v13060_v24, %v13411_v10  ;;  %v13450_v14 = vsel %vm1254_vm6, %v12863_v5, %v12761_v17  ;;  %v17731_v0 = vld [vmem:[#allocation22_spill] sm:$0xff] }
 0x4bb   : >> { %17672 = vst [vmem:[#allocation168_spill] sm:$0xff] %v13371_v7  ;;  %17673 = vst [vmem:[#allocation169_spill] sm:$0xff] %v13375_v13  ;;  %v13454_v51 = vmul.f32 %v17693_v46, %v13387_v56  ;;  %v13462_v13 = vmul.f32 %v13057_v44, %v13405_v57  ;;  %v13470_v5 = vmul.f32 %v17687_v11, %v13333_v12  ;;  %v13490_v11 = vpop.permute.xlu0 %7084  ;;  %5894 = vrot.lane.b32.xlu1 %v12819_v31, %s17515_s30 }
 0x4bc   : >> { %17674 = vst [vmem:[#allocation170_spill] sm:$0xff] %v13379_v61  ;;  %17675 = vst [vmem:[#allocation171_spill] sm:$0xff] %v13383_v38  ;;  %v13474_v17 = vmul.f32 %v13145_v19, %v13419_v45  ;;  %v13478_v27 = vmul.f32 %v13068_v23, %v13425_v50  ;;  %v13484_v18 = vmul.f32 %v17693_v46, %v13338_v25  ;;  %v10241_v38 = vld [vmem:[%s16786_s3 + $0x10] sm:$0xf] }
 0x4bd   : >> { %17676 = vst [vmem:[#allocation172_spill] sm:$0xff] %v13387_v56  ;;  %17677 = vst [vmem:[#allocation173_spill] sm:$0xff] %v13391_v48  ;;  %v13500_v62 = vmul.f32 %v13145_v19, %v13450_v14  ;;  %v13510_v23 = vpop.permute.xlu1 %7086  ;;  %6158 = vrot.lane.b32.xlu0 %v12942_v3, %s17517_s16  ;;  %v14008_v35 = vrot.slane %v10241_v38, %v11467_v26 }
 0x4be   : >> { %17678 = vst [vmem:[#allocation174_spill] sm:$0xff] %v13395_v39  ;;  %17679 = vst [vmem:[#allocation175_spill] sm:$0xff] %v13401_v30  ;;  %v17695_v39 = vld [vmem:[#allocation118_spill] sm:$0xff] }
 0x4bf   : >> { %17680 = vst [vmem:[#allocation176_spill] sm:$0xff] %v13405_v57  ;;  %17682 = vst [vmem:[#allocation66_spill] sm:$0xff] %v13411_v10  ;;  %v13458_v49 = vmul.f32 %v17695_v39, %v13401_v30  ;;  %v13488_v24 = vmul.f32 %v17695_v39, %v13349_v43  ;;  %v13522_v40 = vpop.permute.xlu0 %7206  ;;  %6006 = vrot.lane.b32.xlu1 %v12819_v31, %s17516_s24  ;;  %v17812_v43 = vld [vmem:[#allocation24_spill] sm:$0xff] }
 0x4c0   : >> { %17683 = vst [vmem:[#allocation177_spill] sm:$0xff] %v13415_v4  ;;  %17684 = vst [vmem:[#allocation178_spill] sm:$0xff] %v13419_v45 }
 0x4c1   : >> { %17685 = vst [vmem:[#allocation179_spill] sm:$0xff] %v13425_v50  ;;  %17686 = vst [vmem:[#allocation180_spill] sm:$0xff] %v13427_v8  ;;  %v13528_v44 = vpop.permute.xlu1 %7204  ;;  %6276 = vrot.lane.b32.xlu0 %v12932_v34, %s17518_s11 }
 0x4c2   : >> { %17688 = vst [vmem:[#allocation181_spill] sm:$0xff] %v13433_v1  ;;  %17689 = vst [vmem:[#allocation182_spill] sm:$0xff] %v13437_v42 }
 0x4c3   : >> { %17690 = vst [vmem:[#allocation183_spill] sm:$0xff] %v13441_v2  ;;  %17691 = vst [vmem:[#allocation184_spill] sm:$0xff] %v13445_v15  ;;  %v13531_v59 = vpop.permute.xlu0 %7328  ;;  %6128 = vrot.lane.b32.xlu1 %v12819_v31, %s17517_s16 }
 0x4c4   : >> { %17692 = vst [vmem:[#allocation185_spill] sm:$0xff] %v13450_v14  ;;  %17694 = vst [vmem:[#allocation186_spill] sm:$0xff] %v13454_v51 }
 0x4c5   : >> { %17696 = vst [vmem:[#allocation187_spill] sm:$0xff] %v13458_v49  ;;  %17697 = vst [vmem:[#allocation188_spill] sm:$0xff] %v13462_v13  ;;  %v13537_v39 = vpop.permute.xlu1 %7208  ;;  %6280 = vrot.lane.b32.xlu0 %v12942_v3, %s17518_s11  ;;  %v11036_v49 = vpop.eup %11035 }
 0x4c6   : >> { %17698 = vst [vmem:[#allocation189_spill] sm:$0xff] %v13466_v20  ;;  %17699 = vst [vmem:[#allocation190_spill] sm:$0xff] %v13470_v5 }
 0x4c7   : >> { %17700 = vst [vmem:[#allocation191_spill] sm:$0xff] %v13474_v17  ;;  %17701 = vst [vmem:[#allocation192_spill] sm:$0xff] %v13478_v27  ;;  %v13539_v15 = vpop.permute.xlu0 %7450  ;;  %6250 = vrot.lane.b32.xlu1 %v12819_v31, %s17518_s11 }
 0x4c8   : >> { %17702 = vst [vmem:[#allocation193_spill] sm:$0xff] %v13484_v18  ;;  %17703 = vst [vmem:[#allocation194_spill] sm:$0xff] %v13488_v24 }
 0x4c9   : >> { %17704 = vst [vmem:[#allocation195_spill] sm:$0xff] %v13490_v11  ;;  %17705 = vst [vmem:[#allocation196_spill] sm:$0xff] %v13500_v62  ;;  %v13545_v32 = vpop.permute.xlu1 %7326  ;;  %v17714_v62 = vld [vmem:[#allocation23_spill] sm:$0xff]  ;;  %6398 = vrot.lane.b32.xlu0 %v12932_v34, %s17519_s12 }
 0x4ca   : >> { %17706 = vst [vmem:[#allocation197_spill] sm:$0xff] %v13510_v23  ;;  %17707 = vst [vmem:[#allocation198_spill] sm:$0xff] %v13522_v40  ;;  %v5771_v17 = vadd.f32 %v17714_v62, %v17713_v58  ;;  %v17719_v58 = vld [vmem:[#allocation91_spill] sm:$0xff]  ;;  %v10253_v40 = vld [vmem:[%s16786_s3 + $0x44] sm:$0xf]  ;;  %v13891_v23 = vrot.slane %v10240_v9, %v11474_v29 }
 0x4cb   : >> { %17708 = vst [vmem:[#allocation199_spill] sm:$0xff] %v13528_v44  ;;  %17709 = vst [vmem:[#allocation200_spill] sm:$0xff] %v13531_v59  ;;  %v13549_v53 = vpop.permute.xlu0 %7580  ;;  %6372 = vrot.lane.b32.xlu1 %v12819_v31, %s17519_s12  ;;  %v13566_v13 = vmul.f32 %v11036_v49, %v17719_v58  ;;  %v13850_v56 = vrot.slane %v10253_v40, %v11467_v26  ;;  %v13869_v63 = vrot.slane %v10253_v40, %v11474_v29 }
 0x4cc   : >> { %17710 = vst [vmem:[#allocation201_spill] sm:$0xff] %v13537_v39  ;;  %17711 = vst [vmem:[#allocation202_spill] sm:$0xff] %v13539_v15  ;;  %v10235_v27 = vmul.f32 -1.442695, %v5771_v17  ;;  %v10252_v15 = vld [vmem:[%s16786_s3 + $0x40] sm:$0xf] }
 0x4cd   : >> { %17712 = vst [vmem:[#allocation203_spill] sm:$0xff] %v13545_v32  ;;  %17715 = vst [vmem:[#allocation16_spill] sm:$0xff] %v13549_v53  ;;  %v13555_v37 = vpop.permute.xlu1 %7330  ;;  %6402 = vrot.lane.b32.xlu0 %v12942_v3, %s17519_s12  ;;  %v13828_v57 = vrot.slane %v10252_v15, %v11467_v26  ;;  %v13844_v30 = vrot.slane %v10252_v15, %v11474_v29 }
 0x4ce   : >> { %17716 = vst [vmem:[#allocation23_spill] sm:$0xff] %v13555_v37  ;;  %11037 = vpow2.f32 %v10235_v27  ;;  %17720 = vst [vmem:[#allocation91_spill] sm:$0xff] %v13566_v13  ;;  %v17725_v27 = vld [vmem:[#allocation21_spill] sm:$0xff] }
 0x4cf   : >> { %v13557_v24 = vpop.permute.xlu0 %7584  ;;  %7586 = vrot.lane.b32.xlu1 %v12932_v34, %s17722_s25  ;;  %17790 = vst [vmem:[#allocation258_spill] sm:$0xff] %v13828_v57  ;;  %17793 = vst [vmem:[#allocation261_spill] sm:$0xff] %v13844_v30 }
 0x4d0   : >> { %17717 = vst [vmem:[#allocation204_spill] sm:$0xff] %v13557_v24  ;;  %v17774_v24 = vld [vmem:[#allocation8_spill] sm:$0xff]  ;;  %17795 = vst [vmem:[#allocation263_spill] sm:$0xff] %v13850_v56 }
 0x4d1   : >> { %v13563_v62 = vpop.permute.xlu1 %7448  ;;  %7064 = vrot.lane.b32.xlu0 %v13566_v13, %s17655_s1  ;;  %v13866_v7 = vrot.slane %v10253_v40, %v17774_v24  ;;  %17799 = vst [vmem:[#allocation267_spill] sm:$0xff] %v13869_v63  ;;  %17806 = vst [vmem:[#allocation274_spill] sm:$0xff] %v13891_v23 }
 0x4d2   : >> { %17718 = vst [vmem:[#allocation205_spill] sm:$0xff] %v13563_v62 }
 0x4d3   : >> { %v13568_v18 = vpop.permute.xlu0 %7702  ;;  %7590 = vrot.lane.b32.xlu1 %v12942_v3, %s17722_s25  ;;  %17798 = vst [vmem:[#allocation266_spill] sm:$0xff] %v13866_v7 }
 0x4d4   : >> { %17721 = vst [vmem:[#allocation206_spill] sm:$0xff] %v13568_v18 }
 0x4d5   : >> { %v13574_v51 = vpop.permute.xlu1 %7452  ;;  %6508 = vrot.lane.b32.xlu0 %v17725_v27, %s17520_s15 }
 0x4d6   : >> { %17723 = vst [vmem:[#allocation207_spill] sm:$0xff] %v13574_v51 }
 0x4d7   : >> { %v13576_v2 = vpop.permute.xlu0 %7706  ;;  %7708 = vrot.lane.b32.xlu1 %v12932_v34, %s17728_s26 }
 0x4d8   : >> { %17724 = vst [vmem:[#allocation208_spill] sm:$0xff] %v13576_v2  ;;  %v11038_v5 = vpop.eup %11037 }
 0x4d9   : >> { %v13582_v49 = vpop.permute.xlu1 %7578  ;;  %7186 = vrot.lane.b32.xlu0 %v13566_v13, %s17670_s23  ;;  %v5835_v42 = vadd.f32 1.0, %v11038_v5 }
 0x4da   : >> { %17726 = vst [vmem:[#allocation209_spill] sm:$0xff] %v13582_v49 }
 0x4db   : >> { %v13584_v58 = vpop.permute.xlu0 %7824  ;;  %7712 = vrot.lane.b32.xlu1 %v12942_v3, %s17728_s26  ;;  %11039 = vrcp.f32 %v5835_v42  ;;  %v17740_v42 = vld [vmem:[#allocation58_spill] sm:$0xff] }
 0x4dc   : >> { %17727 = vst [vmem:[#allocation210_spill] sm:$0xff] %v13584_v58 }
 0x4dd   : >> { %v13590_v1 = vpop.permute.xlu1 %7582  ;;  %6512 = vrot.lane.b32.xlu0 %v17731_v0, %s17520_s15 }
 0x4de   : >> { %17729 = vst [vmem:[#allocation211_spill] sm:$0xff] %v13590_v1  ;;  %v13731_v1 = vld [vmem:[%s16786_s3 + $0x30] sm:$0xf] }
 0x4df   : >> { %v13592_v41 = vpop.permute.xlu0 %7828  ;;  %7830 = vrot.lane.b32.xlu1 %v12932_v34, %s17734_s18  ;;  %v13773_v32 = vrot.slane %v13731_v1, %v17774_v24  ;;  %v13777_v59 = vrot.slane %v13731_v1, %v11474_v29 }
 0x4e0   : >> { %17730 = vst [vmem:[#allocation212_spill] sm:$0xff] %v13592_v41 }
 0x4e1   : >> { %v13598_v33 = vpop.permute.xlu1 %7700  ;;  %7308 = vrot.lane.b32.xlu0 %v13566_v13, %s17594_s22  ;;  %17777 = vst [vmem:[#allocation246_spill] sm:$0xff] %v13773_v32  ;;  %17778 = vst [vmem:[#allocation247_spill] sm:$0xff] %v13777_v59 }
 0x4e2   : >> { %17732 = vst [vmem:[#allocation213_spill] sm:$0xff] %v13598_v33 }
 0x4e3   : >> { %v13600_v4 = vpop.permute.xlu0 %7946  ;;  %7834 = vrot.lane.b32.xlu1 %v12942_v3, %s17734_s18 }
 0x4e4   : >> { %17733 = vst [vmem:[#allocation214_spill] sm:$0xff] %v13600_v4 }
 0x4e5   : >> { %v13606_v19 = vpop.permute.xlu1 %7704  ;;  %7430 = vrot.lane.b32.xlu0 %v13566_v13, %s17621_s0  ;;  %v11040_v21 = vpop.eup %11039 }
 0x4e6   : >> { %17735 = vst [vmem:[#allocation215_spill] sm:$0xff] %v13606_v19 }
 0x4e7   : >> { %v13608_v46 = vpop.permute.xlu0 %7950  ;;  %7952 = vrot.lane.b32.xlu1 %v12932_v34, %s17739_s19 }
 0x4e8   : >> { %17736 = vst [vmem:[#allocation216_spill] sm:$0xff] %v13608_v46  ;;  %v13628_v46 = vmul.f32 %v11040_v21, %v5771_v17  ;;  %v17747_v21 = vld [vmem:[#allocation19_spill] sm:$0xff]  ;;  %v17749_v17 = vld [vmem:[#allocation36_spill] sm:$0xff] }
 0x4e9   : >> { %v13614_v5 = vpop.permute.xlu1 %7822  ;;  %6516 = vrot.lane.b32.xlu0 %v17740_v42, %s17520_s15 }
 0x4ea   : >> { %17737 = vst [vmem:[#allocation217_spill] sm:$0xff] %v13614_v5 }
 0x4eb   : >> { %v13616_v55 = vpop.permute.xlu0 %5928  ;;  %7956 = vrot.lane.b32.xlu1 %v12942_v3, %s17739_s19 }
 0x4ec   : >> { %17738 = vst [vmem:[#allocation218_spill] sm:$0xff] %v13616_v55 }
 0x4ed   : >> { %v13622_v52 = vpop.permute.xlu1 %7826  ;;  %6520 = vrot.lane.b32.xlu0 %v12932_v34, %s17520_s15 }
 0x4ee   : >> { %17741 = vst [vmem:[#allocation219_spill] sm:$0xff] %v13622_v52 }
 0x4ef   : >> { %v13624_v22 = vpop.permute.xlu0 %6028  ;;  %7090 = vrot.lane.b32.xlu1 %v13628_v46, %s17655_s1 }
 0x4f0   : >> { %17742 = vst [vmem:[#allocation220_spill] sm:$0xff] %v13624_v22 }
 0x4f1   : >> { %v13632_v55 = vpop.permute.xlu1 %7944  ;;  %6524 = vrot.lane.b32.xlu0 %v12942_v3, %s17520_s15 }
 0x4f2   : >> { %17743 = vst [vmem:[#allocation221_spill] sm:$0xff] %v13632_v55 }
 0x4f3   : >> { %v13634_v4 = vpop.permute.xlu0 %6150  ;;  %6506 = vrot.lane.b32.xlu1 %v17747_v21, %s17520_s15 }
 0x4f4   : >> { %17744 = vst [vmem:[#allocation222_spill] sm:$0xff] %v13634_v4  ;;  %v17752_v4 = vld [vmem:[#allocation18_spill] sm:$0xff] }
 0x4f5   : >> { %v13640_v52 = vpop.permute.xlu1 %7948  ;;  %6614 = vrot.lane.b32.xlu0 %v17749_v17, %s17748_s28 }
 0x4f6   : >> { %17745 = vst [vmem:[#allocation223_spill] sm:$0xff] %v13640_v52 }
 0x4f7   : >> { %v13642_v22 = vpop.permute.xlu0 %6272  ;;  %7212 = vrot.lane.b32.xlu1 %v13628_v46, %s17670_s23 }
 0x4f8   : >> { %17746 = vst [vmem:[#allocation224_spill] sm:$0xff] %v13642_v22  ;;  %v17755_v22 = vld [vmem:[#allocation45_spill] sm:$0xff] }
 0x4f9   : >> { %v13648_v41 = vpop.permute.xlu1 %5926  ;;  %6626 = vrot.lane.b32.xlu0 %v17752_v4, %s17748_s28 }
 0x4fa   : >> { %17750 = vst [vmem:[#allocation225_spill] sm:$0xff] %v13648_v41 }
 0x4fb   : >> { %v13650_v55 = vpop.permute.xlu0 %6394  ;;  %6510 = vrot.lane.b32.xlu1 %v17755_v22, %s17520_s15 }
 0x4fc   : >> { %17751 = vst [vmem:[#allocation226_spill] sm:$0xff] %v13650_v55 }
 0x4fd   : >> { %v13656_v5 = vpop.permute.xlu1 %5930  ;;  %6630 = vrot.lane.b32.xlu0 %v17725_v27, %s17748_s28 }
 0x4fe   : >> { %17753 = vst [vmem:[#allocation227_spill] sm:$0xff] %v13656_v5 }
 0x4ff   : >> { %v13658_v52 = vpop.permute.xlu0 %7088  ;;  %7334 = vrot.lane.b32.xlu1 %v13628_v46, %s17594_s22  ;;  %s17766_s22 = smov 56  }
 0x500   : >> { %17754 = vst [vmem:[#allocation228_spill] sm:$0xff] %v13658_v52 }
 0x501   : >> { %v13664_v58 = vpop.permute.xlu1 %6026  ;;  %6634 = vrot.lane.b32.xlu0 %v17731_v0, %s17748_s28  ;;  %v13897_v0 = vrot.slane %v10241_v38, %v11474_v29 }
 0x502   : >> { %17756 = vst [vmem:[#allocation229_spill] sm:$0xff] %v13664_v58 }
 0x503   : >> { %v13666_v41 = vpop.permute.xlu0 %7092  ;;  %6494 = vrot.lane.b32.xlu1 %v12819_v31, %s17520_s15  ;;  %17808 = vst [vmem:[#allocation276_spill] sm:$0xff] %v13897_v0 }
 0x504   : >> { %17757 = vst [vmem:[#allocation230_spill] sm:$0xff] %v13666_v41 }
 0x505   : >> { %v13672_v55 = vpop.permute.xlu1 %6030  ;;  %6638 = vrot.lane.b32.xlu0 %v17740_v42, %s17748_s28 }
 0x506   : >> { %17758 = vst [vmem:[#allocation231_spill] sm:$0xff] %v13672_v55 }
 0x507   : >> { %v13674_v5 = vpop.permute.xlu0 %7210  ;;  %7456 = vrot.lane.b32.xlu1 %v13628_v46, %s17621_s0 }
 0x508   : >> { %17759 = vst [vmem:[#allocation232_spill] sm:$0xff] %v13674_v5 }
 0x509   : >> { %v13680_v19 = vpop.permute.xlu1 %6148  ;;  %6642 = vrot.lane.b32.xlu0 %v12932_v34, %s17748_s28 }
 0x50a   : >> { %17760 = vst [vmem:[#allocation233_spill] sm:$0xff] %v13680_v19 }
 0x50b   : >> { %v13682_v58 = vpop.permute.xlu0 %7214  ;;  %6514 = vrot.lane.b32.xlu1 %v12767_v36, %s17520_s15 }
 0x50c   : >> { %17761 = vst [vmem:[#allocation234_spill] sm:$0xff] %v13682_v58 }
 0x50d   : >> { %v13688_v2 = vpop.permute.xlu1 %6152  ;;  %6646 = vrot.lane.b32.xlu0 %v12942_v3, %s17748_s28  ;;  %v10239_v3 = vld [vmem:[%s16786_s3 + $0x8] sm:$0xf] }
 0x50e   : >> { %17762 = vst [vmem:[#allocation235_spill] sm:$0xff] %v13688_v2  ;;  %v13882_v8 = vrot.slane %v10239_v3, %v17774_v24  ;;  %v13885_v41 = vrot.slane %v10239_v3, %v11474_v29 }
 0x50f   : >> { %v13690_v55 = vpop.permute.xlu0 %7332  ;;  %6518 = vrot.lane.b32.xlu1 %v12781_v16, %s17520_s15 }
 0x510   : >> { %17763 = vst [vmem:[#allocation236_spill] sm:$0xff] %v13690_v55  ;;  %v17769_v55 = vld [vmem:[#allocation20_spill] sm:$0xff]  ;;  %17803 = vst [vmem:[#allocation271_spill] sm:$0xff] %v13882_v8 }
 0x511   : >> { %v13696_v33 = vpop.permute.xlu1 %6270  ;;  %6736 = vrot.lane.b32.xlu0 %v17749_v17, %s17766_s22  ;;  %17804 = vst [vmem:[#allocation272_spill] sm:$0xff] %v13885_v41 }
 0x512   : >> { %17764 = vst [vmem:[#allocation237_spill] sm:$0xff] %v13696_v33  ;;  %v13717_v33 = vld [vmem:[%s16786_s3 + $0x28] sm:$0xf] }
 0x513   : >> { %v13698_v19 = vpop.permute.xlu0 %7336  ;;  %6612 = vrot.lane.b32.xlu1 %v17769_v55, %s17748_s28  ;;  %v13746_v49 = vrot.slane %v13717_v33, %v11474_v29 }
 0x514   : >> { %17765 = vst [vmem:[#allocation238_spill] sm:$0xff] %v13698_v19  ;;  %v13722_v19 = vld [vmem:[%s16786_s3 + $0x2c] sm:$0xf] }
 0x515   : >> { %v13704_v18 = vpop.permute.xlu1 %6274  ;;  %7588 = vrot.lane.b32.xlu0 %v13628_v46, %s17722_s25  ;;  %v13750_v53 = vrot.slane %v13722_v19, %v17774_v24  ;;  %v13756_v52 = vrot.slane %v13722_v19, %v11474_v29 }
 0x516   : >> { %17767 = vst [vmem:[#allocation239_spill] sm:$0xff] %v13704_v18 }
 0x517   : >> { %v13706_v2 = vpop.permute.xlu0 %7454 }
 0x518   : >> { %17768 = vst [vmem:[#allocation240_spill] sm:$0xff] %v13706_v2  ;;  %v17772_v2 = vld [vmem:[#allocation17_spill] sm:$0xff] }
 0x519   : >> { %v13712_v5 = vpop.permute.xlu1 %6392  ;;  %6624 = vrot.lane.b32.xlu1 %v17772_v2, %s17748_s28  ;;  %7592 = vrot.lane.b32.xlu0 %v13566_v13, %s17722_s25 }
 0x51a   : >> { %17770 = vst [vmem:[#allocation241_spill] sm:$0xff] %v13712_v5  ;;  %v10250_v5 = vld [vmem:[%s16786_s3 + $0x38] sm:$0xf] }
 0x51b   : >> { %v13724_v18 = vpop.permute.xlu0 %7458  ;;  %v13788_v51 = vrot.slane %v10250_v5, %v11467_v26  ;;  %v13791_v17 = vrot.slane %v10250_v5, %v17774_v24  ;;  %v13794_v44 = vrot.slane %v10250_v5, %v11474_v29 }
 0x51c   : >> { %17771 = vst [vmem:[#allocation242_spill] sm:$0xff] %v13724_v18  ;;  %v13742_v18 = vrot.slane %v13717_v33, %v17774_v24 }
 0x51d   : >> { %v13738_v58 = vpop.permute.xlu1 %6396  ;;  %6628 = vrot.lane.b32.xlu1 %v17747_v21, %s17748_s28  ;;  %17781 = vst [vmem:[#allocation249_spill] sm:$0xff] %v13788_v51  ;;  %17782 = vst [vmem:[#allocation250_spill] sm:$0xff] %v13791_v17  ;;  %7710 = vrot.lane.b32.xlu0 %v13628_v46, %s17728_s26  ;;  %v17839_v21 = vld [vmem:[#allocation32_spill] sm:$0xff] }
 0x51e   : >> { %17773 = vst [vmem:[#allocation243_spill] sm:$0xff] %v13738_v58  ;;  %17775 = vst [vmem:[#allocation244_spill] sm:$0xff] %v13742_v18  ;;  %v10251_v58 = vld [vmem:[%s16786_s3 + $0x3c] sm:$0xf] }
 0x51f   : >> { %v13761_v62 = vpop.permute.xlu0 %5932  ;;  %17783 = vst [vmem:[#allocation251_spill] sm:$0xff] %v13794_v44  ;;  %v13809_v10 = vrot.slane %v10251_v58, %v11467_v26  ;;  %v13819_v50 = vrot.slane %v10251_v58, %v17774_v24  ;;  %v13822_v37 = vrot.slane %v10251_v58, %v11474_v29 }
 0x520   : >> { %17776 = vst [vmem:[#allocation245_spill] sm:$0xff] %v13761_v62  ;;  %v17779_v62 = vld [vmem:[#allocation10_spill] sm:$0xff] }
 0x521   : >> { %v13780_v39 = vrot.slane %v10250_v5, %v17779_v62  ;;  %v13801_v20 = vpop.permute.xlu1 %7062  ;;  %v13806_v11 = vrot.slane %v10251_v58, %v17779_v62  ;;  %17786 = vst [vmem:[#allocation254_spill] sm:$0xff] %v13809_v10  ;;  %v10238_v5 = vld [vmem:[%s16786_s3 + $0x4] sm:$0xf]  ;;  %17787 = vst [vmem:[#allocation255_spill] sm:$0xff] %v13819_v50  ;;  %v13825_v45 = vrot.slane %v10252_v15, %v17779_v62  ;;  %6632 = vrot.lane.b32.xlu1 %v17755_v22, %s17748_s28  ;;  %v17813_v22 = vld [vmem:[#allocation25_spill] sm:$0xff] }
 0x522   : >> { %17784 = vst [vmem:[#allocation252_spill] sm:$0xff] %v13801_v20  ;;  %17788 = vst [vmem:[#allocation256_spill] sm:$0xff] %v13822_v37  ;;  %v13841_v58 = vrot.slane %v10252_v15, %v17774_v24  ;;  %v13847_v48 = vrot.slane %v10253_v40, %v17779_v62  ;;  %v13863_v15 = vld [vmem:[%s16786_s3 + $0x5c] sm:$0xf]  ;;  %v13872_v47 = vrot.slane %v10238_v5, %v17774_v24  ;;  %7714 = vrot.lane.b32.xlu0 %v13566_v13, %s17728_s26 }
 0x523   : >> { %17780 = vst [vmem:[#allocation248_spill] sm:$0xff] %v13780_v39  ;;  %17785 = vst [vmem:[#allocation253_spill] sm:$0xff] %v13806_v11  ;;  %v13836_v61 = vpop.permute.xlu0 %5936  ;;  %v13875_v34 = vrot.slane %v10238_v5, %v11474_v29  ;;  %v13888_v40 = vrot.slane %v10240_v9, %v17774_v24  ;;  %v13894_v20 = vrot.slane %v10241_v38, %v17774_v24 }
 0x524   : >> { %17789 = vst [vmem:[#allocation257_spill] sm:$0xff] %v13825_v45  ;;  %17791 = vst [vmem:[#allocation259_spill] sm:$0xff] %v13836_v61  ;;  %v13858_v61 = vld [vmem:[%s16786_s3 + $0x14] sm:$0xf]  ;;  %v13905_v54 = vrot.slane %v13863_v15, %v17779_v62  ;;  %v7216_v25 = vsel %vm2478_vm12, %v17813_v22, %v17812_v43  ;;  %v13916_v29 = vrot.slane %v13717_v33, %v17779_v62 }
 0x525   : >> { %17792 = vst [vmem:[#allocation260_spill] sm:$0xff] %v13841_v58  ;;  %17794 = vst [vmem:[#allocation262_spill] sm:$0xff] %v13847_v48  ;;  %v13879_v42 = vpop.permute.xlu1 %7184  ;;  %6616 = vrot.lane.b32.xlu1 %v12819_v31, %s17748_s28  ;;  %v13924_v12 = vrot.slane %v13722_v19, %v17779_v62  ;;  %v13931_v31 = vrot.slane %v13722_v19, %v11467_v26  ;;  %v13935_v6 = vrot.slane %v13731_v1, %v17779_v62 }
 0x526   : >> { %17796 = vst [vmem:[#allocation264_spill] sm:$0xff] %v13858_v61  ;;  %17797 = vst [vmem:[#allocation265_spill] sm:$0xff] %v13863_v15  ;;  %7832 = vrot.lane.b32.xlu0 %v13628_v46, %s17734_s18  ;;  %v13952_v19 = vrot.slane %v10239_v3, %v17779_v62 }
 0x527   : >> { %17800 = vst [vmem:[#allocation268_spill] sm:$0xff] %v13872_v47  ;;  %17801 = vst [vmem:[#allocation269_spill] sm:$0xff] %v13875_v34  ;;  %v13907_v14 = vpop.permute.xlu0 %6032 }
 0x528   : >> { %17802 = vst [vmem:[#allocation270_spill] sm:$0xff] %v13879_v42  ;;  %17805 = vst [vmem:[#allocation273_spill] sm:$0xff] %v13888_v40  ;;  %v13901_v42 = vrot.slane %v13858_v61, %v17774_v24  ;;  %v13920_v24 = vrot.slane %v13717_v33, %v11467_v26  ;;  %v13939_v33 = vrot.slane %v13731_v1, %v11467_v26 }
 0x529   : >> { %17807 = vst [vmem:[#allocation275_spill] sm:$0xff] %v13894_v20  ;;  %17810 = vst [vmem:[#allocation278_spill] sm:$0xff] %v13905_v54  ;;  %v13958_v1 = vrot.slane %v10240_v9, %v17779_v62  ;;  %6636 = vrot.lane.b32.xlu1 %v12767_v36, %s17748_s28 }
 0x52a   : >> { %17809 = vst [vmem:[#allocation277_spill] sm:$0xff] %v13901_v42  ;;  %17811 = vst [vmem:[#allocation279_spill] sm:$0xff] %v13907_v14  ;;  %v10955_v14 = vld [vmem:[%s16789_s6 + $0x34] ss:$12 sps:$4 sm:$0xff]   ;;  %7836 = vrot.lane.b32.xlu0 %v13566_v13, %s17734_s18 }
 0x52b   : >> { %17814 = vst [vmem:[#allocation24_spill] sm:$0xff] %v13916_v29  ;;  %17815 = vst [vmem:[#allocation25_spill] sm:$0xff] %v13920_v24  ;;  %v13942_v24 = vrot.slane %v10238_v5, %v17779_v62  ;;  %v13949_v29 = vrot.slane %v10238_v5, %v11467_v26  ;;  %8200 = vmatprep.mubr.bf16.mxu0 %v10955_v14  ;;  %v13967_v5 = vrot.slane %v10240_v9, %v11467_v26 }
 0x52c   : >> { %17816 = vst [vmem:[#allocation280_spill] sm:$0xff] %v13924_v12  ;;  %17817 = vst [vmem:[#allocation281_spill] sm:$0xff] %v13931_v31  ;;  %v13946_v12 = vpop.permute.xlu1 %7306  ;;  %8306 = vmatprep.mubr.bf16.mxu1 %v10955_v14  ;;  %v13983_v9 = vrot.slane %v10241_v38, %v17779_v62  ;;  %v17837_v14 = vld [vmem:[#allocation30_spill] sm:$0xff] }
 0x52d   : >> { %17818 = vst [vmem:[#allocation282_spill] sm:$0xff] %v13935_v6  ;;  %17819 = vst [vmem:[#allocation283_spill] sm:$0xff] %v13939_v33  ;;  %v13955_v6 = vrot.slane %v10239_v3, %v11467_v26  ;;  %v17827_v33 = vld [vmem:[#allocation27_spill] sm:$0xff]  ;;  %v17830_v3 = vld [vmem:[#allocation26_spill] sm:$0xff]  ;;  %6640 = vrot.lane.b32.xlu1 %v12781_v16, %s17748_s28 }
 0x52e   : >> { %17820 = vst [vmem:[#allocation284_spill] sm:$0xff] %v13942_v24  ;;  %17821 = vst [vmem:[#allocation285_spill] sm:$0xff] %v13946_v12  ;;  %v13961_v24 = vmul.f32 %v13742_v18, %v7216_v25  ;;  %v7217_v12 = vsel %vm2478_vm12, %v17812_v43, %v17827_v33  ;;  %v17834_v18 = vld [vmem:[#allocation33_spill] sm:$0xff]  ;;  %6748 = vrot.lane.b32.xlu0 %v17752_v4, %s17766_s22  ;;  %v17863_v16 = vld [vmem:[#allocation48_spill] sm:$0xff] }
 0x52f   : >> { %17822 = vst [vmem:[#allocation286_spill] sm:$0xff] %v13949_v29  ;;  %17823 = vst [vmem:[#allocation287_spill] sm:$0xff] %v13952_v19  ;;  %v13969_v29 = vpop.permute.xlu0 %6036  ;;  %v17832_v19 = vld [vmem:[#allocation31_spill] sm:$0xff]  ;;  %v14002_v0 = vmul.f32 %v13746_v49, %v7217_v12 }
 0x530   : >> { %17824 = vst [vmem:[#allocation288_spill] sm:$0xff] %v13955_v6  ;;  %17825 = vst [vmem:[#allocation289_spill] sm:$0xff] %v13958_v1  ;;  %v17831_v6 = vld [vmem:[#allocation29_spill] sm:$0xff]  ;;  %v7339_v25 = vsel %vm2682_vm13, %v17830_v3, %v17832_v19  ;;  %v17864_v4 = vld [vmem:[#allocation43_spill] sm:$0xff] }
 0x531   : >> { %17826 = vst [vmem:[#allocation290_spill] sm:$0xff] %v13961_v24  ;;  %17828 = vst [vmem:[#allocation27_spill] sm:$0xff] %v13967_v5  ;;  %v7338_v1 = vsel %vm2682_vm13, %v17831_v6, %v17830_v3  ;;  %v17833_v24 = vld [vmem:[#allocation28_spill] sm:$0xff]  ;;  %v17838_v5 = vld [vmem:[#allocation38_spill] sm:$0xff]  ;;  %v14018_v13 = vmul.f32 %v13756_v52, %v7339_v25  ;;  %6734 = vrot.lane.b32.xlu1 %v17769_v55, %s17766_s22 }
 0x532   : >> { %17829 = vst [vmem:[#allocation291_spill] sm:$0xff] %v13969_v29  ;;  %v7460_v43 = vsel %vm2886_vm14, %v17834_v18, %v17833_v24  ;;  %17835 = vst [vmem:[#allocation26_spill] sm:$0xff] %v13983_v9  ;;  %v17836_v29 = vld [vmem:[#allocation35_spill] sm:$0xff]  ;;  %v7594_v31 = vsel %vm3250_vm15, %v17838_v5, %v17837_v14  ;;  %v7626_v54 = vsel %vm3250_vm15, %v17839_v21, %v17838_v5  ;;  %v17840_v3 = vld [vmem:[#allocation40_spill] sm:$0xff]  ;;  %v13999_v9 = vpop.permute.xlu1 %7428  ;;  %6752 = vrot.lane.b32.xlu0 %v17725_v27, %s17766_s22 }
 0x533   : >> { %v7461_v36 = vsel %vm2886_vm14, %v17833_v24, %v17836_v29  ;;  %v7595_v42 = vsel %vm3250_vm15, %v17837_v14, %v17840_v3  ;;  %17841 = vst [vmem:[#allocation29_spill] sm:$0xff] %v13999_v9  ;;  %17842 = vst [vmem:[#allocation31_spill] sm:$0xff] %v14002_v0  ;;  %v7596_v24 = vsel %vm3250_vm15, %v17840_v3, %v17839_v21  ;;  %v14027_v21 = vpop.permute.xlu0 %6154  ;;  %v17867_v0 = vld [vmem:[#allocation50_spill] sm:$0xff] }
 0x534   : >> { %17843 = vst [vmem:[#allocation28_spill] sm:$0xff] %v14008_v35  ;;  %v14012_v5 = vrot.slane %v13858_v61, %v17779_v62  ;;  %v14015_v14 = vmul.f32 %v13750_v53, %v7338_v1  ;;  %17846 = vst [vmem:[#allocation30_spill] sm:$0xff] %v14018_v13  ;;  %v14021_v12 = vmul.f32 %v13773_v32, %v7460_v43  ;;  %v17855_v62 = vld [vmem:[#allocation34_spill] sm:$0xff]  ;;  %v17857_v61 = vld [vmem:[#allocation37_spill] sm:$0xff] }
 0x535   : >> { %v14025_v9 = vrot.slane %v13863_v15, %v11467_v26  ;;  %17849 = vst [vmem:[#allocation40_spill] sm:$0xff] %v14027_v21  ;;  %v14032_v38 = vmul.f32 %v13777_v59, %v7461_v36  ;;  %v14035_v1 = vmul.f32 %v13780_v39, %v7594_v31  ;;  %v14038_v25 = vmul.f32 %v13788_v51, %v7626_v54  ;;  %v17856_v21 = vld [vmem:[#allocation42_spill] sm:$0xff]  ;;  %v17858_v26 = vld [vmem:[#allocation44_spill] sm:$0xff]  ;;  %v17865_v13 = vld [vmem:[#allocation49_spill] sm:$0xff] }
 0x536   : >> { %17844 = vst [vmem:[#allocation33_spill] sm:$0xff] %v14012_v5  ;;  %17845 = vst [vmem:[#allocation35_spill] sm:$0xff] %v14015_v14  ;;  %v14041_v43 = vmul.f32 %v13791_v17, %v7595_v42  ;;  %v14044_v3 = vmul.f32 %v13794_v44, %v7596_v24  ;;  %v7716_v15 = vsel %vm3454_vm10, %v17856_v21, %v17855_v62  ;;  %v14057_v54 = vpop.permute.xlu1 %5894  ;;  %v17860_v24 = vld [vmem:[#allocation39_spill] sm:$0xff]  ;;  %v17862_v14 = vld [vmem:[#allocation41_spill] sm:$0xff]  ;;  %6746 = vrot.lane.b32.xlu1 %v17772_v2, %s17766_s22 }
 0x537   : >> { %17847 = vst [vmem:[#allocation38_spill] sm:$0xff] %v14021_v12  ;;  %17848 = vst [vmem:[#allocation32_spill] sm:$0xff] %v14025_v9  ;;  %v7748_v36 = vsel %vm3454_vm10, %v17857_v61, %v17856_v21  ;;  %v7717_v31 = vsel %vm3454_vm10, %v17855_v62, %v17858_v26  ;;  %v7718_v42 = vsel %vm3454_vm10, %v17858_v26, %v17857_v61  ;;  %v17861_v12 = vld [vmem:[#allocation47_spill] sm:$0xff]  ;;  %v17866_v61 = vld [vmem:[#allocation46_spill] sm:$0xff]  ;;  %v14083_v59 = vpop.permute.xlu0 %6158  ;;  %7954 = vrot.lane.b32.xlu0 %v13628_v46, %s17739_s19 }
 0x538   : >> { %17850 = vst [vmem:[#allocation292_spill] sm:$0xff] %v14032_v38  ;;  %17851 = vst [vmem:[#allocation293_spill] sm:$0xff] %v14035_v1  ;;  %v7838_v38 = vsel %vm3658_vm9, %v17861_v12, %v17860_v24  ;;  %v7870_v21 = vsel %vm3658_vm9, %v17862_v14, %v17861_v12  ;;  %v7839_v62 = vsel %vm3658_vm9, %v17860_v24, %v17863_v16 }
 0x539   : >> { %17852 = vst [vmem:[#allocation294_spill] sm:$0xff] %v14038_v25  ;;  %17853 = vst [vmem:[#allocation295_spill] sm:$0xff] %v14041_v43  ;;  %v7960_v26 = vsel %vm3862_vm8, %v17865_v13, %v17864_v4  ;;  %v7992_v32 = vsel %vm3862_vm8, %v17866_v61, %v17865_v13  ;;  %v7961_v12 = vsel %vm3862_vm8, %v17864_v4, %v17867_v0  ;;  %v18052_v25 = vld [vmem:[#allocation60_spill] sm:$0xff] }
 0x53a   : >> { %17854 = vst [vmem:[#allocation296_spill] sm:$0xff] %v14044_v3  ;;  %17859 = vst [vmem:[#allocation34_spill] sm:$0xff] %v14057_v54  ;;  %v7840_v54 = vsel %vm3658_vm9, %v17863_v16, %v17862_v14  ;;  %v14088_v24 = vmul.f32 %v13806_v11, %v7716_v15  ;;  %v14091_v16 = vmul.f32 %v13809_v10, %v7748_v36  ;;  %v14113_v36 = vpop.permute.xlu1 %6006  ;;  %v18017_v3 = vld [vmem:[#allocation95_spill] sm:$0xff] }
 0x53b   : >> { %17868 = vst [vmem:[#allocation42_spill] sm:$0xff] %v14083_v59  ;;  %v14094_v14 = vmul.f32 %v13819_v50, %v7717_v31  ;;  %v7962_v13 = vsel %vm3862_vm8, %v17867_v0, %v17866_v61  ;;  %v14100_v4 = vmul.f32 %v13822_v37, %v7718_v42  ;;  %v14103_v59 = vmul.f32 %v13825_v45, %v7838_v38  ;;  %v17883_v61 = vld [vmem:[#allocation112_spill] sm:$0xff] }
 0x53c   : >> { %17869 = vst [vmem:[#allocation37_spill] sm:$0xff] %v14088_v24  ;;  %17870 = vst [vmem:[#allocation44_spill] sm:$0xff] %v14091_v16  ;;  %v14106_v55 = vmul.f32 %v13828_v57, %v7870_v21  ;;  %v14109_v15 = vmul.f32 %v13841_v58, %v7839_v62  ;;  %v14116_v31 = vmul.f32 %v13844_v30, %v7840_v54  ;;  %v17882_v62 = vld [vmem:[#allocation13_spill] sm:$0xff] }
 0x53d   : >> { %17871 = vst [vmem:[#allocation39_spill] sm:$0xff] %v14094_v14  ;;  %17872 = vst [vmem:[#allocation47_spill] sm:$0xff] %v14100_v4  ;;  %v14119_v0 = vmul.f32 %v13847_v48, %v7960_v26  ;;  %v14122_v38 = vmul.f32 %v13850_v56, %v7992_v32  ;;  %v14125_v42 = vmul.f32 %v13866_v7, %v7961_v12  ;;  %v14142_v32 = vpop.permute.xlu0 %6276  ;;  %v17891_v12 = vld [vmem:[#allocation127_spill] sm:$0xff]  ;;  %v18013_v14 = vld [vmem:[#allocation94_spill] sm:$0xff] }
 0x53e   : >> { %17873 = vst [vmem:[#allocation41_spill] sm:$0xff] %v14103_v59  ;;  %17874 = vst [vmem:[#allocation48_spill] sm:$0xff] %v14106_v55  ;;  %v14128_v21 = vmul.f32 %v13869_v63, %v7962_v13  ;;  %v14132_v27 = vmul.f32 %v17883_v61, %v17882_v62  ;;  %v17886_v55 = vld [vmem:[#allocation120_spill] sm:$0xff]  ;;  %v14148_v13 = vmul.f32 %v13875_v34, %v17891_v12  ;;  %v17933_v62 = vld [vmem:[#allocation107_spill] sm:$0xff] }
 0x53f   : >> { %17875 = vst [vmem:[#allocation43_spill] sm:$0xff] %v14109_v15  ;;  %17876 = vst [vmem:[#allocation49_spill] sm:$0xff] %v14113_v36  ;;  %v17885_v36 = vld [vmem:[#allocation14_spill] sm:$0xff]  ;;  %v17888_v15 = vld [vmem:[#allocation121_spill] sm:$0xff] }
 0x540   : >> { %17877 = vst [vmem:[#allocation46_spill] sm:$0xff] %v14116_v31  ;;  %17878 = vst [vmem:[#allocation50_spill] sm:$0xff] %v14119_v0  ;;  %v14136_v54 = vmul.f32 %v17886_v55, %v17885_v36  ;;  %v14140_v26 = vmul.f32 %v13872_v47, %v17888_v15  ;;  %v17898_v15 = vld [vmem:[#allocation61_spill] sm:$0xff]  ;;  %v17938_v36 = vld [vmem:[#allocation122_spill] sm:$0xff] }
 0x541   : >> { %17879 = vst [vmem:[#allocation297_spill] sm:$0xff] %v14122_v38  ;;  %17880 = vst [vmem:[#allocation298_spill] sm:$0xff] %v14125_v42  ;;  %v17893_v38 = vld [vmem:[#allocation128_spill] sm:$0xff]  ;;  %v17943_v0 = vld [vmem:[#allocation287_spill] sm:$0xff] }
 0x542   : >> { %17881 = vst [vmem:[#allocation299_spill] sm:$0xff] %v14128_v21  ;;  %17884 = vst [vmem:[#allocation112_spill] sm:$0xff] %v14132_v27  ;;  %v14152_v61 = vmul.f32 %v13882_v8, %v17893_v38  ;;  %v17895_v27 = vld [vmem:[#allocation135_spill] sm:$0xff]  ;;  %v14205_v8 = vpop.permute.xlu0 %6280  ;;  %v17941_v21 = vld [vmem:[#allocation68_spill] sm:$0xff] }
 0x543   : >> { %17887 = vst [vmem:[#allocation120_spill] sm:$0xff] %v14136_v54  ;;  %17889 = vst [vmem:[#allocation121_spill] sm:$0xff] %v14140_v26  ;;  %v14156_v55 = vmul.f32 %v13885_v41, %v17895_v27  ;;  %v17897_v54 = vld [vmem:[#allocation51_spill] sm:$0xff]  ;;  %v17935_v41 = vld [vmem:[#allocation161_spill] sm:$0xff]  ;;  %v6554_v42 = vsel %vm1458_vm7, %v17941_v21, %v17898_v15 }
 0x544   : >> { %17890 = vst [vmem:[#allocation300_spill] sm:$0xff] %v14142_v32  ;;  %17892 = vst [vmem:[#allocation127_spill] sm:$0xff] %v14148_v13  ;;  %v6526_v26 = vsel %vm1458_vm7, %v17898_v15, %v17897_v54  ;;  %v17899_v32 = vld [vmem:[#allocation62_spill] sm:$0xff]  ;;  %v17900_v13 = vld [vmem:[#allocation63_spill] sm:$0xff]  ;;  %v14175_v54 = vpop.permute.xlu1 %6128 }
 0x545   : >> { %17894 = vst [vmem:[#allocation128_spill] sm:$0xff] %v14152_v61  ;;  %17896 = vst [vmem:[#allocation135_spill] sm:$0xff] %v14156_v55  ;;  %v7218_v2 = vsel %vm2478_vm12, %v17827_v33, %v17899_v32  ;;  %v7244_v12 = vsel %vm2478_vm12, %v17899_v32, %v17813_v22  ;;  %v7340_v38 = vsel %vm2682_vm13, %v17832_v19, %v17900_v13  ;;  %v17904_v32 = vld [vmem:[#allocation64_spill] sm:$0xff]  ;;  %v17952_v15 = vld [vmem:[#allocation45_spill] sm:$0xff] }
 0x546   : >> { %v7366_v27 = vsel %vm2682_vm13, %v17900_v13, %v17831_v6  ;;  %17901 = vst [vmem:[#allocation61_spill] sm:$0xff] %v14175_v54  ;;  %v14179_v33 = vmul.f32 %v13888_v40, %v13219_v28  ;;  %v14183_v22 = vmul.f32 %v13891_v23, %v13228_v60  ;;  %v7462_v19 = vsel %vm2886_vm14, %v17836_v29, %v17904_v32  ;;  %v17905_v13 = vld [vmem:[#allocation140_spill] sm:$0xff]  ;;  %v17912_v60 = vld [vmem:[#allocation278_spill] sm:$0xff]  ;;  %v17915_v29 = vld [vmem:[#allocation19_spill] sm:$0xff] }
 0x547   : >> { %v7488_v6 = vsel %vm2886_vm14, %v17904_v32, %v17834_v18  ;;  %v14193_v61 = vmul.f32 %v13894_v20, %v17905_v13  ;;  %v17907_v54 = vld [vmem:[#allocation144_spill] sm:$0xff]  ;;  %17914 = vst [vmem:[#allocation302_spill] sm:$0xff] %v14205_v8  ;;  %6750 = vrot.lane.b32.xlu1 %v17915_v29, %s17766_s22  ;;  %v17918_v13 = vld [vmem:[#allocation25_spill] sm:$0xff]  ;;  %v17926_v29 = vld [vmem:[#allocation147_spill] sm:$0xff] }
 0x548   : >> { %17902 = vst [vmem:[#allocation62_spill] sm:$0xff] %v14179_v33  ;;  %17903 = vst [vmem:[#allocation63_spill] sm:$0xff] %v14183_v22  ;;  %v17908_v55 = vld [vmem:[#allocation276_spill] sm:$0xff]  ;;  %v17910_v33 = vld [vmem:[#allocation277_spill] sm:$0xff]  ;;  %v14203_v22 = vmul.f32 %v17912_v60, %v6526_v26  ;;  %v14236_v23 = vpop.permute.xlu1 %6250 }
 0x549   : >> { %17906 = vst [vmem:[#allocation64_spill] sm:$0xff] %v14193_v61  ;;  %v14197_v28 = vmul.f32 %v17908_v55, %v17907_v54  ;;  %v14200_v40 = vmul.f32 %v17910_v33, %v6526_v26  ;;  %v17916_v18 = vld [vmem:[#allocation24_spill] sm:$0xff]  ;;  %v14213_v61 = vmul.f32 %v17918_v13, %v7218_v2  ;;  %v17929_v55 = vld [vmem:[#allocation70_spill] sm:$0xff] }
 0x54a   : >> { %17913 = vst [vmem:[#allocation301_spill] sm:$0xff] %v14203_v22  ;;  %v14210_v32 = vmul.f32 %v17916_v18, %v7244_v12  ;;  %v17919_v20 = vld [vmem:[#allocation280_spill] sm:$0xff]  ;;  %v17923_v22 = vld [vmem:[#allocation283_spill] sm:$0xff]  ;;  %v18040_v59 = vld [vmem:[#allocation30_spill] sm:$0xff] }
 0x54b   : >> { %17909 = vst [vmem:[#allocation140_spill] sm:$0xff] %v14197_v28  ;;  %17911 = vst [vmem:[#allocation144_spill] sm:$0xff] %v14200_v40  ;;  %v14216_v54 = vmul.f32 %v17919_v20, %v7366_v27  ;;  %v17920_v28 = vld [vmem:[#allocation281_spill] sm:$0xff]  ;;  %v17921_v40 = vld [vmem:[#allocation282_spill] sm:$0xff]  ;;  %v14225_v8 = vmul.f32 %v17923_v22, %v7462_v19  ;;  %6754 = vrot.lane.b32.xlu1 %v17952_v15, %s17766_s22 }
 0x54c   : >> { %17917 = vst [vmem:[#allocation303_spill] sm:$0xff] %v14210_v32  ;;  %v14219_v33 = vmul.f32 %v17920_v28, %v7340_v38  ;;  %v14222_v26 = vmul.f32 %v17921_v40, %v7488_v6  ;;  %v17925_v60 = vld [vmem:[#allocation12_spill] sm:$0xff]  ;;  %v17930_v27 = vld [vmem:[#allocation91_spill] sm:$0xff]  ;;  %v17963_v15 = vld [vmem:[#allocation153_spill] sm:$0xff] }
 0x54d   : >> { %17924 = vst [vmem:[#allocation305_spill] sm:$0xff] %v14225_v8  ;;  %v14229_v47 = vmul.f32 %v17926_v29, %v17925_v60  ;;  %v17928_v12 = vld [vmem:[#allocation52_spill] sm:$0xff]  ;;  %7958 = vrot.lane.b32.xlu0 %v17930_v27, %s17739_s19  ;;  %v17932_v38 = vld [vmem:[#allocation15_spill] sm:$0xff]  ;;  %v17939_v29 = vld [vmem:[#allocation286_spill] sm:$0xff]  ;;  %v14291_v63 = vmul.f32 %v14008_v35, %v17963_v15 }
 0x54e   : >> { %17922 = vst [vmem:[#allocation304_spill] sm:$0xff] %v14222_v26  ;;  %v7245_v2 = vsel %vm2478_vm12, %v17929_v55, %v17928_v12  ;;  %17931 = vst [vmem:[#allocation52_spill] sm:$0xff] %v14236_v23  ;;  %v14240_v6 = vmul.f32 %v17933_v62, %v17932_v38  ;;  %v17936_v19 = vld [vmem:[#allocation284_spill] sm:$0xff]  ;;  %v17942_v60 = vld [vmem:[#allocation162_spill] sm:$0xff] }
 0x54f   : >> { %17927 = vst [vmem:[#allocation147_spill] sm:$0xff] %v14229_v47  ;;  %v14244_v34 = vmul.f32 %v17936_v19, %v17935_v41  ;;  %v14248_v47 = vmul.f32 %v17939_v29, %v17938_v36  ;;  %v14255_v56 = vmul.f32 %v17943_v0, %v17942_v60  ;;  %v17945_v23 = vld [vmem:[#allocation136_spill] sm:$0xff]  ;;  %v17954_v60 = vld [vmem:[#allocation289_spill] sm:$0xff]  ;;  %v17970_v15 = vld [vmem:[#allocation59_spill] sm:$0xff]  ;;  %5934 = vrot.lane.b32.xlu1 %v13628_v46, %s17515_s30 }
 0x550   : >> { %17934 = vst [vmem:[#allocation70_spill] sm:$0xff] %v14240_v6  ;;  %v17946_v31 = vld [vmem:[#allocation288_spill] sm:$0xff]  ;;  %v17948_v6 = vld [vmem:[#allocation53_spill] sm:$0xff]  ;;  %v18084_v26 = vld [vmem:[#allocation130_spill] sm:$0xff] }
 0x551   : >> { %17937 = vst [vmem:[#allocation91_spill] sm:$0xff] %v14244_v34  ;;  %17940 = vst [vmem:[#allocation107_spill] sm:$0xff] %v14248_v47  ;;  %v14259_v62 = vmul.f32 %v17946_v31, %v17945_v23  ;;  %v7221_v41 = vsel %vm2478_vm12, %v17948_v6, %v17929_v55  ;;  %v17949_v34 = vld [vmem:[#allocation54_spill] sm:$0xff]  ;;  %v17950_v38 = vld [vmem:[#allocation72_spill] sm:$0xff]  ;;  %v14267_v47 = vpop.permute.xlu0 %6398  ;;  %v14280_v31 = vmul.f32 %v17916_v18, %v7245_v2 }
 0x552   : >> { %17944 = vst [vmem:[#allocation161_spill] sm:$0xff] %v14255_v56  ;;  %v7367_v36 = vsel %vm2682_vm13, %v17950_v38, %v17949_v34  ;;  %17951 = vst [vmem:[#allocation162_spill] sm:$0xff] %v14267_v47  ;;  %v17953_v21 = vld [vmem:[#allocation164_spill] sm:$0xff]  ;;  %v17957_v23 = vld [vmem:[#allocation27_spill] sm:$0xff] }
 0x553   : >> { %17947 = vst [vmem:[#allocation122_spill] sm:$0xff] %v14259_v62  ;;  %v14273_v56 = vmul.f32 %v17954_v60, %v17953_v21  ;;  %v17956_v29 = vld [vmem:[#allocation148_spill] sm:$0xff]  ;;  %v17959_v55 = vld [vmem:[#allocation55_spill] sm:$0xff]  ;;  %v17960_v19 = vld [vmem:[#allocation185_spill] sm:$0xff]  ;;  %v14294_v21 = vmul.f32 %v14012_v5, %v6554_v42 }
 0x554   : >> { %v14277_v62 = vmul.f32 %v17957_v23, %v17956_v29  ;;  %v7343_v0 = vsel %vm2682_vm13, %v17959_v55, %v17950_v38  ;;  %v17961_v47 = vld [vmem:[#allocation26_spill] sm:$0xff]  ;;  %17964 = vst [vmem:[#allocation72_spill] sm:$0xff] %v14291_v63  ;;  %v17966_v29 = vld [vmem:[#allocation56_spill] sm:$0xff]  ;;  %v14304_v38 = vmul.f32 %v17918_v13, %v7221_v41  ;;  %v17972_v63 = vld [vmem:[#allocation69_spill] sm:$0xff] }
 0x555   : >> { %17955 = vst [vmem:[#allocation136_spill] sm:$0xff] %v14273_v56  ;;  %v14287_v16 = vmul.f32 %v17961_v47, %v17960_v19  ;;  %17965 = vst [vmem:[#allocation164_spill] sm:$0xff] %v14294_v21  ;;  %v17968_v18 = vld [vmem:[#allocation22_spill] sm:$0xff]  ;;  %v14301_v56 = vpop.permute.xlu1 %6372  ;;  %v14307_v19 = vmul.f32 %v17919_v20, %v7367_v36  ;;  %v17971_v21 = vld [vmem:[#allocation76_spill] sm:$0xff]  ;;  %v14316_v35 = vmul.f32 %v17920_v28, %v7343_v0 }
 0x556   : >> { %17958 = vst [vmem:[#allocation53_spill] sm:$0xff] %v14277_v62  ;;  %v17967_v62 = vld [vmem:[#allocation74_spill] sm:$0xff]  ;;  %6756 = vrot.lane.b32.xlu0 %v17968_v18, %s17766_s22  ;;  %17969 = vst [vmem:[#allocation148_spill] sm:$0xff] %v14301_v56  ;;  %v17973_v18 = vld [vmem:[#allocation71_spill] sm:$0xff]  ;;  %v14332_v0 = vmul.f32 %v14025_v9, %v6554_v42 }
 0x557   : >> { %17962 = vst [vmem:[#allocation54_spill] sm:$0xff] %v14287_v16  ;;  %v7489_v2 = vsel %vm2886_vm14, %v17967_v62, %v17966_v29  ;;  %v7465_v5 = vsel %vm2886_vm14, %v17970_v15, %v17967_v62  ;;  %v7597_v16 = vsel %vm3250_vm15, %v17972_v63, %v17971_v21  ;;  %v7598_v56 = vsel %vm3250_vm15, %v17971_v21, %v17973_v18  ;;  %v17974_v41 = vld [vmem:[#allocation78_spill] sm:$0xff]  ;;  %v14327_v62 = vpop.permute.xlu0 %6402  ;;  %v17978_v13 = vld [vmem:[#allocation81_spill] sm:$0xff]  ;;  %v17983_v47 = vld [vmem:[#allocation84_spill] sm:$0xff] }
 0x558   : >> { %v7599_v36 = vsel %vm3250_vm15, %v17973_v18, %v17974_v41  ;;  %v7627_v20 = vsel %vm3250_vm15, %v17974_v41, %v17972_v63  ;;  %17975 = vst [vmem:[#allocation55_spill] sm:$0xff] %v14327_v62  ;;  %17976 = vst [vmem:[#allocation185_spill] sm:$0xff] %v14332_v0  ;;  %v14337_v21 = vmul.f32 %v17921_v40, %v7489_v2  ;;  %v17979_v18 = vld [vmem:[#allocation73_spill] sm:$0xff]  ;;  %v17982_v62 = vld [vmem:[#allocation75_spill] sm:$0xff] }
 0x559   : >> { %v7719_v23 = vsel %vm3454_vm10, %v17979_v18, %v17978_v13  ;;  %v14343_v63 = vmul.f32 %v17923_v22, %v7465_v5  ;;  %v14346_v41 = vmul.f32 %v13780_v39, %v7597_v16  ;;  %v7720_v42 = vsel %vm3454_vm10, %v17978_v13, %v17982_v62  ;;  %v14356_v2 = vpop.permute.xlu1 %7586  ;;  %v17988_v22 = vld [vmem:[#allocation252_spill] sm:$0xff]  ;;  %v17989_v13 = vld [vmem:[#allocation197_spill] sm:$0xff] }
 0x55a   : >> { %17977 = vst [vmem:[#allocation153_spill] sm:$0xff] %v14337_v21  ;;  %v7721_v28 = vsel %vm3454_vm10, %v17982_v62, %v17983_v47  ;;  %5896 = vrot.lane.b32.xlu0 %v17930_v27, %s17515_s30  ;;  %17984 = vst [vmem:[#allocation59_spill] sm:$0xff] %v14356_v2  ;;  %v14359_v40 = vmul.f32 %v13791_v17, %v7598_v56  ;;  %v14362_v5 = vmul.f32 %v13794_v44, %v7599_v36  ;;  %v17991_v56 = vld [vmem:[#allocation65_spill] sm:$0xff]  ;;  %v17994_v62 = vld [vmem:[#allocation230_spill] sm:$0xff]  ;;  %s18121_s30 = smov 55  }
 0x55b   : >> { %17980 = vst [vmem:[#allocation56_spill] sm:$0xff] %v14343_v63  ;;  %17981 = vst [vmem:[#allocation74_spill] sm:$0xff] %v14346_v41  ;;  %v14365_v16 = vmul.f32 %v13788_v51, %v7627_v20  ;;  %v7102_v39 = vsel %vm2274_vm11, %v17989_v13, %v17988_v22  ;;  %v14373_v32 = vmul.f32 %v13806_v11, %v7719_v23  ;;  %v14375_v2 = vpop.permute.xlu0 %7064  ;;  %6738 = vrot.lane.b32.xlu1 %v17991_v56, %s17766_s22  ;;  %v17995_v56 = vld [vmem:[#allocation67_spill] sm:$0xff]  ;;  %v18168_v63 = vld [vmem:[#allocation68_spill] sm:$0xff] }
 0x55c   : >> { %17985 = vst [vmem:[#allocation76_spill] sm:$0xff] %v14359_v40  ;;  %17986 = vst [vmem:[#allocation69_spill] sm:$0xff] %v14362_v5  ;;  %v14386_v17 = vmul.f32 %v13819_v50, %v7720_v42  ;;  %v14389_v23 = vmul.f32 %v13822_v37, %v7721_v28  ;;  %v7105_v11 = vsel %vm2274_vm11, %v17994_v62, %v14375_v2  ;;  %v17999_v28 = vld [vmem:[#allocation79_spill] sm:$0xff]  ;;  %v18018_v5 = vld [vmem:[#allocation244_spill] sm:$0xff] }
 0x55d   : >> { %17987 = vst [vmem:[#allocation71_spill] sm:$0xff] %v14365_v16  ;;  %17990 = vst [vmem:[#allocation78_spill] sm:$0xff] %v14373_v32  ;;  %v7749_v36 = vsel %vm3454_vm10, %v17983_v47, %v17979_v18  ;;  %v7159_v51 = vmul.f32 %v17995_v56, %v7102_v39  ;;  %v7163_v20 = vmul.f32 %v17995_v56, %v7105_v11  ;;  %v14401_v42 = vpop.permute.xlu1 %7590  ;;  %v17997_v18 = vld [vmem:[#allocation88_spill] sm:$0xff]  ;;  %v17998_v56 = vld [vmem:[#allocation77_spill] sm:$0xff] }
 0x55e   : >> { %17992 = vst [vmem:[#allocation81_spill] sm:$0xff] %v14386_v17  ;;  %17993 = vst [vmem:[#allocation73_spill] sm:$0xff] %v14389_v23  ;;  %6008 = vrot.lane.b32.xlu0 %v17930_v27, %s17516_s24  ;;  %v7842_v44 = vsel %vm3658_vm9, %v17997_v18, %v17999_v28  ;;  %v14426_v47 = vmul.f32 %v13809_v10, %v7749_v36  ;;  %v18001_v39 = vld [vmem:[#allocation180_spill] sm:$0xff]  ;;  %v18003_v32 = vld [vmem:[#allocation90_spill] sm:$0xff] }
 0x55f   : >> { %17996 = vst [vmem:[#allocation75_spill] sm:$0xff] %v14401_v42  ;;  %v7841_v42 = vsel %vm3658_vm9, %v17998_v56, %v17997_v18  ;;  %v14421_v1 = vpop.permute.xlu0 %6508  ;;  %6034 = vrot.lane.b32.xlu1 %v13628_v46, %s17516_s24  ;;  %v7171_v37 = vpack.c.bf16 %v7163_v20, %v7159_v51  ;;  %v7843_v41 = vsel %vm3658_vm9, %v17999_v28, %v18003_v32  ;;  %v18005_v20 = vld [vmem:[#allocation58_spill] sm:$0xff]  ;;  %v18009_v28 = vld [vmem:[#allocation92_spill] sm:$0xff]  ;;  %v18012_v23 = vld [vmem:[#allocation85_spill] sm:$0xff] }
 0x560   : >> { %18000 = vst [vmem:[#allocation84_spill] sm:$0xff] %v14426_v47  ;;  %v14433_v24 = vsel %vm1458_vm7, %v18001_v39, %v14421_v1  ;;  %v7871_v51 = vsel %vm3658_vm9, %v18003_v32, %v17998_v56  ;;  %v14452_v18 = vmul.f32 %v13825_v45, %v7841_v42  ;;  %v14455_v4 = vmul.f32 %v13841_v58, %v7842_v44  ;;  %v18033_v16 = vld [vmem:[#allocation246_spill] sm:$0xff]  ;;  %v18065_v58 = vld [vmem:[#allocation173_spill] sm:$0xff] }
 0x561   : >> { %18002 = vst [vmem:[#allocation252_spill] sm:$0xff] %v14433_v24  ;;  %v14445_v36 = vmul.f32 %v14025_v9, %v14433_v24  ;;  %8276 = vmatprep.subr.bf16.mxu1 %v7171_v37  ;;  %v14449_v11 = vpop.permute.xlu1 %7708  ;;  %v7219_v32 = vsel %vm2478_vm12, %v17928_v12, %v18009_v28  ;;  %v7220_v56 = vsel %vm2478_vm12, %v18009_v28, %v17948_v6  ;;  %v18010_v9 = vld [vmem:[#allocation93_spill] sm:$0xff]  ;;  %v18011_v24 = vld [vmem:[#allocation82_spill] sm:$0xff] }
 0x562   : >> { %6760 = vrot.lane.b32.xlu0 %v18005_v20, %s17766_s22  ;;  %18006 = vst [vmem:[#allocation230_spill] sm:$0xff] %v14449_v11  ;;  %18007 = vst [vmem:[#allocation67_spill] sm:$0xff] %v14452_v18  ;;  %v7963_v37 = vsel %vm3862_vm8, %v18011_v24, %v18010_v9  ;;  %v7964_v42 = vsel %vm3862_vm8, %v18010_v9, %v18012_v23  ;;  %v7342_v44 = vsel %vm2682_vm13, %v18013_v14, %v17959_v55  ;;  %v18014_v12 = vld [vmem:[#allocation57_spill] sm:$0xff]  ;;  %v18032_v18 = vld [vmem:[#allocation31_spill] sm:$0xff] }
 0x563   : >> { %18004 = vst [vmem:[#allocation197_spill] sm:$0xff] %v14445_v36  ;;  %18008 = vst [vmem:[#allocation88_spill] sm:$0xff] %v14455_v4  ;;  %v14472_v17 = vpop.permute.xlu0 %7186  ;;  %6758 = vrot.lane.b32.xlu1 %v18014_v12, %s17766_s22  ;;  %v14479_v28 = vmul.f32 %v13844_v30, %v7843_v41  ;;  %v14482_v11 = vmul.f32 %v13828_v57, %v7871_v51  ;;  %v7341_v9 = vsel %vm2682_vm13, %v17949_v34, %v18013_v14  ;;  %v18019_v51 = vld [vmem:[#allocation103_spill] sm:$0xff]  ;;  %v18041_v4 = vld [vmem:[#allocation12_spill] sm:$0xff] }
 0x564   : >> { %v7965_v55 = vsel %vm3862_vm8, %v18012_v23, %v18017_v3  ;;  %v14491_v43 = vmul.f32 %v18018_v5, %v7219_v32  ;;  %v14494_v40 = vmul.f32 %v13746_v49, %v7220_v56  ;;  %v7993_v41 = vsel %vm3862_vm8, %v18017_v3, %v18011_v24  ;;  %v18023_v56 = vld [vmem:[#allocation267_spill] sm:$0xff]  ;;  %v18050_v36 = vld [vmem:[#allocation284_spill] sm:$0xff] }
 0x565   : >> { %18015 = vst [vmem:[#allocation77_spill] sm:$0xff] %v14479_v28  ;;  %18016 = vst [vmem:[#allocation79_spill] sm:$0xff] %v14482_v11  ;;  %v7464_v6 = vsel %vm2886_vm14, %v18019_v51, %v17970_v15  ;;  %v14504_v34 = vpop.permute.xlu1 %7712  ;;  %v14507_v14 = vmul.f32 %v13847_v48, %v7963_v37  ;;  %v14510_v23 = vmul.f32 %v13866_v7, %v7964_v42  ;;  %v18029_v24 = vld [vmem:[#allocation247_spill] sm:$0xff]  ;;  %v18062_v11 = vld [vmem:[#allocation172_spill] sm:$0xff] }
 0x566   : >> { %6130 = vrot.lane.b32.xlu0 %v17930_v27, %s17517_s16  ;;  %18020 = vst [vmem:[#allocation180_spill] sm:$0xff] %v14504_v34  ;;  %v14513_v32 = vmul.f32 %v13756_v52, %v7342_v44  ;;  %v7463_v3 = vsel %vm2886_vm14, %v17966_v29, %v18019_v51  ;;  %v14521_v15 = vmul.f32 %v13750_v53, %v7341_v9  ;;  %v18027_v51 = vld [vmem:[#allocation263_spill] sm:$0xff]  ;;  %v18035_v44 = vld [vmem:[#allocation80_spill] sm:$0xff]  ;;  %v18037_v29 = vld [vmem:[#allocation290_spill] sm:$0xff] }
 0x567   : >> { %18021 = vst [vmem:[#allocation90_spill] sm:$0xff] %v14507_v14  ;;  %18022 = vst [vmem:[#allocation92_spill] sm:$0xff] %v14510_v23  ;;  %v14524_v0 = vmul.f32 %v18023_v56, %v7965_v55  ;;  %v14526_v37 = vpop.permute.xlu0 %6512  ;;  %6156 = vrot.lane.b32.xlu1 %v13628_v46, %s17517_s16  ;;  %v14535_v34 = vmul.f32 %v18027_v51, %v7993_v41  ;;  %v14538_v9 = vmul.f32 %v18029_v24, %v7464_v6  ;;  %v18046_v41 = vld [vmem:[#allocation14_spill] sm:$0xff]  ;;  %v18047_v48 = vld [vmem:[#allocation167_spill] sm:$0xff]  ;;  %s16753_s16 = sld [smem:[#allocation4 + %s10327_s2]] }
 0x568   : >> { %v14545_v56 = vmul.f32 %v18033_v16, %v7463_v3  ;;  %v18042_v3 = vld [vmem:[#allocation154_spill] sm:$0xff]  ;;  %v14569_v30 = vmul.f32 %v18047_v48, %v18046_v41  ;;  %v18049_v6 = vld [vmem:[#allocation168_spill] sm:$0xff]  ;;  %v18058_v48 = vld [vmem:[#allocation171_spill] sm:$0xff] }
 0x569   : >> { %18024 = vst [vmem:[#allocation93_spill] sm:$0xff] %v14524_v0  ;;  %18028 = vst [vmem:[#allocation82_spill] sm:$0xff] %v14535_v34  ;;  %v14549_v42 = vpop.permute.xlu1 %7830  ;;  %v14561_v47 = vmul.f32 %v18042_v3, %v18041_v4  ;;  %v14573_v55 = vmul.f32 %v18050_v36, %v18049_v6  ;;  %v18053_v3 = vld [vmem:[#allocation35_spill] sm:$0xff]  ;;  %v18059_v23 = vld [vmem:[#allocation269_spill] sm:$0xff] }
 0x56a   : >> { %18030 = vst [vmem:[#allocation85_spill] sm:$0xff] %v14538_v9  ;;  %18034 = vst [vmem:[#allocation94_spill] sm:$0xff] %v14545_v56  ;;  %6764 = vrot.lane.b32.xlu0 %v18035_v44, %s17766_s22  ;;  %v18055_v44 = vld [vmem:[#allocation15_spill] sm:$0xff]  ;;  %v14589_v4 = vmul.f32 %v18059_v23, %v18058_v48  ;;  %v18066_v14 = vld [vmem:[#allocation272_spill] sm:$0xff] }
 0x56b   : >> { %18036 = vst [vmem:[#allocation95_spill] sm:$0xff] %v14549_v42  ;;  %18043 = vst [vmem:[#allocation244_spill] sm:$0xff] %v14561_v47  ;;  %v14575_v28 = vpop.permute.xlu0 %7308  ;;  %6762 = vrot.lane.b32.xlu1 %v18052_v25, %s17766_s22  ;;  %v18056_v42 = vld [vmem:[#allocation115_spill] sm:$0xff]  ;;  %v14599_v57 = vmul.f32 %v18066_v14, %v18065_v58  ;;  %v18077_v58 = vld [vmem:[#allocation176_spill] sm:$0xff] }
 0x56c   : >> { %18048 = vst [vmem:[#allocation103_spill] sm:$0xff] %v14569_v30  ;;  %18051 = vst [vmem:[#allocation31_spill] sm:$0xff] %v14573_v55  ;;  %v14585_v0 = vmul.f32 %v18056_v42, %v18055_v44  ;;  %v18063_v41 = vld [vmem:[#allocation287_spill] sm:$0xff]  ;;  %v18078_v14 = vld [vmem:[#allocation274_spill] sm:$0xff] }
 0x56d   : >> { %18060 = vst [vmem:[#allocation30_spill] sm:$0xff] %v14589_v4  ;;  %v14595_v25 = vmul.f32 %v18063_v41, %v18062_v11  ;;  %18067 = vst [vmem:[#allocation167_spill] sm:$0xff] %v14599_v57  ;;  %v18068_v7 = vld [vmem:[#allocation175_spill] sm:$0xff]  ;;  %v14607_v48 = vpop.permute.xlu1 %7834  ;;  %v18074_v41 = vld [vmem:[#allocation13_spill] sm:$0xff]  ;;  %v14619_v45 = vmul.f32 %v18078_v14, %v18077_v58 }
 0x56e   : >> { %18057 = vst [vmem:[#allocation290_spill] sm:$0xff] %v14585_v0  ;;  %v14603_v12 = vmul.f32 %v17954_v60, %v18068_v7  ;;  %v18070_v42 = vld [vmem:[#allocation83_spill] sm:$0xff]  ;;  %18071 = vst [vmem:[#allocation35_spill] sm:$0xff] %v14607_v48  ;;  %v18080_v7 = vld [vmem:[#allocation178_spill] sm:$0xff] }
 0x56f   : >> { %18064 = vst [vmem:[#allocation154_spill] sm:$0xff] %v14595_v25  ;;  %6768 = vrot.lane.b32.xlu0 %v18070_v42, %s17766_s22  ;;  %v18075_v34 = vld [vmem:[#allocation123_spill] sm:$0xff]  ;;  %18079 = vst [vmem:[#allocation171_spill] sm:$0xff] %v14619_v45  ;;  %v18081_v60 = vld [vmem:[#allocation26_spill] sm:$0xff]  ;;  %v14637_v58 = vpop.permute.xlu0 %7430  ;;  %6278 = vrot.lane.b32.xlu1 %v13628_v46, %s17518_s11 }
 0x570   : >> { %18069 = vst [vmem:[#allocation168_spill] sm:$0xff] %v14603_v12  ;;  %v14615_v23 = vmul.f32 %v18075_v34, %v18074_v41  ;;  %v14623_v50 = vmul.f32 %v18081_v60, %v18080_v7  ;;  %v18085_v36 = vld [vmem:[#allocation286_spill] sm:$0xff]  ;;  %v18088_v34 = vld [vmem:[#allocation179_spill] sm:$0xff]  ;;  %v18089_v47 = vld [vmem:[#allocation276_spill] sm:$0xff] }
 0x571   : >> { %v14629_v21 = vmul.f32 %v18085_v36, %v18084_v26  ;;  %v14635_v41 = vmul.f32 %v18089_v47, %v18088_v34  ;;  %v18091_v7 = vld [vmem:[#allocation137_spill] sm:$0xff]  ;;  %v18092_v60 = vld [vmem:[#allocation268_spill] sm:$0xff]  ;;  %v18095_v42 = vld [vmem:[#allocation142_spill] sm:$0xff] }
 0x572   : >> { %18076 = vst [vmem:[#allocation115_spill] sm:$0xff] %v14615_v23  ;;  %18082 = vst [vmem:[#allocation172_spill] sm:$0xff] %v14623_v50  ;;  %v14643_v14 = vmul.f32 %v18092_v60, %v18091_v7  ;;  %v18096_v30 = vld [vmem:[#allocation288_spill] sm:$0xff]  ;;  %v18098_v6 = vld [vmem:[#allocation149_spill] sm:$0xff] }
 0x573   : >> { %18086 = vst [vmem:[#allocation173_spill] sm:$0xff] %v14629_v21  ;;  %18090 = vst [vmem:[#allocation175_spill] sm:$0xff] %v14635_v41  ;;  %v14649_v36 = vmul.f32 %v18096_v30, %v18095_v42  ;;  %v18099_v11 = vld [vmem:[#allocation271_spill] sm:$0xff]  ;;  %v18103_v9 = vld [vmem:[#allocation156_spill] sm:$0xff]  ;;  %6252 = vrot.lane.b32.xlu0 %v17930_v27, %s17518_s11  ;;  %v14667_v42 = vpop.permute.xlu1 %7952  ;;  %s9717_s11 = sadd.s32 3, %s10327_s2 }
 0x574   : >> { %18093 = vst [vmem:[#allocation123_spill] sm:$0xff] %v14643_v14  ;;  %v14653_v34 = vmul.f32 %v18099_v11, %v18098_v6  ;;  %v18104_v7 = vld [vmem:[#allocation27_spill] sm:$0xff]  ;;  %18107 = vst [vmem:[#allocation179_spill] sm:$0xff] %v14667_v42  ;;  %v18109_v48 = vld [vmem:[#allocation273_spill] sm:$0xff]  ;;  %v14687_v42 = vpop.permute.xlu0 %6516  ;;  %s16755_s18 = sld [smem:[#allocation4 + %s9717_s11]] }
 0x575   : >> { %18097 = vst [vmem:[#allocation176_spill] sm:$0xff] %v14649_v36  ;;  %v14661_v60 = vmul.f32 %v18104_v7, %v18103_v9  ;;  %v18108_v6 = vld [vmem:[#allocation163_spill] sm:$0xff]  ;;  %v18112_v51 = vld [vmem:[#allocation170_spill] sm:$0xff]  ;;  %v18113_v20 = vld [vmem:[#allocation28_spill] sm:$0xff] }
 0x576   : >> { %18100 = vst [vmem:[#allocation178_spill] sm:$0xff] %v14653_v34  ;;  %v14671_v4 = vmul.f32 %v18109_v48, %v18108_v6  ;;  %v14677_v57 = vmul.f32 %v18113_v20, %v18112_v51  ;;  %v18116_v26 = vld [vmem:[#allocation66_spill] sm:$0xff]  ;;  %v18117_v44 = vld [vmem:[#allocation275_spill] sm:$0xff]  ;;  %18120 = vst [vmem:[#allocation156_spill] sm:$0xff] %v14687_v42 }
 0x577   : >> { %18105 = vst [vmem:[#allocation130_spill] sm:$0xff] %v14661_v60  ;;  %v14683_v12 = vmul.f32 %v18117_v44, %v18116_v26  ;;  %v18122_v6 = vld [vmem:[#allocation20_spill] sm:$0xff]  ;;  %v18129_v44 = vld [vmem:[#allocation195_spill] sm:$0xff]  ;;  %v18130_v48 = vld [vmem:[#allocation189_spill] sm:$0xff]  ;;  %v14717_v41 = vpop.permute.xlu1 %7956 }
 0x578   : >> { %18110 = vst [vmem:[#allocation137_spill] sm:$0xff] %v14671_v4  ;;  %18114 = vst [vmem:[#allocation142_spill] sm:$0xff] %v14677_v57  ;;  %6856 = vrot.lane.b32.xlu1 %v18122_v6, %s18121_s30  ;;  %v7100_v11 = vsel %vm2274_vm11, %v18130_v48, %v18129_v44  ;;  %v7101_v45 = vsel %vm2274_vm11, %v18129_v44, %v17989_v13  ;;  %v18131_v47 = vld [vmem:[#allocation198_spill] sm:$0xff]  ;;  %v18132_v51 = vld [vmem:[#allocation199_spill] sm:$0xff]  ;;  %v14735_v6 = vpop.permute.xlu0 %6520 }
 0x579   : >> { %18118 = vst [vmem:[#allocation149_spill] sm:$0xff] %v14683_v12  ;;  %v7222_v25 = vsel %vm2478_vm12, %v18132_v51, %v18131_v47  ;;  %v18133_v20 = vld [vmem:[#allocation201_spill] sm:$0xff]  ;;  %v18134_v30 = vld [vmem:[#allocation36_spill] sm:$0xff]  ;;  %18135 = vst [vmem:[#allocation163_spill] sm:$0xff] %v14717_v41 }
 0x57a   : >> { %v7223_v26 = vsel %vm2478_vm12, %v18131_v47, %v18133_v20  ;;  %6858 = vrot.lane.b32.xlu0 %v18134_v30, %s18121_s30  ;;  %v18136_v7 = vld [vmem:[#allocation200_spill] sm:$0xff]  ;;  %v18137_v36 = vld [vmem:[#allocation203_spill] sm:$0xff]  ;;  %v18141_v47 = vld [vmem:[#allocation202_spill] sm:$0xff]  ;;  %18144 = vst [vmem:[#allocation170_spill] sm:$0xff] %v14735_v6  ;;  %v14746_v42 = vmul.f32 %v18018_v5, %v7222_v25 }
 0x57b   : >> { %v7344_v50 = vsel %vm2682_vm13, %v18137_v36, %v18136_v7  ;;  %v18138_v34 = vld [vmem:[#allocation23_spill] sm:$0xff]  ;;  %v18142_v0 = vld [vmem:[#allocation205_spill] sm:$0xff]  ;;  %v18143_v23 = vld [vmem:[#allocation228_spill] sm:$0xff]  ;;  %v7091_v25 = vpop.permute.xlu1 %7090 }
 0x57c   : >> { %v7345_v13 = vsel %vm2682_vm13, %v18136_v7, %v18138_v34  ;;  %v7466_v55 = vsel %vm2886_vm14, %v18142_v0, %v18141_v47  ;;  %v7125_v41 = vsel %vm2274_vm11, %v14375_v2, %v18143_v23  ;;  %6400 = vrot.lane.b32.xlu1 %v13628_v46, %s17519_s12  ;;  %v18147_v14 = vld [vmem:[#allocation86_spill] sm:$0xff]  ;;  %v18148_v60 = vld [vmem:[#allocation87_spill] sm:$0xff]  ;;  %v14749_v2 = vmul.f32 %v13746_v49, %v7223_v26  ;;  %v18153_v57 = vld [vmem:[#allocation264_spill] sm:$0xff] }
 0x57d   : >> { %v7157_v21 = vmul.f32 %v18147_v14, %v7100_v11  ;;  %v7158_v4 = vmul.f32 %v18148_v60, %v7101_v45  ;;  %v14752_v6 = vmul.f32 %v13750_v53, %v7344_v50  ;;  %v14755_v56 = vmul.f32 %v13756_v52, %v7345_v13  ;;  %v18149_v30 = vld [vmem:[#allocation207_spill] sm:$0xff]  ;;  %v18151_v50 = vld [vmem:[#allocation89_spill] sm:$0xff] }
 0x57e   : >> { %v7467_v44 = vsel %vm2886_vm14, %v18141_v47, %v18149_v30  ;;  %v7124_v45 = vsel %vm2274_vm11, %v17988_v22, %v18130_v48  ;;  %6374 = vrot.lane.b32.xlu0 %v17930_v27, %s17519_s12  ;;  %v14766_v11 = vmul.f32 %v18033_v16, %v7466_v55  ;;  %v7160_v26 = vmul.f32 %v18151_v50, %v7125_v41  ;;  %v18152_v47 = vld [vmem:[#allocation9_spill] sm:$0xff]  ;;  %v18155_v22 = vld [vmem:[#allocation11_spill] sm:$0xff]  ;;  %s9719_s12 = sadd.s32 4, %s10327_s2 }
 0x57f   : >> { %v7103_v13 = vsel %vm2274_vm11, %v18143_v23, %v7091_v25  ;;  %v7104_v9 = vsel %vm2274_vm11, %v7091_v25, %v17994_v62  ;;  %v14775_v7 = vrot.slane %v18153_v57, %v18152_v47  ;;  %v18156_v48 = vld [vmem:[#allocation265_spill] sm:$0xff]  ;;  %v14788_v23 = vmul.f32 %v18029_v24, %v7467_v44  ;;  %v18161_v62 = vld [vmem:[#allocation16_spill] sm:$0xff]  ;;  %vm18324_vm11 = vmmov %vm18196_vm2  ;;  %s16757_s19 = sld [smem:[#allocation4 + %s9719_s12]] }
 0x580   : >> { %18150 = vst [vmem:[#allocation66_spill] sm:$0xff] %v14766_v11  ;;  %v14779_v12 = vrot.slane %v18156_v48, %v18155_v22  ;;  %v7161_v0 = vmul.f32 %v18147_v14, %v7103_v13  ;;  %v7162_v55 = vmul.f32 %v18148_v60, %v7104_v9  ;;  %v14783_v11 = vpop.permute.xlu0 %6524  ;;  %v18159_v41 = vld [vmem:[#allocation17_spill] sm:$0xff]  ;;  %v7156_v16 = vmul.f32 %v18151_v50, %v7124_v45  ;;  %v18163_v60 = vld [vmem:[#allocation204_spill] sm:$0xff]  ;;  %v18164_v13 = vld [vmem:[#allocation234_spill] sm:$0xff] }
 0x581   : >> { %18154 = vst [vmem:[#allocation195_spill] sm:$0xff] %v14775_v7  ;;  %18158 = vst [vmem:[#allocation198_spill] sm:$0xff] %v14783_v11  ;;  %6868 = vrot.lane.b32.xlu1 %v18159_v41, %s18121_s30  ;;  %v18162_v25 = vld [vmem:[#allocation209_spill] sm:$0xff]  ;;  %v6531_v14 = vsel %vm1458_vm7, %v14526_v37, %v18001_v39  ;;  %v7227_v44 = vsel %vm2478_vm12, %v18164_v13, %v14472_v17  ;;  %v18165_v41 = vld [vmem:[#allocation18_spill] sm:$0xff] }
 0x582   : >> { %18157 = vst [vmem:[#allocation189_spill] sm:$0xff] %v14779_v12  ;;  %18160 = vst [vmem:[#allocation199_spill] sm:$0xff] %v14788_v23  ;;  %v14793_v47 = vsel %vm3250_vm15, %v18162_v25, %v18161_v62  ;;  %v14802_v9 = vsel %vm3250_vm15, %v18163_v60, %v18162_v25  ;;  %v7170_v11 = vpack.c.bf16 %v7162_v55, %v7158_v4  ;;  %6870 = vrot.lane.b32.xlu0 %v18165_v41, %s18121_s30  ;;  %v6507_v23 = vpop.permute.xlu1 %6506  ;;  %v18166_v45 = vld [vmem:[#allocation211_spill] sm:$0xff]  ;;  %v18167_v39 = vld [vmem:[#allocation270_spill] sm:$0xff] }
 0x583   : >> { %v7169_v24 = vpack.c.bf16 %v7161_v0, %v7157_v21  ;;  %v14812_v50 = vsel %vm3250_vm15, %v18161_v62, %v18166_v45  ;;  %v7224_v25 = vsel %vm2478_vm12, %v18133_v20, %v18167_v39  ;;  %v7168_v8 = vpack.c.bf16 %v7160_v26, %v7156_v16  ;;  %v18173_v16 = vld [vmem:[#allocation25_spill] sm:$0xff] }
 0x584   : >> { %v6528_v10 = vsel %vm1458_vm7, %v6507_v23, %v18168_v63  ;;  %v14820_v4 = vmul.f32 %v14775_v7, %v6531_v14  ;;  %v14823_v55 = vmul.f32 %v14779_v12, %v6531_v14  ;;  %v14831_v62 = vpop.permute.xlu0 %6614  ;;  %v7246_v63 = vsel %vm2478_vm12, %v18167_v39, %v18132_v51  ;;  %8277 = vmatpush1.bf16.msra.mxu1 %v7170_v11  ;;  %v18175_v14 = vld [vmem:[#allocation232_spill] sm:$0xff] }
 0x585   : >> { %v14826_v0 = vmul.f32 %v14775_v7, %v6528_v10  ;;  %v14829_v21 = vmul.f32 %v14779_v12, %v6528_v10  ;;  %6522 = vrot.lane.b32.xlu1 %v13628_v46, %s17520_s15  ;;  %v7285_v20 = vmul.f32 %v18173_v16, %v7227_v44  ;;  %v14841_v26 = vrot.slane %v18153_v57, %v18155_v22  ;;  %v18179_v44 = vld [vmem:[#allocation8_spill] sm:$0xff]  ;;  %v18262_v7 = vld [vmem:[#allocation262_spill] sm:$0xff] }
 0x586   : >> { %18169 = vst [vmem:[#allocation201_spill] sm:$0xff] %v14820_v4  ;;  %18170 = vst [vmem:[#allocation200_spill] sm:$0xff] %v14823_v55  ;;  %8170 = vmatprep.subr.bf16.mxu0 %v7169_v24  ;;  %v7247_v10 = vsel %vm2478_vm12, %v14472_v17, %v18175_v14  ;;  %6496 = vrot.lane.b32.xlu0 %v17930_v27, %s17520_s15  ;;  %v7213_v51 = vpop.permute.xlu1 %7212  ;;  %v7281_v57 = vmul.f32 %v18173_v16, %v7224_v25  ;;  %s9715_s15 = sadd.s32 2, %s10327_s2 }
 0x587   : >> { %18171 = vst [vmem:[#allocation203_spill] sm:$0xff] %v14826_v0  ;;  %18172 = vst [vmem:[#allocation23_spill] sm:$0xff] %v14829_v21  ;;  %8171 = vmatpush1.bf16.msra.mxu0 %v7168_v8  ;;  %v18176_v24 = vpack.c.bf16 %v14304_v38, %v14213_v61  ;;  %v7225_v17 = vsel %vm2478_vm12, %v18175_v14, %v7213_v51  ;;  %v7226_v11 = vsel %vm2478_vm12, %v7213_v51, %v18164_v13  ;;  %v18178_v8 = vld [vmem:[#allocation238_spill] sm:$0xff]  ;;  %v18181_v13 = vld [vmem:[#allocation19_spill] sm:$0xff] }
 0x588   : >> { %18174 = vst [vmem:[#allocation202_spill] sm:$0xff] %v14841_v26  ;;  %v18177_v39 = vpack.c.bf16 %v14491_v43, %v18037_v29  ;;  %v7349_v12 = vsel %vm2682_vm13, %v18178_v8, %v14575_v28  ;;  %v14868_v25 = vrot.slane %v18156_v48, %v18179_v44  ;;  %v7283_v61 = vmul.f32 %v18018_v5, %v7225_v17  ;;  %v14872_v16 = vpop.permute.xlu0 %6626  ;;  %v18182_v14 = vld [vmem:[#allocation24_spill] sm:$0xff]  ;;  %v18183_v51 = vld [vmem:[#allocation51_spill] sm:$0xff]  ;;  %v18185_v5 = vld [vmem:[#allocation285_spill] sm:$0xff] }
 0x589   : >> { %8278 = vmatprep.subr.bf16.mxu1 %v18176_v24  ;;  %v7284_v38 = vmul.f32 %v13746_v49, %v7226_v11  ;;  %6872 = vrot.lane.b32.xlu1 %v18181_v13, %s18121_s30  ;;  %v7278_v43 = vmul.f32 %v18182_v14, %v7246_v63  ;;  %v7282_v29 = vmul.f32 %v18182_v14, %v7247_v10  ;;  %v18186_v11 = vld [vmem:[#allocation21_spill] sm:$0xff]  ;;  %v18187_v63 = vld [vmem:[#allocation303_spill] sm:$0xff]  ;;  %v18229_v21 = vld [vmem:[#allocation38_spill] sm:$0xff] }
 0x58a   : >> { %8172 = vmatprep.subr.bf16.mxu0 %v18177_v39  ;;  %18180 = vst [vmem:[#allocation228_spill] sm:$0xff] %v14868_v25  ;;  %v6527_v24 = vsel %vm1458_vm7, %v18183_v51, %v6507_v23  ;;  %v18184_v48 = vpack.c.bf16 %v14494_v40, %v18032_v18  ;;  %v7293_v39 = vpack.c.bf16 %v7285_v20, %v7281_v57  ;;  %v6511_v14 = vpop.permute.xlu1 %6510  ;;  %v18189_v18 = vld [vmem:[#allocation281_spill] sm:$0xff]  ;;  %v18197_v51 = vld [vmem:[#allocation236_spill] sm:$0xff]  ;;  %vm18325_vm12 = vmmov %vm18196_vm2 }
 0x58b   : >> { %v7346_v49 = vsel %vm2682_vm13, %v18138_v34, %v18185_v5  ;;  %v7292_v17 = vpack.c.bf16 %v7284_v38, %v14749_v2  ;;  %6874 = vrot.lane.b32.xlu0 %v18186_v11, %s18121_s30  ;;  %v18188_v10 = vpack.c.bf16 %v14280_v31, %v18187_v63  ;;  %v7291_v23 = vpack.c.bf16 %v7283_v61, %v14746_v42  ;;  %v18193_v42 = vld [vmem:[#allocation278_spill] sm:$0xff] }
 0x58c   : >> { %8279 = vmatpush1.bf16.msra.mxu1 %v18184_v48  ;;  %v7368_v40 = vsel %vm2682_vm13, %v18185_v5, %v18137_v36  ;;  %v7407_v20 = vmul.f32 %v18189_v18, %v7349_v12  ;;  %v14899_v34 = vsel %vm1458_vm7, %v14421_v1, %v6511_v14  ;;  %v6530_v2 = vsel %vm1458_vm7, %v6511_v14, %v14526_v37  ;;  %v14916_v12 = vpop.permute.xlu0 %6630  ;;  %v18223_v5 = vld [vmem:[#allocation305_spill] sm:$0xff] }
 0x58d   : >> { %8173 = vmatpush1.bf16.msra.mxu0 %v18188_v10  ;;  %8280 = vmatprep.subr.bf16.mxu1 %v7293_v39  ;;  %18190 = vst [vmem:[#allocation86_spill] sm:$0xff] %v14899_v34  ;;  %v14904_v31 = vmul.f32 %v14841_v26, %v6527_v24  ;;  %v14907_v57 = vmul.f32 %v14841_v26, %v6530_v2  ;;  %v18264_v26 = vld [vmem:[#allocation223_spill] sm:$0xff] }
 0x58e   : >> { %v14911_v61 = vmul.f32 %v18193_v42, %v14899_v34  ;;  %v14914_v36 = vmul.f32 %v14868_v25, %v6530_v2  ;;  %6644 = vrot.lane.b32.xlu1 %v13628_v46, %s17748_s28  ;;  %v7403_v1 = vmul.f32 %v18189_v18, %v7346_v49  ;;  %v7290_v37 = vpack.c.bf16 %v7282_v29, %v7278_v43  ;;  %v7335_v29 = vpop.permute.xlu1 %7334  ;;  %v18267_v42 = vld [vmem:[#allocation20_spill] sm:$0xff]  ;;  %v18273_v34 = vld [vmem:[#allocation218_spill] sm:$0xff] }
 0x58f   : >> { %18191 = vst [vmem:[#allocation87_spill] sm:$0xff] %v14904_v31  ;;  %18192 = vst [vmem:[#allocation207_spill] sm:$0xff] %v14907_v57  ;;  %v14924_v38 = vsel %vm18196_vm2, %v14831_v62, %v14916_v12  ;;  %8174 = vmatprep.subr.bf16.mxu0 %v7291_v23  ;;  %v7369_v48 = vsel %vm2682_vm13, %v14575_v28, %v18197_v51  ;;  %v14930_v39 = vmul.f32 %v14868_v25, %v6527_v24  ;;  %v18254_v57 = vld [vmem:[#allocation257_spill] sm:$0xff] }
 0x590   : >> { %18194 = vst [vmem:[#allocation89_spill] sm:$0xff] %v14911_v61  ;;  %18195 = vst [vmem:[#allocation264_spill] sm:$0xff] %v14914_v36  ;;  %8281 = vmatpush1.bf16.msra.mxu1 %v7292_v17  ;;  %6618 = vrot.lane.b32.xlu0 %v17930_v27, %s17748_s28  ;;  %v18200_v49 = vpack.c.bf16 %v14316_v35, %v14219_v33  ;;  %v7347_v28 = vsel %vm2682_vm13, %v18197_v51, %v7335_v29  ;;  %v14950_v18 = vpop.permute.xlu0 %6634  ;;  %v18202_v35 = vld [vmem:[#allocation45_spill] sm:$0xff]  ;;  %v18242_v61 = vld [vmem:[#allocation58_spill] sm:$0xff]  ;;  %s16759_s28 = sld [smem:[#allocation4 + %s9715_s15]] }
 0x591   : >> { %18198 = vst [vmem:[#allocation265_spill] sm:$0xff] %v14930_v39  ;;  %8175 = vmatpush1.bf16.msra.mxu0 %v7290_v37  ;;  %v7348_v24 = vsel %vm2682_vm13, %v7335_v29, %v18178_v8  ;;  %v7415_v17 = vpack.c.bf16 %v7407_v20, %v7403_v1  ;;  %v7405_v10 = vmul.f32 %v13750_v53, %v7347_v28  ;;  %v18203_v20 = vld [vmem:[#allocation280_spill] sm:$0xff]  ;;  %v18207_v1 = vld [vmem:[#allocation206_spill] sm:$0xff]  ;;  %v18208_v37 = vld [vmem:[#allocation213_spill] sm:$0xff] }
 0x592   : >> { %8282 = vmatprep.subr.bf16.mxu1 %v18200_v49  ;;  %v7406_v14 = vmul.f32 %v13756_v52, %v7348_v24  ;;  %v18201_v23 = vpack.c.bf16 %v14521_v15, %v18053_v3  ;;  %6876 = vrot.lane.b32.xlu1 %v18202_v35, %s18121_s30  ;;  %v7602_v8 = vsel %vm3250_vm15, %v18166_v45, %v18163_v60  ;;  %v18204_v52 = vld [vmem:[#allocation242_spill] sm:$0xff]  ;;  %v18209_v60 = vld [vmem:[#allocation208_spill] sm:$0xff]  ;;  %v18212_v28 = vld [vmem:[#allocation29_spill] sm:$0xff] }
 0x593   : >> { %v7404_v53 = vmul.f32 %v18203_v20, %v7369_v48  ;;  %v7471_v2 = vsel %vm2886_vm14, %v18204_v52, %v14637_v58  ;;  %v14966_v15 = vsel %vm18205_vm3, %v14950_v18, %v14831_v62  ;;  %v18206_v3 = vpack.c.bf16 %v14513_v32, %v18040_v59  ;;  %v18210_v29 = vld [vmem:[#allocation22_spill] sm:$0xff]  ;;  %v14980_v62 = vpop.permute.xlu1 %6494  ;;  %v18211_v49 = vld [vmem:[#allocation248_spill] sm:$0xff]  ;;  %vm18340_vm13 = vmmov %vm18196_vm2 }
 0x594   : >> { %8176 = vmatprep.subr.bf16.mxu0 %v18201_v23  ;;  %v7722_v51 = vsel %vm3454_vm10, %v18208_v37, %v18207_v1  ;;  %v7750_v45 = vsel %vm3454_vm10, %v18209_v60, %v18208_v37  ;;  %v7414_v48 = vpack.c.bf16 %v7406_v14, %v14755_v56  ;;  %6878 = vrot.lane.b32.xlu0 %v18210_v29, %s18121_s30  ;;  %v18216_v37 = vld [vmem:[#allocation251_spill] sm:$0xff]  ;;  %v18243_v39 = vld [vmem:[#allocation66_spill] sm:$0xff]  ;;  %vm18384_vm3 = vmmov %vm18196_vm2 }
 0x595   : >> { %8283 = vmatpush1.bf16.msra.mxu1 %v18206_v3  ;;  %v14984_v59 = vmul.f32 %v18211_v49, %v14793_v47  ;;  %v7400_v32 = vmul.f32 %v18203_v20, %v7368_v40  ;;  %v7468_v24 = vsel %vm2886_vm14, %v18149_v30, %v18212_v28  ;;  %v18213_v23 = vpack.c.bf16 %v14307_v19, %v14216_v54  ;;  %v18215_v3 = vld [vmem:[#allocation250_spill] sm:$0xff]  ;;  %v18217_v20 = vld [vmem:[#allocation283_spill] sm:$0xff]  ;;  %v15006_v30 = vpop.permute.xlu0 %6638  ;;  %v18218_v54 = vld [vmem:[#allocation253_spill] sm:$0xff] }
 0x596   : >> { %8284 = vmatprep.subr.bf16.mxu1 %v7415_v17  ;;  %v7413_v56 = vpack.c.bf16 %v7405_v10, %v14752_v6  ;;  %v18214_v17 = vld [vmem:[#allocation249_spill] sm:$0xff]  ;;  %v15000_v47 = vmul.f32 %v18215_v3, %v14812_v50  ;;  %v15003_v40 = vmul.f32 %v18216_v37, %v7602_v8  ;;  %v7529_v43 = vmul.f32 %v18217_v20, %v7471_v2  ;;  %v18219_v6 = vld [vmem:[#allocation254_spill] sm:$0xff]  ;;  %v18220_v50 = vld [vmem:[#allocation215_spill] sm:$0xff] }
 0x597   : >> { %8177 = vmatpush1.bf16.msra.mxu0 %v18213_v23  ;;  %v14996_v14 = vmul.f32 %v18214_v17, %v14802_v9  ;;  %6766 = vrot.lane.b32.xlu1 %v13628_v46, %s17766_s22  ;;  %v15011_v19 = vmul.f32 %v18218_v54, %v7722_v51  ;;  %v15014_v9 = vmul.f32 %v18219_v6, %v7750_v45  ;;  %v18221_v23 = vld [vmem:[#allocation240_spill] sm:$0xff] }
 0x598   : >> { %v7412_v10 = vpack.c.bf16 %v7404_v53, %v7400_v32  ;;  %8178 = vmatprep.subr.bf16.mxu0 %v7413_v56  ;;  %v7723_v8 = vsel %vm3454_vm10, %v18207_v1, %v18220_v50  ;;  %v7525_v2 = vmul.f32 %v18217_v20, %v7468_v24  ;;  %v7491_v33 = vsel %vm2886_vm14, %v14637_v58, %v18221_v23  ;;  %v18222_v51 = vld [vmem:[#allocation56_spill] sm:$0xff]  ;;  %v7457_v53 = vpop.permute.xlu1 %7456  ;;  %v18225_v32 = vld [vmem:[#allocation205_spill] sm:$0xff]  ;;  %v18226_v56 = vld [vmem:[#allocation246_spill] sm:$0xff] }
 0x599   : >> { %8285 = vmatpush1.bf16.msra.mxu1 %v7414_v48  ;;  %6740 = vrot.lane.b32.xlu0 %v17930_v27, %s17766_s22  ;;  %v18224_v45 = vpack.c.bf16 %v18222_v51, %v18223_v5  ;;  %v7724_v48 = vsel %vm3454_vm10, %v18220_v50, %v18209_v60  ;;  %v7490_v1 = vsel %vm2886_vm14, %v18212_v28, %v18225_v32  ;;  %v18227_v5 = vld [vmem:[#allocation247_spill] sm:$0xff]  ;;  %v15043_v60 = vpop.permute.xlu0 %6642  ;;  %v18232_v50 = vld [vmem:[#allocation65_spill] sm:$0xff]  ;;  %s10337_s22 = sshll.u32 %s11158_s13, 4  ;;  %s454_s13 = sadd.s32 1, %s11158_s13  }
 0x59a   : >> { %v7469_v58 = vsel %vm2886_vm14, %v18221_v23, %v7457_v53  ;;  %v7470_v24 = vsel %vm2886_vm14, %v7457_v53, %v18204_v52  ;;  %18231 = vst [vmem:[#allocation16_spill] sm:$0xff] %v15043_v60  ;;  %v7537_v28 = vpack.c.bf16 %v7529_v43, %v7525_v2  ;;  %v18234_v32 = vld [vmem:[#allocation217_spill] sm:$0xff]  ;;  %v18235_v52 = vld [vmem:[#allocation212_spill] sm:$0xff]  ;;  %v18241_v2 = vld [vmem:[#allocation199_spill] sm:$0xff]  ;;  %s9753_s5 = scalar_lea.vmem %s18956_s4, %s10337_s22 [#allocation6]  ;;  %p451_p6 = scmp.ge.s32.totalorder %s454_s13, 8  }
 0x59b   : >> { %8286 = vmatprep.subr.bf16.mxu1 %v18224_v45  ;;  %8179 = vmatpush1.bf16.msra.mxu0 %v7412_v10  ;;  %v7527_v20 = vmul.f32 %v18226_v56, %v7469_v58  ;;  %v7528_v51 = vmul.f32 %v18227_v5, %v7470_v24  ;;  %v18228_v45 = vld [vmem:[#allocation94_spill] sm:$0xff]  ;;  %v7872_v53 = vsel %vm3658_vm9, %v18235_v52, %v18234_v32  ;;  %v18236_v58 = vld [vmem:[#allocation219_spill] sm:$0xff]  ;;  %v18238_v56 = vld [vmem:[#allocation85_spill] sm:$0xff] }
 0x59c   : >> { %v18230_v55 = vpack.c.bf16 %v18228_v45, %v18229_v21  ;;  %6860 = vrot.lane.b32.xlu1 %v18232_v50, %s18121_s30  ;;  %v18233_v10 = vld [vmem:[#allocation210_spill] sm:$0xff]  ;;  %v18239_v5 = vld [vmem:[#allocation292_spill] sm:$0xff]  ;;  %v7846_v43 = vsel %vm3658_vm9, %v18236_v58, %v18235_v52  ;;  %v18245_v60 = vld [vmem:[#allocation221_spill] sm:$0xff] }
 0x59d   : >> { %v7844_v23 = vsel %vm3658_vm9, %v18234_v32, %v18233_v10  ;;  %v7845_v24 = vsel %vm3658_vm9, %v18233_v10, %v18236_v58  ;;  %v18237_v21 = vld [vmem:[#allocation282_spill] sm:$0xff]  ;;  %v18240_v45 = vpack.c.bf16 %v18238_v56, %v18239_v5  ;;  %v7536_v63 = vpack.c.bf16 %v7528_v51, %v18241_v2  ;;  %6882 = vrot.lane.b32.xlu0 %v18242_v61, %s18121_s30  ;;  %v6515_v32 = vpop.permute.xlu1 %6514  ;;  %v18246_v5 = vld [vmem:[#allocation153_spill] sm:$0xff]  ;;  %v18249_v52 = vld [vmem:[#allocation156_spill] sm:$0xff] }
 0x59e   : >> { %8180 = vmatprep.subr.bf16.mxu0 %v18230_v55  ;;  %v7526_v55 = vmul.f32 %v18237_v21, %v7491_v33  ;;  %v7535_v36 = vpack.c.bf16 %v7527_v20, %v18243_v39  ;;  %v18244_v10 = vld [vmem:[#allocation214_spill] sm:$0xff]  ;;  %v7522_v56 = vmul.f32 %v18237_v21, %v7490_v1  ;;  %v15076_v51 = vsel %vm1458_vm7, %v6515_v32, %v18249_v52  ;;  %v18252_v58 = vld [vmem:[#allocation255_spill] sm:$0xff]  ;;  %v18253_v20 = vld [vmem:[#allocation256_spill] sm:$0xff] }
 0x59f   : >> { %8287 = vmatpush1.bf16.msra.mxu1 %v18240_v45  ;;  %v7966_v33 = vsel %vm3862_vm8, %v18245_v60, %v18244_v10  ;;  %v18247_v45 = vld [vmem:[#allocation304_spill] sm:$0xff]  ;;  %18250 = vst [vmem:[#allocation209_spill] sm:$0xff] %v15076_v51  ;;  %v15083_v39 = vmul.f32 %v18252_v58, %v7723_v8  ;;  %v15086_v2 = vmul.f32 %v18253_v20, %v7724_v48  ;;  %vm18341_vm14 = vmmov %vm18196_vm2 }
 0x5a0   : >> { %8288 = vmatprep.subr.bf16.mxu1 %v7537_v28  ;;  %v18248_v31 = vpack.c.bf16 %v18246_v5, %v18247_v45  ;;  %v15080_v28 = vsel %vm1458_vm7, %v14980_v62, %v6515_v32  ;;  %v15089_v1 = vmul.f32 %v18254_v57, %v7844_v23  ;;  %v18255_v21 = vld [vmem:[#allocation216_spill] sm:$0xff]  ;;  %v15094_v5 = vpop.permute.xlu0 %6646  ;;  %v18257_v45 = vld [vmem:[#allocation57_spill] sm:$0xff]  ;;  %v18258_v32 = vld [vmem:[#allocation258_spill] sm:$0xff]  ;;  %v7534_v48 = vpack.c.bf16 %v7526_v55, %v7522_v56 }
 0x5a1   : >> { %18251 = vst [vmem:[#allocation204_spill] sm:$0xff] %v15080_v28  ;;  %18256 = vst [vmem:[#allocation234_spill] sm:$0xff] %v15094_v5  ;;  %6880 = vrot.lane.b32.xlu1 %v18257_v45, %s18121_s30  ;;  %v15099_v0 = vmul.f32 %v18258_v32, %v7872_v53  ;;  %v18260_v8 = vld [vmem:[#allocation260_spill] sm:$0xff]  ;;  %v10243_v23 = vld [vmem:[%s16786_s3 + $0x18] sm:$0xf]  ;;  %v15114_v53 = vmul.f32 %v18262_v7, %v7966_v33  ;;  %v6519_v28 = vpop.permute.xlu1 %6518 }
 0x5a2   : >> { %8181 = vmatpush1.bf16.msra.mxu0 %v18248_v31  ;;  %v7994_v31 = vsel %vm3862_vm8, %v18255_v21, %v18245_v60  ;;  %v15102_v4 = vmul.f32 %v18260_v8, %v7845_v24  ;;  %v10288_v60 = vld [vmem:[%s16786_s3 + $0x60] sm:$0xf]  ;;  %v18261_v5 = vld [vmem:[#allocation261_spill] sm:$0xff]  ;;  %v7967_v24 = vsel %vm3862_vm8, %v18244_v10, %v18264_v26  ;;  %v18265_v55 = vld [vmem:[#allocation80_spill] sm:$0xff]  ;;  %v15132_v33 = vsel %vm1458_vm7, %v18249_v52, %v6519_v28 }
 0x5a3   : >> { %18259 = vst [vmem:[#allocation18_spill] sm:$0xff] %v15099_v0  ;;  %8182 = vmatprep.subr.bf16.mxu0 %v7535_v36  ;;  %8289 = vmatpush1.bf16.msra.mxu1 %v7536_v63  ;;  %v15111_v25 = vmul.f32 %v18261_v5, %v7846_v43  ;;  %18263 = vst [vmem:[#allocation211_spill] sm:$0xff] %v15114_v53  ;;  %v18266_v56 = vld [vmem:[#allocation36_spill] sm:$0xff]  ;;  %v18269_v36 = vld [vmem:[#allocation263_spill] sm:$0xff]  ;;  %v7968_v43 = vsel %vm3862_vm8, %v18264_v26, %v18255_v21 }
 0x5a4   : >> { %6886 = vrot.lane.b32.xlu0 %v18265_v55, %s18121_s30  ;;  %v18268_v51 = vpack.c.bf16 %v18266_v56, %v18267_v42  ;;  %v15125_v63 = vmul.f32 %v18269_v36, %v7994_v31  ;;  %18271 = vst [vmem:[#allocation68_spill] sm:$0xff] %v15132_v33  ;;  %v15136_v10 = vsel %vm1458_vm7, %v6519_v28, %v14980_v62  ;;  %v18274_v42 = vld [vmem:[#allocation225_spill] sm:$0xff]  ;;  %v18275_v56 = vld [vmem:[#allocation227_spill] sm:$0xff]  ;;  %v15153_v62 = vpop.permute.xlu0 %6736  ;;  %v18282_v28 = vld [vmem:[#allocation266_spill] sm:$0xff] }
 0x5a5   : >> { %18272 = vst [vmem:[#allocation25_spill] sm:$0xff] %v15136_v10  ;;  %v5945_v31 = vsel %vm470_vm1, %v18273_v34, %v18275_v56  ;;  %v18278_v26 = vld [vmem:[#allocation9_spill] sm:$0xff]  ;;  %v18280_v52 = vpack.c.bf16 %v18202_v35, %v18165_v41  ;;  %18281 = vst [vmem:[#allocation19_spill] sm:$0xff] %v15153_v62  ;;  %v18284_v10 = vld [vmem:[#allocation220_spill] sm:$0xff]  ;;  %v18288_v41 = vpack.c.bf16 %v18210_v29, %v18181_v13 }
 0x5a6   : >> { %8290 = vmatprep.subr.bf16.mxu1 %v18268_v51  ;;  %18270 = vst [vmem:[#allocation270_spill] sm:$0xff] %v15125_v63  ;;  %8183 = vmatpush1.bf16.msra.mxu0 %v7534_v48  ;;  %v5944_v51 = vsel %vm470_vm1, %v18274_v42, %v18273_v34  ;;  %v18276_v63 = vld [vmem:[#allocation10_spill] sm:$0xff]  ;;  %v15148_v21 = vrot.slane %v10288_v60, %v18278_v26  ;;  %v18285_v33 = vld [vmem:[#allocation229_spill] sm:$0xff]  ;;  %v18286_v34 = vld [vmem:[#allocation231_spill] sm:$0xff] }
 0x5a7   : >> { %v15145_v36 = vrot.slane %v10243_v23, %v18276_v63  ;;  %8184 = vmatprep.subr.bf16.mxu0 %v18280_v52  ;;  %v15156_v48 = vmul.f32 %v18282_v28, %v7967_v24  ;;  %v6044_v53 = vsel %vm522_vm0, %v18285_v33, %v18284_v10  ;;  %v15164_v7 = vsel %vm522_vm0, %v18284_v10, %v18286_v34  ;;  %v18287_v56 = vld [vmem:[#allocation60_spill] sm:$0xff]  ;;  %v18289_v35 = vld [vmem:[#allocation267_spill] sm:$0xff]  ;;  %v6613_v28 = vpop.permute.xlu1 %6612  ;;  %v18294_v62 = vld [vmem:[#allocation13_spill] sm:$0xff] }
 0x5a8   : >> { %18279 = vst [vmem:[#allocation238_spill] sm:$0xff] %v15148_v21  ;;  %6884 = vrot.lane.b32.xlu1 %v18287_v56, %s18121_s30  ;;  %8291 = vmatpush1.bf16.msra.mxu1 %v18288_v41  ;;  %v15172_v52 = vmul.f32 %v18289_v35, %v7968_v43  ;;  %v15175_v24 = vrot.slane %v10243_v23, %v18278_v26  ;;  %v18296_v29 = vld [vmem:[#allocation96_spill] sm:$0xff]  ;;  %v18298_v41 = vld [vmem:[#allocation14_spill] sm:$0xff]  ;;  %v18300_v35 = vld [vmem:[#allocation97_spill] sm:$0xff] }
 0x5a9   : >> { %18277 = vst [vmem:[#allocation232_spill] sm:$0xff] %v15145_v36  ;;  %18283 = vst [vmem:[#allocation24_spill] sm:$0xff] %v15156_v48  ;;  %v15178_v48 = vrot.slane %v10288_v60, %v18155_v22  ;;  %6862 = vrot.lane.b32.xlu0 %v17930_v27, %s18121_s30  ;;  %v18293_v10 = vpack.c.bf16 %v17930_v27, %v18232_v50  ;;  %v15186_v13 = vmul.f32 %v5944_v51, %v18294_v62  ;;  %v18302_v34 = vld [vmem:[#allocation17_spill] sm:$0xff]  ;;  %v18304_v0 = vld [vmem:[#allocation268_spill] sm:$0xff] }
 0x5aa   : >> { %18290 = vst [vmem:[#allocation51_spill] sm:$0xff] %v15172_v52  ;;  %18291 = vst [vmem:[#allocation285_spill] sm:$0xff] %v15175_v24  ;;  %v15189_v43 = vmul.f32 %v18296_v29, %v5944_v51  ;;  %v15192_v52 = vmul.f32 %v5945_v31, %v18298_v41  ;;  %v15195_v33 = vmul.f32 %v18300_v35, %v5945_v31  ;;  %v18306_v50 = vld [vmem:[#allocation98_spill] sm:$0xff]  ;;  %v7589_v31 = vpop.permute.xlu0 %7588  ;;  %v18335_v41 = vld [vmem:[#allocation296_spill] sm:$0xff] }
 0x5ab   : >> { %18292 = vst [vmem:[#allocation21_spill] sm:$0xff] %v15178_v48  ;;  %8292 = vmatprep.subr.bf16.mxu1 %v18293_v10  ;;  %18295 = vst [vmem:[#allocation303_spill] sm:$0xff] %v15186_v13  ;;  %v18303_v26 = vpack.c.bf16 %v18186_v11, %v18302_v34  ;;  %v15201_v27 = vmul.f32 %v18304_v0, %v6044_v53  ;;  %v15204_v10 = vmul.f32 %v18306_v50, %v6044_v53  ;;  %v18308_v13 = vld [vmem:[#allocation269_spill] sm:$0xff]  ;;  %v18312_v11 = vld [vmem:[#allocation59_spill] sm:$0xff] }
 0x5ac   : >> { %18297 = vst [vmem:[#allocation281_spill] sm:$0xff] %v15189_v43  ;;  %18299 = vst [vmem:[#allocation236_spill] sm:$0xff] %v15192_v52  ;;  %v15208_v51 = vmul.f32 %v18308_v13, %v15164_v7  ;;  %v18310_v52 = vpack.c.bf16 %v13628_v46, %v18242_v61  ;;  %v18313_v34 = vld [vmem:[#allocation75_spill] sm:$0xff]  ;;  %6888 = vrot.lane.b32.xlu1 %v13628_v46, %s18121_s30  ;;  %v15226_v61 = vrot.slane %v10288_v60, %v18276_v63  ;;  %v18318_v13 = vld [vmem:[#allocation294_spill] sm:$0xff] }
 0x5ad   : >> { %18301 = vst [vmem:[#allocation45_spill] sm:$0xff] %v15195_v33  ;;  %8185 = vmatpush1.bf16.msra.mxu0 %v18303_v26  ;;  %18305 = vst [vmem:[#allocation280_spill] sm:$0xff] %v15201_v27  ;;  %v15214_v33 = vrot.slane %v10243_v23, %v18179_v44  ;;  %v7603_v26 = vsel %vm3250_vm15, %v18312_v11, %v7589_v31  ;;  %v7604_v27 = vsel %vm3250_vm15, %v7589_v31, %v18313_v34  ;;  %v18314_v53 = vld [vmem:[#allocation83_spill] sm:$0xff]  ;;  %v6625_v31 = vpop.permute.xlu1 %6624  ;;  %v9459_v46 = vld [vmem:[%s16790_s7] sm:$0xff] }
 0x5ae   : >> { %18307 = vst [vmem:[#allocation242_spill] sm:$0xff] %v15204_v10  ;;  %18309 = vst [vmem:[#allocation206_spill] sm:$0xff] %v15208_v51  ;;  %8186 = vmatprep.subr.bf16.mxu0 %v18310_v52  ;;  %v18315_v51 = vpack.c.bf16 %v18314_v53, %v18287_v56  ;;  %v7665_v52 = vmul.f32 %v18215_v3, %v7604_v27  ;;  %6890 = vrot.lane.b32.xlu0 %v18314_v53, %s18121_s30  ;;  %v18317_v10 = vld [vmem:[#allocation71_spill] sm:$0xff]  ;;  %s9713_s30 = sadd.s32 1, %s10327_s2 }
 0x5af   : >> { %18311 = vst [vmem:[#allocation213_spill] sm:$0xff] %v15214_v33  ;;  %18316 = vst [vmem:[#allocation208_spill] sm:$0xff] %v15226_v61  ;;  %v18319_v50 = vpack.c.bf16 %v18317_v10, %v18318_v13  ;;  %v15238_v56 = vrot.slane %v10243_v23, %v18155_v22  ;;  %v15245_v3 = vmul.f32 %v15145_v36, %v14924_v38  ;;  %v9460_v23 = vld [vmem:[%s16790_s7 + $0x8] sm:$0xff]  ;;  %s9714_s24 = sld [smem:[#allocation4 + %s9713_s30]] }
 0x5b0   : >> { %8293 = vmatpush1.bf16.msra.mxu1 %v18315_v51  ;;  %v15241_v51 = vrot.slane %v10288_v60, %v18179_v44  ;;  %v7664_v27 = vmul.f32 %v18211_v49, %v7603_v26  ;;  %v18323_v13 = vpack.c.bf16 %v18265_v55, %v18257_v45  ;;  %v6676_v10 = vsel %vm18325_vm12, %v6613_v28, %v6625_v31  ;;  %v18330_v26 = vld [vmem:[#allocation76_spill] sm:$0xff]  ;;  %v18331_v53 = vld [vmem:[#allocation295_spill] sm:$0xff] }
 0x5b1   : >> { %8294 = vmatprep.subr.bf16.mxu1 %v18319_v50  ;;  %18320 = vst [vmem:[#allocation22_spill] sm:$0xff] %v15238_v56  ;;  %18322 = vst [vmem:[#allocation29_spill] sm:$0xff] %v15245_v3  ;;  %v6648_v50 = vsel %vm18324_vm11, %v6625_v31, %v14872_v16  ;;  %v15259_v60 = vmul.f32 %v15148_v21, %v14924_v38  ;;  %v15263_v49 = vmul.f32 %v15175_v24, %v14966_v15  ;;  %v18396_v3 = vld [vmem:[#allocation104_spill] sm:$0xff]  ;;  %vm18444_vm12 = vcmask 457728  }
 0x5b2   : >> { %18321 = vst [vmem:[#allocation248_spill] sm:$0xff] %v15241_v51  ;;  %8187 = vmatpush1.bf16.msra.mxu0 %v18323_v13  ;;  %v15267_v45 = vmul.f32 %v15178_v48, %v14966_v15  ;;  %v15270_v55 = vmul.f32 %v15145_v36, %v6676_v10  ;;  %v18332_v31 = vpack.c.bf16 %v18330_v26, %v18331_v53  ;;  %v7593_v13 = vpop.permute.xlu0 %7592  ;;  %v18334_v15 = vld [vmem:[#allocation69_spill] sm:$0xff]  ;;  %v18372_v36 = vld [vmem:[#allocation47_spill] sm:$0xff]  ;;  %vm18412_vm11 = vmmov %vm18196_vm2 }
 0x5b3   : >> { %18326 = vst [vmem:[#allocation249_spill] sm:$0xff] %v15259_v60  ;;  %18327 = vst [vmem:[#allocation250_spill] sm:$0xff] %v15263_v49  ;;  %v15276_v0 = vmul.f32 %v15148_v21, %v6676_v10  ;;  %v7605_v38 = vsel %vm3250_vm15, %v18313_v34, %v7593_v13  ;;  %v7629_v43 = vsel %vm3250_vm15, %v7593_v13, %v18312_v11  ;;  %9465 = vperm.xlu1 %10896, %v9459_v46   ;;  %v6629_v10 = vpop.permute.xlu1 %6628  ;;  %v9461_v11 = vld [vmem:[%s16790_s7 + $0x10] sm:$0xff]  ;;  %v18337_v46 = vld [vmem:[#allocation74_spill] sm:$0xff] }
 0x5b4   : >> { %18328 = vst [vmem:[#allocation251_spill] sm:$0xff] %v15267_v45  ;;  %18329 = vst [vmem:[#allocation283_spill] sm:$0xff] %v15270_v55  ;;  %8188 = vmatprep.subr.bf16.mxu0 %v18332_v31  ;;  %v18336_v35 = vpack.c.bf16 %v18334_v15, %v18335_v41  ;;  %v7666_v26 = vmul.f32 %v18216_v37, %v7605_v38  ;;  %v7667_v53 = vmul.f32 %v18214_v17, %v7629_v43  ;;  %v18338_v41 = vld [vmem:[#allocation293_spill] sm:$0xff]  ;;  %v18347_v15 = vld [vmem:[#allocation180_spill] sm:$0xff] }
 0x5b5   : >> { %18333 = vst [vmem:[#allocation253_spill] sm:$0xff] %v15276_v0  ;;  %9470 = vperm.xlu0 %10895, %v9460_v23   ;;  %v7673_v31 = vpack.c.bf16 %v7665_v52, %v15000_v47  ;;  %v7672_v34 = vpack.c.bf16 %v7664_v27, %v14984_v59  ;;  %v6649_v13 = vsel %vm18340_vm13, %v14872_v16, %v6629_v10  ;;  %v9462_v17 = vld [vmem:[%s16790_s7 + $0x18] sm:$0xff]  ;;  %v18346_v23 = vld [vmem:[#allocation230_spill] sm:$0xff]  ;;  %vm18350_vm15 = vmmov %vm18196_vm2 }
 0x5b6   : >> { %8295 = vmatpush1.bf16.msra.mxu1 %v18336_v35  ;;  %v18339_v35 = vpack.c.bf16 %v18337_v46, %v18338_v41  ;;  %v6650_v37 = vsel %vm18341_vm14, %v6629_v10, %v6613_v28  ;;  %v15306_v43 = vmul.f32 %v15214_v33, %v6648_v50  ;;  %v15309_v59 = vmul.f32 %v15226_v61, %v6648_v50  ;;  %v7711_v16 = vpop.permute.xlu0 %7710  ;;  %v9620_v41 = vld [vmem:[%s16792_s9] sm:$0xf]  ;;  %v18376_v45 = vld [vmem:[#allocation100_spill] sm:$0xff]  ;;  %v18392_v60 = vld [vmem:[#allocation243_spill] sm:$0xff] }
 0x5b7   : >> { %v7674_v52 = vpack.c.bf16 %v7666_v26, %v15003_v40  ;;  %v15313_v27 = vmul.f32 %v15175_v24, %v6650_v37  ;;  %v15316_v28 = vmul.f32 %v15178_v48, %v6650_v37  ;;  %v7725_v38 = vsel %vm3454_vm10, %v18346_v23, %v7711_v16  ;;  %9475 = vperm.xlu1 %10896, %v9461_v11   ;;  %v18446_v21 = vld [vmem:[#allocation286_spill] sm:$0xff]  ;;  %vm18456_vm13 = vmmov %vm18444_vm12 }
 0x5b8   : >> { %8189 = vmatpush1.bf16.msra.mxu0 %v18339_v35  ;;  %18342 = vst [vmem:[#allocation254_spill] sm:$0xff] %v15306_v43  ;;  %18343 = vst [vmem:[#allocation215_spill] sm:$0xff] %v15309_v59  ;;  %v7726_v10 = vsel %vm3454_vm10, %v7711_v16, %v18347_v15  ;;  %v7675_v50 = vpack.c.bf16 %v7667_v53, %v14996_v14  ;;  %v15324_v46 = vmul.f32 %v15238_v56, %v6649_v13  ;;  %v18354_v16 = vld [vmem:[#allocation81_spill] sm:$0xff]  ;;  %v18374_v35 = vld [vmem:[#allocation35_spill] sm:$0xff] }
 0x5b9   : >> { %18344 = vst [vmem:[#allocation240_spill] sm:$0xff] %v15313_v27  ;;  %8190 = vmatprep.subr.bf16.mxu0 %v7673_v31  ;;  %18345 = vst [vmem:[#allocation56_spill] sm:$0xff] %v15316_v28  ;;  %v15327_v40 = vmul.f32 %v15241_v51, %v6649_v13  ;;  %v7787_v26 = vmul.f32 %v18252_v58, %v7726_v10  ;;  %9480 = vperm.xlu0 %10895, %v9462_v17   ;;  %v6633_v31 = vpop.permute.xlu1 %6632  ;;  %v18362_v14 = vld [vmem:[#allocation233_spill] sm:$0xff] }
 0x5ba   : >> { %18348 = vst [vmem:[#allocation305_spill] sm:$0xff] %v15324_v46  ;;  %8296 = vmatprep.subr.bf16.mxu1 %v7675_v50  ;;  %v6651_v53 = vsel %vm18350_vm15, %v14916_v12, %v6633_v31  ;;  %v6652_v58 = vsel %vm18196_vm2, %v6633_v31, %v14950_v18  ;;  %v7786_v11 = vmul.f32 %v18218_v54, %v7725_v38  ;;  %v7715_v50 = vpop.permute.xlu0 %7714  ;;  %v18408_v43 = vld [vmem:[#allocation41_spill] sm:$0xff]  ;;  %vm18457_vm14 = vmmov %vm18444_vm12 }
 0x5bb   : >> { %18349 = vst [vmem:[#allocation205_spill] sm:$0xff] %v15327_v40  ;;  %v15343_v13 = vmul.f32 %v15214_v33, %v6651_v53  ;;  %v15346_v37 = vmul.f32 %v15238_v56, %v6652_v58  ;;  %v15349_v17 = vmul.f32 %v15226_v61, %v6651_v53  ;;  %v15355_v12 = vmul.f32 %v15241_v51, %v6652_v58  ;;  %v18358_v53 = vld [vmem:[#allocation84_spill] sm:$0xff]  ;;  %v18394_v40 = vld [vmem:[#allocation43_spill] sm:$0xff]  ;;  %v18435_v51 = vld [vmem:[#allocation298_spill] sm:$0xff] }
 0x5bc   : >> { %8191 = vmatpush1.bf16.msra.mxu0 %v7672_v34  ;;  %v18355_v34 = vld [vmem:[#allocation39_spill] sm:$0xff]  ;;  %8297 = vmatpush1.bf16.msra.mxu1 %v7674_v52  ;;  %v7727_v18 = vsel %vm3454_vm10, %v18347_v15, %v7715_v50  ;;  %v7751_v54 = vsel %vm3454_vm10, %v7715_v50, %v18346_v23  ;;  %v18361_v15 = vld [vmem:[#allocation222_spill] sm:$0xff]  ;;  %v18364_v50 = vld [vmem:[#allocation37_spill] sm:$0xff]  ;;  %v7795_v38 = vpack.c.bf16 %v7787_v26, %v15083_v39 }
 0x5bd   : >> { %18351 = vst [vmem:[#allocation246_spill] sm:$0xff] %v15343_v13  ;;  %18352 = vst [vmem:[#allocation247_spill] sm:$0xff] %v15346_v37  ;;  %v18356_v10 = vpack.c.bf16 %v18354_v16, %v18355_v34  ;;  %9623 = vperm.xlu1 %10896, %v9620_v41   ;;  %v18359_v16 = vld [vmem:[#allocation44_spill] sm:$0xff]  ;;  %v7788_v58 = vmul.f32 %v18253_v20, %v7727_v18  ;;  %v7789_v52 = vmul.f32 %v18219_v6, %v7751_v54  ;;  %v18363_v41 = vld [vmem:[#allocation78_spill] sm:$0xff] }
 0x5be   : >> { %18353 = vst [vmem:[#allocation94_spill] sm:$0xff] %v15349_v17  ;;  %18357 = vst [vmem:[#allocation38_spill] sm:$0xff] %v15355_v12  ;;  %v18360_v34 = vpack.c.bf16 %v18358_v53, %v18359_v16  ;;  %v6166_v23 = vsel %vm846_vm4, %v18362_v14, %v18361_v15  ;;  %v18365_v47 = vpack.c.bf16 %v18363_v41, %v18364_v50  ;;  %v18366_v20 = vld [vmem:[#allocation99_spill] sm:$0xff]  ;;  %v18369_v16 = vld [vmem:[#allocation224_spill] sm:$0xff]  ;;  %v7833_v41 = vpop.permute.xlu0 %7832 }
 0x5bf   : >> { %8192 = vmatprep.subr.bf16.mxu0 %v18356_v10  ;;  %v6617_v10 = vpop.permute.xlu1 %6616  ;;  %v15383_v6 = vmul.f32 %v18366_v20, %v15164_v7  ;;  %v18368_v18 = vld [vmem:[#allocation235_spill] sm:$0xff]  ;;  %v7797_v39 = vpack.c.bf16 %v7789_v52, %v15014_v9  ;;  %v7794_v26 = vpack.c.bf16 %v7786_v11, %v15011_v19  ;;  %v7796_v50 = vpack.c.bf16 %v7788_v58, %v15086_v2  ;;  %v18371_v53 = vld [vmem:[#allocation73_spill] sm:$0xff]  ;;  %v18379_v11 = vld [vmem:[#allocation272_spill] sm:$0xff] }
 0x5c0   : >> { %8298 = vmatprep.subr.bf16.mxu1 %v18360_v34  ;;  %8193 = vmatpush1.bf16.msra.mxu0 %v18365_v47  ;;  %v6167_v54 = vsel %vm846_vm4, %v18361_v15, %v18368_v18  ;;  %v18370_v34 = vld [vmem:[#allocation237_spill] sm:$0xff]  ;;  %v18373_v7 = vpack.c.bf16 %v18371_v53, %v18372_v36  ;;  %v7848_v31 = vsel %vm3658_vm9, %v7833_v41, %v18374_v35  ;;  %v18375_v15 = vld [vmem:[#allocation271_spill] sm:$0xff]  ;;  %vm18382_vm10 = vmmov %vm18196_vm2 }
 0x5c1   : >> { %18367 = vst [vmem:[#allocation65_spill] sm:$0xff] %v15383_v6  ;;  %v6288_v47 = vsel %vm1050_vm5, %v18370_v34, %v18369_v16  ;;  %8194 = vmatprep.subr.bf16.mxu0 %v7795_v38  ;;  %v15400_v28 = vmul.f32 %v18375_v15, %v6166_v23  ;;  %v15403_v59 = vmul.f32 %v18376_v45, %v6166_v23  ;;  %v18378_v17 = vld [vmem:[#allocation95_spill] sm:$0xff]  ;;  %v18386_v53 = vld [vmem:[#allocation101_spill] sm:$0xff]  ;;  %vm18474_vm15 = vmmov %vm18444_vm12 }
 0x5c2   : >> { %8299 = vmatpush1.bf16.msra.mxu1 %v18373_v7  ;;  %v7847_v9 = vsel %vm3658_vm9, %v18378_v17, %v7833_v41  ;;  %v7909_v19 = vmul.f32 %v18260_v8, %v7848_v31  ;;  %v15409_v38 = vmul.f32 %v18379_v11, %v6167_v54  ;;  %v18381_v36 = vld [vmem:[#allocation239_spill] sm:$0xff]  ;;  %v15422_v41 = vmul.f32 %v18386_v53, %v6167_v54  ;;  %v18388_v8 = vld [vmem:[#allocation273_spill] sm:$0xff] }
 0x5c3   : >> { %18377 = vst [vmem:[#allocation210_spill] sm:$0xff] %v15403_v59  ;;  %8300 = vmatprep.subr.bf16.mxu1 %v7797_v39  ;;  %v6637_v2 = vpop.permute.xlu1 %6636  ;;  %v6289_v58 = vsel %vm1050_vm5, %v18369_v16, %v18381_v36  ;;  %v15425_v31 = vmul.f32 %v18388_v8, %v6288_v47  ;;  %v18390_v39 = vld [vmem:[#allocation226_spill] sm:$0xff]  ;;  %v18391_v7 = vld [vmem:[#allocation241_spill] sm:$0xff]  ;;  %v7908_v46 = vmul.f32 %v18254_v57, %v7847_v9  ;;  %v18400_v57 = vld [vmem:[#allocation79_spill] sm:$0xff] }
 0x5c4   : >> { %18380 = vst [vmem:[#allocation217_spill] sm:$0xff] %v15409_v38  ;;  %8195 = vmatpush1.bf16.msra.mxu0 %v7794_v26  ;;  %v15416_v52 = vsel %vm18382_vm10, %v6637_v2, %v15006_v30  ;;  %v15419_v23 = vsel %vm18384_vm3, %v6617_v10, %v6637_v2  ;;  %18387 = vst [vmem:[#allocation282_spill] sm:$0xff] %v15422_v41  ;;  %v6410_v0 = vsel %vm1254_vm6, %v18391_v7, %v18390_v39  ;;  %v18393_v26 = vld [vmem:[#allocation88_spill] sm:$0xff]  ;;  %v7837_v2 = vpop.permute.xlu0 %7836  ;;  %v18441_v56 = vld [vmem:[#allocation109_spill] sm:$0xff]  ;;  %vm8161_vm3 = vcmask 261120  }
 0x5c5   : >> { %18383 = vst [vmem:[#allocation212_spill] sm:$0xff] %v15416_v52  ;;  %18385 = vst [vmem:[#allocation219_spill] sm:$0xff] %v15419_v23  ;;  %v6411_v16 = vsel %vm1254_vm6, %v18390_v39, %v18392_v60  ;;  %v18395_v12 = vpack.c.bf16 %v18393_v26, %v18394_v40  ;;  %v7849_v54 = vsel %vm3658_vm9, %v18374_v35, %v7837_v2  ;;  %v10244_v39 = vld [vmem:[%s16786_s3 + $0x1c] sm:$0xf]  ;;  %v18398_v40 = vld [vmem:[#allocation274_spill] sm:$0xff] }
 0x5c6   : >> { %18389 = vst [vmem:[#allocation85_spill] sm:$0xff] %v15425_v31  ;;  %8301 = vmatpush1.bf16.msra.mxu1 %v7796_v50  ;;  %v7873_v37 = vsel %vm3658_vm9, %v7837_v2, %v18378_v17  ;;  %v7917_v55 = vpack.c.bf16 %v7909_v19, %v15102_v4  ;;  %v15446_v27 = vmul.f32 %v18396_v3, %v6288_v47  ;;  %v18401_v50 = vld [vmem:[#allocation48_spill] sm:$0xff]  ;;  %v18403_v4 = vld [vmem:[#allocation105_spill] sm:$0xff]  ;;  %v18405_v2 = vld [vmem:[#allocation275_spill] sm:$0xff] }
 0x5c7   : >> { %8196 = vmatprep.subr.bf16.mxu0 %v18395_v12  ;;  %v15449_v12 = vmul.f32 %v18398_v40, %v6289_v58  ;;  %v18402_v9 = vpack.c.bf16 %v18400_v57, %v18401_v50  ;;  %v7910_v35 = vmul.f32 %v18261_v5, %v7849_v54  ;;  %v7911_v17 = vmul.f32 %v18258_v32, %v7873_v37  ;;  %v6641_v26 = vpop.permute.xlu1 %6640  ;;  %v18407_v47 = vld [vmem:[#allocation67_spill] sm:$0xff]  ;;  %vm18410_vm9 = vmmov %vm18196_vm2  ;;  %v10289_v5 = vld [vmem:[%s16786_s3 + $0x64] sm:$0xf] }
 0x5c8   : >> { %18397 = vst [vmem:[#allocation292_spill] sm:$0xff] %v15446_v27  ;;  %v15457_v19 = vmul.f32 %v18403_v4, %v6289_v58  ;;  %v15460_v49 = vmul.f32 %v18405_v2, %v6410_v0  ;;  %v18409_v13 = vpack.c.bf16 %v18407_v47, %v18408_v43  ;;  %v15467_v48 = vsel %vm18410_vm9, %v15006_v30, %v6641_v26  ;;  %v18414_v32 = vld [vmem:[#allocation106_spill] sm:$0xff]  ;;  %v18416_v58 = vld [vmem:[#allocation276_spill] sm:$0xff]  ;;  %v18422_v47 = vld [vmem:[#allocation77_spill] sm:$0xff] }
 0x5c9   : >> { %18399 = vst [vmem:[#allocation199_spill] sm:$0xff] %v15449_v12  ;;  %8302 = vmatprep.subr.bf16.mxu1 %v18402_v9  ;;  %18411 = vst [vmem:[#allocation214_spill] sm:$0xff] %v15467_v48  ;;  %v15470_v57 = vsel %vm18412_vm11, %v6641_v26, %v6617_v10  ;;  %v15476_v37 = vmul.f32 %v18414_v32, %v6410_v0  ;;  %v15479_v54 = vmul.f32 %v18416_v58, %v6411_v16  ;;  %v18418_v50 = vld [vmem:[#allocation108_spill] sm:$0xff]  ;;  %v18421_v10 = vld [vmem:[#allocation34_spill] sm:$0xff] }
 0x5ca   : >> { %18404 = vst [vmem:[#allocation58_spill] sm:$0xff] %v15457_v19  ;;  %18406 = vst [vmem:[#allocation66_spill] sm:$0xff] %v15460_v49  ;;  %8197 = vmatpush1.bf16.msra.mxu0 %v18409_v13  ;;  %v15482_v43 = vmul.f32 %v18418_v50, %v6411_v16  ;;  %v6749_v13 = vpop.permute.xlu0 %6748  ;;  %v15485_v30 = vrot.slane %v10244_v39, %v18276_v63  ;;  %v5968_v9 = vsel %vm470_vm1, %v18421_v10, %v18274_v42  ;;  %v18423_v49 = vld [vmem:[#allocation46_spill] sm:$0xff]  ;;  %v10953_v42 = vld [vmem:[%s16789_s6 + $0x30] ss:$12 sps:$4 sm:$0xff]  }
 0x5cb   : >> { %18413 = vst [vmem:[#allocation221_spill] sm:$0xff] %v15470_v57  ;;  %18415 = vst [vmem:[#allocation153_spill] sm:$0xff] %v15476_v37  ;;  %8198 = vmatprep.subr.bf16.mxu0 %v7917_v55  ;;  %v7916_v26 = vpack.c.bf16 %v7908_v46, %v15089_v1  ;;  %v7918_v0 = vpack.c.bf16 %v7910_v35, %v15111_v25  ;;  %v18424_v58 = vpack.c.bf16 %v18422_v47, %v18423_v49  ;;  %v18426_v55 = vld [vmem:[#allocation227_spill] sm:$0xff]  ;;  %v15499_v37 = vpop.permute.xlu1 %6734  ;;  %v18427_v50 = vld [vmem:[#allocation9_spill] sm:$0xff] }
 0x5cc   : >> { %18417 = vst [vmem:[#allocation304_spill] sm:$0xff] %v15479_v54  ;;  %18419 = vst [vmem:[#allocation156_spill] sm:$0xff] %v15482_v43  ;;  %v18425_v54 = vld [vmem:[#allocation18_spill] sm:$0xff]  ;;  %v5946_v43 = vsel %vm470_vm1, %v18426_v55, %v18421_v10  ;;  %v15505_v1 = vrot.slane %v10289_v5, %v18427_v50  ;;  %v15508_v25 = vrot.slane %v10244_v39, %v18179_v44  ;;  %v18429_v46 = vld [vmem:[#allocation49_spill] sm:$0xff] }
 0x5cd   : >> { %18420 = vst [vmem:[#allocation255_spill] sm:$0xff] %v15485_v30  ;;  %8303 = vmatpush1.bf16.msra.mxu1 %v18424_v58  ;;  %v7919_v16 = vpack.c.bf16 %v7911_v17, %v18425_v54  ;;  %v15511_v49 = vrot.slane %v10289_v5, %v18276_v63  ;;  %v18430_v35 = vld [vmem:[#allocation231_spill] sm:$0xff]  ;;  %v18431_v58 = vld [vmem:[#allocation229_spill] sm:$0xff]  ;;  %v15520_v10 = vrot.slane %v10244_v39, %v18155_v22  ;;  %v18433_v55 = vld [vmem:[#allocation12_spill] sm:$0xff] }
 0x5ce   : >> { %18428 = vst [vmem:[#allocation256_spill] sm:$0xff] %v15505_v1  ;;  %v6046_v17 = vsel %vm522_vm0, %v18430_v35, %v18429_v46  ;;  %v6068_v54 = vsel %vm522_vm0, %v18429_v46, %v18431_v58  ;;  %8199 = vmatpush1.bf16.msra.mxu0 %v7916_v26  ;;  %v10956_v47 = vld [vmem:[%s16789_s6 + $0x4c] ss:$12 sps:$4 sm:$0xff]   ;;  %v15526_v32 = vmul.f32 %v5968_v9, %v18433_v55  ;;  %v18434_v2 = vld [vmem:[#allocation92_spill] sm:$0xff]  ;;  %v6753_v35 = vpop.permute.xlu0 %6752  ;;  %v18449_v52 = vld [vmem:[#allocation82_spill] sm:$0xff] }
 0x5cf   : >> { %8304 = vmatprep.subr.bf16.mxu1 %v7919_v16  ;;  %18432 = vst [vmem:[#allocation257_spill] sm:$0xff] %v15520_v10  ;;  %v18436_v12 = vpack.c.bf16 %v18434_v2, %v18435_v51  ;;  %v15532_v24 = vrot.slane %v10244_v39, %v18427_v50  ;;  %v15535_v26 = vrot.slane %v10289_v5, %v18179_v44  ;;  %v18438_v46 = vld [vmem:[#allocation15_spill] sm:$0xff]  ;;  %v18439_v10 = vld [vmem:[#allocation102_spill] sm:$0xff]  ;;  %v18450_v23 = vld [vmem:[#allocation297_spill] sm:$0xff] }
 0x5d0   : >> { %v15538_v16 = vrot.slane %v10289_v5, %v18155_v22  ;;  %v15541_v58 = vmul.f32 %v5946_v43, %v18438_v46  ;;  %v15544_v57 = vmul.f32 %v18439_v10, %v5946_v43  ;;  %v15547_v48 = vmul.f32 %v18441_v56, %v5968_v9  ;;  %v18443_v51 = vld [vmem:[#allocation19_spill] sm:$0xff]  ;;  %v18447_v5 = vld [vmem:[#allocation110_spill] sm:$0xff]  ;;  %v6747_v9 = vpop.permute.xlu1 %6746  ;;  %v18483_v41 = vld [vmem:[#allocation289_spill] sm:$0xff] }
 0x5d1   : >> { %8221 = vmatprep.subr.bf16.mxu0 %v18436_v12  ;;  %8305 = vmatpush1.bf16.msra.mxu1 %v7918_v0  ;;  %v6799_v39 = vsel %vm18444_vm12, %v18443_v51, %v6753_v35  ;;  %v18445_v12 = vld [vmem:[#allocation284_spill] sm:$0xff]  ;;  %v15555_v61 = vmul.f32 %v18446_v21, %v6046_v17  ;;  %v15558_v33 = vmul.f32 %v18447_v5, %v6046_v17  ;;  %v18452_v0 = vld [vmem:[#allocation61_spill] sm:$0xff]  ;;  %v18453_v31 = vld [vmem:[#allocation90_spill] sm:$0xff] }
 0x5d2   : >> { %18437 = vst [vmem:[#allocation216_spill] sm:$0xff] %v15538_v16  ;;  %18440 = vst [vmem:[#allocation57_spill] sm:$0xff] %v15544_v57  ;;  %v15552_v2 = vmul.f32 %v18445_v12, %v6068_v54  ;;  %v18451_v43 = vpack.c.bf16 %v18449_v52, %v18450_v23  ;;  %8201 = vmatmul.mubr.bf16.vlgmr.msra.gmra.mrb[8].mxu0 %v10953_v42  ;;  %v6190_v19 = vsel %vm846_vm4, %v18452_v0, %v18362_v14  ;;  %v18454_v27 = vld [vmem:[#allocation50_spill] sm:$0xff]  ;;  %v18465_v8 = vld [vmem:[#allocation179_spill] sm:$0xff] }
 0x5d3   : >> { %18442 = vst [vmem:[#allocation258_spill] sm:$0xff] %v15547_v48  ;;  %18448 = vst [vmem:[#allocation260_spill] sm:$0xff] %v15558_v33  ;;  %v18455_v40 = vpack.c.bf16 %v18453_v31, %v18454_v27  ;;  %v6770_v4 = vsel %vm18456_vm13, %v6747_v9, %v6749_v13  ;;  %v6798_v17 = vsel %vm18457_vm14, %v15499_v37, %v6747_v9  ;;  %8210 = vmatprep.mubr.bf16.mxu0 %v10956_v47  ;;  %v7955_v27 = vpop.permute.xlu0 %7954  ;;  %v18466_v38 = vld [vmem:[#allocation163_spill] sm:$0xff]  ;;  %v18468_v22 = vld [vmem:[#allocation266_spill] sm:$0xff]  ;;  %vm18717_vm13 = vcmask 465920  }
 0x5d4   : >> { %8327 = vmatprep.subr.bf16.mxu1 %v18451_v43  ;;  %v15573_v3 = vmul.f32 %v15485_v30, %v6799_v39  ;;  %v15576_v52 = vmul.f32 %v15505_v1, %v6799_v39  ;;  %v15579_v23 = vmul.f32 %v15485_v30, %v6798_v17  ;;  %v15582_v14 = vmul.f32 %v15505_v1, %v6798_v17  ;;  %v18463_v43 = vld [vmem:[#allocation299_spill] sm:$0xff]  ;;  %v6751_v50 = vpop.permute.xlu1 %6750  ;;  %v18477_v17 = vld [vmem:[#allocation113_spill] sm:$0xff]  ;;  %v18485_v63 = vld [vmem:[#allocation148_spill] sm:$0xff] }
 0x5d5   : >> { %8222 = vmatpush1.bf16.msra.mxu0 %v18455_v40  ;;  %8307 = vmatmul.mubr.bf16.vlgmr.msra.gmra.mrb[8].mxu1 %v10953_v42  ;;  %v6168_v31 = vsel %vm846_vm4, %v18368_v18, %v18452_v0  ;;  %v18462_v40 = vld [vmem:[#allocation93_spill] sm:$0xff]  ;;  %v7969_v39 = vsel %vm3862_vm8, %v18465_v8, %v7955_v27  ;;  %v7970_v30 = vsel %vm3862_vm8, %v7955_v27, %v18466_v38  ;;  %v18467_v42 = vld [vmem:[#allocation262_spill] sm:$0xff]  ;;  %v10958_v18 = vld [vmem:[%s16789_s6 + $0x48] ss:$12 sps:$4 sm:$0xff]  }
 0x5d6   : >> { %18458 = vst [vmem:[#allocation261_spill] sm:$0xff] %v15573_v3  ;;  %18459 = vst [vmem:[#allocation223_spill] sm:$0xff] %v15576_v52  ;;  %v18464_v9 = vpack.c.bf16 %v18462_v40, %v18463_v43  ;;  %8316 = vmatprep.mubr.bf16.mxu1 %v10956_v47  ;;  %v8030_v1 = vmul.f32 %v18467_v42, %v7969_v39  ;;  %v8031_v44 = vmul.f32 %v18468_v22, %v7970_v30  ;;  %v18469_v40 = vld [vmem:[#allocation111_spill] sm:$0xff]  ;;  %v18475_v30 = vld [vmem:[#allocation288_spill] sm:$0xff] }
 0x5d7   : >> { %18460 = vst [vmem:[#allocation80_spill] sm:$0xff] %v15579_v23  ;;  %18461 = vst [vmem:[#allocation36_spill] sm:$0xff] %v15582_v14  ;;  %v15604_v43 = vmul.f32 %v18469_v40, %v6068_v54  ;;  %v18471_v27 = vld [vmem:[#allocation287_spill] sm:$0xff]  ;;  %v15615_v22 = vsel %vm18474_vm15, %v6749_v13, %v6751_v50  ;;  %v15618_v42 = vmul.f32 %v18475_v30, %v6168_v31  ;;  %v18479_v0 = vld [vmem:[#allocation114_spill] sm:$0xff]  ;;  %v7959_v3 = vpop.permute.xlu0 %7958 }
 0x5d8   : >> { %8328 = vmatpush1.bf16.msra.mxu1 %v18464_v9  ;;  %v15607_v47 = vmul.f32 %v18471_v27, %v6190_v19  ;;  %v18473_v9 = vld [vmem:[#allocation52_spill] sm:$0xff]  ;;  %v15621_v23 = vmul.f32 %v18477_v17, %v6168_v31  ;;  %v15624_v54 = vmul.f32 %v18479_v0, %v6190_v19  ;;  %v18481_v14 = vld [vmem:[#allocation211_spill] sm:$0xff]  ;;  %v7971_v13 = vsel %vm3862_vm8, %v18466_v38, %v7959_v3  ;;  %v6755_v38 = vpop.permute.xlu1 %6754  ;;  %vm18719_vm14 = vmmov %vm18717_vm13 }
 0x5d9   : >> { %18470 = vst [vmem:[#allocation20_spill] sm:$0xff] %v15604_v43  ;;  %v15612_v39 = vsel %vm1050_vm5, %v18473_v9, %v18370_v34  ;;  %18476 = vst [vmem:[#allocation225_spill] sm:$0xff] %v15618_v42  ;;  %v8038_v52 = vpack.c.bf16 %v8030_v1, %v18481_v14  ;;  %v15630_v34 = vsel %vm1050_vm5, %v18381_v36, %v18473_v9  ;;  %v18482_v42 = vld [vmem:[#allocation24_spill] sm:$0xff]  ;;  %v18486_v14 = vld [vmem:[#allocation267_spill] sm:$0xff] }
 0x5da   : >> { %18472 = vst [vmem:[#allocation218_spill] sm:$0xff] %v15607_v47  ;;  %18478 = vst [vmem:[#allocation220_spill] sm:$0xff] %v15621_v23  ;;  %v7995_v47 = vsel %vm3862_vm8, %v7959_v3, %v18465_v8  ;;  %v8039_v31 = vpack.c.bf16 %v8031_v44, %v18482_v42  ;;  %v15639_v19 = vmul.f32 %v18483_v41, %v15612_v39  ;;  %v18487_v9 = vld [vmem:[#allocation263_spill] sm:$0xff]  ;;  %8211 = vmatmul.mubr.bf16.gmra.mrb[12].mxu0 %v10958_v18  ;;  %v18491_v8 = vmov 0   ;;  %v18609_v48 = vld [vmem:[#allocation300_spill] sm:$0xff] }
 0x5db   : >> { %18480 = vst [vmem:[#allocation60_spill] sm:$0xff] %v15624_v54  ;;  %v15644_v1 = vsel %vm1254_vm6, %v18392_v60, %v18485_v63  ;;  %v8032_v36 = vmul.f32 %v18486_v14, %v7971_v13  ;;  %v8033_v59 = vmul.f32 %v18487_v9, %v7995_v47  ;;  %v15649_v11 = vmul.f32 %v15511_v49, %v6770_v4  ;;  %vm18489_vm8 = vmmov %vm18444_vm12  ;;  %v18492_v42 = vld [vmem:[#allocation51_spill] sm:$0xff]  ;;  %v6757_v13 = vpop.permute.xlu0 %6756 }
 0x5dc   : >> { %18484 = vst [vmem:[#allocation13_spill] sm:$0xff] %v15639_v19  ;;  %v6772_v44 = vsel %vm18489_vm8, %v6751_v50, %v15499_v37  ;;  %8223 = vmatprep.subr.bf16.mxu0 %v8039_v31  ;;  %vm18490_vm2 = vmmov %vm18489_vm8  ;;  %8253 = vmatprep.mubr.bf16.mxu0 %v18491_v8  ;;  %v15663_v14 = vmul.f32 %v15508_v25, %v6770_v4  ;;  %v18496_v37 = vld [vmem:[#allocation115_spill] sm:$0xff]  ;;  %v18497_v50 = vld [vmem:[#allocation112_spill] sm:$0xff] }
 0x5dd   : >> { %18488 = vst [vmem:[#allocation96_spill] sm:$0xff] %v15649_v11  ;;  %v6773_v3 = vsel %vm18490_vm2, %v6753_v35, %v6755_v38  ;;  %v8040_v60 = vpack.c.bf16 %v8032_v36, %v18492_v42  ;;  %8224 = vmatpush1.bf16.msra.mxu0 %v8038_v52  ;;  %8317 = vmatmul.mubr.bf16.gmra.mrb[12].mxu1 %v10958_v18  ;;  %vm18499_vm10 = vmmov %vm18490_vm2  ;;  %v18500_v36 = vld [vmem:[#allocation270_spill] sm:$0xff]  ;;  %v18595_v23 = vld [vmem:[#allocation167_spill] sm:$0xff] }
 0x5de   : >> { %v15657_v19 = vmul.f32 %v15508_v25, %v6773_v3  ;;  %v15660_v47 = vmul.f32 %v15511_v49, %v6773_v3  ;;  %18495 = vst [vmem:[#allocation75_spill] sm:$0xff] %v15663_v14  ;;  %v18498_v31 = vpack.c.bf16 %v18496_v37, %v18497_v50  ;;  %v6775_v35 = vsel %vm18499_vm10, %v6757_v13, %v18443_v51  ;;  %v5935_v51 = vpop.permute.xlu1 %5934  ;;  %v18505_v37 = vld [vmem:[#allocation259_spill] sm:$0xff]  ;;  %vm18507_vm9 = vmmov %vm18490_vm2  ;;  %v18512_v14 = vld [vmem:[#allocation70_spill] sm:$0xff] }
 0x5df   : >> { %v8041_v9 = vpack.c.bf16 %v8033_v59, %v18500_v36  ;;  %8359 = vmatprep.mubr.bf16.mxu1 %v18491_v8  ;;  %v15675_v52 = vsel %vm1254_vm6, %v18485_v63, %v18391_v7  ;;  %v15678_v4 = vmul.f32 %v15538_v16, %v6772_v44  ;;  %v15683_v3 = vmul.f32 %v15532_v24, %v6775_v35  ;;  %v10959_v59 = vld [vmem:[%s16789_s6 + $0x38] ss:$12 sps:$4 sm:$0xff]   ;;  %vm18729_vm15 = vmmov %vm18717_vm13 }
 0x5e0   : >> { %18493 = vst [vmem:[#allocation17_spill] sm:$0xff] %v15657_v19  ;;  %18494 = vst [vmem:[#allocation59_spill] sm:$0xff] %v15660_v47  ;;  %8416 = vmatprep.subr.bf16.mxu0 %v18498_v31  ;;  %v15689_v42 = vmul.f32 %v15538_v16, %v6775_v35  ;;  %v18504_v63 = vld [vmem:[#allocation245_spill] sm:$0xff]  ;;  %v5948_v50 = vsel %vm470_vm1, %v5935_v51, %v18505_v37  ;;  %v15698_v36 = vmul.f32 %v15532_v24, %v6772_v44  ;;  %v18511_v31 = vld [vmem:[#allocation290_spill] sm:$0xff] }
 0x5e1   : >> { %18501 = vst [vmem:[#allocation83_spill] sm:$0xff] %v15678_v4  ;;  %18502 = vst [vmem:[#allocation71_spill] sm:$0xff] %v15683_v3  ;;  %8329 = vmatprep.subr.bf16.mxu1 %v8041_v9  ;;  %v5947_v7 = vsel %vm470_vm1, %v18504_v63, %v5935_v51  ;;  %v15701_v18 = vsel %vm18507_vm9, %v6755_v38, %v6757_v13  ;;  %v5897_v9 = vpop.permute.xlu0 %5896  ;;  %v18509_v51 = vld [vmem:[#allocation97_spill] sm:$0xff]  ;;  %v18513_v44 = vpack.c.bf16 %v18511_v31, %v18512_v14  ;;  %v18519_v31 = vld [vmem:[#allocation147_spill] sm:$0xff] }
 0x5e2   : >> { %18503 = vst [vmem:[#allocation294_spill] sm:$0xff] %v15689_v42  ;;  %18506 = vst [vmem:[#allocation76_spill] sm:$0xff] %v15698_v36  ;;  %v5983_v11 = vmul.f32 %v5947_v7, %v18294_v62  ;;  %v15705_v35 = vmul.f32 %v18296_v29, %v5947_v7  ;;  %8330 = vmatpush1.bf16.msra.mxu1 %v8040_v60  ;;  %v15710_v16 = vmul.f32 %v18509_v51, %v5948_v50  ;;  %v18514_v29 = vld [vmem:[#allocation14_spill] sm:$0xff]  ;;  %v15725_v4 = vpop.permute.xlu1 %6738  ;;  %v18621_v3 = vld [vmem:[#allocation68_spill] sm:$0xff] }
 0x5e3   : >> { %8522 = vmatprep.subr.bf16.mxu1 %v18513_v44  ;;  %v5949_v38 = vsel %vm470_vm1, %v18505_v37, %v5897_v9  ;;  %v5969_v62 = vsel %vm470_vm1, %v5897_v9, %v18504_v63  ;;  %v5984_v13 = vmul.f32 %v5948_v50, %v18514_v29  ;;  %10268 = vmatmul.mubr.msk.bf16.vlgmr.msra.gmra.mrb[8].mxu0 %vm8161_vm3, %v10959_v59  ;;  %v18518_v63 = vld [vmem:[#allocation244_spill] sm:$0xff]  ;;  %v18521_v9 = vld [vmem:[#allocation303_spill] sm:$0xff]  ;;  %v18586_v60 = vld [vmem:[#allocation10_spill] sm:$0xff] }
 0x5e4   : >> { %18508 = vst [vmem:[#allocation295_spill] sm:$0xff] %v15705_v35  ;;  %18510 = vst [vmem:[#allocation69_spill] sm:$0xff] %v15710_v16  ;;  %v5982_v47 = vmul.f32 %v5969_v62, %v18433_v55  ;;  %v5985_v51 = vmul.f32 %v5949_v38, %v18438_v46  ;;  %v15728_v14 = vmul.f32 %v18439_v10, %v5949_v38  ;;  %8263 = vmatprep.mubr.bf16.mxu0 %v18491_v8  ;;  %v18611_v16 = vld [vmem:[#allocation32_spill] sm:$0xff]  ;;  %v18622_v19 = vld [vmem:[#allocation202_spill] sm:$0xff] }
 0x5e5   : >> { %v15731_v37 = vmul.f32 %v18441_v56, %v5969_v62  ;;  %v18520_v50 = vpack.c.bf16 %v18518_v63, %v18519_v31  ;;  %v5991_v44 = vpack.c.bf16 %v5983_v11, %v18521_v9  ;;  %10270 = vmatmul.mubr.msk.bf16.vlgmr.msra.gmra.mrb[8].mxu1 %vm8161_vm3, %v10959_v59  ;;  %v6009_v29 = vpop.permute.xlu0 %6008  ;;  %v18523_v63 = vld [vmem:[#allocation103_spill] sm:$0xff]  ;;  %v18524_v11 = vld [vmem:[#allocation120_spill] sm:$0xff]  ;;  %v18610_v56 = vld [vmem:[#allocation302_spill] sm:$0xff] }
 0x5e6   : >> { %18516 = vst [vmem:[#allocation296_spill] sm:$0xff] %v15728_v14  ;;  %v5990_v46 = vpack.c.bf16 %v5982_v47, %v15526_v32  ;;  %v5993_v10 = vpack.c.bf16 %v5985_v51, %v15541_v58  ;;  %v18525_v31 = vpack.c.bf16 %v18523_v63, %v18524_v11  ;;  %v18527_v47 = vld [vmem:[#allocation279_spill] sm:$0xff]  ;;  %v15756_v58 = vmul.f32 %v15535_v26, %v15701_v18  ;;  %v18529_v51 = vld [vmem:[#allocation236_spill] sm:$0xff]  ;;  %v6035_v63 = vpop.permute.xlu1 %6034  ;;  %v18561_v14 = vld [vmem:[#allocation125_spill] sm:$0xff] }
 0x5e7   : >> { %18517 = vst [vmem:[#allocation74_spill] sm:$0xff] %v15731_v37  ;;  %8417 = vmatpush1.bf16.msra.mxu0 %v18520_v50  ;;  %v18526_v50 = vld [vmem:[#allocation291_spill] sm:$0xff]  ;;  %v6069_v59 = vsel %vm522_vm0, %v6009_v29, %v18527_v47  ;;  %v5992_v9 = vpack.c.bf16 %v5984_v13, %v18529_v51  ;;  %v10960_v11 = vld [vmem:[%s16789_s6 + $0x50] ss:$12 sps:$4 sm:$0xff]   ;;  %8369 = vmatprep.mubr.bf16.mxu1 %v18491_v8  ;;  %vm18734_vm8 = vmmov %vm18717_vm13 }
 0x5e8   : >> { %8523 = vmatpush1.bf16.msra.mxu1 %v18525_v31  ;;  %v6049_v32 = vsel %vm522_vm0, %v18526_v50, %v6009_v29  ;;  %8418 = vmatprep.subr.bf16.mxu0 %v5991_v44  ;;  %18528 = vst [vmem:[#allocation293_spill] sm:$0xff] %v15756_v58  ;;  %v15763_v62 = vmul.f32 %v18469_v40, %v6069_v59  ;;  %v18533_v31 = vld [vmem:[#allocation268_spill] sm:$0xff]  ;;  %v18535_v51 = vld [vmem:[#allocation121_spill] sm:$0xff]  ;;  %v18537_v40 = vld [vmem:[#allocation98_spill] sm:$0xff] }
 0x5e9   : >> { %v15760_v7 = vmul.f32 %v18447_v5, %v6049_v32  ;;  %8524 = vmatprep.subr.bf16.mxu1 %v5993_v10  ;;  %v6047_v44 = vsel %vm522_vm0, %v18527_v47, %v6035_v63  ;;  %v6048_v29 = vsel %vm522_vm0, %v6035_v63, %v18526_v50  ;;  %v10963_v5 = vld [vmem:[%s16789_s6 + $0x4] ss:$12 sps:$4 sm:$0xff]   ;;  %v15780_v13 = vmul.f32 %v15535_v26, %v15615_v22  ;;  %v18534_v47 = vld [vmem:[#allocation123_spill] sm:$0xff]  ;;  %v15789_v38 = vpop.permute.xlu0 %6760  ;;  %vm18673_vm0 = vmmov %vm18490_vm2 }
 0x5ea   : >> { %18531 = vst [vmem:[#allocation180_spill] sm:$0xff] %v15763_v62  ;;  %v6105_v50 = vmul.f32 %v18533_v31, %v6047_v44  ;;  %v18536_v63 = vpack.c.bf16 %v18534_v47, %v18535_v51  ;;  %v6104_v55 = vmul.f32 %v18445_v12, %v6069_v59  ;;  %v15793_v42 = vmul.f32 %v18537_v40, %v6047_v44  ;;  %v18541_v47 = vld [vmem:[#allocation173_spill] sm:$0xff]  ;;  %v18542_v51 = vld [vmem:[#allocation107_spill] sm:$0xff]  ;;  %v15807_v10 = vpop.permute.xlu1 %6758  ;;  %v18544_v12 = vld [vmem:[#allocation280_spill] sm:$0xff] }
 0x5eb   : >> { %18530 = vst [vmem:[#allocation230_spill] sm:$0xff] %v15760_v7  ;;  %8419 = vmatpush1.bf16.msra.mxu0 %v5990_v46  ;;  %18532 = vst [vmem:[#allocation81_spill] sm:$0xff] %v15780_v13  ;;  %v6107_v46 = vmul.f32 %v18446_v21, %v6049_v32  ;;  %v15796_v57 = vmul.f32 %v18366_v20, %v6048_v29  ;;  %v18540_v32 = vld [vmem:[#allocation27_spill] sm:$0xff]  ;;  %v18547_v40 = vld [vmem:[#allocation269_spill] sm:$0xff] }
 0x5ec   : >> { %8420 = vmatprep.subr.bf16.mxu0 %v18536_v63  ;;  %18538 = vst [vmem:[#allocation39_spill] sm:$0xff] %v15793_v42  ;;  %8525 = vmatpush1.bf16.msra.mxu1 %v5992_v9  ;;  %v15802_v31 = vmul.f32 %v18540_v32, %v15630_v34  ;;  %v18543_v63 = vpack.c.bf16 %v18541_v47, %v18542_v51  ;;  %v18545_v9 = vld [vmem:[#allocation117_spill] sm:$0xff]  ;;  %v18549_v47 = vld [vmem:[#allocation31_spill] sm:$0xff]  ;;  %v18554_v20 = vld [vmem:[#allocation26_spill] sm:$0xff] }
 0x5ed   : >> { %18539 = vst [vmem:[#allocation84_spill] sm:$0xff] %v15796_v57  ;;  %v6113_v59 = vpack.c.bf16 %v6105_v50, %v18544_v12  ;;  %10269 = vmatmul.mubr.msk.bf16.gmra.mrb[12].mxu0 %vm8161_vm3, %v10960_v11  ;;  %v15815_v44 = vmul.f32 %v18545_v9, %v15630_v34  ;;  %v6106_v21 = vmul.f32 %v18547_v40, %v6048_v29  ;;  %v18550_v51 = vld [vmem:[#allocation91_spill] sm:$0xff]  ;;  %v18552_v50 = vld [vmem:[#allocation118_spill] sm:$0xff]  ;;  %v18555_v34 = vld [vmem:[#allocation28_spill] sm:$0xff]  ;;  %v6131_v40 = vpop.permute.xlu0 %6130 }
 0x5ee   : >> { %8526 = vmatprep.subr.bf16.mxu1 %v18543_v63  ;;  %v18551_v63 = vpack.c.bf16 %v18549_v47, %v18550_v51  ;;  %8448 = vmatprep.mubr.bf16.mxu0 %v10963_v5  ;;  %v15825_v12 = vmul.f32 %v18552_v50, %v15612_v39  ;;  %v15829_v13 = vmul.f32 %v18554_v20, %v15675_v52  ;;  %v18556_v51 = vld [vmem:[#allocation30_spill] sm:$0xff]  ;;  %v18560_v42 = vld [vmem:[#allocation40_spill] sm:$0xff]  ;;  %v18584_v57 = vld [vmem:[#allocation161_spill] sm:$0xff] }
 0x5ef   : >> { %18546 = vst [vmem:[#allocation44_spill] sm:$0xff] %v15815_v44  ;;  %v15833_v58 = vmul.f32 %v18555_v34, %v15644_v1  ;;  %v6115_v29 = vpack.c.bf16 %v6107_v46, %v15555_v61  ;;  %v6112_v47 = vpack.c.bf16 %v6104_v55, %v15552_v2  ;;  %v18559_v39 = vld [vmem:[#allocation42_spill] sm:$0xff]  ;;  %v6191_v43 = vsel %vm846_vm4, %v6131_v40, %v18560_v42  ;;  %v18563_v46 = vld [vmem:[#allocation252_spill] sm:$0xff]  ;;  %vm18675_vm1 = vmmov %vm18673_vm0 }
 0x5f0   : >> { %8421 = vmatpush1.bf16.msra.mxu0 %v18551_v63  ;;  %18553 = vst [vmem:[#allocation222_spill] sm:$0xff] %v15825_v12  ;;  %v18557_v63 = vld [vmem:[#allocation127_spill] sm:$0xff]  ;;  %v6171_v33 = vsel %vm846_vm4, %v18559_v39, %v6131_v40  ;;  %v15848_v61 = vmul.f32 %v18561_v14, %v15644_v1  ;;  %v15858_v55 = vmul.f32 %v18479_v0, %v6191_v43  ;;  %v18567_v40 = vld [vmem:[#allocation206_spill] sm:$0xff]  ;;  %v18581_v0 = vld [vmem:[#allocation272_spill] sm:$0xff] }
 0x5f1   : >> { %8422 = vmatprep.subr.bf16.mxu0 %v6113_v59  ;;  %v18558_v7 = vpack.c.bf16 %v18556_v51, %v18557_v63  ;;  %v18564_v59 = vld [vmem:[#allocation33_spill] sm:$0xff]  ;;  %v6157_v51 = vpop.permute.xlu1 %6156  ;;  %v6114_v63 = vpack.c.bf16 %v6106_v21, %v18567_v40  ;;  %10271 = vmatmul.mubr.msk.bf16.gmra.mrb[12].mxu1 %vm8161_vm3, %v10960_v11  ;;  %v18570_v40 = vld [vmem:[#allocation128_spill] sm:$0xff]  ;;  %v10245_v11 = vld [vmem:[%s16786_s3 + $0x20] sm:$0xf] }
 0x5f2   : >> { %18562 = vst [vmem:[#allocation233_spill] sm:$0xff] %v15848_v61  ;;  %v15852_v2 = vmul.f32 %v18564_v59, %v18563_v46  ;;  %18566 = vst [vmem:[#allocation37_spill] sm:$0xff] %v15858_v55  ;;  %v6169_v62 = vsel %vm846_vm4, %v18560_v42, %v6157_v51  ;;  %v6170_v1 = vsel %vm846_vm4, %v6157_v51, %v18559_v39  ;;  %v15877_v42 = vpop.permute.xlu0 %6764  ;;  %8554 = vmatprep.mubr.bf16.mxu1 %v10963_v5  ;;  %v18576_v51 = vld [vmem:[#allocation86_spill] sm:$0xff]  ;;  %v18602_v55 = vld [vmem:[#allocation204_spill] sm:$0xff] }
 0x5f3   : >> { %8527 = vmatpush1.bf16.msra.mxu1 %v18558_v7  ;;  %v15855_v7 = vmul.f32 %v18477_v17, %v6171_v33  ;;  %v6229_v17 = vmul.f32 %v18475_v30, %v6171_v33  ;;  %v6227_v21 = vmul.f32 %v18375_v15, %v6169_v62  ;;  %18572 = vst [vmem:[#allocation99_spill] sm:$0xff] %v15877_v42  ;;  %v10290_v15 = vld [vmem:[%s16786_s3 + $0x68] sm:$0xf]  ;;  %v18657_v44 = vld [vmem:[#allocation22_spill] sm:$0xff]  ;;  %vm18688_vm4 = vmmov %vm18673_vm0 }
 0x5f4   : >> { %8528 = vmatprep.subr.bf16.mxu1 %v6115_v29  ;;  %8423 = vmatpush1.bf16.msra.mxu0 %v6112_v47  ;;  %v18568_v29 = vld [vmem:[#allocation126_spill] sm:$0xff]  ;;  %v15884_v39 = vmul.f32 %v18376_v45, %v6169_v62  ;;  %v15887_v33 = vmul.f32 %v18386_v53, %v6170_v1  ;;  %v6228_v5 = vmul.f32 %v18581_v0, %v6170_v1  ;;  %v18592_v0 = vld [vmem:[#allocation8_spill] sm:$0xff] }
 0x5f5   : >> { %18565 = vst [vmem:[#allocation78_spill] sm:$0xff] %v15855_v7  ;;  %v15868_v46 = vmul.f32 %v18568_v29, %v15675_v52  ;;  %v18569_v47 = vld [vmem:[#allocation178_spill] sm:$0xff]  ;;  %v6226_v52 = vmul.f32 %v18471_v27, %v6191_v43  ;;  %v18578_v43 = vld [vmem:[#allocation176_spill] sm:$0xff]  ;;  %v15901_v62 = vpop.permute.xlu1 %6762  ;;  %v6235_v53 = vpack.c.bf16 %v6227_v21, %v15400_v28  ;;  %v15913_v35 = vrot.slane %v10245_v11, %v18586_v60 }
 0x5f6   : >> { %v18571_v6 = vpack.c.bf16 %v18569_v47, %v18570_v40  ;;  %18573 = vst [vmem:[#allocation235_spill] sm:$0xff] %v15884_v39  ;;  %18574 = vst [vmem:[#allocation224_spill] sm:$0xff] %v15887_v33  ;;  %v18577_v47 = vld [vmem:[#allocation277_spill] sm:$0xff]  ;;  %v18579_v27 = vld [vmem:[#allocation122_spill] sm:$0xff]  ;;  %v15918_v21 = vpop.permute.xlu0 %6768  ;;  %v15924_v30 = vrot.slane %v10245_v11, %v18592_v0  ;;  %v15966_v8 = vmul.f32 %v18611_v16, %v18602_v55 }
 0x5f7   : >> { %8529 = vmatpush1.bf16.msra.mxu1 %v6114_v63  ;;  %v15896_v40 = vmul.f32 %v18577_v47, %v18576_v51  ;;  %v18580_v45 = vpack.c.bf16 %v18578_v43, %v18579_v27  ;;  %v18583_v7 = vld [vmem:[#allocation154_spill] sm:$0xff]  ;;  %18587 = vst [vmem:[#allocation237_spill] sm:$0xff] %v15913_v35  ;;  %18590 = vst [vmem:[#allocation73_spill] sm:$0xff] %v15918_v21  ;;  %v18591_v63 = vld [vmem:[#allocation9_spill] sm:$0xff]  ;;  %v15944_v43 = vmul.f32 %v18564_v59, %v18602_v55 }
 0x5f8   : >> { %8424 = vmatprep.subr.bf16.mxu0 %v18571_v6  ;;  %v18575_v6 = vld [vmem:[#allocation164_spill] sm:$0xff]  ;;  %v18585_v51 = vpack.c.bf16 %v18583_v7, %v18584_v57  ;;  %v15921_v1 = vrot.slane %v10290_v15, %v18591_v63  ;;  %v15927_v57 = vrot.slane %v10290_v15, %v18586_v60  ;;  %v18594_v7 = vld [vmem:[#allocation218_spill] sm:$0xff]  ;;  %v18596_v39 = vld [vmem:[#allocation135_spill] sm:$0xff]  ;;  %18612 = vst [vmem:[#allocation101_spill] sm:$0xff] %v15966_v8 }
 0x5f9   : >> { %8530 = vmatprep.subr.bf16.mxu1 %v18580_v45  ;;  %v18589_v45 = vld [vmem:[#allocation225_spill] sm:$0xff]  ;;  %v18597_v54 = vpack.c.bf16 %v18595_v23, %v18596_v39  ;;  %v18598_v27 = vld [vmem:[#allocation11_spill] sm:$0xff]  ;;  %v6279_v23 = vpop.permute.xlu1 %6278 }
 0x5fa   : >> { %8425 = vmatpush1.bf16.msra.mxu0 %v18585_v51  ;;  %v6237_v28 = vpack.c.bf16 %v6229_v17, %v18589_v45  ;;  %18593 = vst [vmem:[#allocation47_spill] sm:$0xff] %v15927_v57  ;;  %v6234_v51 = vpack.c.bf16 %v6226_v52, %v18594_v7  ;;  %v15934_v17 = vrot.slane %v10245_v11, %v18598_v27  ;;  %v18603_v60 = vld [vmem:[#allocation209_spill] sm:$0xff]  ;;  %v6253_v36 = vpop.permute.xlu0 %6252  ;;  %v18624_v55 = vld [vmem:[#allocation195_spill] sm:$0xff] }
 0x5fb   : >> { %8426 = vmatprep.subr.bf16.mxu0 %v6235_v53  ;;  %8531 = vmatpush1.bf16.msra.mxu1 %v18597_v54  ;;  %v15937_v53 = vrot.slane %v10245_v11, %v18591_v63  ;;  %v15940_v45 = vrot.slane %v10290_v15, %v18592_v0  ;;  %v15948_v52 = vmul.f32 %v18577_v47, %v18603_v60  ;;  %v18604_v54 = vld [vmem:[#allocation144_spill] sm:$0xff]  ;;  %v18606_v11 = vld [vmem:[#allocation278_spill] sm:$0xff]  ;;  %v18608_v0 = vld [vmem:[#allocation217_spill] sm:$0xff] }
 0x5fc   : >> { %18599 = vst [vmem:[#allocation35_spill] sm:$0xff] %v15934_v17  ;;  %8532 = vmatprep.subr.bf16.mxu1 %v6237_v28  ;;  %v15953_v7 = vrot.slane %v10290_v15, %v18598_v27  ;;  %v15957_v63 = vmul.f32 %v18606_v11, %v18603_v60  ;;  %v6236_v33 = vpack.c.bf16 %v6228_v5, %v18608_v0  ;;  %v18613_v39 = vld [vmem:[#allocation273_spill] sm:$0xff]  ;;  %v18614_v27 = vld [vmem:[#allocation104_spill] sm:$0xff] }
 0x5fd   : >> { %18600 = vst [vmem:[#allocation271_spill] sm:$0xff] %v15937_v53  ;;  %18601 = vst [vmem:[#allocation100_spill] sm:$0xff] %v15940_v45  ;;  %v6291_v37 = vsel %vm1050_vm5, %v18609_v48, %v6279_v23  ;;  %v6292_v28 = vsel %vm1050_vm5, %v6279_v23, %v18610_v56  ;;  %v18616_v60 = vld [vmem:[#allocation105_spill] sm:$0xff]  ;;  %v15980_v23 = vmul.f32 %v18622_v19, %v18621_v3 }
 0x5fe   : >> { %18605 = vst [vmem:[#allocation95_spill] sm:$0xff] %v15953_v7  ;;  %18607 = vst [vmem:[#allocation239_spill] sm:$0xff] %v15957_v63  ;;  %8427 = vmatpush1.bf16.msra.mxu0 %v6234_v51  ;;  %v6349_v15 = vmul.f32 %v18613_v39, %v6291_v37  ;;  %v15970_v17 = vmul.f32 %v18614_v27, %v6291_v37  ;;  %v15973_v35 = vmul.f32 %v18616_v60, %v6292_v28  ;;  %v18618_v5 = vld [vmem:[#allocation137_spill] sm:$0xff]  ;;  %v18619_v51 = vld [vmem:[#allocation62_spill] sm:$0xff] }
 0x5ff   : >> { %v18620_v0 = vpack.c.bf16 %v18618_v5, %v18619_v51  ;;  %v18623_v21 = vld [vmem:[#allocation25_spill] sm:$0xff]  ;;  %8533 = vmatpush1.bf16.msra.mxu1 %v6236_v33  ;;  %v6293_v37 = vsel %vm1050_vm5, %v18610_v56, %v6253_v36  ;;  %v6313_v39 = vsel %vm1050_vm5, %v6253_v36, %v18609_v48  ;;  %v18625_v27 = vld [vmem:[#allocation274_spill] sm:$0xff]  ;;  %v15998_v33 = vpop.permute.xlu1 %6856  ;;  %v18632_v36 = vld [vmem:[#allocation168_spill] sm:$0xff] }
 0x600   : >> { %18615 = vst [vmem:[#allocation226_spill] sm:$0xff] %v15970_v17  ;;  %18617 = vst [vmem:[#allocation241_spill] sm:$0xff] %v15973_v35  ;;  %v15984_v42 = vmul.f32 %v18624_v55, %v18623_v21  ;;  %v6350_v60 = vmul.f32 %v18625_v27, %v6292_v28  ;;  %v18628_v7 = vld [vmem:[#allocation53_spill] sm:$0xff]  ;;  %v6348_v53 = vmul.f32 %v18483_v41, %v6313_v39  ;;  %v18633_v28 = vld [vmem:[#allocation136_spill] sm:$0xff] }
 0x601   : >> { %8428 = vmatprep.subr.bf16.mxu0 %v18620_v0  ;;  %v18627_v0 = vld [vmem:[#allocation130_spill] sm:$0xff]  ;;  %v6351_v57 = vmul.f32 %v18540_v32, %v6293_v37  ;;  %v16001_v56 = vmul.f32 %v18545_v9, %v6293_v37  ;;  %v16004_v48 = vmul.f32 %v18552_v50, %v6313_v39  ;;  %v18634_v27 = vpack.c.bf16 %v18632_v36, %v18633_v28  ;;  %v18635_v51 = vld [vmem:[#allocation85_spill] sm:$0xff]  ;;  %v18637_v41 = vld [vmem:[#allocation228_spill] sm:$0xff]  ;;  %v16021_v39 = vpop.permute.xlu0 %6858 }
 0x602   : >> { %v18629_v45 = vpack.c.bf16 %v18627_v0, %v18628_v7  ;;  %v6357_v5 = vpack.c.bf16 %v6349_v15, %v18635_v51  ;;  %v16014_v32 = vmul.f32 %v18637_v41, %v18621_v3  ;;  %v18639_v0 = vld [vmem:[#allocation189_spill] sm:$0xff]  ;;  %18642 = vst [vmem:[#allocation48_spill] sm:$0xff] %v16021_v39  ;;  %v18643_v28 = vld [vmem:[#allocation219_spill] sm:$0xff]  ;;  %v18654_v35 = vld [vmem:[#allocation238_spill] sm:$0xff] }
 0x603   : >> { %18630 = vst [vmem:[#allocation243_spill] sm:$0xff] %v16001_v56  ;;  %18631 = vst [vmem:[#allocation88_spill] sm:$0xff] %v16004_v48  ;;  %8429 = vmatpush1.bf16.msra.mxu0 %v18634_v27  ;;  %v16018_v9 = vmul.f32 %v18639_v0, %v18623_v21  ;;  %v18641_v37 = vld [vmem:[#allocation13_spill] sm:$0xff]  ;;  %v6359_v36 = vpack.c.bf16 %v6351_v57, %v15802_v31  ;;  %v18644_v27 = vld [vmem:[#allocation232_spill] sm:$0xff] }
 0x604   : >> { %8534 = vmatprep.subr.bf16.mxu1 %v18629_v45  ;;  %18638 = vst [vmem:[#allocation43_spill] sm:$0xff] %v16014_v32  ;;  %v6356_v50 = vpack.c.bf16 %v6348_v53, %v18641_v37  ;;  %v16026_v15 = vmul.f32 %v18644_v27, %v18643_v28  ;;  %v18646_v45 = vld [vmem:[#allocation171_spill] sm:$0xff]  ;;  %8430 = vmatprep.subr.bf16.mxu0 %v6357_v5  ;;  %v18649_v53 = vld [vmem:[#allocation212_spill] sm:$0xff]  ;;  %v18650_v37 = vld [vmem:[#allocation213_spill] sm:$0xff] }
 0x605   : >> { %18640 = vst [vmem:[#allocation79_spill] sm:$0xff] %v16018_v9  ;;  %v18647_v3 = vld [vmem:[#allocation63_spill] sm:$0xff]  ;;  %v16037_v7 = vmul.f32 %v18650_v37, %v18649_v53  ;;  %v18652_v31 = vld [vmem:[#allocation208_spill] sm:$0xff]  ;;  %v18656_v51 = vld [vmem:[#allocation214_spill] sm:$0xff] }
 0x606   : >> { %18645 = vst [vmem:[#allocation67_spill] sm:$0xff] %v16026_v15  ;;  %v18648_v17 = vpack.c.bf16 %v18646_v45, %v18647_v3  ;;  %v16041_v57 = vmul.f32 %v18652_v31, %v18649_v53  ;;  %v16045_v15 = vmul.f32 %v18654_v35, %v18643_v28  ;;  %v16049_v45 = vmul.f32 %v18657_v44, %v18656_v51  ;;  %v18659_v5 = vld [vmem:[#allocation221_spill] sm:$0xff]  ;;  %v18662_v56 = vld [vmem:[#allocation199_spill] sm:$0xff]  ;;  %v18663_v48 = vld [vmem:[#allocation162_spill] sm:$0xff] }
 0x607   : >> { %18651 = vst [vmem:[#allocation41_spill] sm:$0xff] %v16037_v7  ;;  %v18660_v3 = vld [vmem:[#allocation285_spill] sm:$0xff]  ;;  %v6358_v12 = vpack.c.bf16 %v6350_v60, %v18662_v56  ;;  %8431 = vmatpush1.bf16.msra.mxu0 %v6356_v50  ;;  %v18664_v7 = vld [vmem:[#allocation55_spill] sm:$0xff]  ;;  %v18671_v56 = vld [vmem:[#allocation64_spill] sm:$0xff] }
 0x608   : >> { %8535 = vmatpush1.bf16.msra.mxu1 %v18648_v17  ;;  %18653 = vst [vmem:[#allocation34_spill] sm:$0xff] %v16041_v57  ;;  %18655 = vst [vmem:[#allocation77_spill] sm:$0xff] %v16045_v15  ;;  %v6401_v17 = vpop.permute.xlu1 %6400  ;;  %v16053_v21 = vmul.f32 %v18660_v3, %v18659_v5  ;;  %v18665_v15 = vld [vmem:[#allocation248_spill] sm:$0xff]  ;;  %v18668_v27 = vld [vmem:[#allocation275_spill] sm:$0xff]  ;;  %v6375_v3 = vpop.permute.xlu0 %6374 }
 0x609   : >> { %18658 = vst [vmem:[#allocation46_spill] sm:$0xff] %v16049_v45  ;;  %8536 = vmatprep.subr.bf16.mxu1 %v6359_v36  ;;  %v6413_v53 = vsel %vm1254_vm6, %v18663_v48, %v6401_v17  ;;  %v6414_v28 = vsel %vm1254_vm6, %v6401_v17, %v18664_v7  ;;  %v16062_v35 = vmul.f32 %v18665_v15, %v18656_v51  ;;  %v18667_v36 = vld [vmem:[#allocation257_spill] sm:$0xff]  ;;  %v18674_v51 = vld [vmem:[#allocation108_spill] sm:$0xff]  ;;  %v18683_v37 = vld [vmem:[#allocation54_spill] sm:$0xff] }
 0x60a   : >> { %18661 = vst [vmem:[#allocation18_spill] sm:$0xff] %v16053_v21  ;;  %v16066_v45 = vmul.f32 %v18667_v36, %v15701_v18  ;;  %v6471_v57 = vmul.f32 %v18668_v27, %v6413_v53  ;;  %v18669_v21 = vld [vmem:[#allocation106_spill] sm:$0xff]  ;;  %v18670_v60 = vld [vmem:[#allocation149_spill] sm:$0xff]  ;;  %v6776_v17 = vsel %vm18673_vm0, %v15807_v10, %v15789_v38  ;;  %v6415_v18 = vsel %vm1254_vm6, %v18664_v7, %v6375_v3  ;;  %v18680_v7 = vld [vmem:[#allocation276_spill] sm:$0xff] }
 0x60b   : >> { %18666 = vst [vmem:[#allocation227_spill] sm:$0xff] %v16062_v35  ;;  %v16070_v39 = vmul.f32 %v18669_v21, %v6413_v53  ;;  %v18672_v50 = vpack.c.bf16 %v18670_v60, %v18671_v56  ;;  %v16079_v35 = vmul.f32 %v18674_v51, %v6414_v28  ;;  %v6435_v27 = vsel %vm1254_vm6, %v6375_v3, %v18663_v48  ;;  %v18677_v56 = vld [vmem:[#allocation142_spill] sm:$0xff]  ;;  %vm18698_vm5 = vmmov %vm18673_vm0  ;;  %v18735_v8 = vld [vmem:[#allocation285_spill] sm:$0xff] }
 0x60c   : >> { %8537 = vmatpush1.bf16.msra.mxu1 %v6358_v12  ;;  %v6800_v21 = vsel %vm18675_vm1, %v15725_v4, %v15807_v10  ;;  %v6470_v51 = vmul.f32 %v18554_v20, %v6435_v27  ;;  %v6473_v12 = vmul.f32 %v18555_v34, %v6415_v18  ;;  %v6869_v44 = vpop.permute.xlu1 %6868  ;;  %v6472_v31 = vmul.f32 %v18680_v7, %v6414_v28  ;;  %v18682_v10 = vld [vmem:[#allocation172_spill] sm:$0xff]  ;;  %v18685_v53 = vld [vmem:[#allocation66_spill] sm:$0xff]  ;;  %v6871_v28 = vpop.permute.xlu0 %6870 }
 0x60d   : >> { %8432 = vmatprep.subr.bf16.mxu0 %v18672_v50  ;;  %v18678_v50 = vld [vmem:[#allocation72_spill] sm:$0xff]  ;;  %v16097_v48 = vmul.f32 %v18561_v14, %v6415_v18  ;;  %v16100_v3 = vmul.f32 %v18568_v29, %v6435_v27  ;;  %v18684_v60 = vpack.c.bf16 %v18682_v10, %v18683_v37  ;;  %v16112_v34 = vmul.f32 %v18667_v36, %v15615_v22  ;;  %v18689_v18 = vld [vmem:[#allocation175_spill] sm:$0xff] }
 0x60e   : >> { %v18679_v15 = vpack.c.bf16 %v18677_v56, %v18678_v50  ;;  %v6479_v56 = vpack.c.bf16 %v6471_v57, %v18685_v53  ;;  %v6478_v14 = vpack.c.bf16 %v6470_v51, %v15829_v13  ;;  %v6481_v29 = vpack.c.bf16 %v6473_v12, %v15833_v58  ;;  %v18690_v27 = vld [vmem:[#allocation140_spill] sm:$0xff] }
 0x60f   : >> { %18681 = vst [vmem:[#allocation49_spill] sm:$0xff] %v16097_v48  ;;  %8433 = vmatpush1.bf16.msra.mxu0 %v18684_v60  ;;  %v6777_v37 = vsel %vm18688_vm4, %v15789_v38, %v15901_v62  ;;  %v18692_v53 = vld [vmem:[#allocation156_spill] sm:$0xff]  ;;  %v18693_v60 = vld [vmem:[#allocation255_spill] sm:$0xff]  ;;  %v16132_v50 = vmul.f32 %v15508_v25, %v6776_v17  ;;  %v16137_v12 = vmul.f32 %v15511_v49, %v6776_v17  ;;  %vm18701_vm6 = vcmask 449536   ;;  %vm18759_vm4 = vmmov %vm18675_vm1 }
 0x610   : >> { %8538 = vmatprep.subr.bf16.mxu1 %v18679_v15  ;;  %v18686_v15 = vld [vmem:[#allocation21_spill] sm:$0xff]  ;;  %8434 = vmatprep.subr.bf16.mxu0 %v6479_v56  ;;  %v16129_v58 = vmul.f32 %v18693_v60, %v6800_v21  ;;  %v6523_v38 = vpop.permute.xlu1 %6522  ;;  %v18694_v7 = vld [vmem:[#allocation304_spill] sm:$0xff]  ;;  %v18695_v56 = vld [vmem:[#allocation170_spill] sm:$0xff]  ;;  %v16151_v51 = vmul.f32 %v18667_v36, %v6777_v37 }
 0x611   : >> { %v16108_v20 = vmul.f32 %v18686_v15, %v18659_v5  ;;  %v18691_v5 = vpack.c.bf16 %v18689_v18, %v18690_v27  ;;  %v6480_v10 = vpack.c.bf16 %v6472_v31, %v18694_v7  ;;  %v6535_v18 = vsel %vm1458_vm7, %v18695_v56, %v6523_v38  ;;  %v18696_v27 = vld [vmem:[#allocation198_spill] sm:$0xff]  ;;  %v18697_v57 = vld [vmem:[#allocation256_spill] sm:$0xff]  ;;  %v18704_v7 = vld [vmem:[#allocation203_spill] sm:$0xff] }
 0x612   : >> { %v16145_v22 = vmul.f32 %v18697_v57, %v6800_v21  ;;  %v16154_v17 = vmul.f32 %v18606_v11, %v6535_v18  ;;  %v18700_v31 = vpack.c.bf16 %v15896_v40, %v18604_v54  ;;  %v6593_v21 = vmul.f32 %v18577_v47, %v6535_v18  ;;  %v18703_v54 = vld [vmem:[#allocation201_spill] sm:$0xff]  ;;  %vm18706_vm11 = vmmov %vm18701_vm6  ;;  %v18724_v40 = vld [vmem:[#allocation208_spill] sm:$0xff] }
 0x613   : >> { %18687 = vst [vmem:[#allocation231_spill] sm:$0xff] %v16108_v20  ;;  %8539 = vmatpush1.bf16.msra.mxu1 %v18691_v5  ;;  %8435 = vmatpush1.bf16.msra.mxu0 %v6478_v14  ;;  %v6536_v5 = vsel %vm1458_vm7, %v6523_v38, %v18696_v27  ;;  %v6497_v14 = vpop.permute.xlu0 %6496  ;;  %v16161_v38 = vsel %vm18701_vm6, %v15998_v33, %v6869_v44  ;;  %vm18715_vm12 = vmmov %vm18701_vm6  ;;  %v18753_v20 = vld [vmem:[#allocation18_spill] sm:$0xff]  ;;  %v18755_v48 = vld [vmem:[#allocation248_spill] sm:$0xff] }
 0x614   : >> { %8540 = vmatprep.subr.bf16.mxu1 %v6481_v29  ;;  %v6778_v29 = vsel %vm18698_vm5, %v15901_v62, %v15725_v4  ;;  %18699 = vst [vmem:[#allocation229_spill] sm:$0xff] %v16154_v17  ;;  %8436 = vmatprep.subr.bf16.mxu0 %v18700_v31  ;;  %v6537_v4 = vsel %vm1458_vm7, %v18696_v27, %v6497_v14  ;;  %vm18738_vm2 = vmmov %vm18701_vm6 }
 0x615   : >> { %v6557_v62 = vsel %vm1458_vm7, %v6497_v14, %v18695_v56  ;;  %v16169_v11 = vmul.f32 %v18637_v41, %v6536_v5  ;;  %v18705_v31 = vpack.c.bf16 %v18703_v54, %v18704_v7  ;;  %v6595_v47 = vmul.f32 %v18624_v55, %v6537_v4  ;;  %v18710_v55 = vld [vmem:[#allocation216_spill] sm:$0xff]  ;;  %vm18711_vm7 = vmmov %vm18701_vm6 }
 0x616   : >> { %v6592_v13 = vmul.f32 %v18564_v59, %v6557_v62  ;;  %v6892_v18 = vsel %vm18706_vm11, %v6869_v44, %v6871_v28  ;;  %v6594_v27 = vmul.f32 %v18622_v19, %v6536_v5  ;;  %v16181_v56 = vmul.f32 %v18639_v0, %v6537_v4  ;;  %v18712_v5 = vld [vmem:[#allocation207_spill] sm:$0xff]  ;;  %vm18741_vm10 = vmmov %vm18738_vm2 }
 0x617   : >> { %8541 = vmatpush1.bf16.msra.mxu1 %v6480_v10  ;;  %18702 = vst [vmem:[#allocation12_spill] sm:$0xff] %v16169_v11  ;;  %v6873_v10 = vpop.permute.xlu1 %6872  ;;  %v16184_v41 = vmul.f32 %v18611_v16, %v6557_v62  ;;  %v18709_v14 = vpack.c.bf16 %v15852_v2, %v18575_v6  ;;  %v16190_v54 = vmul.f32 %v15532_v24, %v6778_v29  ;;  %v6875_v0 = vpop.permute.xlu0 %6874  ;;  %v18713_v4 = vld [vmem:[#allocation87_spill] sm:$0xff]  ;;  %v18746_v11 = vld [vmem:[#allocation41_spill] sm:$0xff]  ;;  %vm18751_vm9 = vmmov %vm18738_vm2 }
 0x618   : >> { %8542 = vmatprep.subr.bf16.mxu1 %v18705_v31  ;;  %18707 = vst [vmem:[#allocation92_spill] sm:$0xff] %v16181_v56  ;;  %v16193_v59 = vmul.f32 %v15535_v26, %v6777_v37  ;;  %v16196_v44 = vmul.f32 %v18710_v55, %v6778_v29  ;;  %v6600_v19 = vpack.c.bf16 %v6592_v13, %v15944_v43  ;;  %v18726_v31 = vld [vmem:[#allocation246_spill] sm:$0xff]  ;;  %vm18752_vm0 = vmmov %vm18738_vm2 }
 0x619   : >> { %18708 = vst [vmem:[#allocation298_spill] sm:$0xff] %v16184_v41  ;;  %8437 = vmatpush1.bf16.msra.mxu0 %v18709_v14  ;;  %v16201_v16 = vmul.f32 %v15921_v1, %v16161_v38  ;;  %v6894_v6 = vsel %vm18711_vm7, %v6873_v10, %v15998_v33  ;;  %v18714_v37 = vpack.c.bf16 %v18712_v5, %v18713_v4  ;;  %v18716_v14 = vld [vmem:[#allocation16_spill] sm:$0xff]  ;;  %v18718_v4 = vld [vmem:[#allocation234_spill] sm:$0xff]  ;;  %vm18763_vm5 = vmmov %vm18675_vm1 }
 0x61a   : >> { %v6601_v29 = vpack.c.bf16 %v6593_v21, %v15948_v52  ;;  %v16212_v62 = vmul.f32 %v15924_v30, %v6892_v18  ;;  %v16215_v43 = vsel %vm18715_vm12, %v6871_v28, %v6873_v10  ;;  %v6603_v13 = vpack.c.bf16 %v6595_v47, %v15984_v42  ;;  %v18720_v28 = vld [vmem:[#allocation47_spill] sm:$0xff]  ;;  %v18727_v21 = vld [vmem:[#allocation254_spill] sm:$0xff]  ;;  %vm18767_vm6 = vmmov %vm18675_vm1 }
 0x61b   : >> { %8543 = vmatpush1.bf16.msra.mxu1 %v18714_v37  ;;  %v6645_v7 = vpop.permute.xlu1 %6644  ;;  %v6602_v33 = vpack.c.bf16 %v6594_v27, %v15980_v23  ;;  %v16228_v10 = vmul.f32 %v18720_v28, %v6892_v18  ;;  %v18721_v42 = vld [vmem:[#allocation271_spill] sm:$0xff]  ;;  %v18722_v37 = vld [vmem:[#allocation213_spill] sm:$0xff]  ;;  %v6619_v27 = vpop.permute.xlu0 %6618  ;;  %v18728_v9 = vpack.c.bf16 %v18726_v31, %v18727_v21  ;;  %v18731_v56 = vld [vmem:[#allocation250_spill] sm:$0xff] }
 0x61c   : >> { %8438 = vmatprep.subr.bf16.mxu0 %v6601_v29  ;;  %v6657_v5 = vsel %vm18717_vm13, %v18716_v14, %v6645_v7  ;;  %v6658_v52 = vsel %vm18719_vm14, %v6645_v7, %v18718_v4  ;;  %v16231_v47 = vmul.f32 %v18721_v42, %v6894_v6  ;;  %8544 = vmatprep.subr.bf16.mxu1 %v6603_v13  ;;  %v18723_v29 = vld [vmem:[#allocation100_spill] sm:$0xff]  ;;  %v18747_v21 = vld [vmem:[#allocation67_spill] sm:$0xff]  ;;  %vm18776_vm11 = vmmov %vm18752_vm0 }
 0x61d   : >> { %8439 = vmatpush1.bf16.msra.mxu0 %v6600_v19  ;;  %v6715_v23 = vmul.f32 %v18722_v37, %v6657_v5  ;;  %v16236_v2 = vmul.f32 %v18723_v29, %v16215_v43  ;;  %v16239_v7 = vmul.f32 %v18724_v40, %v6657_v5  ;;  %v6659_v18 = vsel %vm18729_vm15, %v18718_v4, %v6619_v27  ;;  %v18730_v19 = vld [vmem:[#allocation22_spill] sm:$0xff]  ;;  %v18732_v37 = vld [vmem:[#allocation240_spill] sm:$0xff]  ;;  %vm18777_vm7 = vmmov %vm18752_vm0 }
 0x61e   : >> { %8440 = vmatprep.subr.bf16.mxu0 %v18728_v9  ;;  %v6716_v13 = vmul.f32 %v18730_v19, %v6658_v52  ;;  %v18733_v63 = vpack.c.bf16 %v18731_v56, %v18732_v37  ;;  %v6679_v17 = vsel %vm18734_vm8, %v6619_v27, %v18716_v14  ;;  %v6717_v40 = vmul.f32 %v18735_v8, %v6659_v18  ;;  %v18737_v9 = vld [vmem:[#allocation48_spill] sm:$0xff]  ;;  %v18743_v14 = vld [vmem:[#allocation29_spill] sm:$0xff]  ;;  %vm18778_vm12 = vmmov %vm18752_vm0 }
 0x61f   : >> { %18725 = vst [vmem:[#allocation15_spill] sm:$0xff] %v16239_v7  ;;  %8545 = vmatpush1.bf16.msra.mxu1 %v6602_v33  ;;  %v16254_v5 = vmul.f32 %v18686_v15, %v6659_v18  ;;  %v6877_v31 = vpop.permute.xlu1 %6876  ;;  %v6921_v33 = vsel %vm18738_vm2, %v18737_v9, %v6875_v0  ;;  %v18740_v19 = vld [vmem:[#allocation232_spill] sm:$0xff]  ;;  %v18744_v15 = vld [vmem:[#allocation283_spill] sm:$0xff]  ;;  %v6879_v32 = vpop.permute.xlu0 %6878  ;;  %v6723_v4 = vpack.c.bf16 %v6715_v23, %v18746_v11  ;;  %v18756_v23 = vld [vmem:[#allocation238_spill] sm:$0xff] }
 0x620   : >> { %8546 = vmatprep.subr.bf16.mxu1 %v18733_v63  ;;  %v6714_v41 = vmul.f32 %v18740_v19, %v6679_v17  ;;  %v6895_v56 = vsel %vm18741_vm10, %v6875_v0, %v6877_v31  ;;  %v18742_v63 = vld [vmem:[#allocation95_spill] sm:$0xff]  ;;  %v18745_v27 = vpack.c.bf16 %v18743_v14, %v18744_v15  ;;  %v18749_v0 = vld [vmem:[#allocation305_spill] sm:$0xff]  ;;  %v6897_v8 = vsel %vm18752_vm0, %v6879_v32, %v18737_v9  ;;  %vm18779_vm13 = vmmov %vm18752_vm0 }
 0x621   : >> { %18736 = vst [vmem:[#allocation102_spill] sm:$0xff] %v16254_v5  ;;  %v16263_v37 = vmul.f32 %v18742_v63, %v6894_v6  ;;  %v16271_v18 = vmul.f32 %v18720_v28, %v6895_v56  ;;  %v18748_v7 = vld [vmem:[#allocation247_spill] sm:$0xff]  ;;  %v6896_v6 = vsel %vm18751_vm9, %v6877_v31, %v6879_v32  ;;  %v6725_v14 = vpack.c.bf16 %v6717_v40, %v18753_v20  ;;  %v18758_v31 = vld [vmem:[#allocation73_spill] sm:$0xff]  ;;  %vm18780_vm14 = vmmov %vm18752_vm0 }
 0x622   : >> { %8441 = vmatpush1.bf16.msra.mxu0 %v18745_v27  ;;  %v6722_v19 = vpack.c.bf16 %v6714_v41, %v18747_v21  ;;  %v18750_v61 = vpack.c.bf16 %v18748_v7, %v18749_v0  ;;  %v16283_v15 = vmul.f32 %v15921_v1, %v6921_v33  ;;  %v18754_v27 = vld [vmem:[#allocation46_spill] sm:$0xff]  ;;  %v16287_v11 = vmul.f32 %v18755_v48, %v6658_v52  ;;  %v18757_v20 = vld [vmem:[#allocation99_spill] sm:$0xff]  ;;  %vm18781_vm15 = vmmov %vm18752_vm0 }
 0x623   : >> { %v6724_v5 = vpack.c.bf16 %v6716_v13, %v18754_v27  ;;  %8442 = vmatprep.subr.bf16.mxu0 %v6723_v4  ;;  %v16292_v7 = vmul.f32 %v18756_v23, %v6679_v17  ;;  %v16295_v32 = vmul.f32 %v18742_v63, %v6897_v8  ;;  %v6951_v48 = vmul.f32 %v15924_v30, %v6895_v56  ;;  %v6741_v21 = vpop.permute.xlu0 %6740  ;;  %v18761_v27 = vld [vmem:[#allocation75_spill] sm:$0xff]  ;;  %v18765_v23 = vld [vmem:[#allocation76_spill] sm:$0xff]  ;;  %vm18782_vm8 = vmmov %vm18752_vm0 }
 0x624   : >> { %8547 = vmatpush1.bf16.msra.mxu1 %v18750_v61  ;;  %v6767_v61 = vpop.permute.xlu1 %6766  ;;  %v16303_v52 = vmul.f32 %v18723_v29, %v6896_v6  ;;  %v6781_v56 = vsel %vm18763_vm5, %v18758_v31, %v6741_v21  ;;  %vm18783_vm2 = vmmov %vm18752_vm0 }
 0x625   : >> { %8548 = vmatprep.subr.bf16.mxu1 %v6725_v14  ;;  %v6779_v40 = vsel %vm18675_vm1, %v18757_v20, %v6767_v61  ;;  %v6780_v13 = vsel %vm18759_vm4, %v6767_v61, %v18758_v31  ;;  %v18760_v14 = vld [vmem:[#allocation17_spill] sm:$0xff]  ;;  %v6839_v4 = vmul.f32 %v15532_v24, %v6781_v56 }
 0x626   : >> { %8443 = vmatpush1.bf16.msra.mxu0 %v6722_v19  ;;  %v6837_v9 = vmul.f32 %v15508_v25, %v6779_v40  ;;  %v16307_v17 = vmul.f32 %v15511_v49, %v6779_v40  ;;  %v16312_v0 = vmul.f32 %v15535_v26, %v6780_v13  ;;  %v18762_v61 = vpack.c.bf16 %v18760_v14, %v18761_v27  ;;  %v18764_v19 = vld [vmem:[#allocation71_spill] sm:$0xff] }
 0x627   : >> { %v6838_v25 = vmul.f32 %v18667_v36, %v6780_v13  ;;  %v18766_v40 = vpack.c.bf16 %v18764_v19, %v18765_v23  ;;  %v6801_v26 = vsel %vm18767_vm6, %v6741_v21, %v18757_v20  ;;  %v16330_v27 = vmul.f32 %v18710_v55, %v6781_v56  ;;  %v18769_v19 = vld [vmem:[#allocation80_spill] sm:$0xff]  ;;  %v6883_v20 = vpop.permute.xlu0 %6882  ;;  %v18771_v21 = vld [vmem:[#allocation227_spill] sm:$0xff] }
 0x628   : >> { %8444 = vmatprep.subr.bf16.mxu0 %v18762_v61  ;;  %8549 = vmatpush1.bf16.msra.mxu1 %v6724_v5  ;;  %v9048_v49 = vpack.c.bf16 %v16307_v17, %v16137_v12  ;;  %v6861_v14 = vpop.permute.xlu1 %6860  ;;  %v6836_v5 = vmul.f32 %v18693_v60, %v6801_v26  ;;  %v16333_v36 = vmul.f32 %v18697_v57, %v6801_v26  ;;  %v18768_v61 = vld [vmem:[#allocation261_spill] sm:$0xff] }
 0x629   : >> { %8550 = vmatprep.subr.bf16.mxu1 %v18766_v40  ;;  %v6845_v31 = vpack.c.bf16 %v6837_v9, %v16132_v50  ;;  %v6953_v13 = vmul.f32 %v18721_v42, %v6897_v8  ;;  %v18770_v23 = vpack.c.bf16 %v18768_v61, %v18769_v19  ;;  %v6847_v24 = vpack.c.bf16 %v6839_v4, %v16190_v54  ;;  %v18772_v40 = vld [vmem:[#allocation77_spill] sm:$0xff]  ;;  %v18775_v61 = vld [vmem:[#allocation35_spill] sm:$0xff] }
 0x62a   : >> { %v8995_v60 = vpack.c.bf16 %v16287_v11, %v18771_v21  ;;  %v8997_v55 = vpack.c.bf16 %v16292_v7, %v18772_v40  ;;  %v6844_v57 = vpack.c.bf16 %v6836_v5, %v16129_v58  ;;  %v9050_v50 = vpack.c.bf16 %v16330_v27, %v16196_v44  ;;  %v18774_v54 = vld [vmem:[#allocation237_spill] sm:$0xff]  ;;  %v18945_v21 = vld [vmem:[#allocation223_spill] sm:$0xff]  ;;  %v18951_v40 = vld [vmem:[#allocation294_spill] sm:$0xff] }
 0x62b   : >> { %8445 = vmatpush1.bf16.msra.mxu0 %v18770_v23  ;;  %v18773_v8 = vpack.c.bf16 %v16066_v45, %v16112_v34  ;;  %v9049_v9 = vpack.c.bf16 %v16312_v0, %v16193_v59  ;;  %v6950_v4 = vmul.f32 %v18774_v54, %v6921_v33  ;;  %v9051_v26 = vpack.c.bf16 %v16333_v36, %v16145_v22  ;;  %v10961_v33 = vld [vmem:[%s16789_s6] ss:$12 sps:$4 sm:$0xff]   ;;  %v10972_v22 = vld [vmem:[%s16789_s6 + $0x7c] ss:$12 sps:$4 sm:$0xff]   ;;  %v10974_v44 = vld [vmem:[%s16789_s6 + $0x78] ss:$12 sps:$4 sm:$0xff]  }
 0x62c   : >> { %8446 = vmatprep.subr.bf16.mxu0 %v6845_v31  ;;  %v6881_v56 = vpop.permute.xlu1 %6880  ;;  %v9099_v58 = vpack.c.bf16 %v16303_v52, %v16236_v2  ;;  %v9101_v5 = vpack.c.bf16 %v16283_v15, %v16201_v16  ;;  %v6952_v45 = vmul.f32 %v18775_v61, %v6896_v6  ;;  %v6846_v34 = vpack.c.bf16 %v6838_v25, %v16151_v51  ;;  %v10964_v51 = vld [vmem:[%s16789_s6 + $0x1c] ss:$12 sps:$4 sm:$0xff]   ;;  %v10976_v2 = vld [vmem:[%s16789_s6 + $0x80] ss:$12 sps:$4 sm:$0xff]  }
 0x62d   : >> { %8551 = vmatpush1.bf16.msra.mxu1 %v18773_v8  ;;  %v6963_v31 = vpack.c.bf16 %v6951_v48, %v16212_v62  ;;  %v6946_v19 = vmul.f32 %v18774_v54, %v16161_v38  ;;  %v6965_v23 = vpack.c.bf16 %v6953_v13, %v16231_v47  ;;  %v6948_v8 = vmul.f32 %v18775_v61, %v16215_v43  ;;  %v10975_v16 = vld [vmem:[%s16789_s6 + $0x68] ss:$12 sps:$4 sm:$0xff]  }
 0x62e   : >> { %8552 = vmatprep.subr.bf16.mxu1 %v6847_v24  ;;  %v6887_v24 = vpop.permute.xlu0 %6886  ;;  %v6898_v48 = vsel %vm18776_vm11, %v6881_v56, %v6883_v20  ;;  %v6922_v38 = vsel %vm18777_vm7, %v6861_v14, %v6881_v56  ;;  %v18954_v12 = vpack.c.bf16 %v16271_v18, %v16228_v10  ;;  %v18955_v59 = vpack.c.bf16 %v16295_v32, %v16263_v37 }
 0x62f   : >> { %8447 = vmatpush1.bf16.msra.mxu0 %v6844_v57  ;;  %v6962_v6 = vpack.c.bf16 %v6950_v4, %v6946_v19  ;;  %v6964_v62 = vpack.c.bf16 %v6952_v45, %v6948_v8  ;;  %v6954_v57 = vmul.f32 %v18774_v54, %v6922_v38  ;;  %v6955_v4 = vmul.f32 %v15924_v30, %v6898_v48 }
 0x630   : >> { %8469 = vmatprep.subr.bf16.mxu0 %v6963_v31  ;;  %v6885_v25 = vpop.permute.xlu1 %6884  ;;  %v16382_v56 = vmul.f32 %v18720_v28, %v6898_v48 }
 0x631   : >> { %8553 = vmatpush1.bf16.msra.mxu1 %v6846_v34  ;;  %v6899_v47 = vsel %vm18778_vm12, %v6883_v20, %v6885_v25  ;;  %v6900_v13 = vsel %vm18779_vm13, %v6885_v25, %v6861_v14  ;;  %v16385_v34 = vmul.f32 %v15921_v1, %v6922_v38 }
 0x632   : >> { %8575 = vmatprep.subr.bf16.mxu1 %v6965_v23  ;;  %8449 = vmatmul.mubr.bf16.vlgmr.msra.gmra.mrb[8].mxu0 %v10961_v33  ;;  %v6863_v43 = vpop.permute.xlu0 %6862  ;;  %v6956_v20 = vmul.f32 %v18775_v61, %v6899_v47  ;;  %v6957_v19 = vmul.f32 %v18721_v42, %v6900_v13  ;;  %v16396_v23 = vmul.f32 %v18723_v29, %v6899_v47 }
 0x633   : >> { %8470 = vmatpush1.bf16.msra.mxu0 %v6962_v6  ;;  %v6923_v45 = vsel %vm18780_vm14, %v6863_v43, %v6887_v24  ;;  %8458 = vmatprep.mubr.bf16.mxu0 %v10964_v51 }
 0x634   : >> { %8555 = vmatmul.mubr.bf16.vlgmr.msra.gmra.mrb[8].mxu1 %v10961_v33  ;;  %v16389_v31 = vmul.f32 %v15921_v1, %v6923_v45  ;;  %v6889_v14 = vpop.permute.xlu1 %6888  ;;  %v10966_v33 = vld [vmem:[%s16789_s6 + $0x18] ss:$12 sps:$4 sm:$0xff]   ;;  %v6958_v8 = vmul.f32 %v18774_v54, %v6923_v45 }
 0x635   : >> { %8576 = vmatpush1.bf16.msra.mxu1 %v6964_v62  ;;  %8564 = vmatprep.mubr.bf16.mxu1 %v10964_v51  ;;  %v6901_v6 = vsel %vm18781_vm15, %v6887_v24, %v6889_v14  ;;  %v16401_v62 = vmul.f32 %v18742_v63, %v6900_v13 }
 0x636   : >> { %v6891_v51 = vpop.permute.xlu0 %6890  ;;  %v6959_v1 = vmul.f32 %v15924_v30, %v6901_v6  ;;  %v16405_v48 = vmul.f32 %v18720_v28, %v6901_v6  ;;  %v9105_v54 = vpack.c.bf16 %v16389_v31, %v16385_v34  ;;  %v6966_v45 = vpack.c.bf16 %v6958_v8, %v6954_v57  ;;  %v10967_v57 = vld [vmem:[%s16789_s6 + $0x8] ss:$12 sps:$4 sm:$0xff]  }
 0x637   : >> { %v6902_v38 = vsel %vm18782_vm8, %v6889_v14, %v6891_v51  ;;  %v6903_v25 = vsel %vm18783_vm2, %v6891_v51, %v6863_v43  ;;  %v18792_v51 = vld [vmem:[#allocation124_spill] sm:$0xff] }
 0x638   : >> { %v6960_v47 = vmul.f32 %v18775_v61, %v6902_v38  ;;  %v16411_v41 = vmul.f32 %v18723_v29, %v6902_v38  ;;  %v9102_v24 = vpack.c.bf16 %v16405_v48, %v16382_v56  ;;  %v6961_v30 = vmul.f32 %v18721_v42, %v6903_v25  ;;  %v18785_v42 = vld [vmem:[#allocation177_spill] sm:$0xff]  ;;  %v9466_v10 = vpop.permute.xlu1 %9465 }
 0x639   : >> { %v16419_v28 = vmul.f32 %v18742_v63, %v6903_v25  ;;  %v6967_v13 = vpack.c.bf16 %v6959_v1, %v6955_v4  ;;  %v18784_v61 = vmov 0   ;;  %v18786_v63 = vld [vmem:[#allocation131_spill] sm:$0xff]  ;;  %v18794_v38 = vld [vmem:[#allocation69_spill] sm:$0xff] }
 0x63a   : >> { %8459 = vmatmul.mubr.bf16.gmra.mrb[12].mxu0 %v10966_v33  ;;  %v6968_v43 = vpack.c.bf16 %v6960_v47, %v6956_v20  ;;  %v9103_v29 = vpack.c.bf16 %v16411_v41, %v16396_v23  ;;  %v6969_v6 = vpack.c.bf16 %v6961_v30, %v6957_v19  ;;  %v18787_v4 = vpack.c.bf16 %v18785_v42, %v18786_v63  ;;  %v18788_v20 = vld [vmem:[#allocation166_spill] sm:$0xff]  ;;  %v18791_v19 = vld [vmem:[#allocation129_spill] sm:$0xff]  ;;  %v18797_v30 = vld [vmem:[#allocation119_spill] sm:$0xff]  ;;  %v9471_v37 = vpop.permute.xlu0 %9470 }
 0x63b   : >> { %8501 = vmatprep.mubr.bf16.mxu0 %v18784_v61  ;;  %v9104_v14 = vpack.c.bf16 %v16419_v28, %v16401_v62  ;;  %8471 = vmatprep.subr.bf16.mxu0 %v6967_v13  ;;  %v18793_v1 = vpack.c.bf16 %v18791_v19, %v18792_v51  ;;  %v18795_v25 = vld [vmem:[#allocation45_spill] sm:$0xff]  ;;  %v18798_v13 = vld [vmem:[#allocation116_spill] sm:$0xff]  ;;  %v10968_v63 = vld [vmem:[%s16789_s6 + $0x20] ss:$12 sps:$4 sm:$0xff]  }
 0x63c   : >> { %8565 = vmatmul.mubr.bf16.gmra.mrb[12].mxu1 %v10966_v33  ;;  %8472 = vmatpush1.bf16.msra.mxu0 %v6966_v45  ;;  %v18789_v33 = vld [vmem:[#allocation158_spill] sm:$0xff]  ;;  %v18796_v47 = vpack.c.bf16 %v18794_v38, %v18795_v25  ;;  %v18799_v45 = vpack.c.bf16 %v18797_v30, %v18798_v13  ;;  %v18809_v51 = vld [vmem:[#allocation296_spill] sm:$0xff]  ;;  %v18812_v25 = vld [vmem:[#allocation181_spill] sm:$0xff] }
 0x63d   : >> { %8607 = vmatprep.mubr.bf16.mxu1 %v18784_v61  ;;  %8577 = vmatprep.subr.bf16.mxu1 %v6969_v6  ;;  %v18790_v8 = vpack.c.bf16 %v18788_v20, %v18789_v33  ;;  %v18801_v6 = vld [vmem:[#allocation258_spill] sm:$0xff] }
 0x63e   : >> { %9231 = vmatprep.subr.bf16.mxu0 %v18787_v4  ;;  %8578 = vmatpush1.bf16.msra.mxu1 %v6968_v43  ;;  %v18800_v43 = vld [vmem:[#allocation74_spill] sm:$0xff]  ;;  %v18803_v4 = vld [vmem:[#allocation295_spill] sm:$0xff] }
 0x63f   : >> { %9337 = vmatprep.subr.bf16.mxu1 %v18790_v8  ;;  %v18802_v42 = vpack.c.bf16 %v18800_v43, %v18801_v6  ;;  %v18806_v33 = vld [vmem:[#allocation182_spill] sm:$0xff]  ;;  %v18816_v43 = vld [vmem:[#allocation132_spill] sm:$0xff] }
 0x640   : >> { %v18807_v8 = vld [vmem:[#allocation138_spill] sm:$0xff] }
 0x641   : >> { %v18808_v19 = vpack.c.bf16 %v18806_v33, %v18807_v8  ;;  %v10971_v13 = vld [vmem:[%s16789_s6 + $0x64] ss:$12 sps:$4 sm:$0xff]   ;;  %v18822_v33 = vld [vmem:[#allocation133_spill] sm:$0xff] }
 0x642   : >> { %10278 = vmatmul.mubr.msk.bf16.vlgmr.msra.gmra.mrb[8].mxu0 %vm8161_vm3, %v10967_v57 }
 0x643   : >> { %9232 = vmatpush1.bf16.msra.mxu0 %v18793_v1  ;;  %8511 = vmatprep.mubr.bf16.mxu0 %v18784_v61  ;;  %v18810_v1 = vld [vmem:[#allocation57_spill] sm:$0xff] }
 0x644   : >> { %10280 = vmatmul.mubr.msk.bf16.vlgmr.msra.gmra.mrb[8].mxu1 %vm8161_vm3, %v10967_v57  ;;  %9233 = vmatprep.subr.bf16.mxu0 %v18796_v47  ;;  %v18804_v57 = vld [vmem:[#allocation281_spill] sm:$0xff]  ;;  %v18811_v38 = vpack.c.bf16 %v18809_v51, %v18810_v1  ;;  %v18813_v47 = vld [vmem:[#allocation190_spill] sm:$0xff]  ;;  %v18825_v51 = vld [vmem:[#allocation20_spill] sm:$0xff] }
 0x645   : >> { %9338 = vmatpush1.bf16.msra.mxu1 %v18799_v45  ;;  %8617 = vmatprep.mubr.bf16.mxu1 %v18784_v61  ;;  %v18805_v20 = vpack.c.bf16 %v18803_v4, %v18804_v57  ;;  %v18814_v30 = vpack.c.bf16 %v18812_v25, %v18813_v47  ;;  %v18815_v45 = vld [vmem:[#allocation141_spill] sm:$0xff]  ;;  %v18828_v25 = vld [vmem:[#allocation242_spill] sm:$0xff] }
 0x646   : >> { %9339 = vmatprep.subr.bf16.mxu1 %v18802_v42  ;;  %v18817_v6 = vpack.c.bf16 %v18815_v45, %v18816_v43  ;;  %v18818_v42 = vld [vmem:[#allocation84_spill] sm:$0xff]  ;;  %v18819_v4 = vld [vmem:[#allocation65_spill] sm:$0xff]  ;;  %v18833_v43 = vld [vmem:[#allocation230_spill] sm:$0xff] }
 0x647   : >> { %9234 = vmatpush1.bf16.msra.mxu0 %v18805_v20  ;;  %v18820_v57 = vpack.c.bf16 %v18818_v42, %v18819_v4  ;;  %v18821_v20 = vld [vmem:[#allocation134_spill] sm:$0xff] }
 0x648   : >> { %9235 = vmatprep.subr.bf16.mxu0 %v18808_v19  ;;  %v18823_v8 = vpack.c.bf16 %v18821_v20, %v18822_v33  ;;  %v18824_v19 = vld [vmem:[#allocation180_spill] sm:$0xff]  ;;  %v18836_v4 = vld [vmem:[#allocation186_spill] sm:$0xff]  ;;  %v18839_v33 = vld [vmem:[#allocation155_spill] sm:$0xff] }
 0x649   : >> { %9340 = vmatpush1.bf16.msra.mxu1 %v18811_v38  ;;  %v18826_v1 = vpack.c.bf16 %v18824_v19, %v18825_v51  ;;  %v18827_v38 = vld [vmem:[#allocation39_spill] sm:$0xff]  ;;  %v18843_v51 = vld [vmem:[#allocation282_spill] sm:$0xff] }
 0x64a   : >> { %9341 = vmatprep.subr.bf16.mxu1 %v18814_v30  ;;  %10279 = vmatmul.mubr.msk.bf16.gmra.mrb[12].mxu0 %vm8161_vm3, %v10968_v63  ;;  %v18829_v47 = vpack.c.bf16 %v18827_v38, %v18828_v25  ;;  %v18830_v30 = vld [vmem:[#allocation183_spill] sm:$0xff]  ;;  %v18845_v38 = vld [vmem:[#allocation146_spill] sm:$0xff]  ;;  %v18846_v25 = vld [vmem:[#allocation145_spill] sm:$0xff] }
 0x64b   : >> { %9236 = vmatpush1.bf16.msra.mxu0 %v18817_v6  ;;  %9263 = vmatprep.mubr.bf16.mxu0 %v10971_v13  ;;  %v18834_v6 = vld [vmem:[#allocation260_spill] sm:$0xff] }
 0x64c   : >> { %10281 = vmatmul.mubr.msk.bf16.gmra.mrb[12].mxu1 %vm8161_vm3, %v10968_v63  ;;  %9237 = vmatprep.subr.bf16.mxu0 %v18820_v57  ;;  %v18831_v63 = vld [vmem:[#allocation143_spill] sm:$0xff]  ;;  %v18835_v42 = vpack.c.bf16 %v18833_v43, %v18834_v6  ;;  %v18837_v57 = vld [vmem:[#allocation193_spill] sm:$0xff]  ;;  %v18852_v6 = vld [vmem:[#allocation210_spill] sm:$0xff] }
 0x64d   : >> { %9342 = vmatpush1.bf16.msra.mxu1 %v18823_v8  ;;  %9369 = vmatprep.mubr.bf16.mxu1 %v10971_v13  ;;  %v18832_v45 = vpack.c.bf16 %v18830_v30, %v18831_v63  ;;  %v18838_v20 = vpack.c.bf16 %v18836_v4, %v18837_v57  ;;  %v18840_v8 = vld [vmem:[#allocation139_spill] sm:$0xff]  ;;  %v18842_v13 = vld [vmem:[#allocation224_spill] sm:$0xff]  ;;  %v18848_v30 = vld [vmem:[#allocation37_spill] sm:$0xff] }
 0x64e   : >> { %9343 = vmatprep.subr.bf16.mxu1 %v18826_v1  ;;  %v18841_v19 = vpack.c.bf16 %v18839_v33, %v18840_v8  ;;  %v18844_v1 = vpack.c.bf16 %v18842_v13, %v18843_v51  ;;  %v18849_v63 = vld [vmem:[#allocation60_spill] sm:$0xff]  ;;  %v18851_v43 = vld [vmem:[#allocation235_spill] sm:$0xff]  ;;  %v18857_v33 = vld [vmem:[#allocation78_spill] sm:$0xff] }
 0x64f   : >> { %9238 = vmatpush1.bf16.msra.mxu0 %v18829_v47  ;;  %v18847_v47 = vpack.c.bf16 %v18845_v38, %v18846_v25  ;;  %v18854_v4 = vld [vmem:[#allocation188_spill] sm:$0xff]  ;;  %v18855_v57 = vld [vmem:[#allocation151_spill] sm:$0xff]  ;;  %v18861_v51 = vld [vmem:[#allocation194_spill] sm:$0xff] }
 0x650   : >> { %9239 = vmatprep.subr.bf16.mxu0 %v18832_v45  ;;  %v18850_v45 = vpack.c.bf16 %v18848_v30, %v18849_v63  ;;  %v18858_v8 = vld [vmem:[#allocation220_spill] sm:$0xff]  ;;  %v18860_v13 = vld [vmem:[#allocation187_spill] sm:$0xff]  ;;  %v18863_v38 = vld [vmem:[#allocation169_spill] sm:$0xff] }
 0x651   : >> { %9344 = vmatpush1.bf16.msra.mxu1 %v18835_v42  ;;  %v18853_v42 = vpack.c.bf16 %v18851_v43, %v18852_v6  ;;  %v18864_v25 = vld [vmem:[#allocation150_spill] sm:$0xff]  ;;  %v18866_v30 = vld [vmem:[#allocation241_spill] sm:$0xff]  ;;  %v18869_v43 = vld [vmem:[#allocation160_spill] sm:$0xff] }
 0x652   : >> { %9345 = vmatprep.subr.bf16.mxu1 %v18838_v20  ;;  %v18856_v20 = vpack.c.bf16 %v18854_v4, %v18855_v57  ;;  %v18867_v63 = vld [vmem:[#allocation58_spill] sm:$0xff]  ;;  %v18870_v6 = vld [vmem:[#allocation159_spill] sm:$0xff]  ;;  %v18872_v4 = vld [vmem:[#allocation88_spill] sm:$0xff] }
 0x653   : >> { %9240 = vmatpush1.bf16.msra.mxu0 %v18841_v19  ;;  %v18859_v19 = vpack.c.bf16 %v18857_v33, %v18858_v8  ;;  %v18873_v57 = vld [vmem:[#allocation222_spill] sm:$0xff]  ;;  %v18876_v8 = vld [vmem:[#allocation292_spill] sm:$0xff] }
 0x654   : >> { %9241 = vmatprep.subr.bf16.mxu0 %v18844_v1  ;;  %v18862_v1 = vpack.c.bf16 %v18860_v13, %v18861_v51  ;;  %v18875_v33 = vld [vmem:[#allocation226_spill] sm:$0xff]  ;;  %v18878_v13 = vld [vmem:[#allocation192_spill] sm:$0xff]  ;;  %v18879_v51 = vld [vmem:[#allocation157_spill] sm:$0xff] }
 0x655   : >> { %9346 = vmatpush1.bf16.msra.mxu1 %v18847_v47  ;;  %v18865_v47 = vpack.c.bf16 %v18863_v38, %v18864_v25  ;;  %v18881_v38 = vld [vmem:[#allocation243_spill] sm:$0xff]  ;;  %v18882_v25 = vld [vmem:[#allocation44_spill] sm:$0xff] }
 0x656   : >> { %9347 = vmatprep.subr.bf16.mxu1 %v18850_v45  ;;  %v18868_v45 = vpack.c.bf16 %v18866_v30, %v18867_v63  ;;  %v18884_v30 = vld [vmem:[#allocation191_spill] sm:$0xff]  ;;  %v18885_v63 = vld [vmem:[#allocation196_spill] sm:$0xff] }
 0x657   : >> { %9242 = vmatpush1.bf16.msra.mxu0 %v18853_v42  ;;  %v18871_v42 = vpack.c.bf16 %v18869_v43, %v18870_v6  ;;  %v18887_v43 = vld [vmem:[#allocation184_spill] sm:$0xff] }
 0x658   : >> { %9243 = vmatprep.subr.bf16.mxu0 %v18856_v20  ;;  %v18874_v20 = vpack.c.bf16 %v18872_v4, %v18873_v57  ;;  %v18888_v6 = vld [vmem:[#allocation152_spill] sm:$0xff]  ;;  %v18890_v4 = vpack.c.bf16 %v16079_v35, %v18692_v53  ;;  %v18891_v57 = vld [vmem:[#allocation174_spill] sm:$0xff]  ;;  %v18903_v53 = vld [vmem:[#allocation197_spill] sm:$0xff] }
 0x659   : >> { %9348 = vmatpush1.bf16.msra.mxu1 %v18859_v19  ;;  %v18877_v19 = vpack.c.bf16 %v18875_v33, %v18876_v8  ;;  %v18894_v8 = vpack.c.bf16 %v16100_v3, %v15868_v46  ;;  %v18909_v3 = vld [vmem:[#allocation12_spill] sm:$0xff] }
 0x65a   : >> { %9349 = vmatprep.subr.bf16.mxu1 %v18862_v1  ;;  %v18880_v1 = vpack.c.bf16 %v18878_v13, %v18879_v51  ;;  %v18897_v51 = vld [vmem:[#allocation264_spill] sm:$0xff] }
 0x65b   : >> { %9244 = vmatpush1.bf16.msra.mxu0 %v18865_v47  ;;  %v18883_v47 = vpack.c.bf16 %v18881_v38, %v18882_v25  ;;  %v18900_v25 = vld [vmem:[#allocation49_spill] sm:$0xff] }
 0x65c   : >> { %9245 = vmatprep.subr.bf16.mxu0 %v18868_v45  ;;  %v18886_v45 = vpack.c.bf16 %v18884_v30, %v18885_v63  ;;  %v18904_v30 = vld [vmem:[#allocation185_spill] sm:$0xff] }
 0x65d   : >> { %9350 = vmatpush1.bf16.msra.mxu1 %v18871_v42  ;;  %v18889_v42 = vpack.c.bf16 %v18887_v43, %v18888_v6  ;;  %v18905_v63 = vpack.c.bf16 %v18903_v53, %v18904_v30  ;;  %v18907_v43 = vld [vmem:[#allocation301_spill] sm:$0xff]  ;;  %v18910_v6 = vld [vmem:[#allocation43_spill] sm:$0xff] }
 0x65e   : >> { %9351 = vmatprep.subr.bf16.mxu1 %v18874_v20  ;;  %v18892_v20 = vld [vmem:[#allocation165_spill] sm:$0xff] }
 0x65f   : >> { %9246 = vmatpush1.bf16.msra.mxu0 %v18877_v19  ;;  %v18893_v33 = vpack.c.bf16 %v18891_v57, %v18892_v20  ;;  %v18895_v19 = vld [vmem:[#allocation153_spill] sm:$0xff]  ;;  %v18915_v20 = vld [vmem:[#allocation298_spill] sm:$0xff] }
 0x660   : >> { %9247 = vmatprep.subr.bf16.mxu0 %v18880_v1  ;;  %v18896_v13 = vpack.c.bf16 %v16070_v39, %v18895_v19  ;;  %v18898_v1 = vld [vmem:[#allocation265_spill] sm:$0xff]  ;;  %v18911_v39 = vpack.c.bf16 %v18909_v3, %v18910_v6  ;;  %v18933_v6 = vld [vmem:[#allocation251_spill] sm:$0xff] }
 0x661   : >> { %9352 = vmatpush1.bf16.msra.mxu1 %v18883_v47  ;;  %v18899_v38 = vpack.c.bf16 %v18897_v51, %v18898_v1  ;;  %v18901_v47 = vld [vmem:[#allocation233_spill] sm:$0xff]  ;;  %v18921_v1 = vld [vmem:[#allocation38_spill] sm:$0xff] }
 0x662   : >> { %9353 = vmatprep.subr.bf16.mxu1 %v18886_v45  ;;  %v18902_v35 = vpack.c.bf16 %v18900_v25, %v18901_v47  ;;  %v18906_v45 = vld [vmem:[#allocation89_spill] sm:$0xff]  ;;  %v18924_v47 = vld [vmem:[#allocation92_spill] sm:$0xff] }
 0x663   : >> { %9248 = vmatpush1.bf16.msra.mxu0 %v18889_v42  ;;  %v18908_v46 = vpack.c.bf16 %v18906_v45, %v18907_v43  ;;  %v18912_v42 = vld [vmem:[#allocation200_spill] sm:$0xff]  ;;  %v18918_v19 = vld [vmem:[#allocation229_spill] sm:$0xff]  ;;  %v18930_v43 = vld [vmem:[#allocation94_spill] sm:$0xff] }
 0x664   : >> { %9249 = vmatprep.subr.bf16.mxu0 %v18890_v4  ;;  %v18913_v4 = vld [vmem:[#allocation23_spill] sm:$0xff]  ;;  %v18927_v30 = vld [vmem:[#allocation249_spill] sm:$0xff] }
 0x665   : >> { %9354 = vmatpush1.bf16.msra.mxu1 %v18893_v33  ;;  %v18914_v57 = vpack.c.bf16 %v18912_v42, %v18913_v4  ;;  %v18916_v33 = vld [vmem:[#allocation101_spill] sm:$0xff]  ;;  %v18936_v4 = vld [vmem:[#allocation15_spill] sm:$0xff] }
 0x666   : >> { %9355 = vmatprep.subr.bf16.mxu1 %v18894_v8  ;;  %v18917_v8 = vpack.c.bf16 %v18915_v20, %v18916_v33  ;;  %v18939_v33 = vld [vmem:[#allocation293_spill] sm:$0xff] }
 0x667   : >> { %9250 = vmatpush1.bf16.msra.mxu0 %v18896_v13  ;;  %v18919_v13 = vld [vmem:[#allocation239_spill] sm:$0xff] }
 0x668   : >> { %9251 = vmatprep.subr.bf16.mxu0 %v18899_v38  ;;  %v18920_v51 = vpack.c.bf16 %v18918_v19, %v18919_v13  ;;  %v18922_v38 = vld [vmem:[#allocation205_spill] sm:$0xff]  ;;  %v18942_v13 = vld [vmem:[#allocation102_spill] sm:$0xff] }
 0x669   : >> { %9356 = vmatpush1.bf16.msra.mxu1 %v18902_v35  ;;  %v18923_v25 = vpack.c.bf16 %v18921_v1, %v18922_v38  ;;  %v18925_v35 = vld [vmem:[#allocation79_spill] sm:$0xff] }
 0x66a   : >> { %9357 = vmatprep.subr.bf16.mxu1 %v18905_v63  ;;  %v18926_v53 = vpack.c.bf16 %v18924_v47, %v18925_v35  ;;  %v18928_v63 = vld [vmem:[#allocation253_spill] sm:$0xff]  ;;  %v18948_v38 = vld [vmem:[#allocation59_spill] sm:$0xff] }
 0x66b   : >> { %9252 = vmatpush1.bf16.msra.mxu0 %v18908_v46  ;;  %v18929_v45 = vpack.c.bf16 %v18927_v30, %v18928_v63  ;;  %v18931_v46 = vld [vmem:[#allocation215_spill] sm:$0xff] }
 0x66c   : >> { %9253 = vmatprep.subr.bf16.mxu0 %v18911_v39  ;;  %v18932_v3 = vpack.c.bf16 %v18930_v43, %v18931_v46  ;;  %v18934_v39 = vld [vmem:[#allocation56_spill] sm:$0xff]  ;;  %v10969_v35 = vld [vmem:[%s16789_s6 + $0x60] ss:$12 sps:$4 sm:$0xff]  }
 0x66d   : >> { %9358 = vmatpush1.bf16.msra.mxu1 %v18914_v57  ;;  %v18935_v42 = vpack.c.bf16 %v18933_v6, %v18934_v39  ;;  %v18937_v57 = vld [vmem:[#allocation34_spill] sm:$0xff] }
 0x66e   : >> { %9359 = vmatprep.subr.bf16.mxu1 %v18917_v8  ;;  %v18938_v20 = vpack.c.bf16 %v18936_v4, %v18937_v57  ;;  %v18940_v8 = vld [vmem:[#allocation81_spill] sm:$0xff] }
 0x66f   : >> { %9254 = vmatpush1.bf16.msra.mxu0 %v18920_v51  ;;  %v18941_v19 = vpack.c.bf16 %v18939_v33, %v18940_v8  ;;  %v18943_v51 = vld [vmem:[#allocation231_spill] sm:$0xff] }
 0x670   : >> { %9255 = vmatprep.subr.bf16.mxu0 %v18923_v25  ;;  %v18944_v11 = vpack.c.bf16 %v18942_v13, %v18943_v51  ;;  %v18949_v25 = vld [vmem:[#allocation96_spill] sm:$0xff] }
 0x671   : >> { %9360 = vmatpush1.bf16.msra.mxu1 %v18926_v53  ;;  %v18950_v7 = vpack.c.bf16 %v18948_v38, %v18949_v25 }
 0x672   : >> { %9361 = vmatprep.subr.bf16.mxu1 %v18929_v45 }
 0x673   : >> { %9256 = vmatpush1.bf16.msra.mxu0 %v18932_v3 }
 0x674   : >> { %9257 = vmatprep.subr.bf16.mxu0 %v8995_v60  ;;  %v18946_v60 = vld [vmem:[#allocation36_spill] sm:$0xff] }
 0x675   : >> { %9362 = vmatpush1.bf16.msra.mxu1 %v18935_v42  ;;  %v18947_v1 = vpack.c.bf16 %v18945_v21, %v18946_v60 }
 0x676   : >> { %9363 = vmatprep.subr.bf16.mxu1 %v8997_v55  ;;  %v18952_v55 = vld [vmem:[#allocation83_spill] sm:$0xff] }
 0x677   : >> { %9258 = vmatpush1.bf16.msra.mxu0 %v18938_v20  ;;  %v18953_v47 = vpack.c.bf16 %v18951_v40, %v18952_v55 }
 0x678   : >> { %9259 = vmatprep.subr.bf16.mxu0 %v18941_v19 }
 0x679   : >> { %9364 = vmatpush1.bf16.msra.mxu1 %v18944_v11 }
 0x67a   : >> { %9365 = vmatprep.subr.bf16.mxu1 %v18947_v1 }
 0x67b   : >> { %9260 = vmatpush1.bf16.msra.mxu0 %v18950_v7 }
 0x67c   : >> { %9261 = vmatprep.subr.bf16.mxu0 %v9049_v9 }
 0x67d   : >> { %9366 = vmatpush1.bf16.msra.mxu1 %v18953_v47 }
 0x67e   : >> { %9367 = vmatprep.subr.bf16.mxu1 %v9051_v26 }
 0x67f   : >> { %9262 = vmatpush1.bf16.msra.mxu0 %v9048_v49 }
 0x680   : >> { %9284 = vmatprep.subr.bf16.mxu0 %v9099_v58 }
 0x681   : >> { %9368 = vmatpush1.bf16.msra.mxu1 %v9050_v50 }
 0x682   : >> { %9390 = vmatprep.subr.bf16.mxu1 %v9101_v5  ;;  %9264 = vmatmul.mubr.bf16.vlgmr.msra.gmra.mrb[8].mxu0 %v10969_v35 }
 0x683   : >> { %9285 = vmatpush1.bf16.msra.mxu0 %v18954_v12  ;;  %9273 = vmatprep.mubr.bf16.mxu0 %v10972_v22 }
 0x684   : >> { %9370 = vmatmul.mubr.bf16.vlgmr.msra.gmra.mrb[8].mxu1 %v10969_v35  ;;  %9286 = vmatprep.subr.bf16.mxu0 %v9103_v29 }
 0x685   : >> { %9391 = vmatpush1.bf16.msra.mxu1 %v18955_v59  ;;  %9379 = vmatprep.mubr.bf16.mxu1 %v10972_v22 }
 0x686   : >> { %9392 = vmatprep.subr.bf16.mxu1 %v9105_v54 }
 0x687   : >> { %9287 = vmatpush1.bf16.msra.mxu0 %v9102_v24  ;;  %v9476_v24 = vpop.permute.xlu1 %9475 }
 0x689   : >> { %9393 = vmatpush1.bf16.msra.mxu1 %v9104_v14 }
 0x68a   : >> { %9274 = vmatmul.mubr.bf16.gmra.mrb[12].mxu0 %v10974_v44 }
 0x68b   : >> { %9316 = vmatprep.mubr.bf16.mxu0 %v18784_v61 }
 0x68c   : >> { %9380 = vmatmul.mubr.bf16.gmra.mrb[12].mxu1 %v10974_v44 }
 0x68d   : >> { %9422 = vmatprep.mubr.bf16.mxu1 %v18784_v61 }
 0x692   : >> { %10305 = vmatmul.mubr.msk.bf16.vlgmr.msra.gmra.mrb[8].mxu0 %vm8161_vm3, %v10975_v16 }
 0x693   : >> { %9326 = vmatprep.mubr.bf16.mxu0 %v18784_v61 }
 0x694   : >> { %10307 = vmatmul.mubr.msk.bf16.vlgmr.msra.gmra.mrb[8].mxu1 %vm8161_vm3, %v10975_v16 }
 0x695   : >> { %9432 = vmatprep.mubr.bf16.mxu1 %v18784_v61 }
 0x69a   : >> { %10306 = vmatmul.mubr.msk.bf16.gmra.mrb[12].mxu0 %vm8161_vm3, %v10976_v2 }
 0x69b   : >> { %9661 = vmatprep.mubr.bf16.mxu0 %v18784_v61 }
 0x69c   : >> { %10308 = vmatmul.mubr.msk.bf16.gmra.mrb[12].mxu1 %vm8161_vm3, %v10976_v2 }
 0x69d   : >> { %9702 = vmatprep.mubr.bf16.mxu1 %v18784_v61  ;;  %v9481_v61 = vpop.permute.xlu0 %9480 }
 0x765   : >> { %v9318_v18 = vpop.f32.mrb[8].mxu0 }
 0x766   : >> { %v16683_v15 = vadd.f32 %v9466_v10, %v9318_v18  ;;  %v9320_v41 = vpop.f32.mrb[9].mxu0 }
 0x767   : >> { %v9424_v32 = vpop.f32.mrb[8].mxu1  ;;  %v16685_v52 = vadd.f32 %v9466_v10, %v9320_v41  ;;  %v9322_v0 = vpop.f32.mrb[10].mxu0 }
 0x768   : >> { %v16687_v17 = vadd.f32 %v9466_v10, %v9424_v32  ;;  %v9426_v49 = vpop.f32.mrb[9].mxu1  ;;  %v10309_v27 = vmul.f32 -1.442695, %v16683_v15  ;;  %v16690_v36 = vadd.f32 %v9471_v37, %v9322_v0  ;;  %v9324_v9 = vpop.f32.mrb[11].mxu0 }
 0x769   : >> { %v16692_v50 = vadd.f32 %v9466_v10, %v9426_v49  ;;  %v9428_v26 = vpop.f32.mrb[10].mxu1  ;;  %v10310_v58 = vmul.f32 -1.442695, %v16685_v52  ;;  %v16696_v56 = vadd.f32 %v9471_v37, %v9324_v9 }
 0x76a   : >> { %v10311_v5 = vmul.f32 -1.442695, %v16687_v17  ;;  %v16698_v34 = vadd.f32 %v9471_v37, %v9428_v26  ;;  %v9430_v31 = vpop.f32.mrb[11].mxu1  ;;  %11041 = vpow2.f32 %v10309_v27  ;;  %v10313_v23 = vmul.f32 -1.442695, %v16690_v36 }
 0x76b   : >> { %v10312_v62 = vmul.f32 -1.442695, %v16692_v50  ;;  %v16702_v48 = vadd.f32 %v9471_v37, %v9430_v31  ;;  %11043 = vpow2.f32 %v10310_v58  ;;  %v10314_v54 = vmul.f32 -1.442695, %v16696_v56 }
 0x76c   : >> { %11045 = vpow2.f32 %v10311_v5  ;;  %v10315_v28 = vmul.f32 -1.442695, %v16698_v34 }
 0x76d   : >> { %11047 = vpow2.f32 %v10313_v23  ;;  %v10316_v29 = vmul.f32 -1.442695, %v16702_v48  ;;  %v9328_v14 = vpop.f32.mrb[12].mxu0 }
 0x76e   : >> { %11049 = vpow2.f32 %v10312_v62  ;;  %v16707_v53 = vadd.f32 %v9476_v24, %v9328_v14  ;;  %v9330_v30 = vpop.f32.mrb[13].mxu0 }
 0x76f   : >> { %v9434_v63 = vpop.f32.mrb[12].mxu1  ;;  %11051 = vpow2.f32 %v10314_v54  ;;  %v16709_v45 = vadd.f32 %v9476_v24, %v9330_v30  ;;  %v9332_v46 = vpop.f32.mrb[14].mxu0 }
 0x770   : >> { %v16711_v43 = vadd.f32 %v9476_v24, %v9434_v63  ;;  %v9436_v3 = vpop.f32.mrb[13].mxu1  ;;  %11053 = vpow2.f32 %v10315_v28  ;;  %v10317_v6 = vmul.f32 -1.442695, %v16707_v53  ;;  %v16714_v39 = vadd.f32 %v9481_v61, %v9332_v46  ;;  %v9334_v42 = vpop.f32.mrb[15].mxu0 }
 0x771   : >> { %v9438_v4 = vpop.f32.mrb[14].mxu1  ;;  %11055 = vpow2.f32 %v10316_v29  ;;  %v10318_v57 = vmul.f32 -1.442695, %v16709_v45  ;;  %v16719_v38 = vadd.f32 %v9476_v24, %v9436_v3  ;;  %v16722_v2 = vadd.f32 %v9481_v61, %v9334_v42 }
 0x772   : >> { %v9440_v20 = vpop.f32.mrb[15].mxu1  ;;  %11057 = vpow2.f32 %v10317_v6  ;;  %v10319_v33 = vmul.f32 -1.442695, %v16711_v43  ;;  %v10321_v8 = vmul.f32 -1.442695, %v16714_v39  ;;  %v16724_v37 = vadd.f32 %v9481_v61, %v9438_v4 }
 0x773   : >> { %11059 = vpow2.f32 %v10318_v57  ;;  %v10320_v59 = vmul.f32 -1.442695, %v16719_v38  ;;  %v16726_v41 = vadd.f32 %v9481_v61, %v9440_v20  ;;  %v10322_v27 = vmul.f32 -1.442695, %v16722_v2 }
 0x774   : >> { %v11042_v19 = vpop.eup %11041  ;;  %11061 = vpow2.f32 %v10321_v8  ;;  %v10323_v26 = vmul.f32 -1.442695, %v16724_v37 }
 0x775   : >> { %v11044_v13 = vpop.eup %11043  ;;  %v9547_v51 = vadd.f32 1.0, %v11042_v19  ;;  %11063 = vpow2.f32 %v10319_v33  ;;  %v10324_v5 = vmul.f32 -1.442695, %v16726_v41 }
 0x776   : >> { %v11046_v11 = vpop.eup %11045  ;;  %v9548_v21 = vadd.f32 1.0, %v11044_v13 }
 0x777   : >> { %v11048_v60 = vpop.eup %11047  ;;  %11065 = vrcp.f32 %v9547_v51  ;;  %v9549_v1 = vadd.f32 1.0, %v11046_v11 }
 0x778   : >> { %v11050_v25 = vpop.eup %11049  ;;  %11067 = vrcp.f32 %v9548_v21  ;;  %v9551_v7 = vadd.f32 1.0, %v11048_v60 }
 0x779   : >> { %v11052_v40 = vpop.eup %11051  ;;  %11069 = vrcp.f32 %v9549_v1  ;;  %v9550_v55 = vadd.f32 1.0, %v11050_v25 }
 0x77a   : >> { %v11054_v47 = vpop.eup %11053  ;;  %11071 = vrcp.f32 %v9551_v7  ;;  %v9552_v35 = vadd.f32 1.0, %v11052_v40 }
 0x77b   : >> { %v11056_v22 = vpop.eup %11055  ;;  %11073 = vrcp.f32 %v9550_v55  ;;  %v9553_v12 = vadd.f32 1.0, %v11054_v47 }
 0x77c   : >> { %v11058_v44 = vpop.eup %11057  ;;  %11075 = vrcp.f32 %v9552_v35  ;;  %v9554_v16 = vadd.f32 1.0, %v11056_v22 }
 0x77d   : >> { %11077 = vrcp.f32 %v9553_v12  ;;  %v9555_v10 = vadd.f32 1.0, %v11058_v44  ;;  %v11060_v18 = vpop.eup %11059 }
 0x77e   : >> { %11079 = vrcp.f32 %v9554_v16  ;;  %v11062_v32 = vpop.eup %11061  ;;  %v9556_v20 = vadd.f32 1.0, %v11060_v18  ;;  %v9721_v18 = vstv %s16753_s16 }
 0x77f   : >> { %11081 = vpow2.f32 %v10320_v59  ;;  %v11064_v0 = vpop.eup %11063  ;;  %v9559_v49 = vadd.f32 1.0, %v11062_v32 }
 0x780   : >> { %11083 = vrcp.f32 %v9555_v10  ;;  %v9557_v33 = vadd.f32 1.0, %v11064_v0 }
 0x781   : >> { %v11066_v9 = vpop.eup %11065  ;;  %11085 = vrcp.f32 %v9559_v49 }
 0x782   : >> { %v11068_v58 = vpop.eup %11067  ;;  %11087 = vpow2.f32 %v10322_v27  ;;  %v9595_v54 = vmul.f32 %v11066_v9, %v16683_v15 }
 0x783   : >> { %v11070_v31 = vpop.eup %11069  ;;  %11089 = vpow2.f32 %v10323_v26  ;;  %v9596_v29 = vmul.f32 %v11068_v58, %v16685_v52  ;;  %v11107_v58 = vld [vmem:[#allocation2] sm:$0xff] }
 0x784   : >> { %v11072_v23 = vpop.eup %11071  ;;  %11091 = vpow2.f32 %v10324_v5  ;;  %v9597_v46 = vmul.f32 %v11070_v31, %v16687_v17  ;;  %v9722_v5 = vmul.f32 %v11107_v58, %v9721_v18 }
 0x785   : >> { %v11074_v62 = vpop.eup %11073  ;;  %v9599_v24 = vmul.f32 %v11072_v23, %v16690_v36  ;;  %11093 = vrcp.f32 %v9556_v20 }
 0x786   : >> { %v11076_v28 = vpop.eup %11075  ;;  %v9598_v42 = vmul.f32 %v11074_v62, %v16692_v50  ;;  %11095 = vrcp.f32 %v9557_v33 }
 0x787   : >> { %v11078_v61 = vpop.eup %11077  ;;  %v9612_v14 = vpack.c.bf16 %v9599_v24, %v9595_v54  ;;  %v9600_v30 = vmul.f32 %v11076_v28, %v16696_v56 }
 0x788   : >> { %v11080_v63 = vpop.eup %11079  ;;  %v9601_v3 = vmul.f32 %v11078_v61, %v16698_v34  ;;  %v11108_v61 = vld [vmem:[#allocation2 + $0x8] sm:$0xff] }
 0x789   : >> { %v11082_v6 = vpop.eup %11081  ;;  %v9602_v15 = vmul.f32 %v11080_v63, %v16702_v48  ;;  %v9613_v36 = vpack.c.bf16 %v9600_v30, %v9596_v29  ;;  %v9723_v29 = vmul.f32 %v11108_v61, %v9721_v18  ;;  %v9746_v30 = vstv %s16755_s18 }
 0x78a   : >> { %v11084_v4 = vpop.eup %11083  ;;  %v9614_v57 = vpack.c.bf16 %v9601_v3, %v9597_v46  ;;  %v9558_v19 = vadd.f32 1.0, %v11082_v6  ;;  %v9754_v3 = vld [vmem:[%s9753_s5] sm:$0xff]  ;;  %v9756_v6 = vstv %s16757_s19 }
 0x78b   : >> { %9629 = vmatprep.subr.bf16.mxu0 %v9613_v36  ;;  %v9615_v52 = vpack.c.bf16 %v9602_v15, %v9598_v42  ;;  %v11086_v8 = vpop.eup %11085  ;;  %v9603_v56 = vmul.f32 %v11084_v4, %v16707_v53  ;;  %v9743_v42 = vstv %s16759_s28  ;;  %v9747_v36 = vmul.f32 %v11107_v58, %v9746_v30 }
 0x78c   : >> { %9630 = vmatpush1.bf16.msra.mxu0 %v9612_v14  ;;  %v9607_v17 = vmul.f32 %v11086_v8, %v16714_v39  ;;  %v11088_v34 = vpop.eup %11087  ;;  %11097 = vrcp.f32 %v9558_v19  ;;  %v9757_v20 = vmul.f32 %v9756_v6, %v9754_v3  ;;  %v9748_v8 = vmul.f32 %v11108_v61, %v9746_v30 }
 0x78d   : >> { %9670 = vmatprep.subr.bf16.mxu1 %v9615_v52  ;;  %v11090_v50 = vpop.eup %11089  ;;  %v9560_v13 = vadd.f32 1.0, %v11088_v34 }
 0x78e   : >> { %9671 = vmatpush1.bf16.msra.mxu1 %v9614_v57  ;;  %v9616_v48 = vpack.c.bf16 %v9607_v17, %v9603_v56  ;;  %v11092_v51 = vpop.eup %11091  ;;  %v9561_v11 = vadd.f32 1.0, %v11090_v50  ;;  %v9755_v57 = vld [vmem:[%s9753_s5 + $0x8] sm:$0xff] }
 0x78f   : >> { %11099 = vrcp.f32 %v9560_v13  ;;  %v9562_v21 = vadd.f32 1.0, %v11092_v51  ;;  %v11094_v60 = vpop.eup %11093  ;;  %v9758_v19 = vmul.f32 %v9756_v6, %v9755_v57 }
 0x790   : >> { %11101 = vrcp.f32 %v9561_v11  ;;  %v11096_v1 = vpop.eup %11095  ;;  %v9604_v7 = vmul.f32 %v11094_v60, %v16709_v45  ;;  %v9611_v45 = vld [vmem:[%s16791_s8] sm:$0x3] }
 0x791   : >> { %11103 = vrcp.f32 %v9562_v21  ;;  %v9605_v47 = vmul.f32 %v11096_v1, %v16711_v43  ;;  %v9624_v43 = vpop.permute.xlu1 %9623 }
 0x796   : >> { %v11098_v53 = vpop.eup %11097 }
 0x797   : >> { %v9606_v22 = vmul.f32 %v11098_v53, %v16719_v38 }
 0x799   : >> { %v11100_v25 = vpop.eup %11099 }
 0x79a   : >> { %v11102_v39 = vpop.eup %11101  ;;  %v9608_v40 = vmul.f32 %v11100_v25, %v16722_v2  ;;  %v9724_v2 = vstv %s9714_s24 }
 0x79b   : >> { %v11104_v55 = vpop.eup %11103  ;;  %v9609_v35 = vmul.f32 %v11102_v39, %v16724_v37 }
 0x79c   : >> { %v9610_v12 = vmul.f32 %v11104_v55, %v16726_v41  ;;  %v9617_v59 = vpack.c.bf16 %v9608_v40, %v9604_v7 }
 0x79d   : >> { %v9618_v44 = vpack.c.bf16 %v9609_v35, %v9605_v47 }
 0x79e   : >> { %9631 = vmatprep.subr.bf16.mxu0 %v9617_v59  ;;  %v9619_v16 = vpack.c.bf16 %v9610_v12, %v9606_v22 }
 0x79f   : >> { %9632 = vmatpush1.bf16.msra.mxu0 %v9616_v48 }
 0x7a0   : >> { %9672 = vmatprep.subr.bf16.mxu1 %v9619_v16 }
 0x7a1   : >> { %9673 = vmatpush1.bf16.msra.mxu1 %v9618_v44 }
 0x7a2   : >> { %10325 = vmatmul.mubr.msk.bf16.vlgmr.msra.gmra.mrb[16].mxu0 %vm8161_vm3, %v9611_v45 }
 0x7a4   : >> { %10326 = vmatmul.mubr.msk.bf16.vlgmr.msra.gmra.mrb[16].mxu1 %vm8161_vm3, %v9611_v45 }
 0x875   : >> { %v9663_v38 = vpop.f32.mrb[16].mxu0 }
 0x876   : >> { %v9664_v10 = vadd.f32 %v9663_v38, %v9624_v43  ;;  %v9665_v37 = vpop.f32.mrb[17].mxu0 }
 0x877   : >> { %v9666_v41 = vadd.f32 %v9665_v37, %v9624_v43  ;;  %v9704_v32 = vpop.f32.mrb[16].mxu1  ;;  %v9667_v0 = vpop.f32.mrb[18].mxu0 }
 0x878   : >> { %v9725_v49 = vmul.f32 %v9724_v2, %v9664_v10  ;;  %v9705_v27 = vadd.f32 %v9704_v32, %v9624_v43  ;;  %v9706_v9 = vpop.f32.mrb[17].mxu1  ;;  %v9668_v26 = vpop.f32.mrb[19].mxu0 }
 0x879   : >> { %v9726_v31 = vmul.f32 %v9724_v2, %v9666_v41  ;;  %v9707_v23 = vadd.f32 %v9706_v9, %v9624_v43  ;;  %v9708_v62 = vpop.f32.mrb[18].mxu1 }
 0x87a   : >> { %v9727_v54 = vmul.f32 %v9724_v2, %v9705_v27  ;;  %v9709_v24 = vpop.f32.mrb[19].mxu1 }
 0x87b   : >> { %v9733_v28 = vcombine.low %v9725_v49, %v9726_v31  ;;  %v9728_v14 = vmul.f32 %v9724_v2, %v9707_v23 }
 0x87d   : >> { %v9737_v63 = vsub.f32 %v9722_v5, %v9733_v28  ;;  %v9734_v46 = vcombine.low %v9727_v54, %v9728_v14 }
 0x87f   : >> { %v10328_v15 = vclamps-f32 %v9737_v63, 1.0  ;;  %v9738_v4 = vsub.f32 %v9723_v29, %v9734_v46 }
 0x881   : >> { %v9744_v33 = vmul.f32 %v10328_v15, %v9743_v42  ;;  %v10329_v52 = vclamps-f32 %v9738_v4, 1.0 }
 0x883   : >> { %v9749_v56 = vadd.f32 %v9747_v36, %v9744_v33  ;;  %v9745_v17 = vmul.f32 %v10329_v52, %v9743_v42  ;;  %453 = sbr.rel (!%p451_p6) target bundleno = 79 (0x4f), region = 188 }
 0x885   : >> { %v9759_v34 = vadd.f32 %v9757_v20, %v9749_v56  ;;  %v9750_v50 = vadd.f32 %v9748_v8, %v9745_v17 }
 0x887   : >> { %9761 = vst [vmem:[#allocation2] sm:$0xff] %v9759_v34  ;;  %v9760_v48 = vadd.f32 %v9758_v19, %v9750_v50 }
 0x889   : >> { %9762 = vst [vmem:[#allocation2 + $0x8] sm:$0xff] %v9760_v48 }
 0x88e   : > { %v9763_v13 = vld [vmem:[#allocation2] sm:$0xff] }
 0x88f   : > { %9765 = vst [vmem:[%s11326_s29] sm:$0xff] %v9763_v13 }
 0x890   : > { %v9764_v51 = vld [vmem:[#allocation2 + $0x8] sm:$0xff] }
 0x891   : > { %9766 = vst [vmem:[%s11326_s29 + $0x8] sm:$0xff] %v9764_v51 }
 0x892 PF: > { %p18_p7 = scmp.ge.s32.totalorder %s11253_s17, 4   ;;  %s18957_s13 = smov %s11150_s14 }
 0x893   : > { %s18958_s14 = smov %s11263_s20  ;;  %s18959_s15 = smov %s11253_s17 }
 0x894   :  { %20 = sbr.rel (!%p18_p7) target bundleno = 9 (0x9), region = 199 }
 0x89b   :  { %9788 = vsyncpa [#allocation5], 1 }
 0x89c   :  { %9790 = vsyncpa [#allocation5 + $0x1], 1 }

</bundles_post_ra>
